<compile_context>
chip_gen: v6e
topology: v6e:2x2x1
jax: 0.10.0
libtpu: 0.0.40
codegen_flags: <defaults>
</compile_context>

<pallas_src>
import jax
import jax.numpy as jnp
from jax import lax
from jax.experimental import pallas as pl
from jax.experimental.pallas import tpu as pltpu

# ---------------------------------------------------------------------------
# model hyper-parameters (small, consistent with the module's __init__)
# ---------------------------------------------------------------------------
B = 2            # batch
S_SRC = 8        # source sequence length
T_TGT = 9        # target sequence length (decoder consumes tgt[:, :-1] -> 8)
D = 32           # d_model
HEADS = 4
DK = D // HEADS
D_FF = 64
VOCAB = 20       # vocab_size_src == vocab_size_tgt (shared_vocab=True)
VOCAB_PAD = 128  # lane-dense padded vocab for the generator
PAD_IDX = 1
N_NODES = 8      # max nodes per graph (padded)
NODE_DIM = 9     # raw atom feature dim
EDGE_DIM = 7     # raw bond feature dim (matches embedding_bond = Linear(7, d))
N_EDGES = 12
ENC_LAYERS = 2   # encoder_num_layers
DEC_LAYERS = 2   # decoder_num_layers
N_TEXT = ENC_LAYERS // 2            # text_encoder layers
N_ENC = ENC_LAYERS - N_TEXT         # graph-aware encoder layers
N_DEC = DEC_LAYERS

NEG = -1e9
_ARB1 = pltpu.CompilerParams(dimension_semantics=("arbitrary",))


# ---------------------------------------------------------------------------
# in-kernel helpers (traced inside Pallas kernel bodies)
# ---------------------------------------------------------------------------
def _ln(x2, g, b, eps=1e-5):
    """Layer norm over the last axis of a 2-D (rows, D) tile."""
    mu = jnp.mean(x2, axis=-1, keepdims=True)
    var = jnp.mean(jnp.square(x2 - mu), axis=-1, keepdims=True)
    return (x2 - mu) * lax.rsqrt(var + eps) * g + b


def _heads_attention(q2, k2, v2, wo, bo, mask, b, sq, sk, want_probs=False):
    """Multi-head attention on flat 2-D projections.

    q2: (b*sq, D), k2/v2: (b*sk, D), wo: (D, D), bo: (1, D),
    mask: additive, broadcastable to (b, sq, sk).
    Returns ((b*sq, D) output-projected context, head-summed probs or None).
    """
    d = wo.shape[1]
    dk = d // HEADS
    scale = 1.0 / (dk ** 0.5)
    out = jnp.zeros((b * sq, d), jnp.float32)
    psum = None
    for h in range(HEADS):           # static unroll over heads
        q = q2[:, h * dk:(h + 1) * dk].reshape(b, sq, dk)
        k = k2[:, h * dk:(h + 1) * dk].reshape(b, sk, dk)
        v = v2[:, h * dk:(h + 1) * dk].reshape(b, sk, dk)
        s = jnp.einsum("bqd,bkd->bqk", q, k,
                       preferred_element_type=jnp.float32) * scale + mask
        s = s - jnp.max(s, axis=-1, keepdims=True)
        p = jnp.exp(s)
        p = p / jnp.sum(p, axis=-1, keepdims=True)
        ctx = jnp.einsum("bqk,bkd->bqd", p, v,
                         preferred_element_type=jnp.float32)
        out = out + jnp.dot(ctx.reshape(b * sq, dk),
                            wo[h * dk:(h + 1) * dk, :],
                            preferred_element_type=jnp.float32)
        if want_probs:
            psum = p if psum is None else psum + p
    return out + bo, psum


def _encoder_layer(x2, mask, b, s, d,
                   wqkv, bqkv, wo, bo, g1, e1, g2, e2, w1, c1, w2, c2):
    """One pre-LN transformer encoder layer on flat (b*s, d) activations."""
    xn = _ln(x2, g1, e1)
    qkv = jnp.dot(xn, wqkv, preferred_element_type=jnp.float32) + bqkv
    a_out, _ = _heads_attention(qkv[:, :d], qkv[:, d:2 * d], qkv[:, 2 * d:],
                                wo, bo, mask, b, s, s)
    x2 = x2 + a_out
    xn = _ln(x2, g2, e2)
    hh = jnp.maximum(jnp.dot(xn, w1, preferred_element_type=jnp.float32) + c1, 0.0)
    return x2 + jnp.dot(hh, w2, preferred_element_type=jnp.float32) + c2


# ---------------------------------------------------------------------------
# kernel 1: graph encoder (+ RC heads) fused into the text-encoder stack
# ---------------------------------------------------------------------------
def _text_graph_kernel(x_ref, bias_ref,
                       nf_ref, adj_ref, valid_ref, edge_ref,
                       wni_ref, bni_ref, wmsg_ref, bmsg_ref, glng_ref, glnb_ref,
                       warc_ref, barc_ref, wei_ref, bei_ref, wbrc_ref, bbrc_ref,
                       wqkv_ref, bqkv_ref, wo_ref, bo_ref,
                       g1_ref, e1_ref, g2_ref, e2_ref,
                       w1_ref, c1_ref, w2_ref, c2_ref,
                       gf_ref, efb_ref,
                       txt_ref, gemb_ref, arc_ref, brc_ref,
                       acc_ref):
    l = pl.program_id(0)

    @pl.when(l == 0)
    def _():
        acc_ref[...] = x_ref[...]

        # --- graph branch (independent of the text layers; done once) ---
        # TODO(synk): GatedGCNNet.embedd_nodes internals are not in the reference;
        # replaced by linear node/edge embeddings + one residual GCN message step.
        b, n, d = gemb_ref.shape
        nf2 = nf_ref[...].reshape(b * n, nf_ref.shape[-1])
        h0 = jnp.dot(nf2, wni_ref[...], preferred_element_type=jnp.float32) + bni_ref[...]
        msg = jnp.einsum("bij,bjd->bid", adj_ref[...], h0.reshape(b, n, d),
                         preferred_element_type=jnp.float32).reshape(b * n, d)
        h = jnp.maximum(jnp.dot(msg, wmsg_ref[...], preferred_element_type=jnp.float32)
                        + bmsg_ref[...], 0.0) + h0
        hn = _ln(h, glng_ref[...], glnb_ref[...])
        emb = hn.reshape(b, n, d) * valid_ref[...][:, :, None]   # zero-pad like reference
        gemb_ref[...] = emb

        # atom reaction-center head (Linear + Sigmoid)
        a = jnp.dot(emb.reshape(b * n, d), warc_ref[...],
                    preferred_element_type=jnp.float32) + barc_ref[...]
        arc_ref[...] = (1.0 / (1.0 + jnp.exp(-a))).reshape(b, n, 1)

        # bond embedding + bond reaction-center head (Linear + Sigmoid)
        e = jnp.dot(edge_ref[...], wei_ref[...],
                    preferred_element_type=jnp.float32) + bei_ref[...]
        r = jnp.dot(e, wbrc_ref[...], preferred_element_type=jnp.float32) + bbrc_ref[...]
        brc_ref[...] = 1.0 / (1.0 + jnp.exp(-r))

    # --- text encoder layer l (pre-LN, residual) ---
    b, s, d = acc_ref.shape
    x2 = acc_ref[...].reshape(b * s, d)
    mask = bias_ref[...][:, None, :]            # (B, 1, S) additive key bias
    x2 = _encoder_layer(x2, mask, b, s, d,
                        wqkv_ref[0], bqkv_ref[0], wo_ref[0], bo_ref[0],
                        g1_ref[0], e1_ref[0], g2_ref[0], e2_ref[0],
                        w1_ref[0], c1_ref[0], w2_ref[0], c2_ref[0])
    acc_ref[...] = x2.reshape(b, s, d)

    @pl.when(l == pl.num_programs(0) - 1)
    def _():
        txt_ref[...] = _ln(x2, gf_ref[...], efb_ref[...]).reshape(b, s, d)


def fused_text_and_graph(params, x, key_bias, node_feats, adj, node_valid, edge_feats):
    b, s, d = x.shape
    n = node_feats.shape[1]
    e = edge_feats.shape[0]
    p = params["text_encoder"]
    nl = p["wqkv"].shape[0]
    stk = lambda a: pl.BlockSpec((1,) + a.shape[1:], lambda l: (l, 0, 0))
    c3 = lambda shape: pl.BlockSpec(shape, lambda l: (0, 0, 0))
    c2 = lambda shape: pl.BlockSpec(shape, lambda l: (0, 0))
    return pl.pallas_call(
        _text_graph_kernel,
        out_shape=(jax.ShapeDtypeStruct((b, s, d), jnp.float32),   # text_out
                   jax.ShapeDtypeStruct((b, n, d), jnp.float32),   # graph_embed
                   jax.ShapeDtypeStruct((b, n, 1), jnp.float32),   # atom_rc
                   jax.ShapeDtypeStruct((e, 1), jnp.float32)),     # bond_rc
        grid=(nl,),
        in_specs=[c3((b, s, d)), c2((b, s)),
                  c3((b, n, NODE_DIM)), c3((b, n, n)), c2((b, n)), c2((e, EDGE_DIM)),
                  c2((NODE_DIM, D)), c2((1, D)), c2((D, D)), c2((1, D)),
                  c2((1, D)), c2((1, D)),
                  c2((D, 1)), c2((1, 1)),
                  c2((EDGE_DIM, D)), c2((1, D)), c2((D, 1)), c2((1, 1)),
                  stk(p["wqkv"]), stk(p["bqkv"]), stk(p["wo"]), stk(p["bo"]),
                  stk(p["ln1_g"]), stk(p["ln1_b"]), stk(p["ln2_g"]), stk(p["ln2_b"]),
                  stk(p["w1"]), stk(p["b1"]), stk(p["w2"]), stk(p["b2"]),
                  c2((1, d)), c2((1, d))],
        out_specs=(c3((b, s, d)), c3((b, n, d)), c3((b, n, 1)), c2((e, 1))),
        scratch_shapes=[pltpu.VMEM((b, s, d), jnp.float32)],
        compiler_params=_ARB1,
    )(x, key_bias,
      node_feats, adj, node_valid, edge_feats,
      params["gnn_node_in_w"], params["gnn_node_in_b"],
      params["gnn_msg_w"], params["gnn_msg_b"],
      params["gnn_ln_g"], params["gnn_ln_b"],
      params["atom_rc_w"], params["atom_rc_b"],
      params["gnn_edge_in_w"], params["gnn_edge_in_b"],
      params["bond_rc_w"], params["bond_rc_b"],
      p["wqkv"], p["bqkv"], p["wo"], p["bo"],
      p["ln1_g"], p["ln1_b"], p["ln2_g"], p["ln2_b"],
      p["w1"], p["b1"], p["w2"], p["b2"],
      p["lnf_g"], p["lnf_b"])


# ---------------------------------------------------------------------------
# kernel 2: cross-modal similarity + graph-aware encoder stack
# ---------------------------------------------------------------------------
def _cross_encoder_kernel(t_ref, g_ref, gmask_ref, bias_ref,
                          wz1_ref, bz1_ref, wz2_ref, bz2_ref,
                          wqkv_ref, bqkv_ref, wo_ref, bo_ref,
                          g1_ref, e1_ref, g2_ref, e2_ref,
                          w1_ref, c1_ref, w2_ref, c2_ref,
                          gf_ref, efb_ref,
                          o_ref, acc_ref):
    l = pl.program_id(0)
    b, sn, d = acc_ref.shape
    s = t_ref.shape[1]
    n = g_ref.shape[1]

    @pl.when(l == 0)
    def _():
        # gnn_z MLP + masked double-softmax weighting of the graph embedding
        g2d = g_ref[...].reshape(b * n, d)
        z = jnp.maximum(jnp.dot(g2d, wz1_ref[...], preferred_element_type=jnp.float32)
                        + bz1_ref[...], 0.0)
        z = jnp.dot(z, wz2_ref[...], preferred_element_type=jnp.float32) + bz2_ref[...]
        z3 = z.reshape(b, n, d)

        madd = gmask_ref[...]                                       # (B, N), -1e18 at pads
        sim = jnp.einsum("bsd,bnd->bsn", t_ref[...], z3,
                         preferred_element_type=jnp.float32) + madd[:, None, :]
        sim = sim - jnp.max(sim, axis=-1, keepdims=True)
        p = jnp.exp(sim)
        p = p / jnp.sum(p, axis=-1, keepdims=True)                  # softmax over nodes
        srow = jnp.sum(p, axis=1)                                   # sum over seq -> (B, N)
        srow = jnp.where(madd < 0.0, -1e18, srow)                   # re-mask padded nodes
        srow = srow - jnp.max(srow, axis=-1, keepdims=True)
        w = jnp.exp(srow)
        w = w / jnp.sum(w, axis=-1, keepdims=True)                  # (B, N)

        # TODO(synk): exact fusion of graph_embed inside the reference
        # TransformerEncoder is not given; graph tokens are appended to the
        # sequence for self-attention and stripped at the end.
        acc_ref[:, :s, :] = t_ref[...]
        acc_ref[:, s:, :] = w[:, :, None] * g_ref[...]

    # --- graph-aware encoder layer l ---
    x2 = acc_ref[...].reshape(b * sn, d)
    mask = bias_ref[...][:, None, :]            # (B, 1, S+N)
    x2 = _encoder_layer(x2, mask, b, sn, d,
                        wqkv_ref[0], bqkv_ref[0], wo_ref[0], bo_ref[0],
                        g1_ref[0], e1_ref[0], g2_ref[0], e2_ref[0],
                        w1_ref[0], c1_ref[0], w2_ref[0], c2_ref[0])
    acc_ref[...] = x2.reshape(b, sn, d)

    @pl.when(l == pl.num_programs(0) - 1)
    def _():
        xn = _ln(x2, gf_ref[...], efb_ref[...]).reshape(b, sn, d)
        o_ref[...] = xn[:, :s, :]               # only the text positions leave VMEM


def fused_cross_encoder(params, text_out, graph_embed, graph_bias18, enc_bias):
    b, s, d = text_out.shape
    n = graph_embed.shape[1]
    sn = s + n
    p = params["encoder"]
    nl = p["wqkv"].shape[0]
    stk = lambda a: pl.BlockSpec((1,) + a.shape[1:], lambda l: (l, 0, 0))
    c3 = lambda shape: pl.BlockSpec(shape, lambda l: (0, 0, 0))
    c2 = lambda shape: pl.BlockSpec(shape, lambda l: (0, 0))
    return pl.pallas_call(
        _cross_encoder_kernel,
        out_shape=jax.ShapeDtypeStruct((b, s, d), jnp.float32),
        grid=(nl,),
        in_specs=[c3((b, s, d)), c3((b, n, d)), c2((b, n)), c2((b, sn)),
                  c2((D, D)), c2((1, D)), c2((D, D)), c2((1, D)),
                  stk(p["wqkv"]), stk(p["bqkv"]), stk(p["wo"]), stk(p["bo"]),
                  stk(p["ln1_g"]), stk(p["ln1_b"]), stk(p["ln2_g"]), stk(p["ln2_b"]),
                  stk(p["w1"]), stk(p["b1"]), stk(p["w2"]), stk(p["b2"]),
                  c2((1, d)), c2((1, d))],
        out_specs=c3((b, s, d)),
        scratch_shapes=[pltpu.VMEM((b, sn, d), jnp.float32)],
        compiler_params=_ARB1,
    )(text_out, graph_embed, graph_bias18, enc_bias,
      params["gnn_z1_w"], params["gnn_z1_b"], params["gnn_z2_w"], params["gnn_z2_b"],
      p["wqkv"], p["bqkv"], p["wo"], p["bo"],
      p["ln1_g"], p["ln1_b"], p["ln2_g"], p["ln2_b"],
      p["w1"], p["b1"], p["w2"], p["b2"],
      p["lnf_g"], p["lnf_b"])


# ---------------------------------------------------------------------------
# kernel 3: decoder stack + generator (Linear + LogSoftmax, lane-dense vocab)
# ---------------------------------------------------------------------------
def _decoder_gen_kernel(x_ref, mem_ref, tbias_ref, sbias_ref,
                        sa_wqkv_ref, sa_bqkv_ref, sa_wo_ref, sa_bo_ref,
                        ca_wq_ref, ca_bq_ref, ca_wkv_ref, ca_bkv_ref,
                        ca_wo_ref, ca_bo_ref,
                        g1_ref, e1_ref, g2_ref, e2_ref, g3_ref, e3_ref,
                        w1_ref, c1_ref, w2_ref, c2_ref,
                        gf_ref, efb_ref, genw_ref, genb_ref,
                        gen_ref, al_ref, acc_ref):
    l = pl.program_id(0)

    @pl.when(l == 0)
    def _():
        acc_ref[...] = x_ref[...]

    b, t, d = acc_ref.shape
    s = mem_ref.shape[1]
    x2 = acc_ref[...].reshape(b * t, d)
    mem2 = mem_ref[...].reshape(b * s, d)

    # masks built in-kernel from key-pad bias vectors + causal iota
    row = lax.broadcasted_iota(jnp.int32, (t, t), 0)
    col = lax.broadcasted_iota(jnp.int32, (t, t), 1)
    causal = jnp.where(col > row, NEG, 0.0).astype(jnp.float32)
    self_mask = causal[None, :, :] + tbias_ref[...][:, None, :]    # (B, T, T)
    cross_mask = sbias_ref[...][:, None, :]                        # (B, 1, S)

    # --- masked self-attention ---
    xn = _ln(x2, g1_ref[0], e1_ref[0])
    qkv = jnp.dot(xn, sa_wqkv_ref[0], preferred_element_type=jnp.float32) + sa_bqkv_ref[0]
    a_out, _ = _heads_attention(qkv[:, :d], qkv[:, d:2 * d], qkv[:, 2 * d:],
                                sa_wo_ref[0], sa_bo_ref[0], self_mask, b, t, t)
    x2 = x2 + a_out

    # --- cross-attention over encoder memory ---
    xn = _ln(x2, g2_ref[0], e2_ref[0])
    qc = jnp.dot(xn, ca_wq_ref[0], preferred_element_type=jnp.float32) + ca_bq_ref[0]
    kvc = jnp.dot(mem2, ca_wkv_ref[0], preferred_element_type=jnp.float32) + ca_bkv_ref[0]
    a_out, psum = _heads_attention(qc, kvc[:, :d], kvc[:, d:],
                                   ca_wo_ref[0], ca_bo_ref[0], cross_mask,
                                   b, t, s, want_probs=True)
    x2 = x2 + a_out

    # --- feed-forward sublayer ---
    xn = _ln(x2, g3_ref[0], e3_ref[0])
    hh = jnp.maximum(jnp.dot(xn, w1_ref[0], preferred_element_type=jnp.float32)
                     + c1_ref[0], 0.0)
    x2 = x2 + jnp.dot(hh, w2_ref[0], preferred_element_type=jnp.float32) + c2_ref[0]

    acc_ref[...] = x2.reshape(b, t, d)

    @pl.when(l == pl.num_programs(0) - 1)
    def _():
        dn = _ln(x2, gf_ref[...], efb_ref[...])                    # (b*t, d)
        # generator: Linear(d -> padded vocab) + LogSoftmax (padded cols have
        # -1e9 bias so they never contribute to the normalizer)
        logits = jnp.dot(dn, genw_ref[...],
                         preferred_element_type=jnp.float32) + genb_ref[...]
        m = jnp.max(logits, axis=-1, keepdims=True)
        lse = jnp.log(jnp.sum(jnp.exp(logits - m), axis=-1, keepdims=True)) + m
        gen_ref[...] = (logits - lse).reshape(b, t, gen_ref.shape[-1])
        # TODO(synk): reference decoder's `top_aligns` definition not provided;
        # using head-averaged cross-attention of the last layer.
        al_ref[...] = psum * (1.0 / HEADS)


def fused_decoder_generator(params, x, memory, tgt_bias, src_bias):
    b, t, d = x.shape
    s = memory.shape[1]
    p = params["decoder"]
    nl = p["sa_wqkv"].shape[0]
    v = params["generator_w"].shape[1]
    stk = lambda a: pl.BlockSpec((1,) + a.shape[1:], lambda l: (l, 0, 0))
    c3 = lambda shape: pl.BlockSpec(shape, lambda l: (0, 0, 0))
    c2 = lambda shape: pl.BlockSpec(shape, lambda l: (0, 0))
    gen_full, aligns = pl.pallas_call(
        _decoder_gen_kernel,
        out_shape=(jax.ShapeDtypeStruct((b, t, v), jnp.float32),
                   jax.ShapeDtypeStruct((b, t, s), jnp.float32)),
        grid=(nl,),
        in_specs=[c3((b, t, d)), c3((b, s, d)), c2((b, t)), c2((b, s)),
                  stk(p["sa_wqkv"]), stk(p["sa_bqkv"]), stk(p["sa_wo"]), stk(p["sa_bo"]),
                  stk(p["ca_wq"]), stk(p["ca_bq"]), stk(p["ca_wkv"]), stk(p["ca_bkv"]),
                  stk(p["ca_wo"]), stk(p["ca_bo"]),
                  stk(p["ln1_g"]), stk(p["ln1_b"]), stk(p["ln2_g"]), stk(p["ln2_b"]),
                  stk(p["ln3_g"]), stk(p["ln3_b"]),
                  stk(p["w1"]), stk(p["b1"]), stk(p["w2"]), stk(p["b2"]),
                  c2((1, d)), c2((1, d)), c2((d, v)), c2((1, v))],
        out_specs=(c3((b, t, v)), c3((b, t, s))),
        scratch_shapes=[pltpu.VMEM((b, t, d), jnp.float32)],
        compiler_params=_ARB1,
    )(x, memory, tgt_bias, src_bias,
      p["sa_wqkv"], p["sa_bqkv"], p["sa_wo"], p["sa_bo"],
      p["ca_wq"], p["ca_bq"], p["ca_wkv"], p["ca_bkv"], p["ca_wo"], p["ca_bo"],
      p["ln1_g"], p["ln1_b"], p["ln2_g"], p["ln2_b"], p["ln3_g"], p["ln3_b"],
      p["w1"], p["b1"], p["w2"], p["b2"],
      p["lnf_g"], p["lnf_b"], params["generator_w"], params["generator_b"])
    return gen_full, aligns


# ---------------------------------------------------------------------------
# parameters (deterministic, in-script; per-layer weights pre-stacked)
# ---------------------------------------------------------------------------
def init_params(key):
    keys = iter(jax.random.split(key, 64))

    def w(shape, fan_in, fan_out):
        lim = (6.0 / (fan_in + fan_out)) ** 0.5
        return jax.random.uniform(next(keys), shape, jnp.float32, -lim, lim)

    def ln_g(nl):
        return jnp.ones((nl, 1, D), jnp.float32)

    def ln_b(nl):
        return jnp.zeros((nl, 1, D), jnp.float32)

    def enc_stack(nl):
        return {
            "wqkv": w((nl, D, 3 * D), D, 3 * D), "bqkv": jnp.zeros((nl, 1, 3 * D), jnp.float32),
            "wo": w((nl, D, D), D, D), "bo": jnp.zeros((nl, 1, D), jnp.float32),
            "ln1_g": ln_g(nl), "ln1_b": ln_b(nl), "ln2_g": ln_g(nl), "ln2_b": ln_b(nl),
            "w1": w((nl, D, D_FF), D, D_FF), "b1": jnp.zeros((nl, 1, D_FF), jnp.float32),
            "w2": w((nl, D_FF, D), D_FF, D), "b2": jnp.zeros((nl, 1, D), jnp.float32),
            "lnf_g": jnp.ones((1, D), jnp.float32), "lnf_b": jnp.zeros((1, D), jnp.float32),
        }

    def dec_stack(nl):
        return {
            "sa_wqkv": w((nl, D, 3 * D), D, 3 * D), "sa_bqkv": jnp.zeros((nl, 1, 3 * D), jnp.float32),
            "sa_wo": w((nl, D, D), D, D), "sa_bo": jnp.zeros((nl, 1, D), jnp.float32),
            "ca_wq": w((nl, D, D), D, D), "ca_bq": jnp.zeros((nl, 1, D), jnp.float32),
            "ca_wkv": w((nl, D, 2 * D), D, 2 * D), "ca_bkv": jnp.zeros((nl, 1, 2 * D), jnp.float32),
            "ca_wo": w((nl, D, D), D, D), "ca_bo": jnp.zeros((nl, 1, D), jnp.float32),
            "ln1_g": ln_g(nl), "ln1_b": ln_b(nl), "ln2_g": ln_g(nl), "ln2_b": ln_b(nl),
            "ln3_g": ln_g(nl), "ln3_b": ln_b(nl),
            "w1": w((nl, D, D_FF), D, D_FF), "b1": jnp.zeros((nl, 1, D_FF), jnp.float32),
            "w2": w((nl, D_FF, D), D_FF, D), "b2": jnp.zeros((nl, 1, D), jnp.float32),
            "lnf_g": jnp.ones((1, D), jnp.float32), "lnf_b": jnp.zeros((1, D), jnp.float32),
        }

    emb = jax.random.normal(next(keys), (VOCAB + 1, D), jnp.float32) * 0.02
    emb = emb.at[PAD_IDX].set(0.0)                       # padding_idx

    # generator padded to a lane-dense 128-wide output; padded columns get a
    # -1e9 bias so they never contribute to the log-softmax normalizer.
    gen_w = jnp.zeros((D, VOCAB_PAD), jnp.float32).at[:, :VOCAB].set(w((D, VOCAB), D, VOCAB))
    gen_b = jnp.full((1, VOCAB_PAD), NEG, jnp.float32).at[:, :VOCAB].set(0.0)

    return {
        # shared embedding (shared_vocab=True -> embedding_src is embedding_tgt)
        "embedding": emb,
        # embedding_bond = Linear(7, d_model) exists in the reference but the
        # bond=None path never uses it; kept for structural parity.
        "embedding_bond_w": w((EDGE_DIM, D), EDGE_DIM, D),
        "embedding_bond_b": jnp.zeros((1, D), jnp.float32),
        "text_encoder": enc_stack(N_TEXT),
        "encoder": enc_stack(N_ENC),
        "decoder": dec_stack(N_DEC),
        "gnn_node_in_w": w((NODE_DIM, D), NODE_DIM, D), "gnn_node_in_b": jnp.zeros((1, D), jnp.float32),
        "gnn_edge_in_w": w((EDGE_DIM, D), EDGE_DIM, D), "gnn_edge_in_b": jnp.zeros((1, D), jnp.float32),
        "gnn_msg_w": w((D, D), D, D), "gnn_msg_b": jnp.zeros((1, D), jnp.float32),
        "gnn_ln_g": jnp.ones((1, D), jnp.float32), "gnn_ln_b": jnp.zeros((1, D), jnp.float32),
        "gnn_z1_w": w((D, D), D, D), "gnn_z1_b": jnp.zeros((1, D), jnp.float32),
        "gnn_z2_w": w((D, D), D, D), "gnn_z2_b": jnp.zeros((1, D), jnp.float32),
        "atom_rc_w": w((D, 1), D, 1), "atom_rc_b": jnp.zeros((1, 1), jnp.float32),
        "bond_rc_w": w((D, 1), D, 1), "bond_rc_b": jnp.zeros((1, 1), jnp.float32),
        "generator_w": gen_w, "generator_b": gen_b,
        # TODO(synk): centers/rc_atom center-loss branch not implemented (rc_atom=None path).
        "centers": jax.random.normal(next(keys), (2, D), jnp.float32) * 0.02,
    }


# ---------------------------------------------------------------------------
# model glue (plain JAX around the Pallas kernels)
# ---------------------------------------------------------------------------
def positional_encoding(seq_len, d):
    pos = jnp.arange(seq_len, dtype=jnp.float32)[:, None]
    i = jnp.arange(d)[None, :]
    angle = pos / jnp.power(10000.0, (2.0 * (i // 2).astype(jnp.float32)) / d)
    return jnp.where(i % 2 == 0, jnp.sin(angle), jnp.cos(angle))


def embed_tokens(table, ids):
    # TODO(synk): reference Embedding class internals (scaling / PE variant) not provided;
    # using lookup * sqrt(d_model) + sinusoidal positional encoding.
    e = jnp.take(table, ids, axis=0) * (D ** 0.5)
    return e + positional_encoding(ids.shape[1], D)[None]


def retro_forward(params, src, tgt, node_feats, edge_feats, adj, graph_nums):
    bsz, s = src.shape
    n = node_feats.shape[1]

    # ---- kernel 1: graph encoder + RC heads fused with the text encoder ----
    node_valid = (jnp.arange(n)[None, :] < graph_nums[:, None]).astype(jnp.float32)
    src_bias = jnp.where(src == PAD_IDX, NEG, 0.0).astype(jnp.float32)        # (B, S)
    emb_src = embed_tokens(params["embedding"], src)
    text_out, graph_embed, atom_rc_scores, bond_rc_scores = fused_text_and_graph(
        params, emb_src, src_bias, node_feats, adj, node_valid, edge_feats)

    # ---- kernel 2: cross-modal similarity + graph-aware encoder ----
    pad_nodes = jnp.arange(n)[None, :] >= graph_nums[:, None]
    graph_bias18 = jnp.where(pad_nodes, -1e18, 0.0).astype(jnp.float32)       # (B, N)
    node_bias = jnp.where(pad_nodes, NEG, 0.0).astype(jnp.float32)            # (B, N)
    enc_bias = jnp.concatenate([src_bias, node_bias], axis=1)                 # (B, S+N)
    encoder_out = fused_cross_encoder(params, text_out, graph_embed,
                                      graph_bias18, enc_bias)                 # (B, S, D)

    # ---- kernel 3: decoder on tgt[:, :-1] + generator (log-softmax) ----
    tgt_in = tgt[:, :-1]
    tgt_bias = jnp.where(tgt_in == PAD_IDX, NEG, 0.0).astype(jnp.float32)     # (B, T)
    emb_tgt = embed_tokens(params["embedding"], tgt_in)
    gen_full, top_aligns = fused_decoder_generator(params, emb_tgt, encoder_out,
                                                   tgt_bias, src_bias)
    generative_scores = gen_full[..., :VOCAB]

    return generative_scores, atom_rc_scores, bond_rc_scores, top_aligns


# ---------------------------------------------------------------------------
if __name__ == "__main__":
    key = jax.random.PRNGKey(0)
    kp, k1, k2, k3, k4, k5 = jax.random.split(key, 6)
    params = init_params(kp)

    src = jax.random.randint(k1, (B, S_SRC), 2, VOCAB, dtype=jnp.int32)
    src = src.at[:, -1].set(PAD_IDX)                           # some padding
    tgt = jax.random.randint(k2, (B, T_TGT), 2, VOCAB, dtype=jnp.int32)
    node_feats = jax.random.normal(k3, (B, N_NODES, NODE_DIM), jnp.float32)
    edge_feats = jax.random.normal(k4, (N_EDGES, EDGE_DIM), jnp.float32)
    adj = (jax.random.uniform(k5, (B, N_NODES, N_NODES)) > 0.5).astype(jnp.float32)
    adj = jnp.maximum(adj, jnp.transpose(adj, (0, 2, 1)))      # symmetric adjacency
    graph_nums = jnp.array([N_NODES, 5], dtype=jnp.int32)      # batch_graph_nums

    fwd = jax.jit(retro_forward)
    outs = fwd(params, src, tgt, node_feats, edge_feats, adj, graph_nums)
    jax.block_until_ready(outs)

    gen, atom_rc, bond_rc, aligns = outs
    assert gen.shape == (B, T_TGT - 1, VOCAB)
    assert atom_rc.shape == (B, N_NODES, 1)
    assert bond_rc.shape == (N_EDGES, 1)
    assert aligns.shape == (B, T_TGT - 1, S_SRC)
    assert bool(jnp.all(jnp.isfinite(gen)))
    assert bool(jnp.all(jnp.isfinite(aligns)))
    print("KERNEL_OK")
</pallas_src>

<mosaic_0001>
module attributes {stable_mosaic.version = 11 : i64} {
  func.func @_cross_encoder_kernel(%arg0: i32, %arg1: memref<2x8x32xf32, #tpu.memory_space<vmem>>, %arg2: memref<2x8x32xf32, #tpu.memory_space<vmem>>, %arg3: memref<2x8xf32, #tpu.memory_space<vmem>>, %arg4: memref<2x16xf32, #tpu.memory_space<vmem>>, %arg5: memref<32x32xf32, #tpu.memory_space<vmem>>, %arg6: memref<1x32xf32, #tpu.memory_space<vmem>>, %arg7: memref<32x32xf32, #tpu.memory_space<vmem>>, %arg8: memref<1x32xf32, #tpu.memory_space<vmem>>, %arg9: memref<1x32x96xf32, #tpu.memory_space<vmem>>, %arg10: memref<1x1x96xf32, #tpu.memory_space<vmem>>, %arg11: memref<1x32x32xf32, #tpu.memory_space<vmem>>, %arg12: memref<1x1x32xf32, #tpu.memory_space<vmem>>, %arg13: memref<1x1x32xf32, #tpu.memory_space<vmem>>, %arg14: memref<1x1x32xf32, #tpu.memory_space<vmem>>, %arg15: memref<1x1x32xf32, #tpu.memory_space<vmem>>, %arg16: memref<1x1x32xf32, #tpu.memory_space<vmem>>, %arg17: memref<1x32x64xf32, #tpu.memory_space<vmem>>, %arg18: memref<1x1x64xf32, #tpu.memory_space<vmem>>, %arg19: memref<1x64x32xf32, #tpu.memory_space<vmem>>, %arg20: memref<1x1x32xf32, #tpu.memory_space<vmem>>, %arg21: memref<1x32xf32, #tpu.memory_space<vmem>>, %arg22: memref<1x32xf32, #tpu.memory_space<vmem>>, %arg23: memref<2x8x32xf32, #tpu.memory_space<vmem>>, %arg24: memref<2x16x32xf32, #tpu.memory_space<vmem>>) attributes {dimension_semantics = [#tpu.dimension_semantics<arbitrary>], iteration_bounds = array<i64: 1>, scalar_prefetch = 0 : i64, scratch_operands = 1 : i64, tpu.core_type = #tpu.core_type<tc>, window_params = [{pipeline_mode = #tpu.pipeline_mode<synchronous>, transform_indices = @transform_0, window_bounds = array<i64: 2, 8, 32>}, {pipeline_mode = #tpu.pipeline_mode<synchronous>, transform_indices = @transform_1, window_bounds = array<i64: 2, 8, 32>}, {pipeline_mode = #tpu.pipeline_mode<synchronous>, transform_indices = @transform_2, window_bounds = array<i64: 2, 8>}, {pipeline_mode = #tpu.pipeline_mode<synchronous>, transform_indices = @transform_3, window_bounds = array<i64: 2, 16>}, {pipeline_mode = #tpu.pipeline_mode<synchronous>, transform_indices = @transform_4, window_bounds = array<i64: 32, 32>}, {pipeline_mode = #tpu.pipeline_mode<synchronous>, transform_indices = @transform_5, window_bounds = array<i64: 1, 32>}, {pipeline_mode = #tpu.pipeline_mode<synchronous>, transform_indices = @transform_6, window_bounds = array<i64: 32, 32>}, {pipeline_mode = #tpu.pipeline_mode<synchronous>, transform_indices = @transform_7, window_bounds = array<i64: 1, 32>}, {transform_indices = @transform_8, window_bounds = array<i64: 1, 32, 96>}, {transform_indices = @transform_9, window_bounds = array<i64: 1, 1, 96>}, {transform_indices = @transform_10, window_bounds = array<i64: 1, 32, 32>}, {transform_indices = @transform_11, window_bounds = array<i64: 1, 1, 32>}, {transform_indices = @transform_12, window_bounds = array<i64: 1, 1, 32>}, {transform_indices = @transform_13, window_bounds = array<i64: 1, 1, 32>}, {transform_indices = @transform_14, window_bounds = array<i64: 1, 1, 32>}, {transform_indices = @transform_15, window_bounds = array<i64: 1, 1, 32>}, {transform_indices = @transform_16, window_bounds = array<i64: 1, 32, 64>}, {transform_indices = @transform_17, window_bounds = array<i64: 1, 1, 64>}, {transform_indices = @transform_18, window_bounds = array<i64: 1, 64, 32>}, {transform_indices = @transform_19, window_bounds = array<i64: 1, 1, 32>}, {pipeline_mode = #tpu.pipeline_mode<synchronous>, transform_indices = @transform_20, window_bounds = array<i64: 1, 32>}, {pipeline_mode = #tpu.pipeline_mode<synchronous>, transform_indices = @transform_21, window_bounds = array<i64: 1, 32>}, {pipeline_mode = #tpu.pipeline_mode<synchronous>, transform_indices = @transform_22, window_bounds = array<i64: 2, 8, 32>}]} {
    %c0_i32 = arith.constant 0 : i32
    %0 = arith.cmpi eq, %arg0, %c0_i32 : i32
    %1 = arith.extui %0 : i1 to i32
    %c0_i32_0 = arith.constant 0 : i32
    %2 = arith.cmpi ne, %1, %c0_i32_0 : i32
    scf.if %2 {
      %c0_84 = arith.constant 0 : index
      %c0_85 = arith.constant 0 : index
      %c0_86 = arith.constant 0 : index
      %199 = vector.load %arg2[%c0_84, %c0_85, %c0_86] : memref<2x8x32xf32, #tpu.memory_space<vmem>>, vector<2x8x32xf32>
      %200 = vector.shape_cast %199 : vector<2x8x32xf32> to vector<16x32xf32>
      %c0_87 = arith.constant 0 : index
      %c0_88 = arith.constant 0 : index
      %201 = vector.load %arg5[%c0_87, %c0_88] : memref<32x32xf32, #tpu.memory_space<vmem>>, vector<32x32xf32>
      %cst_89 = arith.constant dense<0.000000e+00> : vector<16x32xf32>
      %202 = tpu.matmul %200, %201, %cst_89 {dimension_numbers = #tpu.dot_dimension_numbers<[1], [0], [0], [1], [0, 0, 1, 1], [], []>} : vector<16x32xf32>, vector<32x32xf32>, vector<16x32xf32> -> vector<16x32xf32>
      %c0_90 = arith.constant 0 : index
      %c0_91 = arith.constant 0 : index
      %203 = vector.load %arg6[%c0_90, %c0_91] : memref<1x32xf32, #tpu.memory_space<vmem>>, vector<1x32xf32>
      %204 = vector.broadcast %203 : vector<1x32xf32> to vector<16x32xf32>
      %205 = arith.addf %202, %204 : vector<16x32xf32>
      %cst_92 = arith.constant 0.000000e+00 : f32
      %206 = vector.broadcast %cst_92 : f32 to vector<16x32xf32>
      %207 = arith.maximumf %205, %206 : vector<16x32xf32>
      %c0_93 = arith.constant 0 : index
      %c0_94 = arith.constant 0 : index
      %208 = vector.load %arg7[%c0_93, %c0_94] : memref<32x32xf32, #tpu.memory_space<vmem>>, vector<32x32xf32>
      %cst_95 = arith.constant dense<0.000000e+00> : vector<16x32xf32>
      %209 = tpu.matmul %207, %208, %cst_95 {dimension_numbers = #tpu.dot_dimension_numbers<[1], [0], [0], [1], [0, 0, 1, 1], [], []>} : vector<16x32xf32>, vector<32x32xf32>, vector<16x32xf32> -> vector<16x32xf32>
      %c0_96 = arith.constant 0 : index
      %c0_97 = arith.constant 0 : index
      %210 = vector.load %arg8[%c0_96, %c0_97] : memref<1x32xf32, #tpu.memory_space<vmem>>, vector<1x32xf32>
      %211 = vector.broadcast %210 : vector<1x32xf32> to vector<16x32xf32>
      %212 = arith.addf %209, %211 : vector<16x32xf32>
      %213 = vector.shape_cast %212 : vector<16x32xf32> to vector<2x8x32xf32>
      %c0_98 = arith.constant 0 : index
      %c0_99 = arith.constant 0 : index
      %214 = vector.load %arg3[%c0_98, %c0_99] : memref<2x8xf32, #tpu.memory_space<vmem>>, vector<2x8xf32>
      %c0_100 = arith.constant 0 : index
      %c0_101 = arith.constant 0 : index
      %c0_102 = arith.constant 0 : index
      %215 = vector.load %arg1[%c0_100, %c0_101, %c0_102] : memref<2x8x32xf32, #tpu.memory_space<vmem>>, vector<2x8x32xf32>
      "tpu.trace_start"() <{level = 10 : i32, message = "bsd,bnd->bsn"}> : () -> ()
      %cst_103 = arith.constant dense<0.000000e+00> : vector<2x8x8xf32>
      %216 = tpu.matmul %215, %213, %cst_103 {dimension_numbers = #tpu.dot_dimension_numbers<[2], [2], [1], [1], [0, 0, 0, 1, 1, 1], [0], [0]>} : vector<2x8x32xf32>, vector<2x8x32xf32>, vector<2x8x8xf32> -> vector<2x8x8xf32>
      "tpu.trace_stop"() : () -> ()
      %217 = vector.shape_cast %214 : vector<2x8xf32> to vector<2x1x8xf32>
      %218 = vector.broadcast %217 : vector<2x1x8xf32> to vector<2x8x8xf32>
      %219 = arith.addf %216, %218 : vector<2x8x8xf32>
      %cst_104 = arith.constant dense<0xFF800000> : vector<2x8xf32>
      %220 = vector.multi_reduction <maximumf>, %219, %cst_104 [2] : vector<2x8x8xf32> to vector<2x8xf32>
      %221 = vector.shape_cast %220 : vector<2x8xf32> to vector<2x8x1xf32>
      %222 = vector.broadcast %221 : vector<2x8x1xf32> to vector<2x8x8xf32>
      %223 = arith.subf %219, %222 : vector<2x8x8xf32>
      %224 = math.exp %223 : vector<2x8x8xf32>
      %cst_105 = arith.constant dense<0.000000e+00> : vector<2x8xf32>
      %225 = vector.multi_reduction <add>, %224, %cst_105 [2] : vector<2x8x8xf32> to vector<2x8xf32>
      %226 = vector.shape_cast %225 : vector<2x8xf32> to vector<2x8x1xf32>
      %227 = vector.broadcast %226 : vector<2x8x1xf32> to vector<2x8x8xf32>
      %228 = arith.divf %224, %227 : vector<2x8x8xf32>
      %cst_106 = arith.constant dense<0.000000e+00> : vector<2x8xf32>
      %229 = vector.multi_reduction <add>, %228, %cst_106 [1] : vector<2x8x8xf32> to vector<2x8xf32>
      %cst_107 = arith.constant 0.000000e+00 : f32
      %230 = vector.broadcast %cst_107 : f32 to vector<2x8xf32>
      %231 = arith.cmpf olt, %214, %230 : vector<2x8xf32>
      %cst_108 = arith.constant -9.99999984E+17 : f32
      %232 = vector.broadcast %cst_108 : f32 to vector<2x8xf32>
      %233 = arith.select %231, %232, %229 : vector<2x8xi1>, vector<2x8xf32>
      %cst_109 = arith.constant dense<0xFF800000> : vector<2xf32>
      %234 = vector.multi_reduction <maximumf>, %233, %cst_109 [1] : vector<2x8xf32> to vector<2xf32>
      %235 = vector.shape_cast %234 : vector<2xf32> to vector<2x1xf32>
      %236 = vector.broadcast %235 : vector<2x1xf32> to vector<2x8xf32>
      %237 = arith.subf %233, %236 : vector<2x8xf32>
      %238 = math.exp %237 : vector<2x8xf32>
      %cst_110 = arith.constant dense<0.000000e+00> : vector<2xf32>
      %239 = vector.multi_reduction <add>, %238, %cst_110 [1] : vector<2x8xf32> to vector<2xf32>
      %240 = vector.shape_cast %239 : vector<2xf32> to vector<2x1xf32>
      %241 = vector.broadcast %240 : vector<2x1xf32> to vector<2x8xf32>
      %242 = arith.divf %238, %241 : vector<2x8xf32>
      %c0_111 = arith.constant 0 : index
      %c0_112 = arith.constant 0 : index
      %c0_113 = arith.constant 0 : index
      %243 = vector.load %arg1[%c0_111, %c0_112, %c0_113] : memref<2x8x32xf32, #tpu.memory_space<vmem>>, vector<2x8x32xf32>
      %c0_114 = arith.constant 0 : index
      %c0_115 = arith.constant 0 : index
      %c0_116 = arith.constant 0 : index
      %244 = vector.load %arg24[%c0_114, %c0_115, %c0_116] : memref<2x16x32xf32, #tpu.memory_space<vmem>>, vector<2x8x32xf32>
      tpu.vector_store %arg24[%c0_114, %c0_115, %c0_116], %243 {strides = array<i32>} : memref<2x16x32xf32, #tpu.memory_space<vmem>>, vector<2x8x32xf32>,
      %245 = vector.shape_cast %242 : vector<2x8xf32> to vector<2x8x1xf32>
      %c0_117 = arith.constant 0 : index
      %c0_118 = arith.constant 0 : index
      %c0_119 = arith.constant 0 : index
      %246 = vector.load %arg2[%c0_117, %c0_118, %c0_119] : memref<2x8x32xf32, #tpu.memory_space<vmem>>, vector<2x8x32xf32>
      %247 = vector.broadcast %245 : vector<2x8x1xf32> to vector<2x8x32xf32>
      %248 = arith.mulf %247, %246 : vector<2x8x32xf32>
      %c0_120 = arith.constant 0 : index
      %c8 = arith.constant 8 : index
      %c0_121 = arith.constant 0 : index
      %249 = vector.load %arg24[%c0_120, %c8, %c0_121] : memref<2x16x32xf32, #tpu.memory_space<vmem>>, vector<2x8x32xf32>
      tpu.vector_store %arg24[%c0_120, %c8, %c0_121], %248 {strides = array<i32>} : memref<2x16x32xf32, #tpu.memory_space<vmem>>, vector<2x8x32xf32>,
    } else {
    }
    %c0 = arith.constant 0 : index
    %c0_1 = arith.constant 0 : index
    %c0_2 = arith.constant 0 : index
    %3 = vector.load %arg24[%c0, %c0_1, %c0_2] : memref<2x16x32xf32, #tpu.memory_space<vmem>>, vector<2x16x32xf32>
    %4 = vector.shape_cast %3 : vector<2x16x32xf32> to vector<32x32xf32>
    %c0_3 = arith.constant 0 : index
    %c0_4 = arith.constant 0 : index
    %5 = vector.load %arg4[%c0_3, %c0_4] : memref<2x16xf32, #tpu.memory_space<vmem>>, vector<2x16xf32>
    %6 = vector.shape_cast %5 : vector<2x16xf32> to vector<2x1x16xf32>
    %c0_5 = arith.constant 0 : index
    %c0_6 = arith.constant 0 : index
    %c0_7 = arith.constant 0 : index
    %7 = vector.load %arg9[%c0_5, %c0_6, %c0_7] : memref<1x32x96xf32, #tpu.memory_space<vmem>>, vector<1x32x96xf32>
    %8 = vector.shape_cast %7 : vector<1x32x96xf32> to vector<32x96xf32>
    %c0_8 = arith.constant 0 : index
    %c0_9 = arith.constant 0 : index
    %c0_10 = arith.constant 0 : index
    %9 = vector.load %arg10[%c0_8, %c0_9, %c0_10] : memref<1x1x96xf32, #tpu.memory_space<vmem>>, vector<1x1x96xf32>
    %10 = vector.shape_cast %9 : vector<1x1x96xf32> to vector<1x96xf32>
    %c0_11 = arith.constant 0 : index
    %c0_12 = arith.constant 0 : index
    %c0_13 = arith.constant 0 : index
    %11 = vector.load %arg11[%c0_11, %c0_12, %c0_13] : memref<1x32x32xf32, #tpu.memory_space<vmem>>, vector<1x32x32xf32>
    %12 = vector.shape_cast %11 : vector<1x32x32xf32> to vector<32x32xf32>
    %c0_14 = arith.constant 0 : index
    %c0_15 = arith.constant 0 : index
    %c0_16 = arith.constant 0 : index
    %13 = vector.load %arg12[%c0_14, %c0_15, %c0_16] : memref<1x1x32xf32, #tpu.memory_space<vmem>>, vector<1x1x32xf32>
    %14 = vector.shape_cast %13 : vector<1x1x32xf32> to vector<1x32xf32>
    %c0_17 = arith.constant 0 : index
    %c0_18 = arith.constant 0 : index
    %c0_19 = arith.constant 0 : index
    %15 = vector.load %arg13[%c0_17, %c0_18, %c0_19] : memref<1x1x32xf32, #tpu.memory_space<vmem>>, vector<1x1x32xf32>
    %16 = vector.shape_cast %15 : vector<1x1x32xf32> to vector<1x32xf32>
    %c0_20 = arith.constant 0 : index
    %c0_21 = arith.constant 0 : index
    %c0_22 = arith.constant 0 : index
    %17 = vector.load %arg14[%c0_20, %c0_21, %c0_22] : memref<1x1x32xf32, #tpu.memory_space<vmem>>, vector<1x1x32xf32>
    %18 = vector.shape_cast %17 : vector<1x1x32xf32> to vector<1x32xf32>
    %c0_23 = arith.constant 0 : index
    %c0_24 = arith.constant 0 : index
    %c0_25 = arith.constant 0 : index
    %19 = vector.load %arg15[%c0_23, %c0_24, %c0_25] : memref<1x1x32xf32, #tpu.memory_space<vmem>>, vector<1x1x32xf32>
    %20 = vector.shape_cast %19 : vector<1x1x32xf32> to vector<1x32xf32>
    %c0_26 = arith.constant 0 : index
    %c0_27 = arith.constant 0 : index
    %c0_28 = arith.constant 0 : index
    %21 = vector.load %arg16[%c0_26, %c0_27, %c0_28] : memref<1x1x32xf32, #tpu.memory_space<vmem>>, vector<1x1x32xf32>
    %22 = vector.shape_cast %21 : vector<1x1x32xf32> to vector<1x32xf32>
    %c0_29 = arith.constant 0 : index
    %c0_30 = arith.constant 0 : index
    %c0_31 = arith.constant 0 : index
    %23 = vector.load %arg17[%c0_29, %c0_30, %c0_31] : memref<1x32x64xf32, #tpu.memory_space<vmem>>, vector<1x32x64xf32>
    %24 = vector.shape_cast %23 : vector<1x32x64xf32> to vector<32x64xf32>
    %c0_32 = arith.constant 0 : index
    %c0_33 = arith.constant 0 : index
    %c0_34 = arith.constant 0 : index
    %25 = vector.load %arg18[%c0_32, %c0_33, %c0_34] : memref<1x1x64xf32, #tpu.memory_space<vmem>>, vector<1x1x64xf32>
    %26 = vector.shape_cast %25 : vector<1x1x64xf32> to vector<1x64xf32>
    %c0_35 = arith.constant 0 : index
    %c0_36 = arith.constant 0 : index
    %c0_37 = arith.constant 0 : index
    %27 = vector.load %arg19[%c0_35, %c0_36, %c0_37] : memref<1x64x32xf32, #tpu.memory_space<vmem>>, vector<1x64x32xf32>
    %28 = vector.shape_cast %27 : vector<1x64x32xf32> to vector<64x32xf32>
    %c0_38 = arith.constant 0 : index
    %c0_39 = arith.constant 0 : index
    %c0_40 = arith.constant 0 : index
    %29 = vector.load %arg20[%c0_38, %c0_39, %c0_40] : memref<1x1x32xf32, #tpu.memory_space<vmem>>, vector<1x1x32xf32>
    %30 = vector.shape_cast %29 : vector<1x1x32xf32> to vector<1x32xf32>
    %cst = arith.constant dense<0.000000e+00> : vector<32xf32>
    %31 = vector.multi_reduction <add>, %4, %cst [1] : vector<32x32xf32> to vector<32xf32>
    %32 = vector.shape_cast %31 : vector<32xf32> to vector<32x1xf32>
    %cst_41 = arith.constant 3.200000e+01 : f32
    %33 = vector.broadcast %cst_41 : f32 to vector<32x1xf32>
    %34 = arith.divf %32, %33 : vector<32x1xf32>
    %35 = vector.broadcast %34 : vector<32x1xf32> to vector<32x32xf32>
    %36 = arith.subf %4, %35 : vector<32x32xf32>
    %37 = arith.mulf %36, %36 : vector<32x32xf32>
    %cst_42 = arith.constant dense<0.000000e+00> : vector<32xf32>
    %38 = vector.multi_reduction <add>, %37, %cst_42 [1] : vector<32x32xf32> to vector<32xf32>
    %39 = vector.shape_cast %38 : vector<32xf32> to vector<32x1xf32>
    %cst_43 = arith.constant 3.200000e+01 : f32
    %40 = vector.broadcast %cst_43 : f32 to vector<32x1xf32>
    %41 = arith.divf %39, %40 : vector<32x1xf32>
    %42 = vector.broadcast %34 : vector<32x1xf32> to vector<32x32xf32>
    %43 = arith.subf %4, %42 : vector<32x32xf32>
    %cst_44 = arith.constant 9.99999974E-6 : f32
    %44 = vector.broadcast %cst_44 : f32 to vector<32x1xf32>
    %45 = arith.addf %41, %44 : vector<32x1xf32>
    %46 = math.rsqrt %45 : vector<32x1xf32>
    %47 = vector.broadcast %46 : vector<32x1xf32> to vector<32x32xf32>
    %48 = arith.mulf %43, %47 : vector<32x32xf32>
    %49 = vector.broadcast %16 : vector<1x32xf32> to vector<32x32xf32>
    %50 = arith.mulf %48, %49 : vector<32x32xf32>
    %51 = vector.broadcast %18 : vector<1x32xf32> to vector<32x32xf32>
    %52 = arith.addf %50, %51 : vector<32x32xf32>
    %cst_45 = arith.constant dense<0.000000e+00> : vector<32x96xf32>
    %53 = tpu.matmul %52, %8, %cst_45 {dimension_numbers = #tpu.dot_dimension_numbers<[1], [0], [0], [1], [0, 0, 1, 1], [], []>} : vector<32x32xf32>, vector<32x96xf32>, vector<32x96xf32> -> vector<32x96xf32>
    %54 = vector.broadcast %10 : vector<1x96xf32> to vector<32x96xf32>
    %55 = arith.addf %53, %54 : vector<32x96xf32>
    %56 = vector.extract_strided_slice %55 {offsets = [0, 0], sizes = [32, 32], strides = [1, 1]} : vector<32x96xf32> to vector<32x32xf32>
    %57 = vector.extract_strided_slice %55 {offsets = [0, 32], sizes = [32, 32], strides = [1, 1]} : vector<32x96xf32> to vector<32x32xf32>
    %58 = vector.extract_strided_slice %55 {offsets = [0, 64], sizes = [32, 32], strides = [1, 1]} : vector<32x96xf32> to vector<32x32xf32>
    %cst_46 = arith.constant 0.000000e+00 : f32
    %59 = vector.broadcast %cst_46 : f32 to vector<32x32xf32>
    %60 = vector.extract_strided_slice %56 {offsets = [0, 0], sizes = [32, 8], strides = [1, 1]} : vector<32x32xf32> to vector<32x8xf32>
    %61 = vector.shape_cast %60 : vector<32x8xf32> to vector<2x16x8xf32>
    %62 = vector.extract_strided_slice %57 {offsets = [0, 0], sizes = [32, 8], strides = [1, 1]} : vector<32x32xf32> to vector<32x8xf32>
    %63 = vector.shape_cast %62 : vector<32x8xf32> to vector<2x16x8xf32>
    %64 = vector.extract_strided_slice %58 {offsets = [0, 0], sizes = [32, 8], strides = [1, 1]} : vector<32x32xf32> to vector<32x8xf32>
    %65 = vector.shape_cast %64 : vector<32x8xf32> to vector<2x16x8xf32>
    "tpu.trace_start"() <{level = 10 : i32, message = "bqd,bkd->bqk"}> : () -> ()
    %cst_47 = arith.constant dense<0.000000e+00> : vector<2x16x16xf32>
    %66 = tpu.matmul %61, %63, %cst_47 {dimension_numbers = #tpu.dot_dimension_numbers<[2], [2], [1], [1], [0, 0, 0, 1, 1, 1], [0], [0]>} : vector<2x16x8xf32>, vector<2x16x8xf32>, vector<2x16x16xf32> -> vector<2x16x16xf32>
    "tpu.trace_stop"() : () -> ()
    %cst_48 = arith.constant 0.353553385 : f32
    %67 = vector.broadcast %cst_48 : f32 to vector<2x16x16xf32>
    %68 = arith.mulf %66, %67 : vector<2x16x16xf32>
    %69 = vector.broadcast %6 : vector<2x1x16xf32> to vector<2x16x16xf32>
    %70 = arith.addf %68, %69 : vector<2x16x16xf32>
    %cst_49 = arith.constant dense<0xFF800000> : vector<2x16xf32>
    %71 = vector.multi_reduction <maximumf>, %70, %cst_49 [2] : vector<2x16x16xf32> to vector<2x16xf32>
    %72 = vector.shape_cast %71 : vector<2x16xf32> to vector<2x16x1xf32>
    %73 = vector.broadcast %72 : vector<2x16x1xf32> to vector<2x16x16xf32>
    %74 = arith.subf %70, %73 : vector<2x16x16xf32>
    %75 = math.exp %74 : vector<2x16x16xf32>
    %cst_50 = arith.constant dense<0.000000e+00> : vector<2x16xf32>
    %76 = vector.multi_reduction <add>, %75, %cst_50 [2] : vector<2x16x16xf32> to vector<2x16xf32>
    %77 = vector.shape_cast %76 : vector<2x16xf32> to vector<2x16x1xf32>
    %78 = vector.broadcast %77 : vector<2x16x1xf32> to vector<2x16x16xf32>
    %79 = arith.divf %75, %78 : vector<2x16x16xf32>
    "tpu.trace_start"() <{level = 10 : i32, message = "bqk,bkd->bqd"}> : () -> ()
    %cst_51 = arith.constant dense<0.000000e+00> : vector<2x16x8xf32>
    %80 = tpu.matmul %79, %65, %cst_51 {dimension_numbers = #tpu.dot_dimension_numbers<[2], [1], [1], [2], [0, 0, 0, 1, 1, 2], [0], [0]>} : vector<2x16x16xf32>, vector<2x16x8xf32>, vector<2x16x8xf32> -> vector<2x16x8xf32>
    "tpu.trace_stop"() : () -> ()
    %81 = vector.shape_cast %80 : vector<2x16x8xf32> to vector<32x8xf32>
    %82 = vector.extract_strided_slice %12 {offsets = [0, 0], sizes = [8, 32], strides = [1, 1]} : vector<32x32xf32> to vector<8x32xf32>
    %cst_52 = arith.constant dense<0.000000e+00> : vector<32x32xf32>
    %83 = tpu.matmul %81, %82, %cst_52 {dimension_numbers = #tpu.dot_dimension_numbers<[1], [0], [0], [1], [0, 0, 1, 1], [], []>} : vector<32x8xf32>, vector<8x32xf32>, vector<32x32xf32> -> vector<32x32xf32>
    %84 = arith.addf %59, %83 : vector<32x32xf32>
    %85 = vector.extract_strided_slice %56 {offsets = [0, 8], sizes = [32, 8], strides = [1, 1]} : vector<32x32xf32> to vector<32x8xf32>
    %86 = vector.shape_cast %85 : vector<32x8xf32> to vector<2x16x8xf32>
    %87 = vector.extract_strided_slice %57 {offsets = [0, 8], sizes = [32, 8], strides = [1, 1]} : vector<32x32xf32> to vector<32x8xf32>
    %88 = vector.shape_cast %87 : vector<32x8xf32> to vector<2x16x8xf32>
    %89 = vector.extract_strided_slice %58 {offsets = [0, 8], sizes = [32, 8], strides = [1, 1]} : vector<32x32xf32> to vector<32x8xf32>
    %90 = vector.shape_cast %89 : vector<32x8xf32> to vector<2x16x8xf32>
    "tpu.trace_start"() <{level = 10 : i32, message = "bqd,bkd->bqk"}> : () -> ()
    %cst_53 = arith.constant dense<0.000000e+00> : vector<2x16x16xf32>
    %91 = tpu.matmul %86, %88, %cst_53 {dimension_numbers = #tpu.dot_dimension_numbers<[2], [2], [1], [1], [0, 0, 0, 1, 1, 1], [0], [0]>} : vector<2x16x8xf32>, vector<2x16x8xf32>, vector<2x16x16xf32> -> vector<2x16x16xf32>
    "tpu.trace_stop"() : () -> ()
    %cst_54 = arith.constant 0.353553385 : f32
    %92 = vector.broadcast %cst_54 : f32 to vector<2x16x16xf32>
    %93 = arith.mulf %91, %92 : vector<2x16x16xf32>
    %94 = vector.broadcast %6 : vector<2x1x16xf32> to vector<2x16x16xf32>
    %95 = arith.addf %93, %94 : vector<2x16x16xf32>
    %cst_55 = arith.constant dense<0xFF800000> : vector<2x16xf32>
    %96 = vector.multi_reduction <maximumf>, %95, %cst_55 [2] : vector<2x16x16xf32> to vector<2x16xf32>
    %97 = vector.shape_cast %96 : vector<2x16xf32> to vector<2x16x1xf32>
    %98 = vector.broadcast %97 : vector<2x16x1xf32> to vector<2x16x16xf32>
    %99 = arith.subf %95, %98 : vector<2x16x16xf32>
    %100 = math.exp %99 : vector<2x16x16xf32>
    %cst_56 = arith.constant dense<0.000000e+00> : vector<2x16xf32>
    %101 = vector.multi_reduction <add>, %100, %cst_56 [2] : vector<2x16x16xf32> to vector<2x16xf32>
    %102 = vector.shape_cast %101 : vector<2x16xf32> to vector<2x16x1xf32>
    %103 = vector.broadcast %102 : vector<2x16x1xf32> to vector<2x16x16xf32>
    %104 = arith.divf %100, %103 : vector<2x16x16xf32>
    "tpu.trace_start"() <{level = 10 : i32, message = "bqk,bkd->bqd"}> : () -> ()
    %cst_57 = arith.constant dense<0.000000e+00> : vector<2x16x8xf32>
    %105 = tpu.matmul %104, %90, %cst_57 {dimension_numbers = #tpu.dot_dimension_numbers<[2], [1], [1], [2], [0, 0, 0, 1, 1, 2], [0], [0]>} : vector<2x16x16xf32>, vector<2x16x8xf32>, vector<2x16x8xf32> -> vector<2x16x8xf32>
    "tpu.trace_stop"() : () -> ()
    %106 = vector.shape_cast %105 : vector<2x16x8xf32> to vector<32x8xf32>
    %107 = vector.extract_strided_slice %12 {offsets = [8, 0], sizes = [8, 32], strides = [1, 1]} : vector<32x32xf32> to vector<8x32xf32>
    %cst_58 = arith.constant dense<0.000000e+00> : vector<32x32xf32>
    %108 = tpu.matmul %106, %107, %cst_58 {dimension_numbers = #tpu.dot_dimension_numbers<[1], [0], [0], [1], [0, 0, 1, 1], [], []>} : vector<32x8xf32>, vector<8x32xf32>, vector<32x32xf32> -> vector<32x32xf32>
    %109 = arith.addf %84, %108 : vector<32x32xf32>
    %110 = vector.extract_strided_slice %56 {offsets = [0, 16], sizes = [32, 8], strides = [1, 1]} : vector<32x32xf32> to vector<32x8xf32>
    %111 = vector.shape_cast %110 : vector<32x8xf32> to vector<2x16x8xf32>
    %112 = vector.extract_strided_slice %57 {offsets = [0, 16], sizes = [32, 8], strides = [1, 1]} : vector<32x32xf32> to vector<32x8xf32>
    %113 = vector.shape_cast %112 : vector<32x8xf32> to vector<2x16x8xf32>
    %114 = vector.extract_strided_slice %58 {offsets = [0, 16], sizes = [32, 8], strides = [1, 1]} : vector<32x32xf32> to vector<32x8xf32>
    %115 = vector.shape_cast %114 : vector<32x8xf32> to vector<2x16x8xf32>
    "tpu.trace_start"() <{level = 10 : i32, message = "bqd,bkd->bqk"}> : () -> ()
    %cst_59 = arith.constant dense<0.000000e+00> : vector<2x16x16xf32>
    %116 = tpu.matmul %111, %113, %cst_59 {dimension_numbers = #tpu.dot_dimension_numbers<[2], [2], [1], [1], [0, 0, 0, 1, 1, 1], [0], [0]>} : vector<2x16x8xf32>, vector<2x16x8xf32>, vector<2x16x16xf32> -> vector<2x16x16xf32>
    "tpu.trace_stop"() : () -> ()
    %cst_60 = arith.constant 0.353553385 : f32
    %117 = vector.broadcast %cst_60 : f32 to vector<2x16x16xf32>
    %118 = arith.mulf %116, %117 : vector<2x16x16xf32>
    %119 = vector.broadcast %6 : vector<2x1x16xf32> to vector<2x16x16xf32>
    %120 = arith.addf %118, %119 : vector<2x16x16xf32>
    %cst_61 = arith.constant dense<0xFF800000> : vector<2x16xf32>
    %121 = vector.multi_reduction <maximumf>, %120, %cst_61 [2] : vector<2x16x16xf32> to vector<2x16xf32>
    %122 = vector.shape_cast %121 : vector<2x16xf32> to vector<2x16x1xf32>
    %123 = vector.broadcast %122 : vector<2x16x1xf32> to vector<2x16x16xf32>
    %124 = arith.subf %120, %123 : vector<2x16x16xf32>
    %125 = math.exp %124 : vector<2x16x16xf32>
    %cst_62 = arith.constant dense<0.000000e+00> : vector<2x16xf32>
    %126 = vector.multi_reduction <add>, %125, %cst_62 [2] : vector<2x16x16xf32> to vector<2x16xf32>
    %127 = vector.shape_cast %126 : vector<2x16xf32> to vector<2x16x1xf32>
    %128 = vector.broadcast %127 : vector<2x16x1xf32> to vector<2x16x16xf32>
    %129 = arith.divf %125, %128 : vector<2x16x16xf32>
    "tpu.trace_start"() <{level = 10 : i32, message = "bqk,bkd->bqd"}> : () -> ()
    %cst_63 = arith.constant dense<0.000000e+00> : vector<2x16x8xf32>
    %130 = tpu.matmul %129, %115, %cst_63 {dimension_numbers = #tpu.dot_dimension_numbers<[2], [1], [1], [2], [0, 0, 0, 1, 1, 2], [0], [0]>} : vector<2x16x16xf32>, vector<2x16x8xf32>, vector<2x16x8xf32> -> vector<2x16x8xf32>
    "tpu.trace_stop"() : () -> ()
    %131 = vector.shape_cast %130 : vector<2x16x8xf32> to vector<32x8xf32>
    %132 = vector.extract_strided_slice %12 {offsets = [16, 0], sizes = [8, 32], strides = [1, 1]} : vector<32x32xf32> to vector<8x32xf32>
    %cst_64 = arith.constant dense<0.000000e+00> : vector<32x32xf32>
    %133 = tpu.matmul %131, %132, %cst_64 {dimension_numbers = #tpu.dot_dimension_numbers<[1], [0], [0], [1], [0, 0, 1, 1], [], []>} : vector<32x8xf32>, vector<8x32xf32>, vector<32x32xf32> -> vector<32x32xf32>
    %134 = arith.addf %109, %133 : vector<32x32xf32>
    %135 = vector.extract_strided_slice %56 {offsets = [0, 24], sizes = [32, 8], strides = [1, 1]} : vector<32x32xf32> to vector<32x8xf32>
    %136 = vector.shape_cast %135 : vector<32x8xf32> to vector<2x16x8xf32>
    %137 = vector.extract_strided_slice %57 {offsets = [0, 24], sizes = [32, 8], strides = [1, 1]} : vector<32x32xf32> to vector<32x8xf32>
    %138 = vector.shape_cast %137 : vector<32x8xf32> to vector<2x16x8xf32>
    %139 = vector.extract_strided_slice %58 {offsets = [0, 24], sizes = [32, 8], strides = [1, 1]} : vector<32x32xf32> to vector<32x8xf32>
    %140 = vector.shape_cast %139 : vector<32x8xf32> to vector<2x16x8xf32>
    "tpu.trace_start"() <{level = 10 : i32, message = "bqd,bkd->bqk"}> : () -> ()
    %cst_65 = arith.constant dense<0.000000e+00> : vector<2x16x16xf32>
    %141 = tpu.matmul %136, %138, %cst_65 {dimension_numbers = #tpu.dot_dimension_numbers<[2], [2], [1], [1], [0, 0, 0, 1, 1, 1], [0], [0]>} : vector<2x16x8xf32>, vector<2x16x8xf32>, vector<2x16x16xf32> -> vector<2x16x16xf32>
    "tpu.trace_stop"() : () -> ()
    %cst_66 = arith.constant 0.353553385 : f32
    %142 = vector.broadcast %cst_66 : f32 to vector<2x16x16xf32>
    %143 = arith.mulf %141, %142 : vector<2x16x16xf32>
    %144 = vector.broadcast %6 : vector<2x1x16xf32> to vector<2x16x16xf32>
    %145 = arith.addf %143, %144 : vector<2x16x16xf32>
    %cst_67 = arith.constant dense<0xFF800000> : vector<2x16xf32>
    %146 = vector.multi_reduction <maximumf>, %145, %cst_67 [2] : vector<2x16x16xf32> to vector<2x16xf32>
    %147 = vector.shape_cast %146 : vector<2x16xf32> to vector<2x16x1xf32>
    %148 = vector.broadcast %147 : vector<2x16x1xf32> to vector<2x16x16xf32>
    %149 = arith.subf %145, %148 : vector<2x16x16xf32>
    %150 = math.exp %149 : vector<2x16x16xf32>
    %cst_68 = arith.constant dense<0.000000e+00> : vector<2x16xf32>
    %151 = vector.multi_reduction <add>, %150, %cst_68 [2] : vector<2x16x16xf32> to vector<2x16xf32>
    %152 = vector.shape_cast %151 : vector<2x16xf32> to vector<2x16x1xf32>
    %153 = vector.broadcast %152 : vector<2x16x1xf32> to vector<2x16x16xf32>
    %154 = arith.divf %150, %153 : vector<2x16x16xf32>
    "tpu.trace_start"() <{level = 10 : i32, message = "bqk,bkd->bqd"}> : () -> ()
    %cst_69 = arith.constant dense<0.000000e+00> : vector<2x16x8xf32>
    %155 = tpu.matmul %154, %140, %cst_69 {dimension_numbers = #tpu.dot_dimension_numbers<[2], [1], [1], [2], [0, 0, 0, 1, 1, 2], [0], [0]>} : vector<2x16x16xf32>, vector<2x16x8xf32>, vector<2x16x8xf32> -> vector<2x16x8xf32>
    "tpu.trace_stop"() : () -> ()
    %156 = vector.shape_cast %155 : vector<2x16x8xf32> to vector<32x8xf32>
    %157 = vector.extract_strided_slice %12 {offsets = [24, 0], sizes = [8, 32], strides = [1, 1]} : vector<32x32xf32> to vector<8x32xf32>
    %cst_70 = arith.constant dense<0.000000e+00> : vector<32x32xf32>
    %158 = tpu.matmul %156, %157, %cst_70 {dimension_numbers = #tpu.dot_dimension_numbers<[1], [0], [0], [1], [0, 0, 1, 1], [], []>} : vector<32x8xf32>, vector<8x32xf32>, vector<32x32xf32> -> vector<32x32xf32>
    %159 = arith.addf %134, %158 : vector<32x32xf32>
    %160 = vector.broadcast %14 : vector<1x32xf32> to vector<32x32xf32>
    %161 = arith.addf %159, %160 : vector<32x32xf32>
    %162 = arith.addf %4, %161 : vector<32x32xf32>
    %cst_71 = arith.constant dense<0.000000e+00> : vector<32xf32>
    %163 = vector.multi_reduction <add>, %162, %cst_71 [1] : vector<32x32xf32> to vector<32xf32>
    %164 = vector.shape_cast %163 : vector<32xf32> to vector<32x1xf32>
    %cst_72 = arith.constant 3.200000e+01 : f32
    %165 = vector.broadcast %cst_72 : f32 to vector<32x1xf32>
    %166 = arith.divf %164, %165 : vector<32x1xf32>
    %167 = vector.broadcast %166 : vector<32x1xf32> to vector<32x32xf32>
    %168 = arith.subf %162, %167 : vector<32x32xf32>
    %169 = arith.mulf %168, %168 : vector<32x32xf32>
    %cst_73 = arith.constant dense<0.000000e+00> : vector<32xf32>
    %170 = vector.multi_reduction <add>, %169, %cst_73 [1] : vector<32x32xf32> to vector<32xf32>
    %171 = vector.shape_cast %170 : vector<32xf32> to vector<32x1xf32>
    %cst_74 = arith.constant 3.200000e+01 : f32
    %172 = vector.broadcast %cst_74 : f32 to vector<32x1xf32>
    %173 = arith.divf %171, %172 : vector<32x1xf32>
    %174 = vector.broadcast %166 : vector<32x1xf32> to vector<32x32xf32>
    %175 = arith.subf %162, %174 : vector<32x32xf32>
    %cst_75 = arith.constant 9.99999974E-6 : f32
    %176 = vector.broadcast %cst_75 : f32 to vector<32x1xf32>
    %177 = arith.addf %173, %176 : vector<32x1xf32>
    %178 = math.rsqrt %177 : vector<32x1xf32>
    %179 = vector.broadcast %178 : vector<32x1xf32> to vector<32x32xf32>
    %180 = arith.mulf %175, %179 : vector<32x32xf32>
    %181 = vector.broadcast %20 : vector<1x32xf32> to vector<32x32xf32>
    %182 = arith.mulf %180, %181 : vector<32x32xf32>
    %183 = vector.broadcast %22 : vector<1x32xf32> to vector<32x32xf32>
    %184 = arith.addf %182, %183 : vector<32x32xf32>
    %cst_76 = arith.constant dense<0.000000e+00> : vector<32x64xf32>
    %185 = tpu.matmul %184, %24, %cst_76 {dimension_numbers = #tpu.dot_dimension_numbers<[1], [0], [0], [1], [0, 0, 1, 1], [], []>} : vector<32x32xf32>, vector<32x64xf32>, vector<32x64xf32> -> vector<32x64xf32>
    %186 = vector.broadcast %26 : vector<1x64xf32> to vector<32x64xf32>
    %187 = arith.addf %185, %186 : vector<32x64xf32>
    %cst_77 = arith.constant 0.000000e+00 : f32
    %188 = vector.broadcast %cst_77 : f32 to vector<32x64xf32>
    %189 = arith.maximumf %187, %188 : vector<32x64xf32>
    %cst_78 = arith.constant dense<0.000000e+00> : vector<32x32xf32>
    %190 = tpu.matmul %189, %28, %cst_78 {dimension_numbers = #tpu.dot_dimension_numbers<[1], [0], [0], [1], [0, 0, 1, 1], [], []>} : vector<32x64xf32>, vector<64x32xf32>, vector<32x32xf32> -> vector<32x32xf32>
    %191 = arith.addf %162, %190 : vector<32x32xf32>
    %192 = vector.broadcast %30 : vector<1x32xf32> to vector<32x32xf32>
    %193 = arith.addf %191, %192 : vector<32x32xf32>
    %194 = vector.shape_cast %193 : vector<32x32xf32> to vector<2x16x32xf32>
    %c0_79 = arith.constant 0 : index
    %c0_80 = arith.constant 0 : index
    %c0_81 = arith.constant 0 : index
    %195 = vector.load %arg24[%c0_79, %c0_80, %c0_81] : memref<2x16x32xf32, #tpu.memory_space<vmem>>, vector<2x16x32xf32>
    tpu.vector_store %arg24[%c0_79, %c0_80, %c0_81], %194 {strides = array<i32>} : memref<2x16x32xf32, #tpu.memory_space<vmem>>, vector<2x16x32xf32>,
    %c0_i32_82 = arith.constant 0 : i32
    %196 = arith.cmpi eq, %arg0, %c0_i32_82 : i32
    %197 = arith.extui %196 : i1 to i32
    %c0_i32_83 = arith.constant 0 : i32
    %198 = arith.cmpi ne, %197, %c0_i32_83 : i32
    scf.if %198 {
      %c0_84 = arith.constant 0 : index
      %c0_85 = arith.constant 0 : index
      %199 = vector.load %arg21[%c0_84, %c0_85] : memref<1x32xf32, #tpu.memory_space<vmem>>, vector<1x32xf32>
      %c0_86 = arith.constant 0 : index
      %c0_87 = arith.constant 0 : index
      %200 = vector.load %arg22[%c0_86, %c0_87] : memref<1x32xf32, #tpu.memory_space<vmem>>, vector<1x32xf32>
      %cst_88 = arith.constant dense<0.000000e+00> : vector<32xf32>
      %201 = vector.multi_reduction <add>, %193, %cst_88 [1] : vector<32x32xf32> to vector<32xf32>
      %202 = vector.shape_cast %201 : vector<32xf32> to vector<32x1xf32>
      %cst_89 = arith.constant 3.200000e+01 : f32
      %203 = vector.broadcast %cst_89 : f32 to vector<32x1xf32>
      %204 = arith.divf %202, %203 : vector<32x1xf32>
      %205 = vector.broadcast %204 : vector<32x1xf32> to vector<32x32xf32>
      %206 = arith.subf %193, %205 : vector<32x32xf32>
      %207 = arith.mulf %206, %206 : vector<32x32xf32>
      %cst_90 = arith.constant dense<0.000000e+00> : vector<32xf32>
      %208 = vector.multi_reduction <add>, %207, %cst_90 [1] : vector<32x32xf32> to vector<32xf32>
      %209 = vector.shape_cast %208 : vector<32xf32> to vector<32x1xf32>
      %cst_91 = arith.constant 3.200000e+01 : f32
      %210 = vector.broadcast %cst_91 : f32 to vector<32x1xf32>
      %211 = arith.divf %209, %210 : vector<32x1xf32>
      %212 = vector.broadcast %204 : vector<32x1xf32> to vector<32x32xf32>
      %213 = arith.subf %193, %212 : vector<32x32xf32>
      %cst_92 = arith.constant 9.99999974E-6 : f32
      %214 = vector.broadcast %cst_92 : f32 to vector<32x1xf32>
      %215 = arith.addf %211, %214 : vector<32x1xf32>
      %216 = math.rsqrt %215 : vector<32x1xf32>
      %217 = vector.broadcast %216 : vector<32x1xf32> to vector<32x32xf32>
      %218 = arith.mulf %213, %217 : vector<32x32xf32>
      %219 = vector.broadcast %199 : vector<1x32xf32> to vector<32x32xf32>
      %220 = arith.mulf %218, %219 : vector<32x32xf32>
      %221 = vector.broadcast %200 : vector<1x32xf32> to vector<32x32xf32>
      %222 = arith.addf %220, %221 : vector<32x32xf32>
      %223 = vector.shape_cast %222 : vector<32x32xf32> to vector<2x16x32xf32>
      %224 = vector.extract_strided_slice %223 {offsets = [0, 0, 0], sizes = [2, 8, 32], strides = [1, 1, 1]} : vector<2x16x32xf32> to vector<2x8x32xf32>
      %c0_93 = arith.constant 0 : index
      %c0_94 = arith.constant 0 : index
      %c0_95 = arith.constant 0 : index
      %225 = vector.load %arg23[%c0_93, %c0_94, %c0_95] : memref<2x8x32xf32, #tpu.memory_space<vmem>>, vector<2x8x32xf32>
      tpu.vector_store %arg23[%c0_93, %c0_94, %c0_95], %224 {strides = array<i32>} : memref<2x8x32xf32, #tpu.memory_space<vmem>>, vector<2x8x32xf32>,
    } else {
    }
    return
  }
  func.func @transform_0(%arg0: i32) -> (i32, i32, i32) {
    %c0_i32 = arith.constant 0 : i32
    %c0_i32_0 = arith.constant 0 : i32
    %c0_i32_1 = arith.constant 0 : i32
    %c0_i32_2 = arith.constant 0 : i32
    return %c0_i32, %c0_i32_0, %c0_i32_1 : i32, i32, i32
  }
  func.func @transform_1(%arg0: i32) -> (i32, i32, i32) {
    %c0_i32 = arith.constant 0 : i32
    %c0_i32_0 = arith.constant 0 : i32
    %c0_i32_1 = arith.constant 0 : i32
    %c0_i32_2 = arith.constant 0 : i32
    return %c0_i32, %c0_i32_0, %c0_i32_1 : i32, i32, i32
  }
  func.func @transform_2(%arg0: i32) -> (i32, i32) {
    %c0_i32 = arith.constant 0 : i32
    %c0_i32_0 = arith.constant 0 : i32
    %c0_i32_1 = arith.constant 0 : i32
    return %c0_i32, %c0_i32_0 : i32, i32
  }
  func.func @transform_3(%arg0: i32) -> (i32, i32) {
    %c0_i32 = arith.constant 0 : i32
    %c0_i32_0 = arith.constant 0 : i32
    %c0_i32_1 = arith.constant 0 : i32
    return %c0_i32, %c0_i32_0 : i32, i32
  }
  func.func @transform_4(%arg0: i32) -> (i32, i32) {
    %c0_i32 = arith.constant 0 : i32
    %c0_i32_0 = arith.constant 0 : i32
    %c0_i32_1 = arith.constant 0 : i32
    return %c0_i32, %c0_i32_0 : i32, i32
  }
  func.func @transform_5(%arg0: i32) -> (i32, i32) {
    %c0_i32 = arith.constant 0 : i32
    %c0_i32_0 = arith.constant 0 : i32
    %c0_i32_1 = arith.constant 0 : i32
    return %c0_i32, %c0_i32_0 : i32, i32
  }
  func.func @transform_6(%arg0: i32) -> (i32, i32) {
    %c0_i32 = arith.constant 0 : i32
    %c0_i32_0 = arith.constant 0 : i32
    %c0_i32_1 = arith.constant 0 : i32
    return %c0_i32, %c0_i32_0 : i32, i32
  }
  func.func @transform_7(%arg0: i32) -> (i32, i32) {
    %c0_i32 = arith.constant 0 : i32
    %c0_i32_0 = arith.constant 0 : i32
    %c0_i32_1 = arith.constant 0 : i32
    return %c0_i32, %c0_i32_0 : i32, i32
  }
  func.func @transform_8(%arg0: i32) -> (i32, i32, i32) {
    %c0_i32 = arith.constant 0 : i32
    %c0_i32_0 = arith.constant 0 : i32
    %c0_i32_1 = arith.constant 0 : i32
    return %arg0, %c0_i32, %c0_i32_0 : i32, i32, i32
  }
  func.func @transform_9(%arg0: i32) -> (i32, i32, i32) {
    %c0_i32 = arith.constant 0 : i32
    %c0_i32_0 = arith.constant 0 : i32
    %c0_i32_1 = arith.constant 0 : i32
    return %arg0, %c0_i32, %c0_i32_0 : i32, i32, i32
  }
  func.func @transform_10(%arg0: i32) -> (i32, i32, i32) {
    %c0_i32 = arith.constant 0 : i32
    %c0_i32_0 = arith.constant 0 : i32
    %c0_i32_1 = arith.constant 0 : i32
    return %arg0, %c0_i32, %c0_i32_0 : i32, i32, i32
  }
  func.func @transform_11(%arg0: i32) -> (i32, i32, i32) {
    %c0_i32 = arith.constant 0 : i32
    %c0_i32_0 = arith.constant 0 : i32
    %c0_i32_1 = arith.constant 0 : i32
    return %arg0, %c0_i32, %c0_i32_0 : i32, i32, i32
  }
  func.func @transform_12(%arg0: i32) -> (i32, i32, i32) {
    %c0_i32 = arith.constant 0 : i32
    %c0_i32_0 = arith.constant 0 : i32
    %c0_i32_1 = arith.constant 0 : i32
    return %arg0, %c0_i32, %c0_i32_0 : i32, i32, i32
  }
  func.func @transform_13(%arg0: i32) -> (i32, i32, i32) {
    %c0_i32 = arith.constant 0 : i32
    %c0_i32_0 = arith.constant 0 : i32
    %c0_i32_1 = arith.constant 0 : i32
    return %arg0, %c0_i32, %c0_i32_0 : i32, i32, i32
  }
  func.func @transform_14(%arg0: i32) -> (i32, i32, i32) {
    %c0_i32 = arith.constant 0 : i32
    %c0_i32_0 = arith.constant 0 : i32
    %c0_i32_1 = arith.constant 0 : i32
    return %arg0, %c0_i32, %c0_i32_0 : i32, i32, i32
  }
  func.func @transform_15(%arg0: i32) -> (i32, i32, i32) {
    %c0_i32 = arith.constant 0 : i32
    %c0_i32_0 = arith.constant 0 : i32
    %c0_i32_1 = arith.constant 0 : i32
    return %arg0, %c0_i32, %c0_i32_0 : i32, i32, i32
  }
  func.func @transform_16(%arg0: i32) -> (i32, i32, i32) {
    %c0_i32 = arith.constant 0 : i32
    %c0_i32_0 = arith.constant 0 : i32
    %c0_i32_1 = arith.constant 0 : i32
    return %arg0, %c0_i32, %c0_i32_0 : i32, i32, i32
  }
  func.func @transform_17(%arg0: i32) -> (i32, i32, i32) {
    %c0_i32 = arith.constant 0 : i32
    %c0_i32_0 = arith.constant 0 : i32
    %c0_i32_1 = arith.constant 0 : i32
    return %arg0, %c0_i32, %c0_i32_0 : i32, i32, i32
  }
  func.func @transform_18(%arg0: i32) -> (i32, i32, i32) {
    %c0_i32 = arith.constant 0 : i32
    %c0_i32_0 = arith.constant 0 : i32
    %c0_i32_1 = arith.constant 0 : i32
    return %arg0, %c0_i32, %c0_i32_0 : i32, i32, i32
  }
  func.func @transform_19(%arg0: i32) -> (i32, i32, i32) {
    %c0_i32 = arith.constant 0 : i32
    %c0_i32_0 = arith.constant 0 : i32
    %c0_i32_1 = arith.constant 0 : i32
    return %arg0, %c0_i32, %c0_i32_0 : i32, i32, i32
  }
  func.func @transform_20(%arg0: i32) -> (i32, i32) {
    %c0_i32 = arith.constant 0 : i32
    %c0_i32_0 = arith.constant 0 : i32
    %c0_i32_1 = arith.constant 0 : i32
    return %c0_i32, %c0_i32_0 : i32, i32
  }
  func.func @transform_21(%arg0: i32) -> (i32, i32) {
    %c0_i32 = arith.constant 0 : i32
    %c0_i32_0 = arith.constant 0 : i32
    %c0_i32_1 = arith.constant 0 : i32
    return %c0_i32, %c0_i32_0 : i32, i32
  }
  func.func @transform_22(%arg0: i32) -> (i32, i32, i32) {
    %c0_i32 = arith.constant 0 : i32
    %c0_i32_0 = arith.constant 0 : i32
    %c0_i32_1 = arith.constant 0 : i32
    %c0_i32_2 = arith.constant 0 : i32
    return %c0_i32, %c0_i32_0, %c0_i32_1 : i32, i32, i32
  }
}

module attributes {stable_mosaic.version = 11 : i64} {
  func.func @_text_graph_kernel(%arg0: i32, %arg1: memref<2x8x32xf32, #tpu.memory_space<vmem>>, %arg2: memref<2x8xf32, #tpu.memory_space<vmem>>, %arg3: memref<2x8x9xf32, #tpu.memory_space<vmem>>, %arg4: memref<2x8x8xf32, #tpu.memory_space<vmem>>, %arg5: memref<2x8xf32, #tpu.memory_space<vmem>>, %arg6: memref<12x7xf32, #tpu.memory_space<vmem>>, %arg7: memref<9x32xf32, #tpu.memory_space<vmem>>, %arg8: memref<1x32xf32, #tpu.memory_space<vmem>>, %arg9: memref<32x32xf32, #tpu.memory_space<vmem>>, %arg10: memref<1x32xf32, #tpu.memory_space<vmem>>, %arg11: memref<1x32xf32, #tpu.memory_space<vmem>>, %arg12: memref<1x32xf32, #tpu.memory_space<vmem>>, %arg13: memref<32x1xf32, #tpu.memory_space<vmem>>, %arg14: memref<1x1xf32, #tpu.memory_space<vmem>>, %arg15: memref<7x32xf32, #tpu.memory_space<vmem>>, %arg16: memref<1x32xf32, #tpu.memory_space<vmem>>, %arg17: memref<32x1xf32, #tpu.memory_space<vmem>>, %arg18: memref<1x1xf32, #tpu.memory_space<vmem>>, %arg19: memref<1x32x96xf32, #tpu.memory_space<vmem>>, %arg20: memref<1x1x96xf32, #tpu.memory_space<vmem>>, %arg21: memref<1x32x32xf32, #tpu.memory_space<vmem>>, %arg22: memref<1x1x32xf32, #tpu.memory_space<vmem>>, %arg23: memref<1x1x32xf32, #tpu.memory_space<vmem>>, %arg24: memref<1x1x32xf32, #tpu.memory_space<vmem>>, %arg25: memref<1x1x32xf32, #tpu.memory_space<vmem>>, %arg26: memref<1x1x32xf32, #tpu.memory_space<vmem>>, %arg27: memref<1x32x64xf32, #tpu.memory_space<vmem>>, %arg28: memref<1x1x64xf32, #tpu.memory_space<vmem>>, %arg29: memref<1x64x32xf32, #tpu.memory_space<vmem>>, %arg30: memref<1x1x32xf32, #tpu.memory_space<vmem>>, %arg31: memref<1x32xf32, #tpu.memory_space<vmem>>, %arg32: memref<1x32xf32, #tpu.memory_space<vmem>>, %arg33: memref<2x8x32xf32, #tpu.memory_space<vmem>>, %arg34: memref<2x8x32xf32, #tpu.memory_space<vmem>>, %arg35: memref<2x8x1xf32, #tpu.memory_space<vmem>>, %arg36: memref<12x1xf32, #tpu.memory_space<vmem>>, %arg37: memref<2x8x32xf32, #tpu.memory_space<vmem>>) attributes {dimension_semantics = [#tpu.dimension_semantics<arbitrary>], iteration_bounds = array<i64: 1>, scalar_prefetch = 0 : i64, scratch_operands = 1 : i64, tpu.core_type = #tpu.core_type<tc>, window_params = [{pipeline_mode = #tpu.pipeline_mode<synchronous>, transform_indices = @transform_0, window_bounds = array<i64: 2, 8, 32>}, {pipeline_mode = #tpu.pipeline_mode<synchronous>, transform_indices = @transform_1, window_bounds = array<i64: 2, 8>}, {pipeline_mode = #tpu.pipeline_mode<synchronous>, transform_indices = @transform_2, window_bounds = array<i64: 2, 8, 9>}, {pipeline_mode = #tpu.pipeline_mode<synchronous>, transform_indices = @transform_3, window_bounds = array<i64: 2, 8, 8>}, {pipeline_mode = #tpu.pipeline_mode<synchronous>, transform_indices = @transform_4, window_bounds = array<i64: 2, 8>}, {pipeline_mode = #tpu.pipeline_mode<synchronous>, transform_indices = @transform_5, window_bounds = array<i64: 12, 7>}, {pipeline_mode = #tpu.pipeline_mode<synchronous>, transform_indices = @transform_6, window_bounds = array<i64: 9, 32>}, {pipeline_mode = #tpu.pipeline_mode<synchronous>, transform_indices = @transform_7, window_bounds = array<i64: 1, 32>}, {pipeline_mode = #tpu.pipeline_mode<synchronous>, transform_indices = @transform_8, window_bounds = array<i64: 32, 32>}, {pipeline_mode = #tpu.pipeline_mode<synchronous>, transform_indices = @transform_9, window_bounds = array<i64: 1, 32>}, {pipeline_mode = #tpu.pipeline_mode<synchronous>, transform_indices = @transform_10, window_bounds = array<i64: 1, 32>}, {pipeline_mode = #tpu.pipeline_mode<synchronous>, transform_indices = @transform_11, window_bounds = array<i64: 1, 32>}, {pipeline_mode = #tpu.pipeline_mode<synchronous>, transform_indices = @transform_12, window_bounds = array<i64: 32, 1>}, {pipeline_mode = #tpu.pipeline_mode<synchronous>, transform_indices = @transform_13, window_bounds = array<i64: 1, 1>}, {pipeline_mode = #tpu.pipeline_mode<synchronous>, transform_indices = @transform_14, window_bounds = array<i64: 7, 32>}, {pipeline_mode = #tpu.pipeline_mode<synchronous>, transform_indices = @transform_15, window_bounds = array<i64: 1, 32>}, {pipeline_mode = #tpu.pipeline_mode<synchronous>, transform_indices = @transform_16, window_bounds = array<i64: 32, 1>}, {pipeline_mode = #tpu.pipeline_mode<synchronous>, transform_indices = @transform_17, window_bounds = array<i64: 1, 1>}, {transform_indices = @transform_18, window_bounds = array<i64: 1, 32, 96>}, {transform_indices = @transform_19, window_bounds = array<i64: 1, 1, 96>}, {transform_indices = @transform_20, window_bounds = array<i64: 1, 32, 32>}, {transform_indices = @transform_21, window_bounds = array<i64: 1, 1, 32>}, {transform_indices = @transform_22, window_bounds = array<i64: 1, 1, 32>}, {transform_indices = @transform_23, window_bounds = array<i64: 1, 1, 32>}, {transform_indices = @transform_24, window_bounds = array<i64: 1, 1, 32>}, {transform_indices = @transform_25, window_bounds = array<i64: 1, 1, 32>}, {transform_indices = @transform_26, window_bounds = array<i64: 1, 32, 64>}, {transform_indices = @transform_27, window_bounds = array<i64: 1, 1, 64>}, {transform_indices = @transform_28, window_bounds = array<i64: 1, 64, 32>}, {transform_indices = @transform_29, window_bounds = array<i64: 1, 1, 32>}, {pipeline_mode = #tpu.pipeline_mode<synchronous>, transform_indices = @transform_30, window_bounds = array<i64: 1, 32>}, {pipeline_mode = #tpu.pipeline_mode<synchronous>, transform_indices = @transform_31, window_bounds = array<i64: 1, 32>}, {pipeline_mode = #tpu.pipeline_mode<synchronous>, transform_indices = @transform_32, window_bounds = array<i64: 2, 8, 32>}, {pipeline_mode = #tpu.pipeline_mode<synchronous>, transform_indices = @transform_33, window_bounds = array<i64: 2, 8, 32>}, {pipeline_mode = #tpu.pipeline_mode<synchronous>, transform_indices = @transform_34, window_bounds = array<i64: 2, 8, 1>}, {pipeline_mode = #tpu.pipeline_mode<synchronous>, transform_indices = @transform_35, window_bounds = array<i64: 12, 1>}]} {
    %c0_i32 = arith.constant 0 : i32
    %0 = arith.cmpi eq, %arg0, %c0_i32 : i32
    %1 = arith.extui %0 : i1 to i32
    %c0_i32_0 = arith.constant 0 : i32
    %2 = arith.cmpi ne, %1, %c0_i32_0 : i32
    scf.if %2 {
      %c0_84 = arith.constant 0 : index
      %c0_85 = arith.constant 0 : index
      %c0_86 = arith.constant 0 : index
      %199 = vector.load %arg1[%c0_84, %c0_85, %c0_86] : memref<2x8x32xf32, #tpu.memory_space<vmem>>, vector<2x8x32xf32>
      %c0_87 = arith.constant 0 : index
      %c0_88 = arith.constant 0 : index
      %c0_89 = arith.constant 0 : index
      %200 = vector.load %arg37[%c0_87, %c0_88, %c0_89] : memref<2x8x32xf32, #tpu.memory_space<vmem>>, vector<2x8x32xf32>
      tpu.vector_store %arg37[%c0_87, %c0_88, %c0_89], %199 {strides = array<i32>} : memref<2x8x32xf32, #tpu.memory_space<vmem>>, vector<2x8x32xf32>,
      %c0_90 = arith.constant 0 : index
      %c0_91 = arith.constant 0 : index
      %c0_92 = arith.constant 0 : index
      %201 = vector.load %arg3[%c0_90, %c0_91, %c0_92] : memref<2x8x9xf32, #tpu.memory_space<vmem>>, vector<2x8x9xf32>
      %202 = vector.shape_cast %201 : vector<2x8x9xf32> to vector<16x9xf32>
      %c0_93 = arith.constant 0 : index
      %c0_94 = arith.constant 0 : index
      %203 = vector.load %arg7[%c0_93, %c0_94] : memref<9x32xf32, #tpu.memory_space<vmem>>, vector<9x32xf32>
      %cst_95 = arith.constant dense<0.000000e+00> : vector<16x32xf32>
      %204 = tpu.matmul %202, %203, %cst_95 {dimension_numbers = #tpu.dot_dimension_numbers<[1], [0], [0], [1], [0, 0, 1, 1], [], []>} : vector<16x9xf32>, vector<9x32xf32>, vector<16x32xf32> -> vector<16x32xf32>
      %c0_96 = arith.constant 0 : index
      %c0_97 = arith.constant 0 : index
      %205 = vector.load %arg8[%c0_96, %c0_97] : memref<1x32xf32, #tpu.memory_space<vmem>>, vector<1x32xf32>
      %206 = vector.broadcast %205 : vector<1x32xf32> to vector<16x32xf32>
      %207 = arith.addf %204, %206 : vector<16x32xf32>
      %c0_98 = arith.constant 0 : index
      %c0_99 = arith.constant 0 : index
      %c0_100 = arith.constant 0 : index
      %208 = vector.load %arg4[%c0_98, %c0_99, %c0_100] : memref<2x8x8xf32, #tpu.memory_space<vmem>>, vector<2x8x8xf32>
      %209 = vector.shape_cast %207 : vector<16x32xf32> to vector<2x8x32xf32>
      "tpu.trace_start"() <{level = 10 : i32, message = "bij,bjd->bid"}> : () -> ()
      %cst_101 = arith.constant dense<0.000000e+00> : vector<2x8x32xf32>
      %210 = tpu.matmul %208, %209, %cst_101 {dimension_numbers = #tpu.dot_dimension_numbers<[2], [1], [1], [2], [0, 0, 0, 1, 1, 2], [0], [0]>} : vector<2x8x8xf32>, vector<2x8x32xf32>, vector<2x8x32xf32> -> vector<2x8x32xf32>
      "tpu.trace_stop"() : () -> ()
      %211 = vector.shape_cast %210 : vector<2x8x32xf32> to vector<16x32xf32>
      %c0_102 = arith.constant 0 : index
      %c0_103 = arith.constant 0 : index
      %212 = vector.load %arg9[%c0_102, %c0_103] : memref<32x32xf32, #tpu.memory_space<vmem>>, vector<32x32xf32>
      %cst_104 = arith.constant dense<0.000000e+00> : vector<16x32xf32>
      %213 = tpu.matmul %211, %212, %cst_104 {dimension_numbers = #tpu.dot_dimension_numbers<[1], [0], [0], [1], [0, 0, 1, 1], [], []>} : vector<16x32xf32>, vector<32x32xf32>, vector<16x32xf32> -> vector<16x32xf32>
      %c0_105 = arith.constant 0 : index
      %c0_106 = arith.constant 0 : index
      %214 = vector.load %arg10[%c0_105, %c0_106] : memref<1x32xf32, #tpu.memory_space<vmem>>, vector<1x32xf32>
      %215 = vector.broadcast %214 : vector<1x32xf32> to vector<16x32xf32>
      %216 = arith.addf %213, %215 : vector<16x32xf32>
      %cst_107 = arith.constant 0.000000e+00 : f32
      %217 = vector.broadcast %cst_107 : f32 to vector<16x32xf32>
      %218 = arith.maximumf %216, %217 : vector<16x32xf32>
      %219 = arith.addf %218, %207 : vector<16x32xf32>
      %c0_108 = arith.constant 0 : index
      %c0_109 = arith.constant 0 : index
      %220 = vector.load %arg11[%c0_108, %c0_109] : memref<1x32xf32, #tpu.memory_space<vmem>>, vector<1x32xf32>
      %c0_110 = arith.constant 0 : index
      %c0_111 = arith.constant 0 : index
      %221 = vector.load %arg12[%c0_110, %c0_111] : memref<1x32xf32, #tpu.memory_space<vmem>>, vector<1x32xf32>
      %cst_112 = arith.constant dense<0.000000e+00> : vector<16xf32>
      %222 = vector.multi_reduction <add>, %219, %cst_112 [1] : vector<16x32xf32> to vector<16xf32>
      %223 = vector.shape_cast %222 : vector<16xf32> to vector<16x1xf32>
      %cst_113 = arith.constant 3.200000e+01 : f32
      %224 = vector.broadcast %cst_113 : f32 to vector<16x1xf32>
      %225 = arith.divf %223, %224 : vector<16x1xf32>
      %226 = vector.broadcast %225 : vector<16x1xf32> to vector<16x32xf32>
      %227 = arith.subf %219, %226 : vector<16x32xf32>
      %228 = arith.mulf %227, %227 : vector<16x32xf32>
      %cst_114 = arith.constant dense<0.000000e+00> : vector<16xf32>
      %229 = vector.multi_reduction <add>, %228, %cst_114 [1] : vector<16x32xf32> to vector<16xf32>
      %230 = vector.shape_cast %229 : vector<16xf32> to vector<16x1xf32>
      %cst_115 = arith.constant 3.200000e+01 : f32
      %231 = vector.broadcast %cst_115 : f32 to vector<16x1xf32>
      %232 = arith.divf %230, %231 : vector<16x1xf32>
      %233 = vector.broadcast %225 : vector<16x1xf32> to vector<16x32xf32>
      %234 = arith.subf %219, %233 : vector<16x32xf32>
      %cst_116 = arith.constant 9.99999974E-6 : f32
      %235 = vector.broadcast %cst_116 : f32 to vector<16x1xf32>
      %236 = arith.addf %232, %235 : vector<16x1xf32>
      %237 = math.rsqrt %236 : vector<16x1xf32>
      %238 = vector.broadcast %237 : vector<16x1xf32> to vector<16x32xf32>
      %239 = arith.mulf %234, %238 : vector<16x32xf32>
      %240 = vector.broadcast %220 : vector<1x32xf32> to vector<16x32xf32>
      %241 = arith.mulf %239, %240 : vector<16x32xf32>
      %242 = vector.broadcast %221 : vector<1x32xf32> to vector<16x32xf32>
      %243 = arith.addf %241, %242 : vector<16x32xf32>
      %244 = vector.shape_cast %243 : vector<16x32xf32> to vector<2x8x32xf32>
      %c0_117 = arith.constant 0 : index
      %c0_118 = arith.constant 0 : index
      %245 = vector.load %arg5[%c0_117, %c0_118] : memref<2x8xf32, #tpu.memory_space<vmem>>, vector<2x8xf32>
      %246 = vector.shape_cast %245 : vector<2x8xf32> to vector<2x8x1xf32>
      %247 = vector.broadcast %246 : vector<2x8x1xf32> to vector<2x8x32xf32>
      %248 = arith.mulf %244, %247 : vector<2x8x32xf32>
      %c0_119 = arith.constant 0 : index
      %c0_120 = arith.constant 0 : index
      %c0_121 = arith.constant 0 : index
      %249 = vector.load %arg34[%c0_119, %c0_120, %c0_121] : memref<2x8x32xf32, #tpu.memory_space<vmem>>, vector<2x8x32xf32>
      tpu.vector_store %arg34[%c0_119, %c0_120, %c0_121], %248 {strides = array<i32>} : memref<2x8x32xf32, #tpu.memory_space<vmem>>, vector<2x8x32xf32>,
      %250 = vector.shape_cast %248 : vector<2x8x32xf32> to vector<16x32xf32>
      %c0_122 = arith.constant 0 : index
      %c0_123 = arith.constant 0 : index
      %251 = vector.load %arg13[%c0_122, %c0_123] : memref<32x1xf32, #tpu.memory_space<vmem>>, vector<32x1xf32>
      %cst_124 = arith.constant dense<0.000000e+00> : vector<16x1xf32>
      %252 = tpu.matmul %250, %251, %cst_124 {dimension_numbers = #tpu.dot_dimension_numbers<[1], [0], [0], [1], [0, 0, 1, 1], [], []>} : vector<16x32xf32>, vector<32x1xf32>, vector<16x1xf32> -> vector<16x1xf32>
      %c0_125 = arith.constant 0 : index
      %c0_126 = arith.constant 0 : index
      %253 = vector.load %arg14[%c0_125, %c0_126] : memref<1x1xf32, #tpu.memory_space<vmem>>, vector<1x1xf32>
      %254 = vector.broadcast %253 : vector<1x1xf32> to vector<16x1xf32>
      %255 = arith.addf %252, %254 : vector<16x1xf32>
      %cst_127 = arith.constant 0.000000e+00 : f32
      %256 = vector.broadcast %cst_127 : f32 to vector<16x1xf32>
      %257 = arith.subf %256, %255 : vector<16x1xf32>
      %258 = math.exp %257 : vector<16x1xf32>
      %cst_128 = arith.constant 1.000000e+00 : f32
      %259 = vector.broadcast %cst_128 : f32 to vector<16x1xf32>
      %260 = arith.addf %259, %258 : vector<16x1xf32>
      %cst_129 = arith.constant 1.000000e+00 : f32
      %261 = vector.broadcast %cst_129 : f32 to vector<16x1xf32>
      %262 = arith.divf %261, %260 : vector<16x1xf32>
      %263 = vector.shape_cast %262 : vector<16x1xf32> to vector<2x8x1xf32>
      %c0_130 = arith.constant 0 : index
      %c0_131 = arith.constant 0 : index
      %c0_132 = arith.constant 0 : index
      %264 = vector.load %arg35[%c0_130, %c0_131, %c0_132] : memref<2x8x1xf32, #tpu.memory_space<vmem>>, vector<2x8x1xf32>
      tpu.vector_store %arg35[%c0_130, %c0_131, %c0_132], %263 {strides = array<i32>} : memref<2x8x1xf32, #tpu.memory_space<vmem>>, vector<2x8x1xf32>,
      %c0_133 = arith.constant 0 : index
      %c0_134 = arith.constant 0 : index
      %265 = vector.load %arg6[%c0_133, %c0_134] : memref<12x7xf32, #tpu.memory_space<vmem>>, vector<12x7xf32>
      %c0_135 = arith.constant 0 : index
      %c0_136 = arith.constant 0 : index
      %266 = vector.load %arg15[%c0_135, %c0_136] : memref<7x32xf32, #tpu.memory_space<vmem>>, vector<7x32xf32>
      %cst_137 = arith.constant dense<0.000000e+00> : vector<12x32xf32>
      %267 = tpu.matmul %265, %266, %cst_137 {dimension_numbers = #tpu.dot_dimension_numbers<[1], [0], [0], [1], [0, 0, 1, 1], [], []>} : vector<12x7xf32>, vector<7x32xf32>, vector<12x32xf32> -> vector<12x32xf32>
      %c0_138 = arith.constant 0 : index
      %c0_139 = arith.constant 0 : index
      %268 = vector.load %arg16[%c0_138, %c0_139] : memref<1x32xf32, #tpu.memory_space<vmem>>, vector<1x32xf32>
      %269 = vector.broadcast %268 : vector<1x32xf32> to vector<12x32xf32>
      %270 = arith.addf %267, %269 : vector<12x32xf32>
      %c0_140 = arith.constant 0 : index
      %c0_141 = arith.constant 0 : index
      %271 = vector.load %arg17[%c0_140, %c0_141] : memref<32x1xf32, #tpu.memory_space<vmem>>, vector<32x1xf32>
      %cst_142 = arith.constant dense<0.000000e+00> : vector<12x1xf32>
      %272 = tpu.matmul %270, %271, %cst_142 {dimension_numbers = #tpu.dot_dimension_numbers<[1], [0], [0], [1], [0, 0, 1, 1], [], []>} : vector<12x32xf32>, vector<32x1xf32>, vector<12x1xf32> -> vector<12x1xf32>
      %c0_143 = arith.constant 0 : index
      %c0_144 = arith.constant 0 : index
      %273 = vector.load %arg18[%c0_143, %c0_144] : memref<1x1xf32, #tpu.memory_space<vmem>>, vector<1x1xf32>
      %274 = vector.broadcast %273 : vector<1x1xf32> to vector<12x1xf32>
      %275 = arith.addf %272, %274 : vector<12x1xf32>
      %cst_145 = arith.constant 0.000000e+00 : f32
      %276 = vector.broadcast %cst_145 : f32 to vector<12x1xf32>
      %277 = arith.subf %276, %275 : vector<12x1xf32>
      %278 = math.exp %277 : vector<12x1xf32>
      %cst_146 = arith.constant 1.000000e+00 : f32
      %279 = vector.broadcast %cst_146 : f32 to vector<12x1xf32>
      %280 = arith.addf %279, %278 : vector<12x1xf32>
      %cst_147 = arith.constant 1.000000e+00 : f32
      %281 = vector.broadcast %cst_147 : f32 to vector<12x1xf32>
      %282 = arith.divf %281, %280 : vector<12x1xf32>
      %c0_148 = arith.constant 0 : index
      %c0_149 = arith.constant 0 : index
      %283 = vector.load %arg36[%c0_148, %c0_149] : memref<12x1xf32, #tpu.memory_space<vmem>>, vector<12x1xf32>
      tpu.vector_store %arg36[%c0_148, %c0_149], %282 {strides = array<i32>} : memref<12x1xf32, #tpu.memory_space<vmem>>, vector<12x1xf32>,
    } else {
    }
    %c0 = arith.constant 0 : index
    %c0_1 = arith.constant 0 : index
    %c0_2 = arith.constant 0 : index
    %3 = vector.load %arg37[%c0, %c0_1, %c0_2] : memref<2x8x32xf32, #tpu.memory_space<vmem>>, vector<2x8x32xf32>
    %4 = vector.shape_cast %3 : vector<2x8x32xf32> to vector<16x32xf32>
    %c0_3 = arith.constant 0 : index
    %c0_4 = arith.constant 0 : index
    %5 = vector.load %arg2[%c0_3, %c0_4] : memref<2x8xf32, #tpu.memory_space<vmem>>, vector<2x8xf32>
    %6 = vector.shape_cast %5 : vector<2x8xf32> to vector<2x1x8xf32>
    %c0_5 = arith.constant 0 : index
    %c0_6 = arith.constant 0 : index
    %c0_7 = arith.constant 0 : index
    %7 = vector.load %arg19[%c0_5, %c0_6, %c0_7] : memref<1x32x96xf32, #tpu.memory_space<vmem>>, vector<1x32x96xf32>
    %8 = vector.shape_cast %7 : vector<1x32x96xf32> to vector<32x96xf32>
    %c0_8 = arith.constant 0 : index
    %c0_9 = arith.constant 0 : index
    %c0_10 = arith.constant 0 : index
    %9 = vector.load %arg20[%c0_8, %c0_9, %c0_10] : memref<1x1x96xf32, #tpu.memory_space<vmem>>, vector<1x1x96xf32>
    %10 = vector.shape_cast %9 : vector<1x1x96xf32> to vector<1x96xf32>
    %c0_11 = arith.constant 0 : index
    %c0_12 = arith.constant 0 : index
    %c0_13 = arith.constant 0 : index
    %11 = vector.load %arg21[%c0_11, %c0_12, %c0_13] : memref<1x32x32xf32, #tpu.memory_space<vmem>>, vector<1x32x32xf32>
    %12 = vector.shape_cast %11 : vector<1x32x32xf32> to vector<32x32xf32>
    %c0_14 = arith.constant 0 : index
    %c0_15 = arith.constant 0 : index
    %c0_16 = arith.constant 0 : index
    %13 = vector.load %arg22[%c0_14, %c0_15, %c0_16] : memref<1x1x32xf32, #tpu.memory_space<vmem>>, vector<1x1x32xf32>
    %14 = vector.shape_cast %13 : vector<1x1x32xf32> to vector<1x32xf32>
    %c0_17 = arith.constant 0 : index
    %c0_18 = arith.constant 0 : index
    %c0_19 = arith.constant 0 : index
    %15 = vector.load %arg23[%c0_17, %c0_18, %c0_19] : memref<1x1x32xf32, #tpu.memory_space<vmem>>, vector<1x1x32xf32>
    %16 = vector.shape_cast %15 : vector<1x1x32xf32> to vector<1x32xf32>
    %c0_20 = arith.constant 0 : index
    %c0_21 = arith.constant 0 : index
    %c0_22 = arith.constant 0 : index
    %17 = vector.load %arg24[%c0_20, %c0_21, %c0_22] : memref<1x1x32xf32, #tpu.memory_space<vmem>>, vector<1x1x32xf32>
    %18 = vector.shape_cast %17 : vector<1x1x32xf32> to vector<1x32xf32>
    %c0_23 = arith.constant 0 : index
    %c0_24 = arith.constant 0 : index
    %c0_25 = arith.constant 0 : index
    %19 = vector.load %arg25[%c0_23, %c0_24, %c0_25] : memref<1x1x32xf32, #tpu.memory_space<vmem>>, vector<1x1x32xf32>
    %20 = vector.shape_cast %19 : vector<1x1x32xf32> to vector<1x32xf32>
    %c0_26 = arith.constant 0 : index
    %c0_27 = arith.constant 0 : index
    %c0_28 = arith.constant 0 : index
    %21 = vector.load %arg26[%c0_26, %c0_27, %c0_28] : memref<1x1x32xf32, #tpu.memory_space<vmem>>, vector<1x1x32xf32>
    %22 = vector.shape_cast %21 : vector<1x1x32xf32> to vector<1x32xf32>
    %c0_29 = arith.constant 0 : index
    %c0_30 = arith.constant 0 : index
    %c0_31 = arith.constant 0 : index
    %23 = vector.load %arg27[%c0_29, %c0_30, %c0_31] : memref<1x32x64xf32, #tpu.memory_space<vmem>>, vector<1x32x64xf32>
    %24 = vector.shape_cast %23 : vector<1x32x64xf32> to vector<32x64xf32>
    %c0_32 = arith.constant 0 : index
    %c0_33 = arith.constant 0 : index
    %c0_34 = arith.constant 0 : index
    %25 = vector.load %arg28[%c0_32, %c0_33, %c0_34] : memref<1x1x64xf32, #tpu.memory_space<vmem>>, vector<1x1x64xf32>
    %26 = vector.shape_cast %25 : vector<1x1x64xf32> to vector<1x64xf32>
    %c0_35 = arith.constant 0 : index
    %c0_36 = arith.constant 0 : index
    %c0_37 = arith.constant 0 : index
    %27 = vector.load %arg29[%c0_35, %c0_36, %c0_37] : memref<1x64x32xf32, #tpu.memory_space<vmem>>, vector<1x64x32xf32>
    %28 = vector.shape_cast %27 : vector<1x64x32xf32> to vector<64x32xf32>
    %c0_38 = arith.constant 0 : index
    %c0_39 = arith.constant 0 : index
    %c0_40 = arith.constant 0 : index
    %29 = vector.load %arg30[%c0_38, %c0_39, %c0_40] : memref<1x1x32xf32, #tpu.memory_space<vmem>>, vector<1x1x32xf32>
    %30 = vector.shape_cast %29 : vector<1x1x32xf32> to vector<1x32xf32>
    %cst = arith.constant dense<0.000000e+00> : vector<16xf32>
    %31 = vector.multi_reduction <add>, %4, %cst [1] : vector<16x32xf32> to vector<16xf32>
    %32 = vector.shape_cast %31 : vector<16xf32> to vector<16x1xf32>
    %cst_41 = arith.constant 3.200000e+01 : f32
    %33 = vector.broadcast %cst_41 : f32 to vector<16x1xf32>
    %34 = arith.divf %32, %33 : vector<16x1xf32>
    %35 = vector.broadcast %34 : vector<16x1xf32> to vector<16x32xf32>
    %36 = arith.subf %4, %35 : vector<16x32xf32>
    %37 = arith.mulf %36, %36 : vector<16x32xf32>
    %cst_42 = arith.constant dense<0.000000e+00> : vector<16xf32>
    %38 = vector.multi_reduction <add>, %37, %cst_42 [1] : vector<16x32xf32> to vector<16xf32>
    %39 = vector.shape_cast %38 : vector<16xf32> to vector<16x1xf32>
    %cst_43 = arith.constant 3.200000e+01 : f32
    %40 = vector.broadcast %cst_43 : f32 to vector<16x1xf32>
    %41 = arith.divf %39, %40 : vector<16x1xf32>
    %42 = vector.broadcast %34 : vector<16x1xf32> to vector<16x32xf32>
    %43 = arith.subf %4, %42 : vector<16x32xf32>
    %cst_44 = arith.constant 9.99999974E-6 : f32
    %44 = vector.broadcast %cst_44 : f32 to vector<16x1xf32>
    %45 = arith.addf %41, %44 : vector<16x1xf32>
    %46 = math.rsqrt %45 : vector<16x1xf32>
    %47 = vector.broadcast %46 : vector<16x1xf32> to vector<16x32xf32>
    %48 = arith.mulf %43, %47 : vector<16x32xf32>
    %49 = vector.broadcast %16 : vector<1x32xf32> to vector<16x32xf32>
    %50 = arith.mulf %48, %49 : vector<16x32xf32>
    %51 = vector.broadcast %18 : vector<1x32xf32> to vector<16x32xf32>
    %52 = arith.addf %50, %51 : vector<16x32xf32>
    %cst_45 = arith.constant dense<0.000000e+00> : vector<16x96xf32>
    %53 = tpu.matmul %52, %8, %cst_45 {dimension_numbers = #tpu.dot_dimension_numbers<[1], [0], [0], [1], [0, 0, 1, 1], [], []>} : vector<16x32xf32>, vector<32x96xf32>, vector<16x96xf32> -> vector<16x96xf32>
    %54 = vector.broadcast %10 : vector<1x96xf32> to vector<16x96xf32>
    %55 = arith.addf %53, %54 : vector<16x96xf32>
    %56 = vector.extract_strided_slice %55 {offsets = [0, 0], sizes = [16, 32], strides = [1, 1]} : vector<16x96xf32> to vector<16x32xf32>
    %57 = vector.extract_strided_slice %55 {offsets = [0, 32], sizes = [16, 32], strides = [1, 1]} : vector<16x96xf32> to vector<16x32xf32>
    %58 = vector.extract_strided_slice %55 {offsets = [0, 64], sizes = [16, 32], strides = [1, 1]} : vector<16x96xf32> to vector<16x32xf32>
    %cst_46 = arith.constant 0.000000e+00 : f32
    %59 = vector.broadcast %cst_46 : f32 to vector<16x32xf32>
    %60 = vector.extract_strided_slice %56 {offsets = [0, 0], sizes = [16, 8], strides = [1, 1]} : vector<16x32xf32> to vector<16x8xf32>
    %61 = vector.shape_cast %60 : vector<16x8xf32> to vector<2x8x8xf32>
    %62 = vector.extract_strided_slice %57 {offsets = [0, 0], sizes = [16, 8], strides = [1, 1]} : vector<16x32xf32> to vector<16x8xf32>
    %63 = vector.shape_cast %62 : vector<16x8xf32> to vector<2x8x8xf32>
    %64 = vector.extract_strided_slice %58 {offsets = [0, 0], sizes = [16, 8], strides = [1, 1]} : vector<16x32xf32> to vector<16x8xf32>
    %65 = vector.shape_cast %64 : vector<16x8xf32> to vector<2x8x8xf32>
    "tpu.trace_start"() <{level = 10 : i32, message = "bqd,bkd->bqk"}> : () -> ()
    %cst_47 = arith.constant dense<0.000000e+00> : vector<2x8x8xf32>
    %66 = tpu.matmul %61, %63, %cst_47 {dimension_numbers = #tpu.dot_dimension_numbers<[2], [2], [1], [1], [0, 0, 0, 1, 1, 1], [0], [0]>} : vector<2x8x8xf32>, vector<2x8x8xf32>, vector<2x8x8xf32> -> vector<2x8x8xf32>
    "tpu.trace_stop"() : () -> ()
    %cst_48 = arith.constant 0.353553385 : f32
    %67 = vector.broadcast %cst_48 : f32 to vector<2x8x8xf32>
    %68 = arith.mulf %66, %67 : vector<2x8x8xf32>
    %69 = vector.broadcast %6 : vector<2x1x8xf32> to vector<2x8x8xf32>
    %70 = arith.addf %68, %69 : vector<2x8x8xf32>
    %cst_49 = arith.constant dense<0xFF800000> : vector<2x8xf32>
    %71 = vector.multi_reduction <maximumf>, %70, %cst_49 [2] : vector<2x8x8xf32> to vector<2x8xf32>
    %72 = vector.shape_cast %71 : vector<2x8xf32> to vector<2x8x1xf32>
    %73 = vector.broadcast %72 : vector<2x8x1xf32> to vector<2x8x8xf32>
    %74 = arith.subf %70, %73 : vector<2x8x8xf32>
    %75 = math.exp %74 : vector<2x8x8xf32>
    %cst_50 = arith.constant dense<0.000000e+00> : vector<2x8xf32>
    %76 = vector.multi_reduction <add>, %75, %cst_50 [2] : vector<2x8x8xf32> to vector<2x8xf32>
    %77 = vector.shape_cast %76 : vector<2x8xf32> to vector<2x8x1xf32>
    %78 = vector.broadcast %77 : vector<2x8x1xf32> to vector<2x8x8xf32>
    %79 = arith.divf %75, %78 : vector<2x8x8xf32>
    "tpu.trace_start"() <{level = 10 : i32, message = "bqk,bkd->bqd"}> : () -> ()
    %cst_51 = arith.constant dense<0.000000e+00> : vector<2x8x8xf32>
    %80 = tpu.matmul %79, %65, %cst_51 {dimension_numbers = #tpu.dot_dimension_numbers<[2], [1], [1], [2], [0, 0, 0, 1, 1, 2], [0], [0]>} : vector<2x8x8xf32>, vector<2x8x8xf32>, vector<2x8x8xf32> -> vector<2x8x8xf32>
    "tpu.trace_stop"() : () -> ()
    %81 = vector.shape_cast %80 : vector<2x8x8xf32> to vector<16x8xf32>
    %82 = vector.extract_strided_slice %12 {offsets = [0, 0], sizes = [8, 32], strides = [1, 1]} : vector<32x32xf32> to vector<8x32xf32>
    %cst_52 = arith.constant dense<0.000000e+00> : vector<16x32xf32>
    %83 = tpu.matmul %81, %82, %cst_52 {dimension_numbers = #tpu.dot_dimension_numbers<[1], [0], [0], [1], [0, 0, 1, 1], [], []>} : vector<16x8xf32>, vector<8x32xf32>, vector<16x32xf32> -> vector<16x32xf32>
    %84 = arith.addf %59, %83 : vector<16x32xf32>
    %85 = vector.extract_strided_slice %56 {offsets = [0, 8], sizes = [16, 8], strides = [1, 1]} : vector<16x32xf32> to vector<16x8xf32>
    %86 = vector.shape_cast %85 : vector<16x8xf32> to vector<2x8x8xf32>
    %87 = vector.extract_strided_slice %57 {offsets = [0, 8], sizes = [16, 8], strides = [1, 1]} : vector<16x32xf32> to vector<16x8xf32>
    %88 = vector.shape_cast %87 : vector<16x8xf32> to vector<2x8x8xf32>
    %89 = vector.extract_strided_slice %58 {offsets = [0, 8], sizes = [16, 8], strides = [1, 1]} : vector<16x32xf32> to vector<16x8xf32>
    %90 = vector.shape_cast %89 : vector<16x8xf32> to vector<2x8x8xf32>
    "tpu.trace_start"() <{level = 10 : i32, message = "bqd,bkd->bqk"}> : () -> ()
    %cst_53 = arith.constant dense<0.000000e+00> : vector<2x8x8xf32>
    %91 = tpu.matmul %86, %88, %cst_53 {dimension_numbers = #tpu.dot_dimension_numbers<[2], [2], [1], [1], [0, 0, 0, 1, 1, 1], [0], [0]>} : vector<2x8x8xf32>, vector<2x8x8xf32>, vector<2x8x8xf32> -> vector<2x8x8xf32>
    "tpu.trace_stop"() : () -> ()
    %cst_54 = arith.constant 0.353553385 : f32
    %92 = vector.broadcast %cst_54 : f32 to vector<2x8x8xf32>
    %93 = arith.mulf %91, %92 : vector<2x8x8xf32>
    %94 = vector.broadcast %6 : vector<2x1x8xf32> to vector<2x8x8xf32>
    %95 = arith.addf %93, %94 : vector<2x8x8xf32>
    %cst_55 = arith.constant dense<0xFF800000> : vector<2x8xf32>
    %96 = vector.multi_reduction <maximumf>, %95, %cst_55 [2] : vector<2x8x8xf32> to vector<2x8xf32>
    %97 = vector.shape_cast %96 : vector<2x8xf32> to vector<2x8x1xf32>
    %98 = vector.broadcast %97 : vector<2x8x1xf32> to vector<2x8x8xf32>
    %99 = arith.subf %95, %98 : vector<2x8x8xf32>
    %100 = math.exp %99 : vector<2x8x8xf32>
    %cst_56 = arith.constant dense<0.000000e+00> : vector<2x8xf32>
    %101 = vector.multi_reduction <add>, %100, %cst_56 [2] : vector<2x8x8xf32> to vector<2x8xf32>
    %102 = vector.shape_cast %101 : vector<2x8xf32> to vector<2x8x1xf32>
    %103 = vector.broadcast %102 : vector<2x8x1xf32> to vector<2x8x8xf32>
    %104 = arith.divf %100, %103 : vector<2x8x8xf32>
    "tpu.trace_start"() <{level = 10 : i32, message = "bqk,bkd->bqd"}> : () -> ()
    %cst_57 = arith.constant dense<0.000000e+00> : vector<2x8x8xf32>
    %105 = tpu.matmul %104, %90, %cst_57 {dimension_numbers = #tpu.dot_dimension_numbers<[2], [1], [1], [2], [0, 0, 0, 1, 1, 2], [0], [0]>} : vector<2x8x8xf32>, vector<2x8x8xf32>, vector<2x8x8xf32> -> vector<2x8x8xf32>
    "tpu.trace_stop"() : () -> ()
    %106 = vector.shape_cast %105 : vector<2x8x8xf32> to vector<16x8xf32>
    %107 = vector.extract_strided_slice %12 {offsets = [8, 0], sizes = [8, 32], strides = [1, 1]} : vector<32x32xf32> to vector<8x32xf32>
    %cst_58 = arith.constant dense<0.000000e+00> : vector<16x32xf32>
    %108 = tpu.matmul %106, %107, %cst_58 {dimension_numbers = #tpu.dot_dimension_numbers<[1], [0], [0], [1], [0, 0, 1, 1], [], []>} : vector<16x8xf32>, vector<8x32xf32>, vector<16x32xf32> -> vector<16x32xf32>
    %109 = arith.addf %84, %108 : vector<16x32xf32>
    %110 = vector.extract_strided_slice %56 {offsets = [0, 16], sizes = [16, 8], strides = [1, 1]} : vector<16x32xf32> to vector<16x8xf32>
    %111 = vector.shape_cast %110 : vector<16x8xf32> to vector<2x8x8xf32>
    %112 = vector.extract_strided_slice %57 {offsets = [0, 16], sizes = [16, 8], strides = [1, 1]} : vector<16x32xf32> to vector<16x8xf32>
    %113 = vector.shape_cast %112 : vector<16x8xf32> to vector<2x8x8xf32>
    %114 = vector.extract_strided_slice %58 {offsets = [0, 16], sizes = [16, 8], strides = [1, 1]} : vector<16x32xf32> to vector<16x8xf32>
    %115 = vector.shape_cast %114 : vector<16x8xf32> to vector<2x8x8xf32>
    "tpu.trace_start"() <{level = 10 : i32, message = "bqd,bkd->bqk"}> : () -> ()
    %cst_59 = arith.constant dense<0.000000e+00> : vector<2x8x8xf32>
    %116 = tpu.matmul %111, %113, %cst_59 {dimension_numbers = #tpu.dot_dimension_numbers<[2], [2], [1], [1], [0, 0, 0, 1, 1, 1], [0], [0]>} : vector<2x8x8xf32>, vector<2x8x8xf32>, vector<2x8x8xf32> -> vector<2x8x8xf32>
    "tpu.trace_stop"() : () -> ()
    %cst_60 = arith.constant 0.353553385 : f32
    %117 = vector.broadcast %cst_60 : f32 to vector<2x8x8xf32>
    %118 = arith.mulf %116, %117 : vector<2x8x8xf32>
    %119 = vector.broadcast %6 : vector<2x1x8xf32> to vector<2x8x8xf32>
    %120 = arith.addf %118, %119 : vector<2x8x8xf32>
    %cst_61 = arith.constant dense<0xFF800000> : vector<2x8xf32>
    %121 = vector.multi_reduction <maximumf>, %120, %cst_61 [2] : vector<2x8x8xf32> to vector<2x8xf32>
    %122 = vector.shape_cast %121 : vector<2x8xf32> to vector<2x8x1xf32>
    %123 = vector.broadcast %122 : vector<2x8x1xf32> to vector<2x8x8xf32>
    %124 = arith.subf %120, %123 : vector<2x8x8xf32>
    %125 = math.exp %124 : vector<2x8x8xf32>
    %cst_62 = arith.constant dense<0.000000e+00> : vector<2x8xf32>
    %126 = vector.multi_reduction <add>, %125, %cst_62 [2] : vector<2x8x8xf32> to vector<2x8xf32>
    %127 = vector.shape_cast %126 : vector<2x8xf32> to vector<2x8x1xf32>
    %128 = vector.broadcast %127 : vector<2x8x1xf32> to vector<2x8x8xf32>
    %129 = arith.divf %125, %128 : vector<2x8x8xf32>
    "tpu.trace_start"() <{level = 10 : i32, message = "bqk,bkd->bqd"}> : () -> ()
    %cst_63 = arith.constant dense<0.000000e+00> : vector<2x8x8xf32>
    %130 = tpu.matmul %129, %115, %cst_63 {dimension_numbers = #tpu.dot_dimension_numbers<[2], [1], [1], [2], [0, 0, 0, 1, 1, 2], [0], [0]>} : vector<2x8x8xf32>, vector<2x8x8xf32>, vector<2x8x8xf32> -> vector<2x8x8xf32>
    "tpu.trace_stop"() : () -> ()
    %131 = vector.shape_cast %130 : vector<2x8x8xf32> to vector<16x8xf32>
    %132 = vector.extract_strided_slice %12 {offsets = [16, 0], sizes = [8, 32], strides = [1, 1]} : vector<32x32xf32> to vector<8x32xf32>
    %cst_64 = arith.constant dense<0.000000e+00> : vector<16x32xf32>
    %133 = tpu.matmul %131, %132, %cst_64 {dimension_numbers = #tpu.dot_dimension_numbers<[1], [0], [0], [1], [0, 0, 1, 1], [], []>} : vector<16x8xf32>, vector<8x32xf32>, vector<16x32xf32> -> vector<16x32xf32>
    %134 = arith.addf %109, %133 : vector<16x32xf32>
    %135 = vector.extract_strided_slice %56 {offsets = [0, 24], sizes = [16, 8], strides = [1, 1]} : vector<16x32xf32> to vector<16x8xf32>
    %136 = vector.shape_cast %135 : vector<16x8xf32> to vector<2x8x8xf32>
    %137 = vector.extract_strided_slice %57 {offsets = [0, 24], sizes = [16, 8], strides = [1, 1]} : vector<16x32xf32> to vector<16x8xf32>
    %138 = vector.shape_cast %137 : vector<16x8xf32> to vector<2x8x8xf32>
    %139 = vector.extract_strided_slice %58 {offsets = [0, 24], sizes = [16, 8], strides = [1, 1]} : vector<16x32xf32> to vector<16x8xf32>
    %140 = vector.shape_cast %139 : vector<16x8xf32> to vector<2x8x8xf32>
    "tpu.trace_start"() <{level = 10 : i32, message = "bqd,bkd->bqk"}> : () -> ()
    %cst_65 = arith.constant dense<0.000000e+00> : vector<2x8x8xf32>
    %141 = tpu.matmul %136, %138, %cst_65 {dimension_numbers = #tpu.dot_dimension_numbers<[2], [2], [1], [1], [0, 0, 0, 1, 1, 1], [0], [0]>} : vector<2x8x8xf32>, vector<2x8x8xf32>, vector<2x8x8xf32> -> vector<2x8x8xf32>
    "tpu.trace_stop"() : () -> ()
    %cst_66 = arith.constant 0.353553385 : f32
    %142 = vector.broadcast %cst_66 : f32 to vector<2x8x8xf32>
    %143 = arith.mulf %141, %142 : vector<2x8x8xf32>
    %144 = vector.broadcast %6 : vector<2x1x8xf32> to vector<2x8x8xf32>
    %145 = arith.addf %143, %144 : vector<2x8x8xf32>
    %cst_67 = arith.constant dense<0xFF800000> : vector<2x8xf32>
    %146 = vector.multi_reduction <maximumf>, %145, %cst_67 [2] : vector<2x8x8xf32> to vector<2x8xf32>
    %147 = vector.shape_cast %146 : vector<2x8xf32> to vector<2x8x1xf32>
    %148 = vector.broadcast %147 : vector<2x8x1xf32> to vector<2x8x8xf32>
    %149 = arith.subf %145, %148 : vector<2x8x8xf32>
    %150 = math.exp %149 : vector<2x8x8xf32>
    %cst_68 = arith.constant dense<0.000000e+00> : vector<2x8xf32>
    %151 = vector.multi_reduction <add>, %150, %cst_68 [2] : vector<2x8x8xf32> to vector<2x8xf32>
    %152 = vector.shape_cast %151 : vector<2x8xf32> to vector<2x8x1xf32>
    %153 = vector.broadcast %152 : vector<2x8x1xf32> to vector<2x8x8xf32>
    %154 = arith.divf %150, %153 : vector<2x8x8xf32>
    "tpu.trace_start"() <{level = 10 : i32, message = "bqk,bkd->bqd"}> : () -> ()
    %cst_69 = arith.constant dense<0.000000e+00> : vector<2x8x8xf32>
    %155 = tpu.matmul %154, %140, %cst_69 {dimension_numbers = #tpu.dot_dimension_numbers<[2], [1], [1], [2], [0, 0, 0, 1, 1, 2], [0], [0]>} : vector<2x8x8xf32>, vector<2x8x8xf32>, vector<2x8x8xf32> -> vector<2x8x8xf32>
    "tpu.trace_stop"() : () -> ()
    %156 = vector.shape_cast %155 : vector<2x8x8xf32> to vector<16x8xf32>
    %157 = vector.extract_strided_slice %12 {offsets = [24, 0], sizes = [8, 32], strides = [1, 1]} : vector<32x32xf32> to vector<8x32xf32>
    %cst_70 = arith.constant dense<0.000000e+00> : vector<16x32xf32>
    %158 = tpu.matmul %156, %157, %cst_70 {dimension_numbers = #tpu.dot_dimension_numbers<[1], [0], [0], [1], [0, 0, 1, 1], [], []>} : vector<16x8xf32>, vector<8x32xf32>, vector<16x32xf32> -> vector<16x32xf32>
    %159 = arith.addf %134, %158 : vector<16x32xf32>
    %160 = vector.broadcast %14 : vector<1x32xf32> to vector<16x32xf32>
    %161 = arith.addf %159, %160 : vector<16x32xf32>
    %162 = arith.addf %4, %161 : vector<16x32xf32>
    %cst_71 = arith.constant dense<0.000000e+00> : vector<16xf32>
    %163 = vector.multi_reduction <add>, %162, %cst_71 [1] : vector<16x32xf32> to vector<16xf32>
    %164 = vector.shape_cast %163 : vector<16xf32> to vector<16x1xf32>
    %cst_72 = arith.constant 3.200000e+01 : f32
    %165 = vector.broadcast %cst_72 : f32 to vector<16x1xf32>
    %166 = arith.divf %164, %165 : vector<16x1xf32>
    %167 = vector.broadcast %166 : vector<16x1xf32> to vector<16x32xf32>
    %168 = arith.subf %162, %167 : vector<16x32xf32>
    %169 = arith.mulf %168, %168 : vector<16x32xf32>
    %cst_73 = arith.constant dense<0.000000e+00> : vector<16xf32>
    %170 = vector.multi_reduction <add>, %169, %cst_73 [1] : vector<16x32xf32> to vector<16xf32>
    %171 = vector.shape_cast %170 : vector<16xf32> to vector<16x1xf32>
    %cst_74 = arith.constant 3.200000e+01 : f32
    %172 = vector.broadcast %cst_74 : f32 to vector<16x1xf32>
    %173 = arith.divf %171, %172 : vector<16x1xf32>
    %174 = vector.broadcast %166 : vector<16x1xf32> to vector<16x32xf32>
    %175 = arith.subf %162, %174 : vector<16x32xf32>
    %cst_75 = arith.constant 9.99999974E-6 : f32
    %176 = vector.broadcast %cst_75 : f32 to vector<16x1xf32>
    %177 = arith.addf %173, %176 : vector<16x1xf32>
    %178 = math.rsqrt %177 : vector<16x1xf32>
    %179 = vector.broadcast %178 : vector<16x1xf32> to vector<16x32xf32>
    %180 = arith.mulf %175, %179 : vector<16x32xf32>
    %181 = vector.broadcast %20 : vector<1x32xf32> to vector<16x32xf32>
    %182 = arith.mulf %180, %181 : vector<16x32xf32>
    %183 = vector.broadcast %22 : vector<1x32xf32> to vector<16x32xf32>
    %184 = arith.addf %182, %183 : vector<16x32xf32>
    %cst_76 = arith.constant dense<0.000000e+00> : vector<16x64xf32>
    %185 = tpu.matmul %184, %24, %cst_76 {dimension_numbers = #tpu.dot_dimension_numbers<[1], [0], [0], [1], [0, 0, 1, 1], [], []>} : vector<16x32xf32>, vector<32x64xf32>, vector<16x64xf32> -> vector<16x64xf32>
    %186 = vector.broadcast %26 : vector<1x64xf32> to vector<16x64xf32>
    %187 = arith.addf %185, %186 : vector<16x64xf32>
    %cst_77 = arith.constant 0.000000e+00 : f32
    %188 = vector.broadcast %cst_77 : f32 to vector<16x64xf32>
    %189 = arith.maximumf %187, %188 : vector<16x64xf32>
    %cst_78 = arith.constant dense<0.000000e+00> : vector<16x32xf32>
    %190 = tpu.matmul %189, %28, %cst_78 {dimension_numbers = #tpu.dot_dimension_numbers<[1], [0], [0], [1], [0, 0, 1, 1], [], []>} : vector<16x64xf32>, vector<64x32xf32>, vector<16x32xf32> -> vector<16x32xf32>
    %191 = arith.addf %162, %190 : vector<16x32xf32>
    %192 = vector.broadcast %30 : vector<1x32xf32> to vector<16x32xf32>
    %193 = arith.addf %191, %192 : vector<16x32xf32>
    %194 = vector.shape_cast %193 : vector<16x32xf32> to vector<2x8x32xf32>
    %c0_79 = arith.constant 0 : index
    %c0_80 = arith.constant 0 : index
    %c0_81 = arith.constant 0 : index
    %195 = vector.load %arg37[%c0_79, %c0_80, %c0_81] : memref<2x8x32xf32, #tpu.memory_space<vmem>>, vector<2x8x32xf32>
    tpu.vector_store %arg37[%c0_79, %c0_80, %c0_81], %194 {strides = array<i32>} : memref<2x8x32xf32, #tpu.memory_space<vmem>>, vector<2x8x32xf32>,
    %c0_i32_82 = arith.constant 0 : i32
    %196 = arith.cmpi eq, %arg0, %c0_i32_82 : i32
    %197 = arith.extui %196 : i1 to i32
    %c0_i32_83 = arith.constant 0 : i32
    %198 = arith.cmpi ne, %197, %c0_i32_83 : i32
    scf.if %198 {
      %c0_84 = arith.constant 0 : index
      %c0_85 = arith.constant 0 : index
      %199 = vector.load %arg31[%c0_84, %c0_85] : memref<1x32xf32, #tpu.memory_space<vmem>>, vector<1x32xf32>
      %c0_86 = arith.constant 0 : index
      %c0_87 = arith.constant 0 : index
      %200 = vector.load %arg32[%c0_86, %c0_87] : memref<1x32xf32, #tpu.memory_space<vmem>>, vector<1x32xf32>
      %cst_88 = arith.constant dense<0.000000e+00> : vector<16xf32>
      %201 = vector.multi_reduction <add>, %193, %cst_88 [1] : vector<16x32xf32> to vector<16xf32>
      %202 = vector.shape_cast %201 : vector<16xf32> to vector<16x1xf32>
      %cst_89 = arith.constant 3.200000e+01 : f32
      %203 = vector.broadcast %cst_89 : f32 to vector<16x1xf32>
      %204 = arith.divf %202, %203 : vector<16x1xf32>
      %205 = vector.broadcast %204 : vector<16x1xf32> to vector<16x32xf32>
      %206 = arith.subf %193, %205 : vector<16x32xf32>
      %207 = arith.mulf %206, %206 : vector<16x32xf32>
      %cst_90 = arith.constant dense<0.000000e+00> : vector<16xf32>
      %208 = vector.multi_reduction <add>, %207, %cst_90 [1] : vector<16x32xf32> to vector<16xf32>
      %209 = vector.shape_cast %208 : vector<16xf32> to vector<16x1xf32>
      %cst_91 = arith.constant 3.200000e+01 : f32
      %210 = vector.broadcast %cst_91 : f32 to vector<16x1xf32>
      %211 = arith.divf %209, %210 : vector<16x1xf32>
      %212 = vector.broadcast %204 : vector<16x1xf32> to vector<16x32xf32>
      %213 = arith.subf %193, %212 : vector<16x32xf32>
      %cst_92 = arith.constant 9.99999974E-6 : f32
      %214 = vector.broadcast %cst_92 : f32 to vector<16x1xf32>
      %215 = arith.addf %211, %214 : vector<16x1xf32>
      %216 = math.rsqrt %215 : vector<16x1xf32>
      %217 = vector.broadcast %216 : vector<16x1xf32> to vector<16x32xf32>
      %218 = arith.mulf %213, %217 : vector<16x32xf32>
      %219 = vector.broadcast %199 : vector<1x32xf32> to vector<16x32xf32>
      %220 = arith.mulf %218, %219 : vector<16x32xf32>
      %221 = vector.broadcast %200 : vector<1x32xf32> to vector<16x32xf32>
      %222 = arith.addf %220, %221 : vector<16x32xf32>
      %223 = vector.shape_cast %222 : vector<16x32xf32> to vector<2x8x32xf32>
      %c0_93 = arith.constant 0 : index
      %c0_94 = arith.constant 0 : index
      %c0_95 = arith.constant 0 : index
      %224 = vector.load %arg33[%c0_93, %c0_94, %c0_95] : memref<2x8x32xf32, #tpu.memory_space<vmem>>, vector<2x8x32xf32>
      tpu.vector_store %arg33[%c0_93, %c0_94, %c0_95], %223 {strides = array<i32>} : memref<2x8x32xf32, #tpu.memory_space<vmem>>, vector<2x8x32xf32>,
    } else {
    }
    return
  }
  func.func @transform_0(%arg0: i32) -> (i32, i32, i32) {
    %c0_i32 = arith.constant 0 : i32
    %c0_i32_0 = arith.constant 0 : i32
    %c0_i32_1 = arith.constant 0 : i32
    %c0_i32_2 = arith.constant 0 : i32
    return %c0_i32, %c0_i32_0, %c0_i32_1 : i32, i32, i32
  }
  func.func @transform_1(%arg0: i32) -> (i32, i32) {
    %c0_i32 = arith.constant 0 : i32
    %c0_i32_0 = arith.constant 0 : i32
    %c0_i32_1 = arith.constant 0 : i32
    return %c0_i32, %c0_i32_0 : i32, i32
  }
  func.func @transform_2(%arg0: i32) -> (i32, i32, i32) {
    %c0_i32 = arith.constant 0 : i32
    %c0_i32_0 = arith.constant 0 : i32
    %c0_i32_1 = arith.constant 0 : i32
    %c0_i32_2 = arith.constant 0 : i32
    return %c0_i32, %c0_i32_0, %c0_i32_1 : i32, i32, i32
  }
  func.func @transform_3(%arg0: i32) -> (i32, i32, i32) {
    %c0_i32 = arith.constant 0 : i32
    %c0_i32_0 = arith.constant 0 : i32
    %c0_i32_1 = arith.constant 0 : i32
    %c0_i32_2 = arith.constant 0 : i32
    return %c0_i32, %c0_i32_0, %c0_i32_1 : i32, i32, i32
  }
  func.func @transform_4(%arg0: i32) -> (i32, i32) {
    %c0_i32 = arith.constant 0 : i32
    %c0_i32_0 = arith.constant 0 : i32
    %c0_i32_1 = arith.constant 0 : i32
    return %c0_i32, %c0_i32_0 : i32, i32
  }
  func.func @transform_5(%arg0: i32) -> (i32, i32) {
    %c0_i32 = arith.constant 0 : i32
    %c0_i32_0 = arith.constant 0 : i32
    %c0_i32_1 = arith.constant 0 : i32
    return %c0_i32, %c0_i32_0 : i32, i32
  }
  func.func @transform_6(%arg0: i32) -> (i32, i32) {
    %c0_i32 = arith.constant 0 : i32
    %c0_i32_0 = arith.constant 0 : i32
    %c0_i32_1 = arith.constant 0 : i32
    return %c0_i32, %c0_i32_0 : i32, i32
  }
  func.func @transform_7(%arg0: i32) -> (i32, i32) {
    %c0_i32 = arith.constant 0 : i32
    %c0_i32_0 = arith.constant 0 : i32
    %c0_i32_1 = arith.constant 0 : i32
    return %c0_i32, %c0_i32_0 : i32, i32
  }
  func.func @transform_8(%arg0: i32) -> (i32, i32) {
    %c0_i32 = arith.constant 0 : i32
    %c0_i32_0 = arith.constant 0 : i32
    %c0_i32_1 = arith.constant 0 : i32
    return %c0_i32, %c0_i32_0 : i32, i32
  }
  func.func @transform_9(%arg0: i32) -> (i32, i32) {
    %c0_i32 = arith.constant 0 : i32
    %c0_i32_0 = arith.constant 0 : i32
    %c0_i32_1 = arith.constant 0 : i32
    return %c0_i32, %c0_i32_0 : i32, i32
  }
  func.func @transform_10(%arg0: i32) -> (i32, i32) {
    %c0_i32 = arith.constant 0 : i32
    %c0_i32_0 = arith.constant 0 : i32
    %c0_i32_1 = arith.constant 0 : i32
    return %c0_i32, %c0_i32_0 : i32, i32
  }
  func.func @transform_11(%arg0: i32) -> (i32, i32) {
    %c0_i32 = arith.constant 0 : i32
    %c0_i32_0 = arith.constant 0 : i32
    %c0_i32_1 = arith.constant 0 : i32
    return %c0_i32, %c0_i32_0 : i32, i32
  }
  func.func @transform_12(%arg0: i32) -> (i32, i32) {
    %c0_i32 = arith.constant 0 : i32
    %c0_i32_0 = arith.constant 0 : i32
    %c0_i32_1 = arith.constant 0 : i32
    return %c0_i32, %c0_i32_0 : i32, i32
  }
  func.func @transform_13(%arg0: i32) -> (i32, i32) {
    %c0_i32 = arith.constant 0 : i32
    %c0_i32_0 = arith.constant 0 : i32
    %c0_i32_1 = arith.constant 0 : i32
    return %c0_i32, %c0_i32_0 : i32, i32
  }
  func.func @transform_14(%arg0: i32) -> (i32, i32) {
    %c0_i32 = arith.constant 0 : i32
    %c0_i32_0 = arith.constant 0 : i32
    %c0_i32_1 = arith.constant 0 : i32
    return %c0_i32, %c0_i32_0 : i32, i32
  }
  func.func @transform_15(%arg0: i32) -> (i32, i32) {
    %c0_i32 = arith.constant 0 : i32
    %c0_i32_0 = arith.constant 0 : i32
    %c0_i32_1 = arith.constant 0 : i32
    return %c0_i32, %c0_i32_0 : i32, i32
  }
  func.func @transform_16(%arg0: i32) -> (i32, i32) {
    %c0_i32 = arith.constant 0 : i32
    %c0_i32_0 = arith.constant 0 : i32
    %c0_i32_1 = arith.constant 0 : i32
    return %c0_i32, %c0_i32_0 : i32, i32
  }
  func.func @transform_17(%arg0: i32) -> (i32, i32) {
    %c0_i32 = arith.constant 0 : i32
    %c0_i32_0 = arith.constant 0 : i32
    %c0_i32_1 = arith.constant 0 : i32
    return %c0_i32, %c0_i32_0 : i32, i32
  }
  func.func @transform_18(%arg0: i32) -> (i32, i32, i32) {
    %c0_i32 = arith.constant 0 : i32
    %c0_i32_0 = arith.constant 0 : i32
    %c0_i32_1 = arith.constant 0 : i32
    return %arg0, %c0_i32, %c0_i32_0 : i32, i32, i32
  }
  func.func @transform_19(%arg0: i32) -> (i32, i32, i32) {
    %c0_i32 = arith.constant 0 : i32
    %c0_i32_0 = arith.constant 0 : i32
    %c0_i32_1 = arith.constant 0 : i32
    return %arg0, %c0_i32, %c0_i32_0 : i32, i32, i32
  }
  func.func @transform_20(%arg0: i32) -> (i32, i32, i32) {
    %c0_i32 = arith.constant 0 : i32
    %c0_i32_0 = arith.constant 0 : i32
    %c0_i32_1 = arith.constant 0 : i32
    return %arg0, %c0_i32, %c0_i32_0 : i32, i32, i32
  }
  func.func @transform_21(%arg0: i32) -> (i32, i32, i32) {
    %c0_i32 = arith.constant 0 : i32
    %c0_i32_0 = arith.constant 0 : i32
    %c0_i32_1 = arith.constant 0 : i32
    return %arg0, %c0_i32, %c0_i32_0 : i32, i32, i32
  }
  func.func @transform_22(%arg0: i32) -> (i32, i32, i32) {
    %c0_i32 = arith.constant 0 : i32
    %c0_i32_0 = arith.constant 0 : i32
    %c0_i32_1 = arith.constant 0 : i32
    return %arg0, %c0_i32, %c0_i32_0 : i32, i32, i32
  }
  func.func @transform_23(%arg0: i32) -> (i32, i32, i32) {
    %c0_i32 = arith.constant 0 : i32
    %c0_i32_0 = arith.constant 0 : i32
    %c0_i32_1 = arith.constant 0 : i32
    return %arg0, %c0_i32, %c0_i32_0 : i32, i32, i32
  }
  func.func @transform_24(%arg0: i32) -> (i32, i32, i32) {
    %c0_i32 = arith.constant 0 : i32
    %c0_i32_0 = arith.constant 0 : i32
    %c0_i32_1 = arith.constant 0 : i32
    return %arg0, %c0_i32, %c0_i32_0 : i32, i32, i32
  }
  func.func @transform_25(%arg0: i32) -> (i32, i32, i32) {
    %c0_i32 = arith.constant 0 : i32
    %c0_i32_0 = arith.constant 0 : i32
    %c0_i32_1 = arith.constant 0 : i32
    return %arg0, %c0_i32, %c0_i32_0 : i32, i32, i32
  }
  func.func @transform_26(%arg0: i32) -> (i32, i32, i32) {
    %c0_i32 = arith.constant 0 : i32
    %c0_i32_0 = arith.constant 0 : i32
    %c0_i32_1 = arith.constant 0 : i32
    return %arg0, %c0_i32, %c0_i32_0 : i32, i32, i32
  }
  func.func @transform_27(%arg0: i32) -> (i32, i32, i32) {
    %c0_i32 = arith.constant 0 : i32
    %c0_i32_0 = arith.constant 0 : i32
    %c0_i32_1 = arith.constant 0 : i32
    return %arg0, %c0_i32, %c0_i32_0 : i32, i32, i32
  }
  func.func @transform_28(%arg0: i32) -> (i32, i32, i32) {
    %c0_i32 = arith.constant 0 : i32
    %c0_i32_0 = arith.constant 0 : i32
    %c0_i32_1 = arith.constant 0 : i32
    return %arg0, %c0_i32, %c0_i32_0 : i32, i32, i32
  }
  func.func @transform_29(%arg0: i32) -> (i32, i32, i32) {
    %c0_i32 = arith.constant 0 : i32
    %c0_i32_0 = arith.constant 0 : i32
    %c0_i32_1 = arith.constant 0 : i32
    return %arg0, %c0_i32, %c0_i32_0 : i32, i32, i32
  }
  func.func @transform_30(%arg0: i32) -> (i32, i32) {
    %c0_i32 = arith.constant 0 : i32
    %c0_i32_0 = arith.constant 0 : i32
    %c0_i32_1 = arith.constant 0 : i32
    return %c0_i32, %c0_i32_0 : i32, i32
  }
  func.func @transform_31(%arg0: i32) -> (i32, i32) {
    %c0_i32 = arith.constant 0 : i32
    %c0_i32_0 = arith.constant 0 : i32
    %c0_i32_1 = arith.constant 0 : i32
    return %c0_i32, %c0_i32_0 : i32, i32
  }
  func.func @transform_32(%arg0: i32) -> (i32, i32, i32) {
    %c0_i32 = arith.constant 0 : i32
    %c0_i32_0 = arith.constant 0 : i32
    %c0_i32_1 = arith.constant 0 : i32
    %c0_i32_2 = arith.constant 0 : i32
    return %c0_i32, %c0_i32_0, %c0_i32_1 : i32, i32, i32
  }
  func.func @transform_33(%arg0: i32) -> (i32, i32, i32) {
    %c0_i32 = arith.constant 0 : i32
    %c0_i32_0 = arith.constant 0 : i32
    %c0_i32_1 = arith.constant 0 : i32
    %c0_i32_2 = arith.constant 0 : i32
    return %c0_i32, %c0_i32_0, %c0_i32_1 : i32, i32, i32
  }
  func.func @transform_34(%arg0: i32) -> (i32, i32, i32) {
    %c0_i32 = arith.constant 0 : i32
    %c0_i32_0 = arith.constant 0 : i32
    %c0_i32_1 = arith.constant 0 : i32
    %c0_i32_2 = arith.constant 0 : i32
    return %c0_i32, %c0_i32_0, %c0_i32_1 : i32, i32, i32
  }
  func.func @transform_35(%arg0: i32) -> (i32, i32) {
    %c0_i32 = arith.constant 0 : i32
    %c0_i32_0 = arith.constant 0 : i32
    %c0_i32_1 = arith.constant 0 : i32
    return %c0_i32, %c0_i32_0 : i32, i32
  }
}

module attributes {stable_mosaic.version = 11 : i64} {
  func.func @_decoder_gen_kernel(%arg0: i32, %arg1: memref<2x8x32xf32, #tpu.memory_space<vmem>>, %arg2: memref<2x8x32xf32, #tpu.memory_space<vmem>>, %arg3: memref<2x8xf32, #tpu.memory_space<vmem>>, %arg4: memref<2x8xf32, #tpu.memory_space<vmem>>, %arg5: memref<1x32x96xf32, #tpu.memory_space<vmem>>, %arg6: memref<1x1x96xf32, #tpu.memory_space<vmem>>, %arg7: memref<1x32x32xf32, #tpu.memory_space<vmem>>, %arg8: memref<1x1x32xf32, #tpu.memory_space<vmem>>, %arg9: memref<1x32x32xf32, #tpu.memory_space<vmem>>, %arg10: memref<1x1x32xf32, #tpu.memory_space<vmem>>, %arg11: memref<1x32x64xf32, #tpu.memory_space<vmem>>, %arg12: memref<1x1x64xf32, #tpu.memory_space<vmem>>, %arg13: memref<1x32x32xf32, #tpu.memory_space<vmem>>, %arg14: memref<1x1x32xf32, #tpu.memory_space<vmem>>, %arg15: memref<1x1x32xf32, #tpu.memory_space<vmem>>, %arg16: memref<1x1x32xf32, #tpu.memory_space<vmem>>, %arg17: memref<1x1x32xf32, #tpu.memory_space<vmem>>, %arg18: memref<1x1x32xf32, #tpu.memory_space<vmem>>, %arg19: memref<1x1x32xf32, #tpu.memory_space<vmem>>, %arg20: memref<1x1x32xf32, #tpu.memory_space<vmem>>, %arg21: memref<1x32x64xf32, #tpu.memory_space<vmem>>, %arg22: memref<1x1x64xf32, #tpu.memory_space<vmem>>, %arg23: memref<1x64x32xf32, #tpu.memory_space<vmem>>, %arg24: memref<1x1x32xf32, #tpu.memory_space<vmem>>, %arg25: memref<1x32xf32, #tpu.memory_space<vmem>>, %arg26: memref<1x32xf32, #tpu.memory_space<vmem>>, %arg27: memref<32x128xf32, #tpu.memory_space<vmem>>, %arg28: memref<1x128xf32, #tpu.memory_space<vmem>>, %arg29: memref<2x8x128xf32, #tpu.memory_space<vmem>>, %arg30: memref<2x8x8xf32, #tpu.memory_space<vmem>>, %arg31: memref<2x8x32xf32, #tpu.memory_space<vmem>>) attributes {dimension_semantics = [#tpu.dimension_semantics<arbitrary>], iteration_bounds = array<i64: 2>, scalar_prefetch = 0 : i64, scratch_operands = 1 : i64, tpu.core_type = #tpu.core_type<tc>, window_params = [{pipeline_mode = #tpu.pipeline_mode<synchronous>, transform_indices = @transform_0, window_bounds = array<i64: 2, 8, 32>}, {pipeline_mode = #tpu.pipeline_mode<synchronous>, transform_indices = @transform_1, window_bounds = array<i64: 2, 8, 32>}, {pipeline_mode = #tpu.pipeline_mode<synchronous>, transform_indices = @transform_2, window_bounds = array<i64: 2, 8>}, {pipeline_mode = #tpu.pipeline_mode<synchronous>, transform_indices = @transform_3, window_bounds = array<i64: 2, 8>}, {transform_indices = @transform_4, window_bounds = array<i64: 1, 32, 96>}, {transform_indices = @transform_5, window_bounds = array<i64: 1, 1, 96>}, {transform_indices = @transform_6, window_bounds = array<i64: 1, 32, 32>}, {transform_indices = @transform_7, window_bounds = array<i64: 1, 1, 32>}, {transform_indices = @transform_8, window_bounds = array<i64: 1, 32, 32>}, {transform_indices = @transform_9, window_bounds = array<i64: 1, 1, 32>}, {transform_indices = @transform_10, window_bounds = array<i64: 1, 32, 64>}, {transform_indices = @transform_11, window_bounds = array<i64: 1, 1, 64>}, {transform_indices = @transform_12, window_bounds = array<i64: 1, 32, 32>}, {transform_indices = @transform_13, window_bounds = array<i64: 1, 1, 32>}, {transform_indices = @transform_14, window_bounds = array<i64: 1, 1, 32>}, {transform_indices = @transform_15, window_bounds = array<i64: 1, 1, 32>}, {transform_indices = @transform_16, window_bounds = array<i64: 1, 1, 32>}, {transform_indices = @transform_17, window_bounds = array<i64: 1, 1, 32>}, {transform_indices = @transform_18, window_bounds = array<i64: 1, 1, 32>}, {transform_indices = @transform_19, window_bounds = array<i64: 1, 1, 32>}, {transform_indices = @transform_20, window_bounds = array<i64: 1, 32, 64>}, {transform_indices = @transform_21, window_bounds = array<i64: 1, 1, 64>}, {transform_indices = @transform_22, window_bounds = array<i64: 1, 64, 32>}, {transform_indices = @transform_23, window_bounds = array<i64: 1, 1, 32>}, {pipeline_mode = #tpu.pipeline_mode<synchronous>, transform_indices = @transform_24, window_bounds = array<i64: 1, 32>}, {pipeline_mode = #tpu.pipeline_mode<synchronous>, transform_indices = @transform_25, window_bounds = array<i64: 1, 32>}, {pipeline_mode = #tpu.pipeline_mode<synchronous>, transform_indices = @transform_26, window_bounds = array<i64: 32, 128>}, {pipeline_mode = #tpu.pipeline_mode<synchronous>, transform_indices = @transform_27, window_bounds = array<i64: 1, 128>}, {pipeline_mode = #tpu.pipeline_mode<synchronous>, transform_indices = @transform_28, window_bounds = array<i64: 2, 8, 128>}, {pipeline_mode = #tpu.pipeline_mode<synchronous>, transform_indices = @transform_29, window_bounds = array<i64: 2, 8, 8>}]} {
    %c0_i32 = arith.constant 0 : i32
    %0 = arith.cmpi eq, %arg0, %c0_i32 : i32
    %1 = arith.extui %0 : i1 to i32
    %c0_i32_0 = arith.constant 0 : i32
    %2 = arith.cmpi ne, %1, %c0_i32_0 : i32
    scf.if %2 {
      %c0_146 = arith.constant 0 : index
      %c0_147 = arith.constant 0 : index
      %c0_148 = arith.constant 0 : index
      %362 = vector.load %arg1[%c0_146, %c0_147, %c0_148] : memref<2x8x32xf32, #tpu.memory_space<vmem>>, vector<2x8x32xf32>
      %c0_149 = arith.constant 0 : index
      %c0_150 = arith.constant 0 : index
      %c0_151 = arith.constant 0 : index
      %363 = vector.load %arg31[%c0_149, %c0_150, %c0_151] : memref<2x8x32xf32, #tpu.memory_space<vmem>>, vector<2x8x32xf32>
      tpu.vector_store %arg31[%c0_149, %c0_150, %c0_151], %362 {strides = array<i32>} : memref<2x8x32xf32, #tpu.memory_space<vmem>>, vector<2x8x32xf32>,
    } else {
    }
    %c0 = arith.constant 0 : index
    %c0_1 = arith.constant 0 : index
    %c0_2 = arith.constant 0 : index
    %3 = vector.load %arg31[%c0, %c0_1, %c0_2] : memref<2x8x32xf32, #tpu.memory_space<vmem>>, vector<2x8x32xf32>
    %4 = vector.shape_cast %3 : vector<2x8x32xf32> to vector<16x32xf32>
    %c0_3 = arith.constant 0 : index
    %c0_4 = arith.constant 0 : index
    %c0_5 = arith.constant 0 : index
    %5 = vector.load %arg2[%c0_3, %c0_4, %c0_5] : memref<2x8x32xf32, #tpu.memory_space<vmem>>, vector<2x8x32xf32>
    %6 = vector.shape_cast %5 : vector<2x8x32xf32> to vector<16x32xf32>
    %7 = tpu.iota {dimensions = array<i32: 0>} : vector<8x8xi32>
    %8 = tpu.iota {dimensions = array<i32: 1>} : vector<8x8xi32>
    %9 = arith.cmpi sgt, %8, %7 : vector<8x8xi32>
    %cst = arith.constant -1.000000e+09 : f32
    %cst_6 = arith.constant 0.000000e+00 : f32
    %10 = vector.broadcast %cst : f32 to vector<8x8xf32>
    %11 = vector.broadcast %cst_6 : f32 to vector<8x8xf32>
    %12 = arith.select %9, %10, %11 : vector<8x8xi1>, vector<8x8xf32>
    %13 = vector.shape_cast %12 : vector<8x8xf32> to vector<1x8x8xf32>
    %c0_7 = arith.constant 0 : index
    %c0_8 = arith.constant 0 : index
    %14 = vector.load %arg3[%c0_7, %c0_8] : memref<2x8xf32, #tpu.memory_space<vmem>>, vector<2x8xf32>
    %15 = vector.shape_cast %14 : vector<2x8xf32> to vector<2x1x8xf32>
    %16 = vector.broadcast %13 : vector<1x8x8xf32> to vector<2x8x8xf32>
    %17 = vector.broadcast %15 : vector<2x1x8xf32> to vector<2x8x8xf32>
    %18 = arith.addf %16, %17 : vector<2x8x8xf32>
    %c0_9 = arith.constant 0 : index
    %c0_10 = arith.constant 0 : index
    %19 = vector.load %arg4[%c0_9, %c0_10] : memref<2x8xf32, #tpu.memory_space<vmem>>, vector<2x8xf32>
    %20 = vector.shape_cast %19 : vector<2x8xf32> to vector<2x1x8xf32>
    %c0_11 = arith.constant 0 : index
    %c0_12 = arith.constant 0 : index
    %c0_13 = arith.constant 0 : index
    %21 = vector.load %arg15[%c0_11, %c0_12, %c0_13] : memref<1x1x32xf32, #tpu.memory_space<vmem>>, vector<1x1x32xf32>
    %22 = vector.shape_cast %21 : vector<1x1x32xf32> to vector<1x32xf32>
    %c0_14 = arith.constant 0 : index
    %c0_15 = arith.constant 0 : index
    %c0_16 = arith.constant 0 : index
    %23 = vector.load %arg16[%c0_14, %c0_15, %c0_16] : memref<1x1x32xf32, #tpu.memory_space<vmem>>, vector<1x1x32xf32>
    %24 = vector.shape_cast %23 : vector<1x1x32xf32> to vector<1x32xf32>
    %cst_17 = arith.constant dense<0.000000e+00> : vector<16xf32>
    %25 = vector.multi_reduction <add>, %4, %cst_17 [1] : vector<16x32xf32> to vector<16xf32>
    %26 = vector.shape_cast %25 : vector<16xf32> to vector<16x1xf32>
    %cst_18 = arith.constant 3.200000e+01 : f32
    %27 = vector.broadcast %cst_18 : f32 to vector<16x1xf32>
    %28 = arith.divf %26, %27 : vector<16x1xf32>
    %29 = vector.broadcast %28 : vector<16x1xf32> to vector<16x32xf32>
    %30 = arith.subf %4, %29 : vector<16x32xf32>
    %31 = arith.mulf %30, %30 : vector<16x32xf32>
    %cst_19 = arith.constant dense<0.000000e+00> : vector<16xf32>
    %32 = vector.multi_reduction <add>, %31, %cst_19 [1] : vector<16x32xf32> to vector<16xf32>
    %33 = vector.shape_cast %32 : vector<16xf32> to vector<16x1xf32>
    %cst_20 = arith.constant 3.200000e+01 : f32
    %34 = vector.broadcast %cst_20 : f32 to vector<16x1xf32>
    %35 = arith.divf %33, %34 : vector<16x1xf32>
    %36 = vector.broadcast %28 : vector<16x1xf32> to vector<16x32xf32>
    %37 = arith.subf %4, %36 : vector<16x32xf32>
    %cst_21 = arith.constant 9.99999974E-6 : f32
    %38 = vector.broadcast %cst_21 : f32 to vector<16x1xf32>
    %39 = arith.addf %35, %38 : vector<16x1xf32>
    %40 = math.rsqrt %39 : vector<16x1xf32>
    %41 = vector.broadcast %40 : vector<16x1xf32> to vector<16x32xf32>
    %42 = arith.mulf %37, %41 : vector<16x32xf32>
    %43 = vector.broadcast %22 : vector<1x32xf32> to vector<16x32xf32>
    %44 = arith.mulf %42, %43 : vector<16x32xf32>
    %45 = vector.broadcast %24 : vector<1x32xf32> to vector<16x32xf32>
    %46 = arith.addf %44, %45 : vector<16x32xf32>
    %c0_22 = arith.constant 0 : index
    %c0_23 = arith.constant 0 : index
    %c0_24 = arith.constant 0 : index
    %47 = vector.load %arg5[%c0_22, %c0_23, %c0_24] : memref<1x32x96xf32, #tpu.memory_space<vmem>>, vector<1x32x96xf32>
    %48 = vector.shape_cast %47 : vector<1x32x96xf32> to vector<32x96xf32>
    %cst_25 = arith.constant dense<0.000000e+00> : vector<16x96xf32>
    %49 = tpu.matmul %46, %48, %cst_25 {dimension_numbers = #tpu.dot_dimension_numbers<[1], [0], [0], [1], [0, 0, 1, 1], [], []>} : vector<16x32xf32>, vector<32x96xf32>, vector<16x96xf32> -> vector<16x96xf32>
    %c0_26 = arith.constant 0 : index
    %c0_27 = arith.constant 0 : index
    %c0_28 = arith.constant 0 : index
    %50 = vector.load %arg6[%c0_26, %c0_27, %c0_28] : memref<1x1x96xf32, #tpu.memory_space<vmem>>, vector<1x1x96xf32>
    %51 = vector.shape_cast %50 : vector<1x1x96xf32> to vector<1x96xf32>
    %52 = vector.broadcast %51 : vector<1x96xf32> to vector<16x96xf32>
    %53 = arith.addf %49, %52 : vector<16x96xf32>
    %54 = vector.extract_strided_slice %53 {offsets = [0, 0], sizes = [16, 32], strides = [1, 1]} : vector<16x96xf32> to vector<16x32xf32>
    %55 = vector.extract_strided_slice %53 {offsets = [0, 32], sizes = [16, 32], strides = [1, 1]} : vector<16x96xf32> to vector<16x32xf32>
    %56 = vector.extract_strided_slice %53 {offsets = [0, 64], sizes = [16, 32], strides = [1, 1]} : vector<16x96xf32> to vector<16x32xf32>
    %c0_29 = arith.constant 0 : index
    %c0_30 = arith.constant 0 : index
    %c0_31 = arith.constant 0 : index
    %57 = vector.load %arg7[%c0_29, %c0_30, %c0_31] : memref<1x32x32xf32, #tpu.memory_space<vmem>>, vector<1x32x32xf32>
    %58 = vector.shape_cast %57 : vector<1x32x32xf32> to vector<32x32xf32>
    %c0_32 = arith.constant 0 : index
    %c0_33 = arith.constant 0 : index
    %c0_34 = arith.constant 0 : index
    %59 = vector.load %arg8[%c0_32, %c0_33, %c0_34] : memref<1x1x32xf32, #tpu.memory_space<vmem>>, vector<1x1x32xf32>
    %60 = vector.shape_cast %59 : vector<1x1x32xf32> to vector<1x32xf32>
    %cst_35 = arith.constant 0.000000e+00 : f32
    %61 = vector.broadcast %cst_35 : f32 to vector<16x32xf32>
    %62 = vector.extract_strided_slice %54 {offsets = [0, 0], sizes = [16, 8], strides = [1, 1]} : vector<16x32xf32> to vector<16x8xf32>
    %63 = vector.shape_cast %62 : vector<16x8xf32> to vector<2x8x8xf32>
    %64 = vector.extract_strided_slice %55 {offsets = [0, 0], sizes = [16, 8], strides = [1, 1]} : vector<16x32xf32> to vector<16x8xf32>
    %65 = vector.shape_cast %64 : vector<16x8xf32> to vector<2x8x8xf32>
    %66 = vector.extract_strided_slice %56 {offsets = [0, 0], sizes = [16, 8], strides = [1, 1]} : vector<16x32xf32> to vector<16x8xf32>
    %67 = vector.shape_cast %66 : vector<16x8xf32> to vector<2x8x8xf32>
    "tpu.trace_start"() <{level = 10 : i32, message = "bqd,bkd->bqk"}> : () -> ()
    %cst_36 = arith.constant dense<0.000000e+00> : vector<2x8x8xf32>
    %68 = tpu.matmul %63, %65, %cst_36 {dimension_numbers = #tpu.dot_dimension_numbers<[2], [2], [1], [1], [0, 0, 0, 1, 1, 1], [0], [0]>} : vector<2x8x8xf32>, vector<2x8x8xf32>, vector<2x8x8xf32> -> vector<2x8x8xf32>
    "tpu.trace_stop"() : () -> ()
    %cst_37 = arith.constant 0.353553385 : f32
    %69 = vector.broadcast %cst_37 : f32 to vector<2x8x8xf32>
    %70 = arith.mulf %68, %69 : vector<2x8x8xf32>
    %71 = arith.addf %70, %18 : vector<2x8x8xf32>
    %cst_38 = arith.constant dense<0xFF800000> : vector<2x8xf32>
    %72 = vector.multi_reduction <maximumf>, %71, %cst_38 [2] : vector<2x8x8xf32> to vector<2x8xf32>
    %73 = vector.shape_cast %72 : vector<2x8xf32> to vector<2x8x1xf32>
    %74 = vector.broadcast %73 : vector<2x8x1xf32> to vector<2x8x8xf32>
    %75 = arith.subf %71, %74 : vector<2x8x8xf32>
    %76 = math.exp %75 : vector<2x8x8xf32>
    %cst_39 = arith.constant dense<0.000000e+00> : vector<2x8xf32>
    %77 = vector.multi_reduction <add>, %76, %cst_39 [2] : vector<2x8x8xf32> to vector<2x8xf32>
    %78 = vector.shape_cast %77 : vector<2x8xf32> to vector<2x8x1xf32>
    %79 = vector.broadcast %78 : vector<2x8x1xf32> to vector<2x8x8xf32>
    %80 = arith.divf %76, %79 : vector<2x8x8xf32>
    "tpu.trace_start"() <{level = 10 : i32, message = "bqk,bkd->bqd"}> : () -> ()
    %cst_40 = arith.constant dense<0.000000e+00> : vector<2x8x8xf32>
    %81 = tpu.matmul %80, %67, %cst_40 {dimension_numbers = #tpu.dot_dimension_numbers<[2], [1], [1], [2], [0, 0, 0, 1, 1, 2], [0], [0]>} : vector<2x8x8xf32>, vector<2x8x8xf32>, vector<2x8x8xf32> -> vector<2x8x8xf32>
    "tpu.trace_stop"() : () -> ()
    %82 = vector.shape_cast %81 : vector<2x8x8xf32> to vector<16x8xf32>
    %83 = vector.extract_strided_slice %58 {offsets = [0, 0], sizes = [8, 32], strides = [1, 1]} : vector<32x32xf32> to vector<8x32xf32>
    %cst_41 = arith.constant dense<0.000000e+00> : vector<16x32xf32>
    %84 = tpu.matmul %82, %83, %cst_41 {dimension_numbers = #tpu.dot_dimension_numbers<[1], [0], [0], [1], [0, 0, 1, 1], [], []>} : vector<16x8xf32>, vector<8x32xf32>, vector<16x32xf32> -> vector<16x32xf32>
    %85 = arith.addf %61, %84 : vector<16x32xf32>
    %86 = vector.extract_strided_slice %54 {offsets = [0, 8], sizes = [16, 8], strides = [1, 1]} : vector<16x32xf32> to vector<16x8xf32>
    %87 = vector.shape_cast %86 : vector<16x8xf32> to vector<2x8x8xf32>
    %88 = vector.extract_strided_slice %55 {offsets = [0, 8], sizes = [16, 8], strides = [1, 1]} : vector<16x32xf32> to vector<16x8xf32>
    %89 = vector.shape_cast %88 : vector<16x8xf32> to vector<2x8x8xf32>
    %90 = vector.extract_strided_slice %56 {offsets = [0, 8], sizes = [16, 8], strides = [1, 1]} : vector<16x32xf32> to vector<16x8xf32>
    %91 = vector.shape_cast %90 : vector<16x8xf32> to vector<2x8x8xf32>
    "tpu.trace_start"() <{level = 10 : i32, message = "bqd,bkd->bqk"}> : () -> ()
    %cst_42 = arith.constant dense<0.000000e+00> : vector<2x8x8xf32>
    %92 = tpu.matmul %87, %89, %cst_42 {dimension_numbers = #tpu.dot_dimension_numbers<[2], [2], [1], [1], [0, 0, 0, 1, 1, 1], [0], [0]>} : vector<2x8x8xf32>, vector<2x8x8xf32>, vector<2x8x8xf32> -> vector<2x8x8xf32>
    "tpu.trace_stop"() : () -> ()
    %cst_43 = arith.constant 0.353553385 : f32
    %93 = vector.broadcast %cst_43 : f32 to vector<2x8x8xf32>
    %94 = arith.mulf %92, %93 : vector<2x8x8xf32>
    %95 = arith.addf %94, %18 : vector<2x8x8xf32>
    %cst_44 = arith.constant dense<0xFF800000> : vector<2x8xf32>
    %96 = vector.multi_reduction <maximumf>, %95, %cst_44 [2] : vector<2x8x8xf32> to vector<2x8xf32>
    %97 = vector.shape_cast %96 : vector<2x8xf32> to vector<2x8x1xf32>
    %98 = vector.broadcast %97 : vector<2x8x1xf32> to vector<2x8x8xf32>
    %99 = arith.subf %95, %98 : vector<2x8x8xf32>
    %100 = math.exp %99 : vector<2x8x8xf32>
    %cst_45 = arith.constant dense<0.000000e+00> : vector<2x8xf32>
    %101 = vector.multi_reduction <add>, %100, %cst_45 [2] : vector<2x8x8xf32> to vector<2x8xf32>
    %102 = vector.shape_cast %101 : vector<2x8xf32> to vector<2x8x1xf32>
    %103 = vector.broadcast %102 : vector<2x8x1xf32> to vector<2x8x8xf32>
    %104 = arith.divf %100, %103 : vector<2x8x8xf32>
    "tpu.trace_start"() <{level = 10 : i32, message = "bqk,bkd->bqd"}> : () -> ()
    %cst_46 = arith.constant dense<0.000000e+00> : vector<2x8x8xf32>
    %105 = tpu.matmul %104, %91, %cst_46 {dimension_numbers = #tpu.dot_dimension_numbers<[2], [1], [1], [2], [0, 0, 0, 1, 1, 2], [0], [0]>} : vector<2x8x8xf32>, vector<2x8x8xf32>, vector<2x8x8xf32> -> vector<2x8x8xf32>
    "tpu.trace_stop"() : () -> ()
    %106 = vector.shape_cast %105 : vector<2x8x8xf32> to vector<16x8xf32>
    %107 = vector.extract_strided_slice %58 {offsets = [8, 0], sizes = [8, 32], strides = [1, 1]} : vector<32x32xf32> to vector<8x32xf32>
    %cst_47 = arith.constant dense<0.000000e+00> : vector<16x32xf32>
    %108 = tpu.matmul %106, %107, %cst_47 {dimension_numbers = #tpu.dot_dimension_numbers<[1], [0], [0], [1], [0, 0, 1, 1], [], []>} : vector<16x8xf32>, vector<8x32xf32>, vector<16x32xf32> -> vector<16x32xf32>
    %109 = arith.addf %85, %108 : vector<16x32xf32>
    %110 = vector.extract_strided_slice %54 {offsets = [0, 16], sizes = [16, 8], strides = [1, 1]} : vector<16x32xf32> to vector<16x8xf32>
    %111 = vector.shape_cast %110 : vector<16x8xf32> to vector<2x8x8xf32>
    %112 = vector.extract_strided_slice %55 {offsets = [0, 16], sizes = [16, 8], strides = [1, 1]} : vector<16x32xf32> to vector<16x8xf32>
    %113 = vector.shape_cast %112 : vector<16x8xf32> to vector<2x8x8xf32>
    %114 = vector.extract_strided_slice %56 {offsets = [0, 16], sizes = [16, 8], strides = [1, 1]} : vector<16x32xf32> to vector<16x8xf32>
    %115 = vector.shape_cast %114 : vector<16x8xf32> to vector<2x8x8xf32>
    "tpu.trace_start"() <{level = 10 : i32, message = "bqd,bkd->bqk"}> : () -> ()
    %cst_48 = arith.constant dense<0.000000e+00> : vector<2x8x8xf32>
    %116 = tpu.matmul %111, %113, %cst_48 {dimension_numbers = #tpu.dot_dimension_numbers<[2], [2], [1], [1], [0, 0, 0, 1, 1, 1], [0], [0]>} : vector<2x8x8xf32>, vector<2x8x8xf32>, vector<2x8x8xf32> -> vector<2x8x8xf32>
    "tpu.trace_stop"() : () -> ()
    %cst_49 = arith.constant 0.353553385 : f32
    %117 = vector.broadcast %cst_49 : f32 to vector<2x8x8xf32>
    %118 = arith.mulf %116, %117 : vector<2x8x8xf32>
    %119 = arith.addf %118, %18 : vector<2x8x8xf32>
    %cst_50 = arith.constant dense<0xFF800000> : vector<2x8xf32>
    %120 = vector.multi_reduction <maximumf>, %119, %cst_50 [2] : vector<2x8x8xf32> to vector<2x8xf32>
    %121 = vector.shape_cast %120 : vector<2x8xf32> to vector<2x8x1xf32>
    %122 = vector.broadcast %121 : vector<2x8x1xf32> to vector<2x8x8xf32>
    %123 = arith.subf %119, %122 : vector<2x8x8xf32>
    %124 = math.exp %123 : vector<2x8x8xf32>
    %cst_51 = arith.constant dense<0.000000e+00> : vector<2x8xf32>
    %125 = vector.multi_reduction <add>, %124, %cst_51 [2] : vector<2x8x8xf32> to vector<2x8xf32>
    %126 = vector.shape_cast %125 : vector<2x8xf32> to vector<2x8x1xf32>
    %127 = vector.broadcast %126 : vector<2x8x1xf32> to vector<2x8x8xf32>
    %128 = arith.divf %124, %127 : vector<2x8x8xf32>
    "tpu.trace_start"() <{level = 10 : i32, message = "bqk,bkd->bqd"}> : () -> ()
    %cst_52 = arith.constant dense<0.000000e+00> : vector<2x8x8xf32>
    %129 = tpu.matmul %128, %115, %cst_52 {dimension_numbers = #tpu.dot_dimension_numbers<[2], [1], [1], [2], [0, 0, 0, 1, 1, 2], [0], [0]>} : vector<2x8x8xf32>, vector<2x8x8xf32>, vector<2x8x8xf32> -> vector<2x8x8xf32>
    "tpu.trace_stop"() : () -> ()
    %130 = vector.shape_cast %129 : vector<2x8x8xf32> to vector<16x8xf32>
    %131 = vector.extract_strided_slice %58 {offsets = [16, 0], sizes = [8, 32], strides = [1, 1]} : vector<32x32xf32> to vector<8x32xf32>
    %cst_53 = arith.constant dense<0.000000e+00> : vector<16x32xf32>
    %132 = tpu.matmul %130, %131, %cst_53 {dimension_numbers = #tpu.dot_dimension_numbers<[1], [0], [0], [1], [0, 0, 1, 1], [], []>} : vector<16x8xf32>, vector<8x32xf32>, vector<16x32xf32> -> vector<16x32xf32>
    %133 = arith.addf %109, %132 : vector<16x32xf32>
    %134 = vector.extract_strided_slice %54 {offsets = [0, 24], sizes = [16, 8], strides = [1, 1]} : vector<16x32xf32> to vector<16x8xf32>
    %135 = vector.shape_cast %134 : vector<16x8xf32> to vector<2x8x8xf32>
    %136 = vector.extract_strided_slice %55 {offsets = [0, 24], sizes = [16, 8], strides = [1, 1]} : vector<16x32xf32> to vector<16x8xf32>
    %137 = vector.shape_cast %136 : vector<16x8xf32> to vector<2x8x8xf32>
    %138 = vector.extract_strided_slice %56 {offsets = [0, 24], sizes = [16, 8], strides = [1, 1]} : vector<16x32xf32> to vector<16x8xf32>
    %139 = vector.shape_cast %138 : vector<16x8xf32> to vector<2x8x8xf32>
    "tpu.trace_start"() <{level = 10 : i32, message = "bqd,bkd->bqk"}> : () -> ()
    %cst_54 = arith.constant dense<0.000000e+00> : vector<2x8x8xf32>
    %140 = tpu.matmul %135, %137, %cst_54 {dimension_numbers = #tpu.dot_dimension_numbers<[2], [2], [1], [1], [0, 0, 0, 1, 1, 1], [0], [0]>} : vector<2x8x8xf32>, vector<2x8x8xf32>, vector<2x8x8xf32> -> vector<2x8x8xf32>
    "tpu.trace_stop"() : () -> ()
    %cst_55 = arith.constant 0.353553385 : f32
    %141 = vector.broadcast %cst_55 : f32 to vector<2x8x8xf32>
    %142 = arith.mulf %140, %141 : vector<2x8x8xf32>
    %143 = arith.addf %142, %18 : vector<2x8x8xf32>
    %cst_56 = arith.constant dense<0xFF800000> : vector<2x8xf32>
    %144 = vector.multi_reduction <maximumf>, %143, %cst_56 [2] : vector<2x8x8xf32> to vector<2x8xf32>
    %145 = vector.shape_cast %144 : vector<2x8xf32> to vector<2x8x1xf32>
    %146 = vector.broadcast %145 : vector<2x8x1xf32> to vector<2x8x8xf32>
    %147 = arith.subf %143, %146 : vector<2x8x8xf32>
    %148 = math.exp %147 : vector<2x8x8xf32>
    %cst_57 = arith.constant dense<0.000000e+00> : vector<2x8xf32>
    %149 = vector.multi_reduction <add>, %148, %cst_57 [2] : vector<2x8x8xf32> to vector<2x8xf32>
    %150 = vector.shape_cast %149 : vector<2x8xf32> to vector<2x8x1xf32>
    %151 = vector.broadcast %150 : vector<2x8x1xf32> to vector<2x8x8xf32>
    %152 = arith.divf %148, %151 : vector<2x8x8xf32>
    "tpu.trace_start"() <{level = 10 : i32, message = "bqk,bkd->bqd"}> : () -> ()
    %cst_58 = arith.constant dense<0.000000e+00> : vector<2x8x8xf32>
    %153 = tpu.matmul %152, %139, %cst_58 {dimension_numbers = #tpu.dot_dimension_numbers<[2], [1], [1], [2], [0, 0, 0, 1, 1, 2], [0], [0]>} : vector<2x8x8xf32>, vector<2x8x8xf32>, vector<2x8x8xf32> -> vector<2x8x8xf32>
    "tpu.trace_stop"() : () -> ()
    %154 = vector.shape_cast %153 : vector<2x8x8xf32> to vector<16x8xf32>
    %155 = vector.extract_strided_slice %58 {offsets = [24, 0], sizes = [8, 32], strides = [1, 1]} : vector<32x32xf32> to vector<8x32xf32>
    %cst_59 = arith.constant dense<0.000000e+00> : vector<16x32xf32>
    %156 = tpu.matmul %154, %155, %cst_59 {dimension_numbers = #tpu.dot_dimension_numbers<[1], [0], [0], [1], [0, 0, 1, 1], [], []>} : vector<16x8xf32>, vector<8x32xf32>, vector<16x32xf32> -> vector<16x32xf32>
    %157 = arith.addf %133, %156 : vector<16x32xf32>
    %158 = vector.broadcast %60 : vector<1x32xf32> to vector<16x32xf32>
    %159 = arith.addf %157, %158 : vector<16x32xf32>
    %160 = arith.addf %4, %159 : vector<16x32xf32>
    %c0_60 = arith.constant 0 : index
    %c0_61 = arith.constant 0 : index
    %c0_62 = arith.constant 0 : index
    %161 = vector.load %arg17[%c0_60, %c0_61, %c0_62] : memref<1x1x32xf32, #tpu.memory_space<vmem>>, vector<1x1x32xf32>
    %162 = vector.shape_cast %161 : vector<1x1x32xf32> to vector<1x32xf32>
    %c0_63 = arith.constant 0 : index
    %c0_64 = arith.constant 0 : index
    %c0_65 = arith.constant 0 : index
    %163 = vector.load %arg18[%c0_63, %c0_64, %c0_65] : memref<1x1x32xf32, #tpu.memory_space<vmem>>, vector<1x1x32xf32>
    %164 = vector.shape_cast %163 : vector<1x1x32xf32> to vector<1x32xf32>
    %cst_66 = arith.constant dense<0.000000e+00> : vector<16xf32>
    %165 = vector.multi_reduction <add>, %160, %cst_66 [1] : vector<16x32xf32> to vector<16xf32>
    %166 = vector.shape_cast %165 : vector<16xf32> to vector<16x1xf32>
    %cst_67 = arith.constant 3.200000e+01 : f32
    %167 = vector.broadcast %cst_67 : f32 to vector<16x1xf32>
    %168 = arith.divf %166, %167 : vector<16x1xf32>
    %169 = vector.broadcast %168 : vector<16x1xf32> to vector<16x32xf32>
    %170 = arith.subf %160, %169 : vector<16x32xf32>
    %171 = arith.mulf %170, %170 : vector<16x32xf32>
    %cst_68 = arith.constant dense<0.000000e+00> : vector<16xf32>
    %172 = vector.multi_reduction <add>, %171, %cst_68 [1] : vector<16x32xf32> to vector<16xf32>
    %173 = vector.shape_cast %172 : vector<16xf32> to vector<16x1xf32>
    %cst_69 = arith.constant 3.200000e+01 : f32
    %174 = vector.broadcast %cst_69 : f32 to vector<16x1xf32>
    %175 = arith.divf %173, %174 : vector<16x1xf32>
    %176 = vector.broadcast %168 : vector<16x1xf32> to vector<16x32xf32>
    %177 = arith.subf %160, %176 : vector<16x32xf32>
    %cst_70 = arith.constant 9.99999974E-6 : f32
    %178 = vector.broadcast %cst_70 : f32 to vector<16x1xf32>
    %179 = arith.addf %175, %178 : vector<16x1xf32>
    %180 = math.rsqrt %179 : vector<16x1xf32>
    %181 = vector.broadcast %180 : vector<16x1xf32> to vector<16x32xf32>
    %182 = arith.mulf %177, %181 : vector<16x32xf32>
    %183 = vector.broadcast %162 : vector<1x32xf32> to vector<16x32xf32>
    %184 = arith.mulf %182, %183 : vector<16x32xf32>
    %185 = vector.broadcast %164 : vector<1x32xf32> to vector<16x32xf32>
    %186 = arith.addf %184, %185 : vector<16x32xf32>
    %c0_71 = arith.constant 0 : index
    %c0_72 = arith.constant 0 : index
    %c0_73 = arith.constant 0 : index
    %187 = vector.load %arg9[%c0_71, %c0_72, %c0_73] : memref<1x32x32xf32, #tpu.memory_space<vmem>>, vector<1x32x32xf32>
    %188 = vector.shape_cast %187 : vector<1x32x32xf32> to vector<32x32xf32>
    %cst_74 = arith.constant dense<0.000000e+00> : vector<16x32xf32>
    %189 = tpu.matmul %186, %188, %cst_74 {dimension_numbers = #tpu.dot_dimension_numbers<[1], [0], [0], [1], [0, 0, 1, 1], [], []>} : vector<16x32xf32>, vector<32x32xf32>, vector<16x32xf32> -> vector<16x32xf32>
    %c0_75 = arith.constant 0 : index
    %c0_76 = arith.constant 0 : index
    %c0_77 = arith.constant 0 : index
    %190 = vector.load %arg10[%c0_75, %c0_76, %c0_77] : memref<1x1x32xf32, #tpu.memory_space<vmem>>, vector<1x1x32xf32>
    %191 = vector.shape_cast %190 : vector<1x1x32xf32> to vector<1x32xf32>
    %192 = vector.broadcast %191 : vector<1x32xf32> to vector<16x32xf32>
    %193 = arith.addf %189, %192 : vector<16x32xf32>
    %c0_78 = arith.constant 0 : index
    %c0_79 = arith.constant 0 : index
    %c0_80 = arith.constant 0 : index
    %194 = vector.load %arg11[%c0_78, %c0_79, %c0_80] : memref<1x32x64xf32, #tpu.memory_space<vmem>>, vector<1x32x64xf32>
    %195 = vector.shape_cast %194 : vector<1x32x64xf32> to vector<32x64xf32>
    %cst_81 = arith.constant dense<0.000000e+00> : vector<16x64xf32>
    %196 = tpu.matmul %6, %195, %cst_81 {dimension_numbers = #tpu.dot_dimension_numbers<[1], [0], [0], [1], [0, 0, 1, 1], [], []>} : vector<16x32xf32>, vector<32x64xf32>, vector<16x64xf32> -> vector<16x64xf32>
    %c0_82 = arith.constant 0 : index
    %c0_83 = arith.constant 0 : index
    %c0_84 = arith.constant 0 : index
    %197 = vector.load %arg12[%c0_82, %c0_83, %c0_84] : memref<1x1x64xf32, #tpu.memory_space<vmem>>, vector<1x1x64xf32>
    %198 = vector.shape_cast %197 : vector<1x1x64xf32> to vector<1x64xf32>
    %199 = vector.broadcast %198 : vector<1x64xf32> to vector<16x64xf32>
    %200 = arith.addf %196, %199 : vector<16x64xf32>
    %201 = vector.extract_strided_slice %200 {offsets = [0, 0], sizes = [16, 32], strides = [1, 1]} : vector<16x64xf32> to vector<16x32xf32>
    %202 = vector.extract_strided_slice %200 {offsets = [0, 32], sizes = [16, 32], strides = [1, 1]} : vector<16x64xf32> to vector<16x32xf32>
    %c0_85 = arith.constant 0 : index
    %c0_86 = arith.constant 0 : index
    %c0_87 = arith.constant 0 : index
    %203 = vector.load %arg13[%c0_85, %c0_86, %c0_87] : memref<1x32x32xf32, #tpu.memory_space<vmem>>, vector<1x32x32xf32>
    %204 = vector.shape_cast %203 : vector<1x32x32xf32> to vector<32x32xf32>
    %c0_88 = arith.constant 0 : index
    %c0_89 = arith.constant 0 : index
    %c0_90 = arith.constant 0 : index
    %205 = vector.load %arg14[%c0_88, %c0_89, %c0_90] : memref<1x1x32xf32, #tpu.memory_space<vmem>>, vector<1x1x32xf32>
    %206 = vector.shape_cast %205 : vector<1x1x32xf32> to vector<1x32xf32>
    %cst_91 = arith.constant 0.000000e+00 : f32
    %207 = vector.broadcast %cst_91 : f32 to vector<16x32xf32>
    %208 = vector.extract_strided_slice %193 {offsets = [0, 0], sizes = [16, 8], strides = [1, 1]} : vector<16x32xf32> to vector<16x8xf32>
    %209 = vector.shape_cast %208 : vector<16x8xf32> to vector<2x8x8xf32>
    %210 = vector.extract_strided_slice %201 {offsets = [0, 0], sizes = [16, 8], strides = [1, 1]} : vector<16x32xf32> to vector<16x8xf32>
    %211 = vector.shape_cast %210 : vector<16x8xf32> to vector<2x8x8xf32>
    %212 = vector.extract_strided_slice %202 {offsets = [0, 0], sizes = [16, 8], strides = [1, 1]} : vector<16x32xf32> to vector<16x8xf32>
    %213 = vector.shape_cast %212 : vector<16x8xf32> to vector<2x8x8xf32>
    "tpu.trace_start"() <{level = 10 : i32, message = "bqd,bkd->bqk"}> : () -> ()
    %cst_92 = arith.constant dense<0.000000e+00> : vector<2x8x8xf32>
    %214 = tpu.matmul %209, %211, %cst_92 {dimension_numbers = #tpu.dot_dimension_numbers<[2], [2], [1], [1], [0, 0, 0, 1, 1, 1], [0], [0]>} : vector<2x8x8xf32>, vector<2x8x8xf32>, vector<2x8x8xf32> -> vector<2x8x8xf32>
    "tpu.trace_stop"() : () -> ()
    %cst_93 = arith.constant 0.353553385 : f32
    %215 = vector.broadcast %cst_93 : f32 to vector<2x8x8xf32>
    %216 = arith.mulf %214, %215 : vector<2x8x8xf32>
    %217 = vector.broadcast %20 : vector<2x1x8xf32> to vector<2x8x8xf32>
    %218 = arith.addf %216, %217 : vector<2x8x8xf32>
    %cst_94 = arith.constant dense<0xFF800000> : vector<2x8xf32>
    %219 = vector.multi_reduction <maximumf>, %218, %cst_94 [2] : vector<2x8x8xf32> to vector<2x8xf32>
    %220 = vector.shape_cast %219 : vector<2x8xf32> to vector<2x8x1xf32>
    %221 = vector.broadcast %220 : vector<2x8x1xf32> to vector<2x8x8xf32>
    %222 = arith.subf %218, %221 : vector<2x8x8xf32>
    %223 = math.exp %222 : vector<2x8x8xf32>
    %cst_95 = arith.constant dense<0.000000e+00> : vector<2x8xf32>
    %224 = vector.multi_reduction <add>, %223, %cst_95 [2] : vector<2x8x8xf32> to vector<2x8xf32>
    %225 = vector.shape_cast %224 : vector<2x8xf32> to vector<2x8x1xf32>
    %226 = vector.broadcast %225 : vector<2x8x1xf32> to vector<2x8x8xf32>
    %227 = arith.divf %223, %226 : vector<2x8x8xf32>
    "tpu.trace_start"() <{level = 10 : i32, message = "bqk,bkd->bqd"}> : () -> ()
    %cst_96 = arith.constant dense<0.000000e+00> : vector<2x8x8xf32>
    %228 = tpu.matmul %227, %213, %cst_96 {dimension_numbers = #tpu.dot_dimension_numbers<[2], [1], [1], [2], [0, 0, 0, 1, 1, 2], [0], [0]>} : vector<2x8x8xf32>, vector<2x8x8xf32>, vector<2x8x8xf32> -> vector<2x8x8xf32>
    "tpu.trace_stop"() : () -> ()
    %229 = vector.shape_cast %228 : vector<2x8x8xf32> to vector<16x8xf32>
    %230 = vector.extract_strided_slice %204 {offsets = [0, 0], sizes = [8, 32], strides = [1, 1]} : vector<32x32xf32> to vector<8x32xf32>
    %cst_97 = arith.constant dense<0.000000e+00> : vector<16x32xf32>
    %231 = tpu.matmul %229, %230, %cst_97 {dimension_numbers = #tpu.dot_dimension_numbers<[1], [0], [0], [1], [0, 0, 1, 1], [], []>} : vector<16x8xf32>, vector<8x32xf32>, vector<16x32xf32> -> vector<16x32xf32>
    %232 = arith.addf %207, %231 : vector<16x32xf32>
    %233 = vector.extract_strided_slice %193 {offsets = [0, 8], sizes = [16, 8], strides = [1, 1]} : vector<16x32xf32> to vector<16x8xf32>
    %234 = vector.shape_cast %233 : vector<16x8xf32> to vector<2x8x8xf32>
    %235 = vector.extract_strided_slice %201 {offsets = [0, 8], sizes = [16, 8], strides = [1, 1]} : vector<16x32xf32> to vector<16x8xf32>
    %236 = vector.shape_cast %235 : vector<16x8xf32> to vector<2x8x8xf32>
    %237 = vector.extract_strided_slice %202 {offsets = [0, 8], sizes = [16, 8], strides = [1, 1]} : vector<16x32xf32> to vector<16x8xf32>
    %238 = vector.shape_cast %237 : vector<16x8xf32> to vector<2x8x8xf32>
    "tpu.trace_start"() <{level = 10 : i32, message = "bqd,bkd->bqk"}> : () -> ()
    %cst_98 = arith.constant dense<0.000000e+00> : vector<2x8x8xf32>
    %239 = tpu.matmul %234, %236, %cst_98 {dimension_numbers = #tpu.dot_dimension_numbers<[2], [2], [1], [1], [0, 0, 0, 1, 1, 1], [0], [0]>} : vector<2x8x8xf32>, vector<2x8x8xf32>, vector<2x8x8xf32> -> vector<2x8x8xf32>
    "tpu.trace_stop"() : () -> ()
    %cst_99 = arith.constant 0.353553385 : f32
    %240 = vector.broadcast %cst_99 : f32 to vector<2x8x8xf32>
    %241 = arith.mulf %239, %240 : vector<2x8x8xf32>
    %242 = vector.broadcast %20 : vector<2x1x8xf32> to vector<2x8x8xf32>
    %243 = arith.addf %241, %242 : vector<2x8x8xf32>
    %cst_100 = arith.constant dense<0xFF800000> : vector<2x8xf32>
    %244 = vector.multi_reduction <maximumf>, %243, %cst_100 [2] : vector<2x8x8xf32> to vector<2x8xf32>
    %245 = vector.shape_cast %244 : vector<2x8xf32> to vector<2x8x1xf32>
    %246 = vector.broadcast %245 : vector<2x8x1xf32> to vector<2x8x8xf32>
    %247 = arith.subf %243, %246 : vector<2x8x8xf32>
    %248 = math.exp %247 : vector<2x8x8xf32>
    %cst_101 = arith.constant dense<0.000000e+00> : vector<2x8xf32>
    %249 = vector.multi_reduction <add>, %248, %cst_101 [2] : vector<2x8x8xf32> to vector<2x8xf32>
    %250 = vector.shape_cast %249 : vector<2x8xf32> to vector<2x8x1xf32>
    %251 = vector.broadcast %250 : vector<2x8x1xf32> to vector<2x8x8xf32>
    %252 = arith.divf %248, %251 : vector<2x8x8xf32>
    "tpu.trace_start"() <{level = 10 : i32, message = "bqk,bkd->bqd"}> : () -> ()
    %cst_102 = arith.constant dense<0.000000e+00> : vector<2x8x8xf32>
    %253 = tpu.matmul %252, %238, %cst_102 {dimension_numbers = #tpu.dot_dimension_numbers<[2], [1], [1], [2], [0, 0, 0, 1, 1, 2], [0], [0]>} : vector<2x8x8xf32>, vector<2x8x8xf32>, vector<2x8x8xf32> -> vector<2x8x8xf32>
    "tpu.trace_stop"() : () -> ()
    %254 = vector.shape_cast %253 : vector<2x8x8xf32> to vector<16x8xf32>
    %255 = vector.extract_strided_slice %204 {offsets = [8, 0], sizes = [8, 32], strides = [1, 1]} : vector<32x32xf32> to vector<8x32xf32>
    %cst_103 = arith.constant dense<0.000000e+00> : vector<16x32xf32>
    %256 = tpu.matmul %254, %255, %cst_103 {dimension_numbers = #tpu.dot_dimension_numbers<[1], [0], [0], [1], [0, 0, 1, 1], [], []>} : vector<16x8xf32>, vector<8x32xf32>, vector<16x32xf32> -> vector<16x32xf32>
    %257 = arith.addf %232, %256 : vector<16x32xf32>
    %258 = arith.addf %227, %252 : vector<2x8x8xf32>
    %259 = vector.extract_strided_slice %193 {offsets = [0, 16], sizes = [16, 8], strides = [1, 1]} : vector<16x32xf32> to vector<16x8xf32>
    %260 = vector.shape_cast %259 : vector<16x8xf32> to vector<2x8x8xf32>
    %261 = vector.extract_strided_slice %201 {offsets = [0, 16], sizes = [16, 8], strides = [1, 1]} : vector<16x32xf32> to vector<16x8xf32>
    %262 = vector.shape_cast %261 : vector<16x8xf32> to vector<2x8x8xf32>
    %263 = vector.extract_strided_slice %202 {offsets = [0, 16], sizes = [16, 8], strides = [1, 1]} : vector<16x32xf32> to vector<16x8xf32>
    %264 = vector.shape_cast %263 : vector<16x8xf32> to vector<2x8x8xf32>
    "tpu.trace_start"() <{level = 10 : i32, message = "bqd,bkd->bqk"}> : () -> ()
    %cst_104 = arith.constant dense<0.000000e+00> : vector<2x8x8xf32>
    %265 = tpu.matmul %260, %262, %cst_104 {dimension_numbers = #tpu.dot_dimension_numbers<[2], [2], [1], [1], [0, 0, 0, 1, 1, 1], [0], [0]>} : vector<2x8x8xf32>, vector<2x8x8xf32>, vector<2x8x8xf32> -> vector<2x8x8xf32>
    "tpu.trace_stop"() : () -> ()
    %cst_105 = arith.constant 0.353553385 : f32
    %266 = vector.broadcast %cst_105 : f32 to vector<2x8x8xf32>
    %267 = arith.mulf %265, %266 : vector<2x8x8xf32>
    %268 = vector.broadcast %20 : vector<2x1x8xf32> to vector<2x8x8xf32>
    %269 = arith.addf %267, %268 : vector<2x8x8xf32>
    %cst_106 = arith.constant dense<0xFF800000> : vector<2x8xf32>
    %270 = vector.multi_reduction <maximumf>, %269, %cst_106 [2] : vector<2x8x8xf32> to vector<2x8xf32>
    %271 = vector.shape_cast %270 : vector<2x8xf32> to vector<2x8x1xf32>
    %272 = vector.broadcast %271 : vector<2x8x1xf32> to vector<2x8x8xf32>
    %273 = arith.subf %269, %272 : vector<2x8x8xf32>
    %274 = math.exp %273 : vector<2x8x8xf32>
    %cst_107 = arith.constant dense<0.000000e+00> : vector<2x8xf32>
    %275 = vector.multi_reduction <add>, %274, %cst_107 [2] : vector<2x8x8xf32> to vector<2x8xf32>
    %276 = vector.shape_cast %275 : vector<2x8xf32> to vector<2x8x1xf32>
    %277 = vector.broadcast %276 : vector<2x8x1xf32> to vector<2x8x8xf32>
    %278 = arith.divf %274, %277 : vector<2x8x8xf32>
    "tpu.trace_start"() <{level = 10 : i32, message = "bqk,bkd->bqd"}> : () -> ()
    %cst_108 = arith.constant dense<0.000000e+00> : vector<2x8x8xf32>
    %279 = tpu.matmul %278, %264, %cst_108 {dimension_numbers = #tpu.dot_dimension_numbers<[2], [1], [1], [2], [0, 0, 0, 1, 1, 2], [0], [0]>} : vector<2x8x8xf32>, vector<2x8x8xf32>, vector<2x8x8xf32> -> vector<2x8x8xf32>
    "tpu.trace_stop"() : () -> ()
    %280 = vector.shape_cast %279 : vector<2x8x8xf32> to vector<16x8xf32>
    %281 = vector.extract_strided_slice %204 {offsets = [16, 0], sizes = [8, 32], strides = [1, 1]} : vector<32x32xf32> to vector<8x32xf32>
    %cst_109 = arith.constant dense<0.000000e+00> : vector<16x32xf32>
    %282 = tpu.matmul %280, %281, %cst_109 {dimension_numbers = #tpu.dot_dimension_numbers<[1], [0], [0], [1], [0, 0, 1, 1], [], []>} : vector<16x8xf32>, vector<8x32xf32>, vector<16x32xf32> -> vector<16x32xf32>
    %283 = arith.addf %257, %282 : vector<16x32xf32>
    %284 = arith.addf %258, %278 : vector<2x8x8xf32>
    %285 = vector.extract_strided_slice %193 {offsets = [0, 24], sizes = [16, 8], strides = [1, 1]} : vector<16x32xf32> to vector<16x8xf32>
    %286 = vector.shape_cast %285 : vector<16x8xf32> to vector<2x8x8xf32>
    %287 = vector.extract_strided_slice %201 {offsets = [0, 24], sizes = [16, 8], strides = [1, 1]} : vector<16x32xf32> to vector<16x8xf32>
    %288 = vector.shape_cast %287 : vector<16x8xf32> to vector<2x8x8xf32>
    %289 = vector.extract_strided_slice %202 {offsets = [0, 24], sizes = [16, 8], strides = [1, 1]} : vector<16x32xf32> to vector<16x8xf32>
    %290 = vector.shape_cast %289 : vector<16x8xf32> to vector<2x8x8xf32>
    "tpu.trace_start"() <{level = 10 : i32, message = "bqd,bkd->bqk"}> : () -> ()
    %cst_110 = arith.constant dense<0.000000e+00> : vector<2x8x8xf32>
    %291 = tpu.matmul %286, %288, %cst_110 {dimension_numbers = #tpu.dot_dimension_numbers<[2], [2], [1], [1], [0, 0, 0, 1, 1, 1], [0], [0]>} : vector<2x8x8xf32>, vector<2x8x8xf32>, vector<2x8x8xf32> -> vector<2x8x8xf32>
    "tpu.trace_stop"() : () -> ()
    %cst_111 = arith.constant 0.353553385 : f32
    %292 = vector.broadcast %cst_111 : f32 to vector<2x8x8xf32>
    %293 = arith.mulf %291, %292 : vector<2x8x8xf32>
    %294 = vector.broadcast %20 : vector<2x1x8xf32> to vector<2x8x8xf32>
    %295 = arith.addf %293, %294 : vector<2x8x8xf32>
    %cst_112 = arith.constant dense<0xFF800000> : vector<2x8xf32>
    %296 = vector.multi_reduction <maximumf>, %295, %cst_112 [2] : vector<2x8x8xf32> to vector<2x8xf32>
    %297 = vector.shape_cast %296 : vector<2x8xf32> to vector<2x8x1xf32>
    %298 = vector.broadcast %297 : vector<2x8x1xf32> to vector<2x8x8xf32>
    %299 = arith.subf %295, %298 : vector<2x8x8xf32>
    %300 = math.exp %299 : vector<2x8x8xf32>
    %cst_113 = arith.constant dense<0.000000e+00> : vector<2x8xf32>
    %301 = vector.multi_reduction <add>, %300, %cst_113 [2] : vector<2x8x8xf32> to vector<2x8xf32>
    %302 = vector.shape_cast %301 : vector<2x8xf32> to vector<2x8x1xf32>
    %303 = vector.broadcast %302 : vector<2x8x1xf32> to vector<2x8x8xf32>
    %304 = arith.divf %300, %303 : vector<2x8x8xf32>
    "tpu.trace_start"() <{level = 10 : i32, message = "bqk,bkd->bqd"}> : () -> ()
    %cst_114 = arith.constant dense<0.000000e+00> : vector<2x8x8xf32>
    %305 = tpu.matmul %304, %290, %cst_114 {dimension_numbers = #tpu.dot_dimension_numbers<[2], [1], [1], [2], [0, 0, 0, 1, 1, 2], [0], [0]>} : vector<2x8x8xf32>, vector<2x8x8xf32>, vector<2x8x8xf32> -> vector<2x8x8xf32>
    "tpu.trace_stop"() : () -> ()
    %306 = vector.shape_cast %305 : vector<2x8x8xf32> to vector<16x8xf32>
    %307 = vector.extract_strided_slice %204 {offsets = [24, 0], sizes = [8, 32], strides = [1, 1]} : vector<32x32xf32> to vector<8x32xf32>
    %cst_115 = arith.constant dense<0.000000e+00> : vector<16x32xf32>
    %308 = tpu.matmul %306, %307, %cst_115 {dimension_numbers = #tpu.dot_dimension_numbers<[1], [0], [0], [1], [0, 0, 1, 1], [], []>} : vector<16x8xf32>, vector<8x32xf32>, vector<16x32xf32> -> vector<16x32xf32>
    %309 = arith.addf %283, %308 : vector<16x32xf32>
    %310 = arith.addf %284, %304 : vector<2x8x8xf32>
    %311 = vector.broadcast %206 : vector<1x32xf32> to vector<16x32xf32>
    %312 = arith.addf %309, %311 : vector<16x32xf32>
    %313 = arith.addf %160, %312 : vector<16x32xf32>
    %c0_116 = arith.constant 0 : index
    %c0_117 = arith.constant 0 : index
    %c0_118 = arith.constant 0 : index
    %314 = vector.load %arg19[%c0_116, %c0_117, %c0_118] : memref<1x1x32xf32, #tpu.memory_space<vmem>>, vector<1x1x32xf32>
    %315 = vector.shape_cast %314 : vector<1x1x32xf32> to vector<1x32xf32>
    %c0_119 = arith.constant 0 : index
    %c0_120 = arith.constant 0 : index
    %c0_121 = arith.constant 0 : index
    %316 = vector.load %arg20[%c0_119, %c0_120, %c0_121] : memref<1x1x32xf32, #tpu.memory_space<vmem>>, vector<1x1x32xf32>
    %317 = vector.shape_cast %316 : vector<1x1x32xf32> to vector<1x32xf32>
    %cst_122 = arith.constant dense<0.000000e+00> : vector<16xf32>
    %318 = vector.multi_reduction <add>, %313, %cst_122 [1] : vector<16x32xf32> to vector<16xf32>
    %319 = vector.shape_cast %318 : vector<16xf32> to vector<16x1xf32>
    %cst_123 = arith.constant 3.200000e+01 : f32
    %320 = vector.broadcast %cst_123 : f32 to vector<16x1xf32>
    %321 = arith.divf %319, %320 : vector<16x1xf32>
    %322 = vector.broadcast %321 : vector<16x1xf32> to vector<16x32xf32>
    %323 = arith.subf %313, %322 : vector<16x32xf32>
    %324 = arith.mulf %323, %323 : vector<16x32xf32>
    %cst_124 = arith.constant dense<0.000000e+00> : vector<16xf32>
    %325 = vector.multi_reduction <add>, %324, %cst_124 [1] : vector<16x32xf32> to vector<16xf32>
    %326 = vector.shape_cast %325 : vector<16xf32> to vector<16x1xf32>
    %cst_125 = arith.constant 3.200000e+01 : f32
    %327 = vector.broadcast %cst_125 : f32 to vector<16x1xf32>
    %328 = arith.divf %326, %327 : vector<16x1xf32>
    %329 = vector.broadcast %321 : vector<16x1xf32> to vector<16x32xf32>
    %330 = arith.subf %313, %329 : vector<16x32xf32>
    %cst_126 = arith.constant 9.99999974E-6 : f32
    %331 = vector.broadcast %cst_126 : f32 to vector<16x1xf32>
    %332 = arith.addf %328, %331 : vector<16x1xf32>
    %333 = math.rsqrt %332 : vector<16x1xf32>
    %334 = vector.broadcast %333 : vector<16x1xf32> to vector<16x32xf32>
    %335 = arith.mulf %330, %334 : vector<16x32xf32>
    %336 = vector.broadcast %315 : vector<1x32xf32> to vector<16x32xf32>
    %337 = arith.mulf %335, %336 : vector<16x32xf32>
    %338 = vector.broadcast %317 : vector<1x32xf32> to vector<16x32xf32>
    %339 = arith.addf %337, %338 : vector<16x32xf32>
    %c0_127 = arith.constant 0 : index
    %c0_128 = arith.constant 0 : index
    %c0_129 = arith.constant 0 : index
    %340 = vector.load %arg21[%c0_127, %c0_128, %c0_129] : memref<1x32x64xf32, #tpu.memory_space<vmem>>, vector<1x32x64xf32>
    %341 = vector.shape_cast %340 : vector<1x32x64xf32> to vector<32x64xf32>
    %cst_130 = arith.constant dense<0.000000e+00> : vector<16x64xf32>
    %342 = tpu.matmul %339, %341, %cst_130 {dimension_numbers = #tpu.dot_dimension_numbers<[1], [0], [0], [1], [0, 0, 1, 1], [], []>} : vector<16x32xf32>, vector<32x64xf32>, vector<16x64xf32> -> vector<16x64xf32>
    %c0_131 = arith.constant 0 : index
    %c0_132 = arith.constant 0 : index
    %c0_133 = arith.constant 0 : index
    %343 = vector.load %arg22[%c0_131, %c0_132, %c0_133] : memref<1x1x64xf32, #tpu.memory_space<vmem>>, vector<1x1x64xf32>
    %344 = vector.shape_cast %343 : vector<1x1x64xf32> to vector<1x64xf32>
    %345 = vector.broadcast %344 : vector<1x64xf32> to vector<16x64xf32>
    %346 = arith.addf %342, %345 : vector<16x64xf32>
    %cst_134 = arith.constant 0.000000e+00 : f32
    %347 = vector.broadcast %cst_134 : f32 to vector<16x64xf32>
    %348 = arith.maximumf %346, %347 : vector<16x64xf32>
    %c0_135 = arith.constant 0 : index
    %c0_136 = arith.constant 0 : index
    %c0_137 = arith.constant 0 : index
    %349 = vector.load %arg23[%c0_135, %c0_136, %c0_137] : memref<1x64x32xf32, #tpu.memory_space<vmem>>, vector<1x64x32xf32>
    %350 = vector.shape_cast %349 : vector<1x64x32xf32> to vector<64x32xf32>
    %cst_138 = arith.constant dense<0.000000e+00> : vector<16x32xf32>
    %351 = tpu.matmul %348, %350, %cst_138 {dimension_numbers = #tpu.dot_dimension_numbers<[1], [0], [0], [1], [0, 0, 1, 1], [], []>} : vector<16x64xf32>, vector<64x32xf32>, vector<16x32xf32> -> vector<16x32xf32>
    %352 = arith.addf %313, %351 : vector<16x32xf32>
    %c0_139 = arith.constant 0 : index
    %c0_140 = arith.constant 0 : index
    %c0_141 = arith.constant 0 : index
    %353 = vector.load %arg24[%c0_139, %c0_140, %c0_141] : memref<1x1x32xf32, #tpu.memory_space<vmem>>, vector<1x1x32xf32>
    %354 = vector.shape_cast %353 : vector<1x1x32xf32> to vector<1x32xf32>
    %355 = vector.broadcast %354 : vector<1x32xf32> to vector<16x32xf32>
    %356 = arith.addf %352, %355 : vector<16x32xf32>
    %357 = vector.shape_cast %356 : vector<16x32xf32> to vector<2x8x32xf32>
    %c0_142 = arith.constant 0 : index
    %c0_143 = arith.constant 0 : index
    %c0_144 = arith.constant 0 : index
    %358 = vector.load %arg31[%c0_142, %c0_143, %c0_144] : memref<2x8x32xf32, #tpu.memory_space<vmem>>, vector<2x8x32xf32>
    tpu.vector_store %arg31[%c0_142, %c0_143, %c0_144], %357 {strides = array<i32>} : memref<2x8x32xf32, #tpu.memory_space<vmem>>, vector<2x8x32xf32>,
    %c1_i32 = arith.constant 1 : i32
    %359 = arith.cmpi eq, %arg0, %c1_i32 : i32
    %360 = arith.extui %359 : i1 to i32
    %c0_i32_145 = arith.constant 0 : i32
    %361 = arith.cmpi ne, %360, %c0_i32_145 : i32
    scf.if %361 {
      %c0_146 = arith.constant 0 : index
      %c0_147 = arith.constant 0 : index
      %362 = vector.load %arg25[%c0_146, %c0_147] : memref<1x32xf32, #tpu.memory_space<vmem>>, vector<1x32xf32>
      %c0_148 = arith.constant 0 : index
      %c0_149 = arith.constant 0 : index
      %363 = vector.load %arg26[%c0_148, %c0_149] : memref<1x32xf32, #tpu.memory_space<vmem>>, vector<1x32xf32>
      %cst_150 = arith.constant dense<0.000000e+00> : vector<16xf32>
      %364 = vector.multi_reduction <add>, %356, %cst_150 [1] : vector<16x32xf32> to vector<16xf32>
      %365 = vector.shape_cast %364 : vector<16xf32> to vector<16x1xf32>
      %cst_151 = arith.constant 3.200000e+01 : f32
      %366 = vector.broadcast %cst_151 : f32 to vector<16x1xf32>
      %367 = arith.divf %365, %366 : vector<16x1xf32>
      %368 = vector.broadcast %367 : vector<16x1xf32> to vector<16x32xf32>
      %369 = arith.subf %356, %368 : vector<16x32xf32>
      %370 = arith.mulf %369, %369 : vector<16x32xf32>
      %cst_152 = arith.constant dense<0.000000e+00> : vector<16xf32>
      %371 = vector.multi_reduction <add>, %370, %cst_152 [1] : vector<16x32xf32> to vector<16xf32>
      %372 = vector.shape_cast %371 : vector<16xf32> to vector<16x1xf32>
      %cst_153 = arith.constant 3.200000e+01 : f32
      %373 = vector.broadcast %cst_153 : f32 to vector<16x1xf32>
      %374 = arith.divf %372, %373 : vector<16x1xf32>
      %375 = vector.broadcast %367 : vector<16x1xf32> to vector<16x32xf32>
      %376 = arith.subf %356, %375 : vector<16x32xf32>
      %cst_154 = arith.constant 9.99999974E-6 : f32
      %377 = vector.broadcast %cst_154 : f32 to vector<16x1xf32>
      %378 = arith.addf %374, %377 : vector<16x1xf32>
      %379 = math.rsqrt %378 : vector<16x1xf32>
      %380 = vector.broadcast %379 : vector<16x1xf32> to vector<16x32xf32>
      %381 = arith.mulf %376, %380 : vector<16x32xf32>
      %382 = vector.broadcast %362 : vector<1x32xf32> to vector<16x32xf32>
      %383 = arith.mulf %381, %382 : vector<16x32xf32>
      %384 = vector.broadcast %363 : vector<1x32xf32> to vector<16x32xf32>
      %385 = arith.addf %383, %384 : vector<16x32xf32>
      %c0_155 = arith.constant 0 : index
      %c0_156 = arith.constant 0 : index
      %386 = vector.load %arg27[%c0_155, %c0_156] : memref<32x128xf32, #tpu.memory_space<vmem>>, vector<32x128xf32>
      %cst_157 = arith.constant dense<0.000000e+00> : vector<16x128xf32>
      %387 = tpu.matmul %385, %386, %cst_157 {dimension_numbers = #tpu.dot_dimension_numbers<[1], [0], [0], [1], [0, 0, 1, 1], [], []>} : vector<16x32xf32>, vector<32x128xf32>, vector<16x128xf32> -> vector<16x128xf32>
      %c0_158 = arith.constant 0 : index
      %c0_159 = arith.constant 0 : index
      %388 = vector.load %arg28[%c0_158, %c0_159] : memref<1x128xf32, #tpu.memory_space<vmem>>, vector<1x128xf32>
      %389 = vector.broadcast %388 : vector<1x128xf32> to vector<16x128xf32>
      %390 = arith.addf %387, %389 : vector<16x128xf32>
      %cst_160 = arith.constant dense<0xFF800000> : vector<16xf32>
      %391 = vector.multi_reduction <maximumf>, %390, %cst_160 [1] : vector<16x128xf32> to vector<16xf32>
      %392 = vector.shape_cast %391 : vector<16xf32> to vector<16x1xf32>
      %393 = vector.broadcast %392 : vector<16x1xf32> to vector<16x128xf32>
      %394 = arith.subf %390, %393 : vector<16x128xf32>
      %395 = math.exp %394 : vector<16x128xf32>
      %cst_161 = arith.constant dense<0.000000e+00> : vector<16xf32>
      %396 = vector.multi_reduction <add>, %395, %cst_161 [1] : vector<16x128xf32> to vector<16xf32>
      %397 = vector.shape_cast %396 : vector<16xf32> to vector<16x1xf32>
      %398 = math.log %397 : vector<16x1xf32>
      %399 = arith.addf %398, %392 : vector<16x1xf32>
      %400 = vector.broadcast %399 : vector<16x1xf32> to vector<16x128xf32>
      %401 = arith.subf %390, %400 : vector<16x128xf32>
      %402 = vector.shape_cast %401 : vector<16x128xf32> to vector<2x8x128xf32>
      %c0_162 = arith.constant 0 : index
      %c0_163 = arith.constant 0 : index
      %c0_164 = arith.constant 0 : index
      %403 = vector.load %arg29[%c0_162, %c0_163, %c0_164] : memref<2x8x128xf32, #tpu.memory_space<vmem>>, vector<2x8x128xf32>
      tpu.vector_store %arg29[%c0_162, %c0_163, %c0_164], %402 {strides = array<i32>} : memref<2x8x128xf32, #tpu.memory_space<vmem>>, vector<2x8x128xf32>,
      %cst_165 = arith.constant 2.500000e-01 : f32
      %404 = vector.broadcast %cst_165 : f32 to vector<2x8x8xf32>
      %405 = arith.mulf %310, %404 : vector<2x8x8xf32>
      %c0_166 = arith.constant 0 : index
      %c0_167 = arith.constant 0 : index
      %c0_168 = arith.constant 0 : index
      %406 = vector.load %arg30[%c0_166, %c0_167, %c0_168] : memref<2x8x8xf32, #tpu.memory_space<vmem>>, vector<2x8x8xf32>
      tpu.vector_store %arg30[%c0_166, %c0_167, %c0_168], %405 {strides = array<i32>} : memref<2x8x8xf32, #tpu.memory_space<vmem>>, vector<2x8x8xf32>,
    } else {
    }
    return
  }
  func.func @transform_0(%arg0: i32) -> (i32, i32, i32) {
    %c0_i32 = arith.constant 0 : i32
    %c0_i32_0 = arith.constant 0 : i32
    %c0_i32_1 = arith.constant 0 : i32
    %c0_i32_2 = arith.constant 0 : i32
    return %c0_i32, %c0_i32_0, %c0_i32_1 : i32, i32, i32
  }
  func.func @transform_1(%arg0: i32) -> (i32, i32, i32) {
    %c0_i32 = arith.constant 0 : i32
    %c0_i32_0 = arith.constant 0 : i32
    %c0_i32_1 = arith.constant 0 : i32
    %c0_i32_2 = arith.constant 0 : i32
    return %c0_i32, %c0_i32_0, %c0_i32_1 : i32, i32, i32
  }
  func.func @transform_2(%arg0: i32) -> (i32, i32) {
    %c0_i32 = arith.constant 0 : i32
    %c0_i32_0 = arith.constant 0 : i32
    %c0_i32_1 = arith.constant 0 : i32
    return %c0_i32, %c0_i32_0 : i32, i32
  }
  func.func @transform_3(%arg0: i32) -> (i32, i32) {
    %c0_i32 = arith.constant 0 : i32
    %c0_i32_0 = arith.constant 0 : i32
    %c0_i32_1 = arith.constant 0 : i32
    return %c0_i32, %c0_i32_0 : i32, i32
  }
  func.func @transform_4(%arg0: i32) -> (i32, i32, i32) {
    %c0_i32 = arith.constant 0 : i32
    %c0_i32_0 = arith.constant 0 : i32
    %c0_i32_1 = arith.constant 0 : i32
    return %arg0, %c0_i32, %c0_i32_0 : i32, i32, i32
  }
  func.func @transform_5(%arg0: i32) -> (i32, i32, i32) {
    %c0_i32 = arith.constant 0 : i32
    %c0_i32_0 = arith.constant 0 : i32
    %c0_i32_1 = arith.constant 0 : i32
    return %arg0, %c0_i32, %c0_i32_0 : i32, i32, i32
  }
  func.func @transform_6(%arg0: i32) -> (i32, i32, i32) {
    %c0_i32 = arith.constant 0 : i32
    %c0_i32_0 = arith.constant 0 : i32
    %c0_i32_1 = arith.constant 0 : i32
    return %arg0, %c0_i32, %c0_i32_0 : i32, i32, i32
  }
  func.func @transform_7(%arg0: i32) -> (i32, i32, i32) {
    %c0_i32 = arith.constant 0 : i32
    %c0_i32_0 = arith.constant 0 : i32
    %c0_i32_1 = arith.constant 0 : i32
    return %arg0, %c0_i32, %c0_i32_0 : i32, i32, i32
  }
  func.func @transform_8(%arg0: i32) -> (i32, i32, i32) {
    %c0_i32 = arith.constant 0 : i32
    %c0_i32_0 = arith.constant 0 : i32
    %c0_i32_1 = arith.constant 0 : i32
    return %arg0, %c0_i32, %c0_i32_0 : i32, i32, i32
  }
  func.func @transform_9(%arg0: i32) -> (i32, i32, i32) {
    %c0_i32 = arith.constant 0 : i32
    %c0_i32_0 = arith.constant 0 : i32
    %c0_i32_1 = arith.constant 0 : i32
    return %arg0, %c0_i32, %c0_i32_0 : i32, i32, i32
  }
  func.func @transform_10(%arg0: i32) -> (i32, i32, i32) {
    %c0_i32 = arith.constant 0 : i32
    %c0_i32_0 = arith.constant 0 : i32
    %c0_i32_1 = arith.constant 0 : i32
    return %arg0, %c0_i32, %c0_i32_0 : i32, i32, i32
  }
  func.func @transform_11(%arg0: i32) -> (i32, i32, i32) {
    %c0_i32 = arith.constant 0 : i32
    %c0_i32_0 = arith.constant 0 : i32
    %c0_i32_1 = arith.constant 0 : i32
    return %arg0, %c0_i32, %c0_i32_0 : i32, i32, i32
  }
  func.func @transform_12(%arg0: i32) -> (i32, i32, i32) {
    %c0_i32 = arith.constant 0 : i32
    %c0_i32_0 = arith.constant 0 : i32
    %c0_i32_1 = arith.constant 0 : i32
    return %arg0, %c0_i32, %c0_i32_0 : i32, i32, i32
  }
  func.func @transform_13(%arg0: i32) -> (i32, i32, i32) {
    %c0_i32 = arith.constant 0 : i32
    %c0_i32_0 = arith.constant 0 : i32
    %c0_i32_1 = arith.constant 0 : i32
    return %arg0, %c0_i32, %c0_i32_0 : i32, i32, i32
  }
  func.func @transform_14(%arg0: i32) -> (i32, i32, i32) {
    %c0_i32 = arith.constant 0 : i32
    %c0_i32_0 = arith.constant 0 : i32
    %c0_i32_1 = arith.constant 0 : i32
    return %arg0, %c0_i32, %c0_i32_0 : i32, i32, i32
  }
  func.func @transform_15(%arg0: i32) -> (i32, i32, i32) {
    %c0_i32 = arith.constant 0 : i32
    %c0_i32_0 = arith.constant 0 : i32
    %c0_i32_1 = arith.constant 0 : i32
    return %arg0, %c0_i32, %c0_i32_0 : i32, i32, i32
  }
  func.func @transform_16(%arg0: i32) -> (i32, i32, i32) {
    %c0_i32 = arith.constant 0 : i32
    %c0_i32_0 = arith.constant 0 : i32
    %c0_i32_1 = arith.constant 0 : i32
    return %arg0, %c0_i32, %c0_i32_0 : i32, i32, i32
  }
  func.func @transform_17(%arg0: i32) -> (i32, i32, i32) {
    %c0_i32 = arith.constant 0 : i32
    %c0_i32_0 = arith.constant 0 : i32
    %c0_i32_1 = arith.constant 0 : i32
    return %arg0, %c0_i32, %c0_i32_0 : i32, i32, i32
  }
  func.func @transform_18(%arg0: i32) -> (i32, i32, i32) {
    %c0_i32 = arith.constant 0 : i32
    %c0_i32_0 = arith.constant 0 : i32
    %c0_i32_1 = arith.constant 0 : i32
    return %arg0, %c0_i32, %c0_i32_0 : i32, i32, i32
  }
  func.func @transform_19(%arg0: i32) -> (i32, i32, i32) {
    %c0_i32 = arith.constant 0 : i32
    %c0_i32_0 = arith.constant 0 : i32
    %c0_i32_1 = arith.constant 0 : i32
    return %arg0, %c0_i32, %c0_i32_0 : i32, i32, i32
  }
  func.func @transform_20(%arg0: i32) -> (i32, i32, i32) {
    %c0_i32 = arith.constant 0 : i32
    %c0_i32_0 = arith.constant 0 : i32
    %c0_i32_1 = arith.constant 0 : i32
    return %arg0, %c0_i32, %c0_i32_0 : i32, i32, i32
  }
  func.func @transform_21(%arg0: i32) -> (i32, i32, i32) {
    %c0_i32 = arith.constant 0 : i32
    %c0_i32_0 = arith.constant 0 : i32
    %c0_i32_1 = arith.constant 0 : i32
    return %arg0, %c0_i32, %c0_i32_0 : i32, i32, i32
  }
  func.func @transform_22(%arg0: i32) -> (i32, i32, i32) {
    %c0_i32 = arith.constant 0 : i32
    %c0_i32_0 = arith.constant 0 : i32
    %c0_i32_1 = arith.constant 0 : i32
    return %arg0, %c0_i32, %c0_i32_0 : i32, i32, i32
  }
  func.func @transform_23(%arg0: i32) -> (i32, i32, i32) {
    %c0_i32 = arith.constant 0 : i32
    %c0_i32_0 = arith.constant 0 : i32
    %c0_i32_1 = arith.constant 0 : i32
    return %arg0, %c0_i32, %c0_i32_0 : i32, i32, i32
  }
  func.func @transform_24(%arg0: i32) -> (i32, i32) {
    %c0_i32 = arith.constant 0 : i32
    %c0_i32_0 = arith.constant 0 : i32
    %c0_i32_1 = arith.constant 0 : i32
    return %c0_i32, %c0_i32_0 : i32, i32
  }
  func.func @transform_25(%arg0: i32) -> (i32, i32) {
    %c0_i32 = arith.constant 0 : i32
    %c0_i32_0 = arith.constant 0 : i32
    %c0_i32_1 = arith.constant 0 : i32
    return %c0_i32, %c0_i32_0 : i32, i32
  }
  func.func @transform_26(%arg0: i32) -> (i32, i32) {
    %c0_i32 = arith.constant 0 : i32
    %c0_i32_0 = arith.constant 0 : i32
    %c0_i32_1 = arith.constant 0 : i32
    return %c0_i32, %c0_i32_0 : i32, i32
  }
  func.func @transform_27(%arg0: i32) -> (i32, i32) {
    %c0_i32 = arith.constant 0 : i32
    %c0_i32_0 = arith.constant 0 : i32
    %c0_i32_1 = arith.constant 0 : i32
    return %c0_i32, %c0_i32_0 : i32, i32
  }
  func.func @transform_28(%arg0: i32) -> (i32, i32, i32) {
    %c0_i32 = arith.constant 0 : i32
    %c0_i32_0 = arith.constant 0 : i32
    %c0_i32_1 = arith.constant 0 : i32
    %c0_i32_2 = arith.constant 0 : i32
    return %c0_i32, %c0_i32_0, %c0_i32_1 : i32, i32, i32
  }
  func.func @transform_29(%arg0: i32) -> (i32, i32, i32) {
    %c0_i32 = arith.constant 0 : i32
    %c0_i32_0 = arith.constant 0 : i32
    %c0_i32_1 = arith.constant 0 : i32
    %c0_i32_2 = arith.constant 0 : i32
    return %c0_i32, %c0_i32_0, %c0_i32_1 : i32, i32, i32
  }
}

</mosaic_0001>

<bundles_post_ra>
// kernel: retro_forward.3
= control target key start
LH: loop header
LB: loop body
LE: loop exit
PB: predicated region body
PF: predicated region fallthrough
CT: control target
= control target key end

     0   :  { %s3711_s6 = smov 1   ;;  %s3712_s10 = smov 2   ;;  %s4251_s0 = inlined_call_operand.smem [shape: u32[36], index: -1, kind: input, shape index: {}] }
   0x1   :  { %s3773_s5 = sld [smem:[%s4251_s0]]   ;;  %s3713_s14 = smov 3  }
   0x2   :  { %s3778_s9 = sld [smem:[%s4251_s0 + %s3711_s6]]   ;;  %s3714_s18 = smov 4  }
   0x3   :  { %s3783_s13 = sld [smem:[%s4251_s0 + %s3712_s10]]   ;;  %s3715_s22 = smov 5  }
   0x4   :  { %s3788_s17 = sld [smem:[%s4251_s0 + %s3713_s14]]   ;;  %s3716_s26 = smov 6  }
   0x5   :  { %s3793_s21 = sld [smem:[%s4251_s0 + %s3714_s18]]   ;;  %s3717_s30 = smov 7  }
   0x6   :  { %s3798_s25 = sld [smem:[%s4251_s0 + %s3715_s22]]   ;;  %s3718_s4 = smov 8  }
   0x7   :  { %s3803_s29 = sld [smem:[%s4251_s0 + %s3716_s26]]   ;;  %s3719_s10 = smov 9  }
   0x8   :  { %4259 = sst [smem:[#allocation16_spill]] %s3778_s9  ;;  %s3720_s15 = smov 10  }
   0x9   :  { %s3808_s3 = sld [smem:[%s4251_s0 + %s3717_s30]]   ;;  %s3721_s20 = smov 11  }
   0xa   :  { %s3813_s8 = sld [smem:[%s4251_s0 + %s3718_s4]]   ;;  %s3722_s26 = smov 12  }
   0xb   :  { %4260 = sst [smem:[#allocation17_spill]] %s3793_s21  ;;  %s3723_s1 = smov 13  }
   0xc   :  { %s3818_s14 = sld [smem:[%s4251_s0 + %s3719_s10]]   ;;  %s3724_s7 = smov 14  }
   0xd   :  { %s3823_s19 = sld [smem:[%s4251_s0 + %s3720_s15]]   ;;  %s3725_s15 = smov 15  }
   0xe   :  { %s3828_s24 = sld [smem:[%s4251_s0 + %s3721_s20]]   ;;  %s3726_s22 = smov 16  }
   0xf   :  { %s3833_s30 = sld [smem:[%s4251_s0 + %s3722_s26]]   ;;  %s3727_s28 = smov 18  }
  0x10   :  { %s3101_s6 = sld [smem:[%s4251_s0 + %s3723_s1]]   ;;  %s3732_s10 = smov 23  }
  0x11   :  { %s3841_s12 = sld [smem:[%s4251_s0 + %s3724_s7]]   ;;  %s3728_s7 = smov 19  }
  0x12   :  { %4261 = sst [smem:[#allocation18_spill]] %s3818_s14 }
  0x13   :  { %4262 = sst [smem:[#allocation19_spill]] %s3823_s19  ;;  %s3736_s19 = smov 27  }
  0x14   :  { %4263 = sst [smem:[#allocation20_spill]] %s3828_s24  ;;  %s3735_s24 = smov 26  }
  0x15   :  { %4264 = sst [smem:[#allocation21_spill]] %s3833_s30 }
  0x16   :  { %s3846_s20 = sld [smem:[%s4251_s0 + %s3725_s15]]   ;;  %s3729_s15 = smov 20   ;;  %v77_v0 = vstv %s3101_s6 }
  0x17   :  { %s3851_s27 = sld [smem:[%s4251_s0 + %s3726_s22]]   ;;  %s3730_s22 = smov 21   ;;  %78 = vst [vmem:[#allocation3] sm:$0x1] %v77_v0 }
  0x18   :  { %s3856_s4 = sld [smem:[%s4251_s0 + %s3727_s28]]   ;;  %s3731_s28 = smov 22  }
  0x19   :  { %s3861_s9 = sld [smem:[%s4251_s0 + %s3728_s7]]   ;;  %s3733_s6 = smov 24  }
  0x1a   :  { %s3871_s1 = sld [smem:[%s4251_s0 + %s3730_s22]]   ;;  %s3734_s22 = smov 25  }
  0x1b   :  { %s3876_s7 = sld [smem:[%s4251_s0 + %s3731_s28]]  }
  0x1c   :  { %4265 = sst [smem:[#allocation22_spill]] %s3846_s20 }
  0x1d   :  { %4266 = sst [smem:[#allocation23_spill]] %s3851_s27 }
  0x1e   :  { %4267 = sst [smem:[#allocation24_spill]] %s3856_s4 }
  0x1f   :  { %4268 = sst [smem:[#allocation25_spill]] %s3861_s9 }
  0x20   :  { %s3866_s20 = sld [smem:[%s4251_s0 + %s3729_s15]]  }
  0x21   :  { %4270 = sst [smem:[#allocation27_spill]] %s3871_s1  ;;  %s3738_s1 = smov 29  }
  0x22   :  { %s3881_s15 = sld [smem:[%s4251_s0 + %s3732_s10]]  }
  0x23   :  { %s3886_s23 = sld [smem:[%s4251_s0 + %s3733_s6]]   ;;  %s3737_s6 = smov 28  }
  0x24   :  { %s3896_s27 = sld [smem:[%s4251_s0 + %s3735_s24]]   ;;  %s3739_s24 = smov 30  }
  0x25   :  { %s3901_s30 = sld [smem:[%s4251_s0 + %s3736_s19]]   ;;  %s3740_s19 = smov 31  }
  0x26   :  { %4269 = sst [smem:[#allocation26_spill]] %s3866_s20 }
  0x27   :  { %s3891_s20 = sld [smem:[%s4251_s0 + %s3734_s22]]  }
  0x28   :  { %4271 = sst [smem:[#allocation28_spill]] %s3881_s15 }
  0x29   :  { %4272 = sst [smem:[#allocation29_spill]] %s3886_s23 }
  0x2a   :  { %4273 = sst [smem:[#allocation30_spill]] %s3896_s27 }
  0x2b   :  { %s3906_s23 = sld [smem:[%s4251_s0 + %s3737_s6]]   ;;  %s3741_s6 = smov 32  }
  0x2c   :  { %s3911_s9 = sld [smem:[%s4251_s0 + %s3738_s1]]   ;;  %s3742_s1 = smov 33  }
  0x2d   :  { %s3916_s27 = sld [smem:[%s4251_s0 + %s3739_s24]]   ;;  %s3743_s24 = smov 34  }
  0x2e   :  { %s3921_s21 = sld [smem:[%s4251_s0 + %s3740_s19]]   ;;  %s3744_s19 = smov 35  }
  0x2f   :  { %s3931_s14 = sld [smem:[%s4251_s0 + %s3742_s1]]  }
  0x30   :  { %s3936_s4 = sld [smem:[%s4251_s0 + %s3743_s24]]  }
  0x31   :  { %4274 = sst [smem:[#allocation31_spill]] %s3906_s23 }
  0x32   :  { %s3926_s23 = sld [smem:[%s4251_s0 + %s3741_s6]]   ;;  %s3745_s6 = smov 17  }
  0x33   :  { %s3941_s15 = sld [smem:[%s4251_s0 + %s3744_s19]]  }
  0x38   :  { %4275 = sst [smem:[#allocation32_spill]] %s3926_s23 }
  0x39   :  { %s3105_s23 = sld [smem:[%s4251_s0 + %s3745_s6]]  }
  0x3f   :  { %v79_v1 = vstv %s3105_s23 }
  0x40   :  { %80 = vst [vmem:[#allocation4] sm:$0x1] %v79_v1 }
  0x41   :  { %81 = vsyncpa [#allocation6], 0 }
  0x42   :  { %82 = vsyncpa [#allocation8], 0 }
  0x43   :  { %83 = vsyncpa [#allocation11], 0  ;;  %s3746_s1 = smov [#allocation7]   ;;  %s3747_s26 = smov [#allocation10]  }
  0x44   :  { %s152_s22 = sshll.u32 %s3746_s1, 4  ;;  %s174_s24 = sshll.u32 %s3747_s26, 4  ;;  %s153_s22 = int_to_ptr.vmem [resolvable:$true] %s152_s22  ;;  %s175_s24 = int_to_ptr.vmem [resolvable:$true] %s174_s24 }
  0x45   :  { %s3613_s28 = scalar_lea.vmem %s153_s22, 16  ;;  %s3617_s2 = scalar_lea.vmem %s153_s22, 32 }
  0x46   :  { %p3614_p0 = scmp.ne.s32.totalorder %s153_s22, %s3613_s28  ;;  %p3618_p1 = scmp.lt.s32.totalorder %s153_s22, %s153_s22 }
  0x47   :  { %p3619_p2 = scmp.lt.s32.totalorder %s3617_s2, %s3613_s28 }
  0x49   :  { %p3620_p3 = por %p3619_p2, %p3618_p1 }
  0x4b   :  { %p3621_p4 = pnand %p3620_p3, %p3614_p0 }
  0x4d   :  { %3624 = shalt.err (!%p3621_p4)
}
  0x4e   :  { %155 = dma.hbm_to_vmem [thread:$0]  %s3901_s30, 16, %s153_s22, [#allocation8]  }
  0x4f   :  { %s3633_s0 = scalar_lea.vmem %s175_s24, 16  ;;  %s3637_s23 = scalar_lea.vmem %s175_s24, 32 }
  0x50   :  { %p3634_p5 = scmp.ne.s32.totalorder %s175_s24, %s3633_s0  ;;  %p3638_p6 = scmp.lt.s32.totalorder %s175_s24, %s175_s24 }
  0x51   :  { %p3639_p7 = scmp.lt.s32.totalorder %s3637_s23, %s3633_s0 }
  0x53   :  { %p3640_p8 = por %p3639_p7, %p3638_p6 }
  0x55   :  { %p3641_p9 = pnand %p3640_p8, %p3634_p5 }
  0x57   :  { %3644 = shalt.err (!%p3641_p9)
}
  0x58   :  { %177 = dma.hbm_to_vmem [thread:$0]  %s3916_s27, 16, %s175_s24, [#allocation11]  }
  0x59   :  { %s3748_s19 = smov [#allocation5]   ;;  %s3749_s11 = smov [#allocation9]  }
  0x5a   :  { %s140_s10 = sshll.u32 %s3748_s19, 4  ;;  %s164_s6 = sshll.u32 %s3749_s11, 4  ;;  %s141_s10 = int_to_ptr.vmem [resolvable:$true] %s140_s10  ;;  %s165_s6 = int_to_ptr.vmem [resolvable:$true] %s164_s6 }
  0x5b   :  { %s3653_s16 = scalar_lea.vmem %s141_s10, 16  ;;  %s3657_s18 = scalar_lea.vmem %s141_s10, 32 }
  0x5c   :  { %p3654_p10 = scmp.ne.s32.totalorder %s141_s10, %s3653_s16  ;;  %p3658_p11 = scmp.lt.s32.totalorder %s141_s10, %s141_s10 }
  0x5d   :  { %p3659_p12 = scmp.lt.s32.totalorder %s3657_s18, %s3653_s16 }
  0x5f   :  { %p3660_p13 = por %p3659_p12, %p3658_p11 }
  0x61   :  { %p3661_p0 = pnand %p3660_p13, %p3654_p10 }
  0x63   :  { %3664 = shalt.err (!%p3661_p0)
}
  0x64   :  { %143 = dma.hbm_to_vmem [thread:$0]  %s3891_s20, 16, %s141_s10, [#allocation6]  }
  0x65   :  { %s3673_s30 = scalar_lea.vmem %s165_s6, 16  ;;  %s3677_s1 = scalar_lea.vmem %s165_s6, 32 }
  0x66   :  { %p3674_p1 = scmp.ne.s32.totalorder %s165_s6, %s3673_s30  ;;  %p3678_p2 = scmp.lt.s32.totalorder %s165_s6, %s165_s6 }
  0x67   :  { %p3679_p3 = scmp.lt.s32.totalorder %s3677_s1, %s3673_s30 }
  0x69   :  { %p3680_p4 = por %p3679_p3, %p3678_p2 }
  0x6b   :  { %p3681_p5 = pnand %p3680_p4, %p3674_p1 }
  0x6d   :  { %3684 = shalt.err (!%p3681_p5)
}
  0x6e   :  { %167 = dma.hbm_to_vmem [thread:$0]  %s3911_s9, 16, %s165_s6, [#allocation8]  }
  0x6f   :  { %s3750_s27 = smov [#allocation12]  }
  0x70   :  { %s184_s22 = sshll.u32 %s3750_s27, 4  ;;  %s185_s22 = int_to_ptr.vmem [resolvable:$true] %s184_s22 }
  0x71   :  { %s3693_s26 = scalar_lea.vmem %s185_s22, 16  ;;  %s3697_s24 = scalar_lea.vmem %s185_s22, 32 }
  0x72   :  { %p3694_p6 = scmp.ne.s32.totalorder %s185_s22, %s3693_s26  ;;  %p3698_p7 = scmp.lt.s32.totalorder %s185_s22, %s185_s22 }
  0x73   :  { %p3699_p8 = scmp.lt.s32.totalorder %s3697_s24, %s3693_s26 }
  0x75   :  { %p3700_p9 = por %p3699_p8, %p3698_p7 }
  0x77   :  { %p3701_p10 = pnand %p3700_p9, %p3694_p6 }
  0x79   :  { %3704 = shalt.err (!%p3701_p10)
}
  0x7a   :  { %187 = dma.hbm_to_vmem [thread:$0]  %s3921_s21, 16, %s185_s22, [#allocation11]  }
  0x7b   :  { %3705 = dma.done.wait [#allocation6], 16  }
  0x7c   :  { %3706 = vsyncadd [#allocation6], 4294967280 }
  0x7d   :  { %3707 = dma.done.wait [#allocation8], 32  }
  0x7e   :  { %3708 = vsyncadd [#allocation8], 4294967264 }
  0x7f   :  { %3709 = dma.done.wait [#allocation11], 32  }
  0x80   :  { %3710 = vsyncadd [#allocation11], 4294967264  ;;  %vm230_vm0 = vcmask 1040384   ;;  %vm223_vm1 = vcmask 72704   ;;  %vm209_vm2 = vcmask 261120   ;;  %v214_v3 = vld [vmem:[%s3803_s29] sm:$0xff] }
  0x81   :  { %v215_v2 = vld [vmem:[%s3803_s29 + $0x8] sm:$0x1]  ;;  %v212_v4 = vld [vmem:[%s3783_s13] sm:$0xff]  ;;  %v3751_v12 = vmov 0.0   ;;  %vm3752_vm3 = vmmov 0   ;;  %v461_v13 = vld [vmem:[%s3813_s8 + $0x18] sm:$0xff] }
  0x82   :  { %3289 = vmatprep.subr.msk.mxu1 %vm230_vm0, %v215_v2  ;;  %3293 = vmatprep.mubr.msk.f32.mxu1 %vm223_vm1, %v212_v4  ;;  %v207_v5 = vld [vmem:[%s3773_s5] sm:$0xff]  ;;  %v208_v6 = vld [vmem:[%s3773_s5 + $0x8] sm:$0xff]  ;;  %v460_v14 = vld [vmem:[%s3813_s8 + $0x10] sm:$0xff]  ;;  %vm311_vm4 = vcmask 64512   ;;  %vm742_vm5 = vcmask 1046528   ;;  %s4276_s5 = sld [smem:[#allocation28_spill]] }
  0x83   :  { %3290 = vmatpush3.msk.msra.mxu1 %vm230_vm0, %v215_v2  ;;  %v213_v7 = vld [vmem:[%s3783_s13 + $0x8] sm:$0xff]  ;;  %210 = vst.msk [vmem:[#allocation2] sm:$0xff] %vm209_vm2, %v207_v5  ;;  %211 = vst.msk [vmem:[#allocation2 + $0x8] sm:$0xff] %vm209_vm2, %v208_v6  ;;  %3306 = vmatprep.subr.mxu0 %v461_v13  ;;  %v3124_v26 = vld [vmem:[%s3808_s3] ss:$0 sm:$0xff]  ;;  %s4277_s9 = sld [smem:[#allocation24_spill]] }
  0x84   :  { %3291 = vmatprep.subr.mxu1 %v214_v3  ;;  %3307 = vmatpush3.msra.mxu0 %v461_v13  ;;  %v309_v29 = vld [vmem:[%s3788_s17] sm:$0xff]  ;;  %v310_v31 = vld [vmem:[%s3788_s17 + $0x8] sm:$0xff]  ;;  %vm735_vm6 = vcmask 56320   ;;  %s4278_s13 = sld [smem:[#allocation18_spill]]  ;;  %s3753_s29 = smov 96   ;;  %vm722_vm7 = vcmask 7168  }
  0x85   :  { %3292 = vmatpush3.msra.mxu1 %v214_v3  ;;  %3308 = vmatprep.subr.mxu0 %v460_v14  ;;  %v459_v32 = vld [vmem:[%s3813_s8 + $0x8] sm:$0xff]  ;;  %v458_v33 = vld [vmem:[%s3813_s8] sm:$0xff]  ;;  %s4279_s17 = sld [smem:[#allocation17_spill]]  ;;  %s3756_s28 = smov 88   ;;  %vm926_vm8 = vcmask 3072   ;;  %vm2927_vm9 = vcmask 523264  }
  0x86   :  { %3294 = vmatmul.mubr.msk.f32.vlgmr.msra.gmra.mxu1 %vm223_vm1, %v213_v7  ;;  %3296 = vmatprep.subr.mxu1 %v3751_v12  ;;  %v727_v34 = vld [vmem:[%s3841_s12] sm:$0x7f]  ;;  %v726_v54 = vld [vmem:[%s3798_s25 + $0x8] sm:$0xf]  ;;  %s4280_s21 = sld [smem:[#allocation25_spill]]  ;;  %s3757_s2 = smov 120  }
  0x87   :  { %3298 = vmatprep.mubr.msk.f32.mxu1 %vm3752_vm3, %v3751_v12  ;;  %3309 = vmatpush3.msra.mxu0 %v460_v14  ;;  %v3146_v43 = vld [vmem:[%s3876_s7] ss:$0 sm:$0xff]  ;;  %s4282_s3 = sld [smem:[#allocation23_spill]]  ;;  %s3760_s0 = smov 112  }
  0x88   :  { %3310 = vmatprep.subr.mxu0 %v459_v32  ;;  %v725_v48 = vld [vmem:[%s3798_s25] sm:$0xff]  ;;  %s4281_s25 = sld [smem:[#allocation21_spill]]  ;;  %s3761_s19 = smov 48  }
  0x89   :  { %3311 = vmatpush3.msra.mxu0 %v459_v32  ;;  %v3147_v49 = vld [vmem:[%s4276_s5] ss:$0 sm:$0xff]  ;;  %v957_v51 = vld [vmem:[%s4277_s9 + $0x18] sm:$0xff]  ;;  %v956_v56 = vld [vmem:[%s4277_s9 + $0x10] sm:$0xff]  ;;  %s4283_s8 = sld [smem:[#allocation19_spill]]  ;;  %s3762_s10 = smov 72  }
  0x8a   :  { %v928_v8 = vld [vmem:[#allocation2] sm:$0xff]  ;;  %v929_v9 = vld [vmem:[#allocation2 + $0x8] sm:$0xff]  ;;  %3312 = vmatprep.subr.mxu0 %v458_v33  ;;  %s4284_s12 = sld [smem:[#allocation20_spill]]  ;;  %s3763_s11 = smov 104  }
  0x8b   :  { %v983_v10 = vsel %vm209_vm2, %v928_v8, 0.0  ;;  %v986_v11 = vsel %vm209_vm2, %v929_v9, 0.0  ;;  %3313 = vmatpush3.msra.mxu0 %v458_v33  ;;  %v955_v58 = vld [vmem:[%s4277_s9 + $0x8] sm:$0xff]  ;;  %v954_v59 = vld [vmem:[%s4277_s9] sm:$0xff]  ;;  %s4285_s20 = sld [smem:[#allocation22_spill]]  ;;  %s3764_s6 = smov 40  }
  0x8c   :  { %984 = vadd.xlane.f32.xlu0 %v983_v10  ;;  %3328 = vmatprep.subr.msk.mxu0 %vm742_vm5, %v727_v34  ;;  %v3130_v61 = vld [vmem:[%s4278_s13] ss:$0 sm:$0xff]  ;;  %s4286_s7 = sld [smem:[#allocation16_spill]] }
  0x8d   :  { %s4287_s23 = sld [smem:[#allocation26_spill]] }
  0x8e   :  { %v621_v33 = vld [vmem:[%s4281_s25 + $0x18] sm:$0xff]  ;;  %s4288_s16 = sld [smem:[#allocation27_spill]] }
  0x8f   :  { %s4289_s18 = sld [smem:[#allocation30_spill]] }
  0x90   :  { %987 = vadd.xlane.f32.xlu0 %v986_v11  ;;  %s4290_s30 = sld [smem:[#allocation31_spill]] }
  0x91   :  { %s4291_s1 = sld [smem:[#allocation29_spill]] }
  0x92   :  { %s4292_s27 = sld [smem:[#allocation32_spill]] }
 0x115   :  { %v985_v15 = vpop.xlane.xlu0 %984 }
 0x116   :  { %v990_v16 = vmul.f32 0.03125, %v985_v15 }
 0x118   :  { %v992_v17 = vsub.f32 %v928_v8, %v990_v16 }
 0x119   :  { %v988_v18 = vpop.xlane.xlu0 %987 }
 0x11a   :  { %v991_v19 = vmul.f32 0.03125, %v988_v18  ;;  %v994_v20 = vmul.f32 %v992_v17, %v992_v17 }
 0x11c   :  { %v993_v21 = vsub.f32 %v929_v9, %v991_v19  ;;  %v996_v22 = vsel %vm209_vm2, %v994_v20, 0.0  ;;  %v600_v19 = vlaneseq }
 0x11d   :  { %997 = vadd.xlane.f32.xlu1 %v996_v22 }
 0x11e   :  { %v995_v23 = vmul.f32 %v993_v21, %v993_v21 }
 0x120   :  { %v999_v24 = vsel %vm209_vm2, %v995_v23, 0.0 }
 0x121   :  { %1000 = vadd.xlane.f32.xlu1 %v999_v24  ;;  %v599_v24 = vld [vmem:[%s4279_s17] sm:$0x3] }
 0x146   :  { %v3295_v25 = vpop.f32.mrf.mxu1 }
 0x147   :  { %v3972_v30 = vadd.f32 %v3295_v25, %v3124_v26 }
 0x148   :  { %v300_v27 = vpop.f32.mrf.mxu1 }
 0x149   :  { %v3969_v28 = vadd.f32 %v3124_v26, %v300_v27  ;;  %v3148_v27 = vld [vmem:[%s4280_s21] ss:$0 sm:$0xff] }
 0x14b   :  { %3297 = vmatpush3.msra.mxu1 %v3969_v28 }
 0x14c   :  { %3299 = vmatmul.mubr.msk.f32.vlgmr.msra.gmra.mxu1 %vm311_vm4, %v309_v29  ;;  %3301 = vmatprep.subr.mxu1 %v3751_v12 }
 0x14d   :  { %3302 = vmatpush3.msra.mxu1 %v3972_v30  ;;  %3303 = vmatprep.mubr.msk.f32.mxu1 %vm3752_vm3, %v3751_v12 }
 0x14e   :  { %3317 = vmatprep.subr.mxu1 %v621_v33 }
 0x150   :  { %3304 = vmatmul.mubr.msk.f32.vlgmr.msra.gmra.mxu1 %vm311_vm4, %v310_v31 }
 0x151   :  { %3318 = vmatpush3.msra.mxu1 %v621_v33 }
 0x1a6   :  { %v998_v35 = vpop.xlane.xlu1 %997 }
 0x1a7   :  { %v1002_v36 = vmul.f32 0.03125, %v998_v35  ;;  %v619_v35 = vld [vmem:[%s4281_s25 + $0x8] sm:$0xff] }
 0x1a9   :  { %v1004_v37 = vadd.f32 1e-05, %v1002_v36  ;;  %v618_v36 = vld [vmem:[%s4281_s25] sm:$0xff] }
 0x1aa   :  { %v1001_v38 = vpop.xlane.xlu1 %1000 }
 0x1ab   :  { %v1003_v39 = vmul.f32 0.03125, %v1001_v38  ;;  %3539 = vrsqrt.f32 %v1004_v37  ;;  %v824_v37 = vld [vmem:[%s4282_s3 + $0x18] sm:$0xff] }
 0x1ad   :  { %v1005_v40 = vadd.f32 1e-05, %v1003_v39 }
 0x1af   :  { %3541 = vrsqrt.f32 %v1005_v40 }
 0x1b8   :  { %v3540_v41 = vpop.eup %3539 }
 0x1b9   :  { %v1008_v42 = vmul.f32 %v3540_v41, %v992_v17 }
 0x1bb   :  { %v1016_v47 = vmul.f32 %v3146_v43, %v1008_v42 }
 0x1bc   :  { %v3542_v45 = vpop.eup %3541 }
 0x1bd   :  { %v1009_v52 = vmul.f32 %v3542_v45, %v993_v21  ;;  %v1024_v55 = vadd.f32 %v3147_v49, %v1016_v47  ;;  %v4011_v21 = vshrl.u32 %v600_v19, 7 }
 0x1bf   :  { %v1017_v57 = vmul.f32 %v3146_v43, %v1009_v52  ;;  %v609_v23 = vsub.s32 1, %v4011_v21  ;;  %v4017_v29 = vsub.s32 0, %v4011_v21 }
 0x1c1   :  { %v1025_v60 = vadd.f32 %v3147_v49, %v1017_v57  ;;  %v610_v26 = vrot.slane %v599_v24, %v609_v23  ;;  %v603_v31 = vrot.slane %v599_v24, %v4017_v29  ;;  %v3142_v24 = vld [vmem:[#allocation4] ss:$0 sm:$0xff] }
 0x20c   :  { %v381_v44 = vpop.f32.mrf.mxu1 }
 0x20d   :  { %3314 = vmatprep.mubr.msk.f32.mxu0 %vm209_vm2, %v381_v44 }
 0x20e   :  { %v3300_v46 = vpop.f32.mrf.mxu1 }
 0x210   :  { %v454_v50 = vpop.f32.mrf.mxu1 }
 0x211   :  { %3315 = vmatmul.mubr.msk.f32.vlgmr.msra.gmra.mxu0 %vm209_vm2, %v454_v50 }
 0x212   :  { %v3305_v53 = vpop.f32.mrf.mxu1  ;;  %3329 = vmatpush3.msk.msra.mxu0 %vm742_vm5, %v727_v34  ;;  %3330 = vmatprep.mubr.msk.f32.mxu0 %vm735_vm6, %v725_v48  ;;  %v620_v34 = vld [vmem:[%s4281_s25 + $0x10] sm:$0xff]  ;;  %v3133_v48 = vld [vmem:[%s4283_s8] ss:$0 sm:$0xff] }
 0x213   :  { %3344 = vmatprep.subr.mxu0 %v957_v51  ;;  %3319 = vmatprep.subr.mxu1 %v620_v34 }
 0x214   :  { %3320 = vmatpush3.msra.mxu1 %v620_v34 }
 0x215   :  { %3331 = vmatmul.mubr.msk.f32.vlgmr.msra.gmra.mxu0 %vm735_vm6, %v726_v54  ;;  %3321 = vmatprep.subr.mxu1 %v619_v35 }
 0x216   :  { %3345 = vmatpush3.msra.mxu0 %v957_v51  ;;  %3352 = vmatprep.mubr.msk.f32.mxu0 %vm209_vm2, %v1024_v55  ;;  %v3134_v51 = vld [vmem:[%s4284_s12] ss:$0 sm:$0xff] }
 0x217   :  { %3346 = vmatprep.subr.mxu0 %v956_v56  ;;  %3322 = vmatpush3.msra.mxu1 %v619_v35 }
 0x218   :  { %3347 = vmatpush3.msra.mxu0 %v956_v56  ;;  %3323 = vmatprep.subr.mxu1 %v618_v36 }
 0x219   :  { %3348 = vmatprep.subr.mxu0 %v955_v58  ;;  %3324 = vmatpush3.msra.mxu1 %v618_v36 }
 0x21a   :  { %3349 = vmatpush3.msra.mxu0 %v955_v58  ;;  %3333 = vmatprep.subr.mxu1 %v824_v37 }
 0x21b   :  { %3350 = vmatprep.subr.mxu0 %v954_v59 }
 0x21c   :  { %3351 = vmatpush3.msra.mxu0 %v954_v59  ;;  %v3138_v59 = vld [vmem:[%s4285_s20] ss:$0 sm:$0xff] }
 0x21d   :  { %3353 = vmatmul.mubr.msk.f32.vlgmr.msra.gmra.mxu0 %vm209_vm2, %v1025_v60  ;;  %3360 = vmatprep.subr.mxu0 %v3751_v12 }
 0x21e   :  { %3362 = vmatprep.mubr.msk.f32.mxu0 %vm3752_vm3, %v3751_v12 }
 0x2d1   :  { %v3316_v62 = vpop.f32.mrf.mxu0 }
 0x2d2   :  { %v547_v63 = vadd.f32 %v3316_v62, %v3130_v61  ;;  %v823_v62 = vld [vmem:[%s4282_s3 + $0x10] sm:$0xff] }
 0x2d3   :  { %v541_v0 = vpop.f32.mrf.mxu0 }
 0x2d4   :  { %v551_v1 = vmax.f32 %v547_v63, 0.0  ;;  %v542_v2 = vadd.f32 %v3130_v61, %v541_v0  ;;  %v822_v63 = vld [vmem:[%s4282_s3 + $0x8] sm:$0xff]  ;;  %v821_v0 = vld [vmem:[%s4282_s3] sm:$0xff] }
 0x2d5   :  { %v4009_v20 = vpop.f32.mrf.mxu0 }
 0x2d6   :  { %v550_v3 = vmax.f32 %v542_v2, 0.0  ;;  %v553_v4 = vadd.f32 %v551_v1, %v3972_v30  ;;  %v818_v1 = vadd.f32 %v4009_v20, %v3138_v59  ;;  %v3754_v2 = vmov 1966171168  }
 0x2d7   :  { %v812_v22 = vpop.f32.mrf.mxu0 }
 0x2d8   :  { %v559_v5 = vsel %vm209_vm2, %v553_v4, 0.0  ;;  %v552_v6 = vadd.f32 %v550_v3, %v3969_v28  ;;  %v813_v61 = vadd.f32 %v3138_v59, %v812_v22  ;;  %v941_v3 = vunpack.c.l.s4 %v3754_v2 }
 0x2d9   :  { %560 = vadd.xlane.f32.xlu1 %v559_v5  ;;  %v3145_v5 = vld.sshfl [vmem:[%s4286_s7] sm:$0x11 pattern:$0x75316420] }
 0x2da   :  { %v556_v7 = vsel %vm209_vm2, %v552_v6, 0.0 }
 0x2db   :  { %557 = vadd.xlane.f32.xlu0 %v556_v7  ;;  %v939_v7 = vcombine.high %v3145_v5, %v3145_v5 }
 0x2dd   :  { %v3354_v25 = vpop.f32.mrf.mxu0 }
 0x2de   :  { %v4023_v32 = vadd.f32 %v3354_v25, %v3148_v27 }
 0x2df   :  { %v1104_v28 = vpop.f32.mrf.mxu0 }
 0x2e0   :  { %v4019_v30 = vadd.f32 %v3148_v27, %v1104_v28 }
 0x362   :  { %v561_v8 = vpop.xlane.xlu1 %560 }
 0x363   :  { %v564_v9 = vmul.f32 0.03125, %v561_v8 }
 0x364   :  { %v558_v10 = vpop.xlane.xlu0 %557 }
 0x365   :  { %v566_v11 = vsub.f32 %v553_v4, %v564_v9  ;;  %v563_v13 = vmul.f32 0.03125, %v558_v10  ;;  %v942_v4 = vunpack.c.0.s8 %v941_v3 }
 0x367   :  { %v565_v14 = vsub.f32 %v552_v6, %v563_v13  ;;  %v568_v15 = vmul.f32 %v566_v11, %v566_v11  ;;  %v945_v6 = vsub.s32 %v942_v4, %v4011_v21 }
 0x369   :  { %v572_v16 = vsel %vm209_vm2, %v568_v15, 0.0  ;;  %v567_v17 = vmul.f32 %v565_v14, %v565_v14  ;;  %v953_v8 = vrot.slane %v939_v7, %v945_v6 }
 0x36a   :  { %573 = vadd.xlane.f32.xlu1 %v572_v16  ;;  %v3135_v16 = vld [vmem:[#allocation3] ss:$0 sm:$0xff] }
 0x36b   :  { %v569_v18 = vsel %vm209_vm2, %v567_v17, 0.0  ;;  %v4064_v9 = vrot.slane %v953_v8, %v4017_v29 }
 0x36c   :  { %570 = vadd.xlane.f32.xlu0 %v569_v18 }
 0x37b   :  { %612 = vbcast.lane.b32.xlu1 %v610_v26, 256  ;;  %v946_v26 = vrot.slane %v3145_v5, %v945_v6 }
 0x37d   :  { %v4074_v35 = vrot.slane %v946_v26, %v4017_v29 }
 0x37f   :  { %1114 = vrot.lane.b32.xlu1 %v4019_v30, %s3753_s29 }
 0x382   :  { %605 = vbcast.lane.b32.xlu0 %v603_v31, 256 }
 0x383   :  { %1192 = vrot.lane.b32.xlu1 %v4023_v32, %s3753_s29 }
 0x3f3   :  { %v574_v38 = vpop.xlane.xlu1 %573 }
 0x3f4   :  { %v576_v39 = vmul.f32 0.03125, %v574_v38 }
 0x3f5   :  { %v571_v40 = vpop.xlane.xlu0 %570 }
 0x3f6   :  { %v578_v41 = vadd.f32 1e-05, %v576_v39  ;;  %v575_v42 = vmul.f32 0.03125, %v571_v40 }
 0x3f7   :  { %v613_v43 = vpop.permute.xlu1 %612 }
 0x3f8   :  { %3543 = vrsqrt.f32 %v578_v41  ;;  %v577_v44 = vadd.f32 1e-05, %v575_v42 }
 0x3f9   :  { %v606_v56 = vpop.permute.xlu0 %605 }
 0x3fa   :  { %3545 = vrsqrt.f32 %v577_v44 }
 0x3fb   :  { %v1115_v45 = vpop.permute.xlu1 %1114 }
 0x3ff   :  { %v1193_v46 = vpop.permute.xlu1 %1192 }
 0x400   :  { %3361 = vmatpush3.xpose.msk.msra.mxu0 %vm311_vm4, %v1193_v46 }
 0x401   :  { %3370 = vmatprep.subr.mxu0 %v3751_v12 }
 0x403   :  { %3363 = vmatmul.mubr.msk.f32.vlgmr.msra.gmra.mxu0 %vm311_vm4, %v4023_v32 }
 0x404   :  { %3372 = vmatprep.mubr.msk.f32.mxu0 %vm3752_vm3, %v3751_v12 }
 0x405   :  { %v3544_v47 = vpop.eup %3543 }
 0x406   :  { %v582_v49 = vmul.f32 %v3544_v47, %v566_v11 }
 0x407   :  { %v3546_v50 = vpop.eup %3545 }
 0x408   :  { %v590_v52 = vmul.f32 %v3133_v48, %v582_v49  ;;  %v581_v53 = vmul.f32 %v3546_v50, %v565_v14 }
 0x40a   :  { %v598_v54 = vadd.f32 %v3134_v51, %v590_v52  ;;  %v589_v55 = vmul.f32 %v3133_v48, %v581_v53 }
 0x40c   :  { %v615_v57 = vmul.f32 %v613_v43, %v598_v54  ;;  %v597_v58 = vadd.f32 %v3134_v51, %v589_v55 }
 0x40e   :  { %617 = vst.msk [vmem:[%s3931_s14 + $0x8] sm:$0xff] %vm209_vm2, %v615_v57  ;;  %v614_v60 = vmul.f32 %v606_v56, %v597_v58 }
 0x410   :  { %616 = vst.msk [vmem:[%s3931_s14] sm:$0xff] %vm209_vm2, %v614_v60  ;;  %3325 = vmatprep.mubr.msk.f32.mxu1 %vm209_vm2, %v614_v60  ;;  %s3755_s14 = smov 64  }
 0x411   :  { %3326 = vmatmul.mubr.msk.f32.vlgmr.msra.gmra.mxu1 %vm209_vm2, %v615_v57 }
 0x412   :  { %3334 = vmatpush3.msra.mxu1 %v824_v37  ;;  %3341 = vmatprep.mubr.msk.f32.mxu1 %vm209_vm2, %v813_v61 }
 0x413   :  { %3335 = vmatprep.subr.mxu1 %v823_v62 }
 0x414   :  { %3336 = vmatpush3.msra.mxu1 %v823_v62 }
 0x415   :  { %3337 = vmatprep.subr.mxu1 %v822_v63 }
 0x416   :  { %3338 = vmatpush3.msra.mxu1 %v822_v63 }
 0x417   :  { %3339 = vmatprep.subr.mxu1 %v821_v0 }
 0x418   :  { %3340 = vmatpush3.msra.mxu1 %v821_v0 }
 0x419   :  { %3342 = vmatmul.mubr.msk.f32.vlgmr.msra.gmra.mxu1 %vm209_vm2, %v818_v1  ;;  %3355 = vmatprep.subr.mxu1 %v3751_v12 }
 0x41a   :  { %3356 = vmatpush3.xpose.msk.msra.mxu1 %vm311_vm4, %v1115_v45  ;;  %3357 = vmatprep.mubr.msk.f32.mxu1 %vm3752_vm3, %v3751_v12 }
 0x41b   :  { %3365 = vmatprep.subr.mxu1 %v3751_v12 }
 0x41d   :  { %3358 = vmatmul.mubr.msk.f32.vlgmr.msra.gmra.mxu1 %vm311_vm4, %v4019_v30 }
 0x41e   :  { %3367 = vmatprep.mubr.msk.f32.mxu1 %vm3752_vm3, %v3751_v12 }
 0x4c3   :  { %v1264_v10 = vpop.f32.mrf.mxu0 }
 0x4c4   :  { %v1269_v11 = vmul.f32 0.35355338, %v1264_v10 }
 0x4c5   :  { %v3364_v13 = vpop.f32.mrf.mxu0 }
 0x4c6   :  { %v4067_v14 = vadd.f32 %v4064_v9, %v1269_v11 }
 0x4c8   :  { %v1285_v15 = vsel %vm311_vm4, %v4067_v14, -inf }
 0x4c9   :  { %1286 = vmax.xlane.f32.xlu1 %v1285_v15 }
 0x4d1   :  { %v3327_v17 = vpop.f32.mrf.mxu1 }
 0x4d2   :  { %v707_v18 = vadd.f32 %v3327_v17, %v3135_v16 }
 0x4d3   :  { %v701_v19 = vpop.f32.mrf.mxu1 }
 0x4d4   :  { %v711_v20 = vsub.f32 0.0, %v707_v18  ;;  %v702_v21 = vadd.f32 %v3135_v16, %v701_v19 }
 0x4d6   :  { %v714_v22 = vmul.f32 1.442695, %v711_v20  ;;  %v710_v23 = vsub.f32 0.0, %v702_v21 }
 0x4d8   :  { %3547 = vpow2.f32 %v714_v22  ;;  %v712_v25 = vmul.f32 1.442695, %v710_v23 }
 0x4d9   :  { %v3343_v27 = vpop.f32.mrf.mxu1 }
 0x4da   :  { %3549 = vpow2.f32 %v712_v25  ;;  %v910_v28 = vadd.f32 %v3343_v27, %v3142_v24  ;;  %1380 = vrot.lane.b32.xlu1 %v4023_v32, %s3755_s14 }
 0x4db   :  { %v904_v31 = vpop.f32.mrf.mxu1 }
 0x4dc   :  { %v914_v33 = vsub.f32 0.0, %v910_v28  ;;  %v905_v34 = vadd.f32 %v3142_v24, %v904_v31 }
 0x4dd   :  { %v1187_v36 = vpop.f32.mrf.mxu1 }
 0x4de   :  { %v917_v37 = vmul.f32 1.442695, %v914_v33  ;;  %v913_v38 = vsub.f32 0.0, %v905_v34  ;;  %v1268_v39 = vmul.f32 0.35355338, %v1187_v36  ;;  %1458 = vrot.lane.b32.xlu1 %v4019_v30, %s3756_s28 }
 0x4df   :  { %v3359_v40 = vpop.f32.mrf.mxu1 }
 0x4e0   :  { %3551 = vpow2.f32 %v917_v37  ;;  %v915_v41 = vmul.f32 1.442695, %v913_v38  ;;  %v1280_v42 = vadd.f32 %v4074_v35, %v1268_v39 }
 0x4e2   :  { %3553 = vpow2.f32 %v915_v41  ;;  %1536 = vrot.lane.b32.xlu1 %v4023_v32, %s3756_s28  ;;  %v1282_v43 = vsel %vm311_vm4, %v1280_v42, -inf }
 0x4e3   :  { %1283 = vmax.xlane.f32.xlu0 %v1282_v43 }
 0x4e5   :  { %v3548_v29 = vpop.eup %3547 }
 0x4e6   :  { %v717_v44 = vadd.f32 1.0, %v3548_v29  ;;  %1534 = vrot.lane.b32.xlu1 %v4023_v32, %s3757_s2  ;;  %v959_v29 = vld [vmem:[%s4287_s23] sm:$0xff] }
 0x4e7   :  { %v3550_v45 = vpop.eup %3549 }
 0x4e8   :  { %3555 = vrcp.f32 %v717_v44  ;;  %v716_v46 = vadd.f32 1.0, %v3550_v45 }
 0x4ea   :  { %3557 = vrcp.f32 %v716_v46 }
 0x4ed   :  { %v3552_v47 = vpop.eup %3551 }
 0x4ee   :  { %v920_v48 = vadd.f32 1.0, %v3552_v47 }
 0x4ef   :  { %v3554_v49 = vpop.eup %3553 }
 0x4f0   :  { %3559 = vrcp.f32 %v920_v48  ;;  %v919_v50 = vadd.f32 1.0, %v3554_v49 }
 0x4f2   :  { %3561 = vrcp.f32 %v919_v50 }
 0x4f5   :  { %v3556_v51 = vpop.eup %3555 }
 0x4f6   :  { %724 = vst.msk [vmem:[%s3936_s4 + $0x8] sm:$0xff] %vm722_vm7, %v3556_v51 }
 0x4f7   :  { %v3558_v52 = vpop.eup %3557 }
 0x4f8   :  { %723 = vst.msk [vmem:[%s3936_s4] sm:$0xff] %vm722_vm7, %v3558_v52  ;;  %s3758_s4 = smov 56  }
 0x4fd   :  { %v3560_v53 = vpop.eup %3559 }
 0x4fe   :  { %927 = vst.msk [vmem:[%s3941_s15 + $0x8] sm:$0xf] %vm926_vm8, %v3560_v53 }
 0x4ff   :  { %v3562_v54 = vpop.eup %3561 }
 0x500   :  { %925 = vst.msk [vmem:[%s3941_s15] sm:$0xff] %vm722_vm7, %v3562_v54  ;;  %s3759_s15 = smov 80   ;;  %v960_v54 = vld [vmem:[%s4287_s23 + $0x8] sm:$0xff] }
 0x552   :  { %v1287_v55 = vpop.xlane.xlu1 %1286 }
 0x553   :  { %v1289_v56 = vsub.f32 %v4067_v14, %v1287_v55 }
 0x555   :  { %v1292_v57 = vmul.f32 1.442695, %v1289_v56 }
 0x556   :  { %v1381_v58 = vpop.permute.xlu1 %1380 }
 0x557   :  { %3563 = vpow2.f32 %v1292_v57  ;;  %3371 = vmatpush3.msra.mxu0 %v1381_v58 }
 0x558   :  { %3380 = vmatprep.subr.mxu0 %v3751_v12 }
 0x55a   :  { %v1459_v3 = vpop.permute.xlu1 %1458 }
 0x55e   :  { %v1537_v5 = vpop.permute.xlu1 %1536 }
 0x562   :  { %v1535_v7 = vpop.permute.xlu1 %1534 }
 0x564   :  { %v3564_v59 = vpop.eup %3563 }
 0x565   :  { %v1297_v60 = vsel %vm311_vm4, %v3564_v59, 0.0 }
 0x566   :  { %1298 = vadd.xlane.f32.xlu0 %v1297_v60 }
 0x56c   :  { %v1284_v61 = vpop.xlane.xlu0 %1283 }
 0x56d   :  { %v1288_v62 = vsub.f32 %v1280_v42, %v1284_v61 }
 0x56f   :  { %v1290_v63 = vmul.f32 1.442695, %v1288_v62 }
 0x571   :  { %3565 = vpow2.f32 %v1290_v63 }
 0x57e   :  { %v3566_v0 = vpop.eup %3565 }
 0x57f   :  { %v1294_v1 = vsel %vm311_vm4, %v3566_v0, 0.0 }
 0x580   :  { %1295 = vadd.xlane.f32.xlu0 %v1294_v1 }
 0x596   :  { %1304 = vrot.lane.b32.xlu0 %v4019_v30, %s3755_s14 }
 0x59a   :  { %1456 = vrot.lane.b32.xlu0 %v4019_v30, %s3757_s2 }
 0x5ef   :  { %v1299_v2 = vpop.xlane.xlu0 %1298 }
 0x5f0   :  { %3567 = vrcp.f32 %v1299_v2 }
 0x5fd   :  { %v3568_v4 = vpop.eup %3567 }
 0x5fe   :  { %v1303_v6 = vmul.f32 %v3568_v4, %v3564_v59 }
 0x600   :  { %3373 = vmatmul.mubr.msk.f32.vlgmr.msra.gmra.mxu0 %vm311_vm4, %v1303_v6 }
 0x601   :  { %3381 = vmatpush3.xpose.msk.msra.mxu0 %vm311_vm4, %v1537_v5  ;;  %3382 = vmatprep.mubr.msk.f32.mxu0 %vm3752_vm3, %v3751_v12 }
 0x602   :  { %3390 = vmatprep.subr.mxu0 %v3751_v12 }
 0x604   :  { %3383 = vmatmul.mubr.msk.f32.vlgmr.msra.gmra.mxu0 %vm311_vm4, %v1535_v7 }
 0x605   :  { %3392 = vmatprep.mubr.msk.f32.mxu0 %vm3752_vm3, %v3751_v12 }
 0x609   :  { %v1296_v8 = vpop.xlane.xlu0 %1295 }
 0x60a   :  { %3569 = vrcp.f32 %v1296_v8 }
 0x60d   :  { %v1305_v10 = vpop.permute.xlu0 %1304 }
 0x60e   :  { %3366 = vmatpush3.msra.mxu1 %v1305_v10 }
 0x60f   :  { %3375 = vmatprep.subr.mxu1 %v3751_v12 }
 0x611   :  { %v1457_v14 = vpop.permute.xlu0 %1456 }
 0x617   :  { %v3570_v11 = vpop.eup %3569 }
 0x618   :  { %v1301_v13 = vmul.f32 %v3570_v11, %v3566_v0 }
 0x61a   :  { %3368 = vmatmul.mubr.msk.f32.vlgmr.msra.gmra.mxu1 %vm311_vm4, %v1301_v13 }
 0x61b   :  { %3376 = vmatpush3.xpose.msk.msra.mxu1 %vm311_vm4, %v1459_v3  ;;  %3377 = vmatprep.mubr.msk.f32.mxu1 %vm3752_vm3, %v3751_v12 }
 0x61c   :  { %3385 = vmatprep.subr.mxu1 %v3751_v12 }
 0x61e   :  { %3378 = vmatmul.mubr.msk.f32.vlgmr.msra.gmra.mxu1 %vm311_vm4, %v1457_v14 }
 0x61f   :  { %3387 = vmatprep.mubr.msk.f32.mxu1 %vm3752_vm3, %v3751_v12 }
 0x6c0   :  { %v1452_v15 = vpop.f32.mrf.mxu0 }
 0x6c2   :  { %v3374_v16 = vpop.f32.mrf.mxu0 }
 0x6c4   :  { %v1608_v17 = vpop.f32.mrf.mxu0 }
 0x6c5   :  { %v1613_v18 = vmul.f32 0.35355338, %v1608_v17 }
 0x6c6   :  { %v3384_v19 = vpop.f32.mrf.mxu0 }
 0x6c7   :  { %v1615_v20 = vadd.f32 %v1613_v18, %v4064_v9 }
 0x6c9   :  { %v1619_v21 = vsel %vm311_vm4, %v1615_v20, -inf }
 0x6ca   :  { %1620 = vmax.xlane.f32.xlu1 %v1619_v21 }
 0x6da   :  { %v1376_v22 = vpop.f32.mrf.mxu1 }
 0x6db   :  { %1714 = vrot.lane.b32.xlu1 %v4023_v32, %s3758_s4 }
 0x6dc   :  { %v3369_v23 = vpop.f32.mrf.mxu1 }
 0x6de   :  { %v1530_v24 = vpop.f32.mrf.mxu1 }
 0x6df   :  { %v1612_v25 = vmul.f32 0.35355338, %v1530_v24  ;;  %1954 = vrot.lane.b32.xlu1 %v4019_v30, %s3759_s15 }
 0x6e0   :  { %v3379_v26 = vpop.f32.mrf.mxu1 }
 0x6e1   :  { %v1614_v27 = vadd.f32 %v1612_v25, %v4074_v35 }
 0x6e3   :  { %2032 = vrot.lane.b32.xlu1 %v4023_v32, %s3759_s15  ;;  %v1616_v28 = vsel %vm311_vm4, %v1614_v27, -inf }
 0x6e4   :  { %1617 = vmax.xlane.f32.xlu0 %v1616_v28 }
 0x6e7   :  { %2030 = vrot.lane.b32.xlu1 %v4023_v32, %s3760_s0 }
 0x753   :  { %v1621_v31 = vpop.xlane.xlu1 %1620 }
 0x754   :  { %v1623_v33 = vsub.f32 %v1615_v20, %v1621_v31 }
 0x756   :  { %v1626_v34 = vmul.f32 1.442695, %v1623_v33 }
 0x757   :  { %v1715_v36 = vpop.permute.xlu1 %1714 }
 0x758   :  { %3571 = vpow2.f32 %v1626_v34  ;;  %3391 = vmatpush3.msra.mxu0 %v1715_v36 }
 0x759   :  { %3400 = vmatprep.subr.mxu0 %v959_v29 }
 0x75b   :  { %v1955_v45 = vpop.permute.xlu1 %1954 }
 0x75f   :  { %v2033_v48 = vpop.permute.xlu1 %2032 }
 0x763   :  { %v2031_v49 = vpop.permute.xlu1 %2030 }
 0x765   :  { %v3572_v37 = vpop.eup %3571 }
 0x766   :  { %v1631_v38 = vsel %vm311_vm4, %v3572_v37, 0.0 }
 0x767   :  { %1632 = vadd.xlane.f32.xlu0 %v1631_v38  ;;  %v961_v38 = vld [vmem:[%s4287_s23 + $0x10] sm:$0xff] }
 0x76d   :  { %v1618_v39 = vpop.xlane.xlu0 %1617 }
 0x76e   :  { %v1622_v40 = vsub.f32 %v1614_v27, %v1618_v39 }
 0x770   :  { %v1624_v41 = vmul.f32 1.442695, %v1622_v40 }
 0x772   :  { %3573 = vpow2.f32 %v1624_v41 }
 0x77f   :  { %v3574_v42 = vpop.eup %3573 }
 0x780   :  { %v1628_v43 = vsel %vm311_vm4, %v3574_v42, 0.0 }
 0x781   :  { %1629 = vadd.xlane.f32.xlu0 %v1628_v43 }
 0x797   :  { %1638 = vrot.lane.b32.xlu0 %v4019_v30, %s3758_s4 }
 0x79b   :  { %1952 = vrot.lane.b32.xlu0 %v4019_v30, %s3760_s0 }
 0x7f0   :  { %v1633_v44 = vpop.xlane.xlu0 %1632 }
 0x7f1   :  { %3575 = vrcp.f32 %v1633_v44 }
 0x7fe   :  { %v3576_v46 = vpop.eup %3575 }
 0x7ff   :  { %v1637_v47 = vmul.f32 %v3576_v46, %v3572_v37 }
 0x801   :  { %3393 = vmatmul.mubr.msk.f32.vlgmr.msra.gmra.mxu0 %vm311_vm4, %v1637_v47 }
 0x802   :  { %3402 = vmatprep.mubr.msk.f32.mxu0 %vm311_vm4, %v1376_v22  ;;  %3401 = vmatpush3.msra.mxu0 %v959_v29 }
 0x803   :  { %3410 = vmatprep.subr.mxu0 %v3751_v12 }
 0x805   :  { %3403 = vmatmul.mubr.msk.f32.vlgmr.msra.gmra.mxu0 %vm311_vm4, %v1452_v15 }
 0x806   :  { %3411 = vmatpush3.xpose.msk.msra.mxu0 %vm311_vm4, %v2033_v48  ;;  %3412 = vmatprep.mubr.msk.f32.mxu0 %vm3752_vm3, %v3751_v12 }
 0x807   :  { %3420 = vmatprep.subr.mxu0 %v3751_v12 }
 0x809   :  { %3413 = vmatmul.mubr.msk.f32.vlgmr.msra.gmra.mxu0 %vm311_vm4, %v2031_v49 }
 0x80a   :  { %v1630_v50 = vpop.xlane.xlu0 %1629  ;;  %3422 = vmatprep.mubr.msk.f32.mxu0 %vm3752_vm3, %v3751_v12 }
 0x80b   :  { %3577 = vrcp.f32 %v1630_v50 }
 0x80e   :  { %v1639_v51 = vpop.permute.xlu0 %1638 }
 0x80f   :  { %3386 = vmatpush3.msra.mxu1 %v1639_v51 }
 0x810   :  { %3395 = vmatprep.subr.mxu1 %v960_v54 }
 0x812   :  { %v1953_v2 = vpop.permute.xlu0 %1952 }
 0x818   :  { %v3578_v52 = vpop.eup %3577 }
 0x819   :  { %v1635_v53 = vmul.f32 %v3578_v52, %v3574_v42 }
 0x81b   :  { %3388 = vmatmul.mubr.msk.f32.vlgmr.msra.gmra.mxu1 %vm311_vm4, %v1635_v53 }
 0x81c   :  { %3396 = vmatpush3.msra.mxu1 %v960_v54 }
 0x81d   :  { %3405 = vmatprep.subr.mxu1 %v3751_v12 }
 0x8c1   :  { %v1786_v55 = vpop.f32.mrf.mxu0 }
 0x8c3   :  { %v3394_v56 = vpop.f32.mrf.mxu0 }
 0x8c5   :  { %v4140_v57 = vpop.f32.mrf.mxu0 }
 0x8c7   :  { %v4142_v58 = vpop.f32.mrf.mxu0 }
 0x8c9   :  { %v2104_v59 = vpop.f32.mrf.mxu0 }
 0x8ca   :  { %v2109_v60 = vmul.f32 0.35355338, %v2104_v59 }
 0x8cb   :  { %v3414_v61 = vpop.f32.mrf.mxu0 }
 0x8cc   :  { %v2111_v62 = vadd.f32 %v2109_v60, %v4064_v9 }
 0x8ce   :  { %v2115_v63 = vsel %vm311_vm4, %v2111_v62, -inf }
 0x8cf   :  { %2116 = vmax.xlane.f32.xlu1 %v2115_v63 }
 0x8db   :  { %v1710_v0 = vpop.f32.mrf.mxu1 }
 0x8dc   :  { %3397 = vmatprep.mubr.msk.f32.mxu1 %vm311_vm4, %v1710_v0 }
 0x8dd   :  { %v3389_v1 = vpop.f32.mrf.mxu1  ;;  %3398 = vmatmul.mubr.msk.f32.vlgmr.msra.gmra.mxu1 %vm311_vm4, %v1786_v55 }
 0x8de   :  { %3406 = vmatpush3.xpose.msk.msra.mxu1 %vm311_vm4, %v1955_v45  ;;  %3407 = vmatprep.mubr.msk.f32.mxu1 %vm3752_vm3, %v3751_v12 }
 0x8df   :  { %3415 = vmatprep.subr.mxu1 %v3751_v12 }
 0x8e0   :  { %2210 = vrot.lane.b32.xlu1 %v4023_v32, %s3761_s19 }
 0x8e1   :  { %3408 = vmatmul.mubr.msk.f32.vlgmr.msra.gmra.mxu1 %vm311_vm4, %v1953_v2 }
 0x8e2   :  { %3417 = vmatprep.mubr.msk.f32.mxu1 %vm3752_vm3, %v3751_v12 }
 0x8e4   :  { %2371 = vrot.lane.b32.xlu1 %v4019_v30, %s3762_s10 }
 0x8e8   :  { %2449 = vrot.lane.b32.xlu1 %v4023_v32, %s3762_s10 }
 0x8ec   :  { %2447 = vrot.lane.b32.xlu1 %v4023_v32, %s3763_s11 }
 0x958   :  { %v2117_v3 = vpop.xlane.xlu1 %2116 }
 0x959   :  { %v2119_v5 = vsub.f32 %v2111_v62, %v2117_v3 }
 0x95b   :  { %v2122_v6 = vmul.f32 1.442695, %v2119_v5 }
 0x95c   :  { %v2211_v4 = vpop.permute.xlu1 %2210 }
 0x95d   :  { %3421 = vmatpush3.msra.mxu0 %v2211_v4  ;;  %3579 = vpow2.f32 %v2122_v6 }
 0x95e   :  { %3430 = vmatprep.subr.mxu0 %v3751_v12 }
 0x960   :  { %v2372_v26 = vpop.permute.xlu1 %2371 }
 0x964   :  { %v2450_v29 = vpop.permute.xlu1 %2449 }
 0x968   :  { %v2448_v46 = vpop.permute.xlu1 %2447 }
 0x96a   :  { %v3580_v16 = vpop.eup %3579 }
 0x96b   :  { %v2127_v17 = vsel %vm311_vm4, %v3580_v16, 0.0 }
 0x99d   :  { %v4162_v7 = vpop.f32.mrf.mxu1 }
 0x99e   :  { %v1949_v51 = vadd.f32 %v4140_v57, %v4162_v7 }
 0x99f   :  { %v4164_v8 = vpop.f32.mrf.mxu1 }
 0x9a0   :  { %v1944_v53 = vadd.f32 %v4142_v58, %v4164_v8  ;;  %v962_v8 = vld [vmem:[%s4287_s23 + $0x18] sm:$0xff] }
 0x9a1   :  { %v2026_v10 = vpop.f32.mrf.mxu1 }
 0x9a2   :  { %v2108_v11 = vmul.f32 0.35355338, %v2026_v10 }
 0x9a3   :  { %v3409_v13 = vpop.f32.mrf.mxu1 }
 0x9a4   :  { %v2110_v14 = vadd.f32 %v2108_v11, %v4074_v35 }
 0x9a6   :  { %v2112_v15 = vsel %vm311_vm4, %v2110_v14, -inf }
 0x9a7   :  { %2113 = vmax.xlane.f32.xlu0 %v2112_v15 }
 0x9ab   :  { %2128 = vadd.xlane.f32.xlu0 %v2127_v17 }
 0xa30   :  { %v2114_v18 = vpop.xlane.xlu0 %2113 }
 0xa31   :  { %v2118_v19 = vsub.f32 %v2110_v14, %v2114_v18  ;;  %v3183_v14 = vld [vmem:[%s4288_s16] ss:$0 sm:$0xff] }
 0xa33   :  { %v2120_v20 = vmul.f32 1.442695, %v2118_v19 }
 0xa34   :  { %v2129_v21 = vpop.xlane.xlu0 %2128 }
 0xa35   :  { %3581 = vpow2.f32 %v2120_v20  ;;  %v3603_v20 = vld [vmem:[#allocation2 + $0x8] sm:$0xff] }
 0xa36   :  { %3583 = vrcp.f32 %v2129_v21 }
 0xa42   :  { %v3582_v22 = vpop.eup %3581 }
 0xa43   :  { %v3584_v23 = vpop.eup %3583  ;;  %v2124_v24 = vsel %vm311_vm4, %v3582_v22, 0.0 }
 0xa44   :  { %2125 = vadd.xlane.f32.xlu0 %v2124_v24  ;;  %v2133_v25 = vmul.f32 %v3584_v23, %v3580_v16  ;;  %v3604_v23 = vld [vmem:[#allocation2] sm:$0xff] }
 0xa46   :  { %3423 = vmatmul.mubr.msk.f32.vlgmr.msra.gmra.mxu0 %vm311_vm4, %v2133_v25 }
 0xa47   :  { %3431 = vmatpush3.xpose.msk.msra.mxu0 %vm311_vm4, %v2372_v26  ;;  %3432 = vmatprep.mubr.msk.f32.mxu0 %vm3752_vm3, %v3751_v12 }
 0xa48   :  { %3440 = vmatprep.subr.mxu0 %v3751_v12 }
 0xa5a   :  { %2134 = vrot.lane.b32.xlu0 %v4019_v30, %s3761_s19 }
 0xa5e   :  { %2369 = vrot.lane.b32.xlu0 %v4019_v30, %s3763_s11 }
 0xacd   :  { %v2126_v27 = vpop.xlane.xlu0 %2125 }
 0xace   :  { %3585 = vrcp.f32 %v2126_v27 }
 0xad1   :  { %v2135_v28 = vpop.permute.xlu0 %2134 }
 0xad2   :  { %3416 = vmatpush3.msra.mxu1 %v2135_v28 }
 0xad3   :  { %3425 = vmatprep.subr.mxu1 %v961_v38 }
 0xad5   :  { %v2370_v31 = vpop.permute.xlu0 %2369 }
 0xad6   :  { %3433 = vmatmul.mubr.msk.f32.vlgmr.msra.gmra.mxu0 %vm311_vm4, %v2370_v31 }
 0xad7   :  { %3442 = vmatprep.mubr.msk.f32.mxu0 %vm3752_vm3, %v3751_v12 }
 0xadb   :  { %v3586_v33 = vpop.eup %3585 }
 0xadc   :  { %v2131_v34 = vmul.f32 %v3586_v33, %v3582_v22 }
 0xade   :  { %3418 = vmatmul.mubr.msk.f32.vlgmr.msra.gmra.mxu1 %vm311_vm4, %v2131_v34 }
 0xadf   :  { %3426 = vmatpush3.msra.mxu1 %v961_v38 }
 0xae0   :  { %3435 = vmatprep.subr.mxu1 %v3751_v12 }
 0xb06   :  { %v2282_v36 = vpop.f32.mrf.mxu0 }
 0xb08   :  { %v3424_v37 = vpop.f32.mrf.mxu0 }
 0xb96   :  { %v2443_v39 = vpop.f32.mrf.mxu0 }
 0xb97   :  { %v2525_v40 = vmul.f32 0.35355338, %v2443_v39 }
 0xb98   :  { %v3434_v41 = vpop.f32.mrf.mxu0 }
 0xb99   :  { %v2527_v42 = vadd.f32 %v2525_v40, %v4074_v35  ;;  %v971_v41 = vld [vmem:[%s4289_s18 + $0x18] sm:$0xff] }
 0xb9b   :  { %v2529_v43 = vsel %vm311_vm4, %v2527_v42, -inf }
 0xb9c   :  { %2530 = vmax.xlane.f32.xlu0 %v2529_v43  ;;  %v969_v43 = vld [vmem:[%s4289_s18 + $0x8] sm:$0xff] }
 0xb9e   :  { %v2206_v44 = vpop.f32.mrf.mxu1 }
 0xb9f   :  { %3427 = vmatprep.mubr.msk.f32.mxu1 %vm311_vm4, %v2206_v44  ;;  %v980_v44 = vld [vmem:[%s4290_s30 + $0x38] sm:$0xff] }
 0xba0   :  { %v3419_v45 = vpop.f32.mrf.mxu1  ;;  %3428 = vmatmul.mubr.msk.f32.vlgmr.msra.gmra.mxu1 %vm311_vm4, %v2282_v36 }
 0xba1   :  { %3436 = vmatpush3.xpose.msk.msra.mxu1 %vm311_vm4, %v2450_v29  ;;  %3437 = vmatprep.mubr.msk.f32.mxu1 %vm3752_vm3, %v3751_v12  ;;  %v968_v29 = vld [vmem:[%s4289_s18] sm:$0xff]  ;;  %v979_v45 = vld [vmem:[%s4290_s30 + $0x30] sm:$0xff] }
 0xba2   :  { %3445 = vmatprep.subr.mxu1 %v3751_v12 }
 0xba4   :  { %3438 = vmatmul.mubr.msk.f32.vlgmr.msra.gmra.mxu1 %vm311_vm4, %v2448_v46  ;;  %v978_v46 = vld [vmem:[%s4290_s30 + $0x28] sm:$0xff] }
 0xba5   :  { %3447 = vmatprep.mubr.msk.f32.mxu1 %vm3752_vm3, %v3751_v12 }
 0xc25   :  { %v2531_v35 = vpop.xlane.xlu0 %2530 }
 0xc26   :  { %v2535_v47 = vsub.f32 %v2527_v42, %v2531_v35  ;;  %v970_v42 = vld [vmem:[%s4289_s18 + $0x10] sm:$0xff]  ;;  %v977_v35 = vld [vmem:[%s4290_s30 + $0x20] sm:$0xff] }
 0xc28   :  { %v2537_v48 = vmul.f32 1.442695, %v2535_v47 }
 0xc2a   :  { %3587 = vpow2.f32 %v2537_v48 }
 0xc37   :  { %v3588_v49 = vpop.eup %3587 }
 0xc38   :  { %v2541_v50 = vsel %vm311_vm4, %v3588_v49, 0.0 }
 0xc39   :  { %2542 = vadd.xlane.f32.xlu0 %v2541_v50 }
 0xc60   :  { %v3429_v52 = vpop.f32.mrf.mxu1 }
 0xc61   :  { %v2368_v54 = vadd.f32 %v3429_v52, %v1949_v51 }
 0xc62   :  { %v2358_v55 = vpop.f32.mrf.mxu1 }
 0xc63   :  { %v2367_v56 = vadd.f32 %v2358_v55, %v1944_v53 }
 0xc64   :  { %v2521_v59 = vpop.f32.mrf.mxu1 }
 0xc65   :  { %v2526_v12 = vmul.f32 0.35355338, %v2521_v59 }
 0xc66   :  { %v3439_v60 = vpop.f32.mrf.mxu1 }
 0xc67   :  { %v2528_v61 = vadd.f32 %v2526_v12, %v4064_v9  ;;  %v3185_v60 = vld [vmem:[#allocation5] ss:$0 sm:$0xff] }
 0xc69   :  { %v2532_v62 = vsel %vm311_vm4, %v2528_v61, -inf }
 0xc6a   :  { %2533 = vmax.xlane.f32.xlu1 %v2532_v62 }
 0xc7b   :  { %2627 = vrot.lane.b32.xlu1 %v4023_v32, %s3764_s6 }
 0xcc2   :  { %v2543_v9 = vpop.xlane.xlu0 %2542 }
 0xcf3   :  { %v2534_v63 = vpop.xlane.xlu1 %2533 }
 0xcf4   :  { %v2536_v57 = vsub.f32 %v2528_v61, %v2534_v63 }
 0xcf6   :  { %v2539_v0 = vmul.f32 1.442695, %v2536_v57  ;;  %v976_v57 = vld [vmem:[%s4290_s30 + $0x18] sm:$0xff] }
 0xcf7   :  { %v2628_v1 = vpop.permute.xlu1 %2627 }
 0xcf8   :  { %3589 = vpow2.f32 %v2539_v0  ;;  %3446 = vmatpush3.msra.mxu1 %v2628_v1  ;;  %v975_v0 = vld [vmem:[%s4290_s30 + $0x10] sm:$0xff]  ;;  %v974_v1 = vld [vmem:[%s4290_s30 + $0x8] sm:$0xff] }
 0xcf9   :  { %3591 = vrcp.f32 %v2543_v9  ;;  %3455 = vmatprep.subr.mxu1 %v971_v41 }
 0xd05   :  { %v3590_v58 = vpop.eup %3589 }
 0xd06   :  { %v2544_v2 = vsel %vm311_vm4, %v3590_v58, 0.0  ;;  %v3592_v4 = vpop.eup %3591 }
 0xd07   :  { %2545 = vadd.xlane.f32.xlu0 %v2544_v2  ;;  %v2548_v32 = vmul.f32 %v3592_v4, %v3588_v49  ;;  %v3186_v2 = vld [vmem:[#allocation7] ss:$0 sm:$0xff] }
 0xd1d   :  { %2551 = vrot.lane.b32.xlu0 %v4019_v30, %s3764_s6 }
 0xd90   :  { %v2546_v3 = vpop.xlane.xlu0 %2545 }
 0xd91   :  { %3593 = vrcp.f32 %v2546_v3 }
 0xd94   :  { %v2552_v5 = vpop.permute.xlu0 %2551 }
 0xd95   :  { %3441 = vmatpush3.msra.mxu0 %v2552_v5 }
 0xd96   :  { %3443 = vmatmul.mubr.msk.f32.vlgmr.msra.gmra.mxu0 %vm311_vm4, %v2548_v32  ;;  %3450 = vmatprep.subr.mxu0 %v962_v8 }
 0xd97   :  { %3451 = vmatpush3.msra.mxu0 %v962_v8 }
 0xd98   :  { %3466 = vmatprep.subr.mxu0 %v980_v44 }
 0xd9e   :  { %v3594_v6 = vpop.eup %3593 }
 0xd9f   :  { %v2550_v7 = vmul.f32 %v3594_v6, %v3590_v58  ;;  %v973_v58 = vld [vmem:[%s4290_s30] sm:$0xff] }
 0xda1   :  { %3448 = vmatmul.mubr.msk.f32.vlgmr.msra.gmra.mxu1 %vm311_vm4, %v2550_v7  ;;  %v3191_v7 = vld [vmem:[#allocation9] ss:$0 sm:$0xff] }
 0xda2   :  { %3456 = vmatpush3.msra.mxu1 %v971_v41  ;;  %v3193_v41 = vld [vmem:[#allocation12] ss:$0 sm:$0xff] }
 0xda3   :  { %3457 = vmatprep.subr.mxu1 %v970_v42 }
 0xda4   :  { %3458 = vmatpush3.msra.mxu1 %v970_v42 }
 0xda5   :  { %3459 = vmatprep.subr.mxu1 %v969_v43 }
 0xda6   :  { %3460 = vmatpush3.msra.mxu1 %v969_v43 }
 0xda7   :  { %3461 = vmatprep.subr.mxu1 %v968_v29 }
 0xda8   :  { %3462 = vmatpush3.msra.mxu1 %v968_v29 }
 0xe56   :  { %v2623_v10 = vpop.f32.mrf.mxu0 }
 0xe57   :  { %3452 = vmatprep.mubr.msk.f32.mxu0 %vm311_vm4, %v2623_v10 }
 0xe58   :  { %v3444_v30 = vpop.f32.mrf.mxu0 }
 0xe61   :  { %v2699_v11 = vpop.f32.mrf.mxu1 }
 0xe62   :  { %3453 = vmatmul.mubr.msk.f32.vlgmr.msra.gmra.mxu0 %vm311_vm4, %v2699_v11 }
 0xe63   :  { %v3449_v13 = vpop.f32.mrf.mxu1  ;;  %3467 = vmatpush3.msra.mxu0 %v980_v44 }
 0xe64   :  { %3468 = vmatprep.subr.mxu0 %v979_v45 }
 0xe65   :  { %3469 = vmatpush3.msra.mxu0 %v979_v45 }
 0xe66   :  { %3470 = vmatprep.subr.mxu0 %v978_v46 }
 0xe67   :  { %3471 = vmatpush3.msra.mxu0 %v978_v46 }
 0xe68   :  { %3472 = vmatprep.subr.mxu0 %v977_v35 }
 0xe69   :  { %3473 = vmatpush3.msra.mxu0 %v977_v35 }
 0xe6a   :  { %3474 = vmatprep.subr.mxu0 %v976_v57 }
 0xe6b   :  { %3475 = vmatpush3.msra.mxu0 %v976_v57 }
 0xe6c   :  { %3476 = vmatprep.subr.mxu0 %v975_v0 }
 0xe6d   :  { %3477 = vmatpush3.msra.mxu0 %v975_v0 }
 0xe6e   :  { %3478 = vmatprep.subr.mxu0 %v974_v1 }
 0xe6f   :  { %3479 = vmatpush3.msra.mxu0 %v974_v1 }
 0xe70   :  { %3480 = vmatprep.subr.mxu0 %v973_v58 }
 0xe71   :  { %3481 = vmatpush3.msra.mxu0 %v973_v58 }
 0xf22   :  { %v3454_v15 = vpop.f32.mrf.mxu0 }
 0xf23   :  { %v2785_v16 = vadd.f32 %v3454_v15, %v2368_v54  ;;  %v3184_v54 = vld [vmem:[%s4291_s1] ss:$0 sm:$0xff] }
 0xf24   :  { %v2775_v17 = vpop.f32.mrf.mxu0 }
 0xf25   :  { %v2793_v18 = vadd.f32 %v3183_v14, %v2785_v16  ;;  %v2784_v19 = vadd.f32 %v2775_v17, %v2367_v56 }
 0xf27   :  { %v4212_v21 = vadd.f32 %v3603_v20, %v2793_v18  ;;  %v2792_v22 = vadd.f32 %v3183_v14, %v2784_v19 }
 0xf29   :  { %v4214_v24 = vadd.f32 %v3604_v23, %v2792_v22  ;;  %v2799_v25 = vsel %vm209_vm2, %v4212_v21, 0.0 }
 0xf2a   :  { %2800 = vadd.xlane.f32.xlu0 %v2799_v25 }
 0xf2b   :  { %v2796_v26 = vsel %vm209_vm2, %v4214_v24, 0.0 }
 0xf2c   :  { %2797 = vadd.xlane.f32.xlu1 %v2796_v26 }
 0xfb3   :  { %v2801_v27 = vpop.xlane.xlu0 %2800 }
 0xfb4   :  { %v2803_v28 = vmul.f32 0.03125, %v2801_v27 }
 0xfb5   :  { %v2798_v31 = vpop.xlane.xlu1 %2797 }
 0xfb6   :  { %v2805_v33 = vsub.f32 %v4212_v21, %v2803_v28  ;;  %v2802_v34 = vmul.f32 0.03125, %v2798_v31 }
 0xfb8   :  { %v2804_v36 = vsub.f32 %v4214_v24, %v2802_v34  ;;  %v2807_v37 = vmul.f32 %v2805_v33, %v2805_v33 }
 0xfba   :  { %v2811_v38 = vsel %vm209_vm2, %v2807_v37, 0.0  ;;  %v2806_v39 = vmul.f32 %v2804_v36, %v2804_v36 }
 0xfbb   :  { %2812 = vadd.xlane.f32.xlu1 %v2811_v38  ;;  %v3192_v38 = vld [vmem:[#allocation10] ss:$0 sm:$0xff] }
 0xfbc   :  { %v2808_v40 = vsel %vm209_vm2, %v2806_v39, 0.0 }
 0xfbd   :  { %2809 = vadd.xlane.f32.xlu0 %v2808_v40 }
0x1044   :  { %v2813_v47 = vpop.xlane.xlu1 %2812 }
0x1045   :  { %v2815_v48 = vmul.f32 0.03125, %v2813_v47 }
0x1046   :  { %v2810_v49 = vpop.xlane.xlu0 %2809 }
0x1047   :  { %v2817_v50 = vadd.f32 1e-05, %v2815_v48  ;;  %v2814_v51 = vmul.f32 0.03125, %v2810_v49 }
0x1049   :  { %3595 = vrsqrt.f32 %v2817_v50  ;;  %v2816_v52 = vadd.f32 1e-05, %v2814_v51 }
0x104b   :  { %3597 = vrsqrt.f32 %v2816_v52 }
0x1056   :  { %v3596_v53 = vpop.eup %3595 }
0x1057   :  { %v2821_v55 = vmul.f32 %v3596_v53, %v2805_v33 }
0x1058   :  { %v3598_v56 = vpop.eup %3597 }
0x1059   :  { %v2820_v59 = vmul.f32 %v3598_v56, %v2804_v36  ;;  %v2829_v12 = vmul.f32 %v3184_v54, %v2821_v55 }
0x105b   :  { %v2828_v61 = vmul.f32 %v3184_v54, %v2820_v59  ;;  %v2837_v63 = vadd.f32 %v3185_v60, %v2829_v12 }
0x105d   :  { %v2836_v62 = vadd.f32 %v3185_v60, %v2828_v61 }
0x105f   :  { %3463 = vmatprep.mubr.msk.f32.mxu1 %vm209_vm2, %v2836_v62 }
0x1060   :  { %3464 = vmatmul.mubr.msk.f32.vlgmr.msra.gmra.mxu1 %vm209_vm2, %v2837_v63 }
0x1120   :  { %v3465_v9 = vpop.f32.mrf.mxu1 }
0x1121   :  { %v2922_v3 = vadd.f32 %v3465_v9, %v3186_v2 }
0x1122   :  { %v2916_v4 = vpop.f32.mrf.mxu1 }
0x1123   :  { %v2917_v5 = vadd.f32 %v3186_v2, %v2916_v4  ;;  %v2926_v6 = vmax.f32 %v2922_v3, 0.0 }
0x1125   :  { %v2925_v32 = vmax.f32 %v2917_v5, 0.0 }
0x1127   :  { %3482 = vmatprep.mubr.msk.f32.mxu0 %vm2927_vm9, %v2925_v32 }
0x1128   :  { %3483 = vmatmul.mubr.msk.f32.vlgmr.msra.gmra.mxu0 %vm2927_vm9, %v2926_v6 }
0x11e8   :  { %v3484_v8 = vpop.f32.mrf.mxu0 }
0x11e9   :  { %v3010_v10 = vadd.f32 %v3484_v8, %v4212_v21 }
0x11ea   :  { %v3000_v30 = vpop.f32.mrf.mxu0 }
0x11eb   :  { %v3018_v11 = vadd.f32 %v3191_v7, %v3010_v10  ;;  %v3009_v13 = vadd.f32 %v3000_v30, %v4214_v24 }
0x11ed   :  { %3020 = vst.msk [vmem:[#allocation2 + $0x8] sm:$0xff] %vm209_vm2, %v3018_v11  ;;  %v3017_v14 = vadd.f32 %v3191_v7, %v3009_v13  ;;  %v3029_v15 = vsel %vm209_vm2, %v3018_v11, 0.0 }
0x11ee   :  { %3030 = vadd.xlane.f32.xlu1 %v3029_v15 }
0x11ef   :  { %3019 = vst.msk [vmem:[#allocation2] sm:$0xff] %vm209_vm2, %v3017_v14  ;;  %v3026_v16 = vsel %vm209_vm2, %v3017_v14, 0.0 }
0x11f0   :  { %3027 = vadd.xlane.f32.xlu0 %v3026_v16 }
0x1277   :  { %v3031_v17 = vpop.xlane.xlu1 %3030 }
0x1278   :  { %v3033_v18 = vmul.f32 0.03125, %v3031_v17 }
0x1279   :  { %v3028_v19 = vpop.xlane.xlu0 %3027 }
0x127a   :  { %v3035_v20 = vsub.f32 %v3018_v11, %v3033_v18  ;;  %v3032_v21 = vmul.f32 0.03125, %v3028_v19 }
0x127c   :  { %v3034_v22 = vsub.f32 %v3017_v14, %v3032_v21  ;;  %v3037_v23 = vmul.f32 %v3035_v20, %v3035_v20 }
0x127e   :  { %v3041_v24 = vsel %vm209_vm2, %v3037_v23, 0.0  ;;  %v3036_v25 = vmul.f32 %v3034_v22, %v3034_v22 }
0x127f   :  { %3042 = vadd.xlane.f32.xlu1 %v3041_v24 }
0x1280   :  { %v3038_v26 = vsel %vm209_vm2, %v3036_v25, 0.0 }
0x1281   :  { %3039 = vadd.xlane.f32.xlu0 %v3038_v26 }
0x1308   :  { %v3043_v27 = vpop.xlane.xlu1 %3042 }
0x1309   :  { %v3045_v28 = vmul.f32 0.03125, %v3043_v27 }
0x130a   :  { %v3040_v31 = vpop.xlane.xlu0 %3039 }
0x130b   :  { %v3047_v33 = vadd.f32 1e-05, %v3045_v28  ;;  %v3044_v34 = vmul.f32 0.03125, %v3040_v31 }
0x130d   :  { %3599 = vrsqrt.f32 %v3047_v33  ;;  %v3046_v36 = vadd.f32 1e-05, %v3044_v34 }
0x130f   :  { %3601 = vrsqrt.f32 %v3046_v36 }
0x131a   :  { %v3600_v37 = vpop.eup %3599 }
0x131b   :  { %v3051_v39 = vmul.f32 %v3600_v37, %v3035_v20 }
0x131c   :  { %v3602_v40 = vpop.eup %3601 }
0x131d   :  { %v3059_v42 = vmul.f32 %v3192_v38, %v3051_v39  ;;  %v3050_v43 = vmul.f32 %v3602_v40, %v3034_v22 }
0x131f   :  { %v3067_v29 = vadd.f32 %v3193_v41, %v3059_v42  ;;  %v3058_v44 = vmul.f32 %v3192_v38, %v3050_v43 }
0x1321   :  { %3069 = vst.msk [vmem:[%s4292_s27 + $0x8] sm:$0xff] %vm209_vm2, %v3067_v29  ;;  %v3066_v45 = vadd.f32 %v3193_v41, %v3058_v44 }
0x1323   :  { %3068 = vst.msk [vmem:[%s4292_s27] sm:$0xff] %vm209_vm2, %v3066_v45 }
0x1324   :  { %3086 = vsyncpa [#allocation6], 1 }
0x1325   :  { %3087 = vsyncpa [#allocation8], 1 }
0x1326   :  { %3088 = vsyncpa [#allocation11], 1 }

// kernel: retro_forward.4
= control target key start
LH: loop header
LB: loop body
LE: loop exit
PB: predicated region body
PF: predicated region fallthrough
CT: control target
= control target key end

     0   :  { %s4750_s0 = inlined_call_operand.vmem [shape: f32[2,8,32], index: 0, kind: input, shape index: {}]   ;;  %s4751_s1 = inlined_call_operand.vmem [shape: f32[2,8,32], index: 1, kind: input, shape index: {}]   ;;  %s4752_s2 = inlined_call_operand.vmem [shape: f32[2,8], index: 2, kind: input, shape index: {}]   ;;  %s4753_s3 = inlined_call_operand.vmem [shape: f32[2,16], index: 3, kind: input, shape index: {}]   ;;  %s4754_s4 = inlined_call_operand.vmem [shape: f32[32,32], index: 4, kind: input, shape index: {}]   ;;  %s4755_s5 = inlined_call_operand.hbm [shape: f32[1,32], index: 5, kind: input, shape index: {}]   ;;  %s4756_s6 = inlined_call_operand.vmem [shape: f32[32,32], index: 6, kind: input, shape index: {}]   ;;  %s4757_s7 = inlined_call_operand.hbm [shape: f32[1,32], index: 7, kind: input, shape index: {}]   ;;  %s4758_s8 = inlined_call_operand.vmem [shape: f32[1,32,96], index: 8, kind: input, shape index: {}]   ;;  %s4759_s9 = inlined_call_operand.hbm [shape: f32[1,1,96], index: 9, kind: input, shape index: {}]   ;;  %s4760_s10 = inlined_call_operand.vmem [shape: f32[1,32,32], index: 10, kind: input, shape index: {}]   ;;  %s4761_s11 = inlined_call_operand.hbm [shape: f32[1,1,32], index: 11, kind: input, shape index: {}]   ;;  %s4762_s12 = inlined_call_operand.hbm [shape: f32[1,1,32], index: 12, kind: input, shape index: {}]   ;;  %s4763_s13 = inlined_call_operand.hbm [shape: f32[1,1,32], index: 13, kind: input, shape index: {}]   ;;  %s4764_s14 = inlined_call_operand.hbm [shape: f32[1,1,32], index: 14, kind: input, shape index: {}]   ;;  %s4765_s15 = inlined_call_operand.hbm [shape: f32[1,1,32], index: 15, kind: input, shape index: {}]   ;;  %s4766_s16 = inlined_call_operand.vmem [shape: f32[1,32,64], index: 16, kind: input, shape index: {}]   ;;  %s4767_s17 = inlined_call_operand.hbm [shape: f32[1,1,64], index: 17, kind: input, shape index: {}]   ;;  %s4768_s18 = inlined_call_operand.vmem [shape: f32[1,64,32], index: 18, kind: input, shape index: {}]   ;;  %s4769_s19 = inlined_call_operand.hbm [shape: f32[1,1,32], index: 19, kind: input, shape index: {}]   ;;  %s4770_s20 = inlined_call_operand.hbm [shape: f32[1,32], index: 20, kind: input, shape index: {}]   ;;  %s4771_s21 = inlined_call_operand.vmem [shape: f32[1,32], index: 21, kind: input, shape index: {}]   ;;  %s4772_s22 = inlined_call_operand.vmem [shape: f32[2,8,32], index: 22, kind: output, shape index: {}]  }
   0x1   :  { %4777 = sst [smem:[#allocation26_spill]] %s4750_s0 }
   0x2   :  { %4778 = sst [smem:[#allocation27_spill]] %s4751_s1 }
   0x3   :  { %4779 = sst [smem:[#allocation28_spill]] %s4752_s2 }
   0x4   :  { %4780 = sst [smem:[#allocation29_spill]] %s4753_s3 }
   0x5   :  { %4781 = sst [smem:[#allocation30_spill]] %s4754_s4 }
   0x6   :  { %4782 = sst [smem:[#allocation31_spill]] %s4755_s5 }
   0x7   :  { %4783 = sst [smem:[#allocation32_spill]] %s4756_s6 }
   0x8   :  { %27 = vsyncpa [#allocation4], 0 }
   0x9   :  { %28 = vsyncpa [#allocation6], 0 }
   0xa   :  { %29 = vsyncpa [#allocation9], 0 }
   0xb   :  { %30 = vsyncpa [#allocation12], 0 }
   0xc   :  { %31 = vsyncpa [#allocation15], 0 }
   0xd   :  { %32 = vsyncpa [#allocation18], 0  ;;  %s4104_s3 = smov [#allocation5]   ;;  %s4105_s29 = smov [#allocation8]  }
   0xe   :  { %s61_s28 = sshll.u32 %s4104_s3, 4  ;;  %s85_s30 = sshll.u32 %s4105_s29, 4  ;;  %s62_s28 = int_to_ptr.vmem [resolvable:$true] %s61_s28  ;;  %s86_s30 = int_to_ptr.vmem [resolvable:$true] %s85_s30 }
   0xf   :  { %s3880_s4 = scalar_lea.vmem %s62_s28, 16  ;;  %s3884_s0 = scalar_lea.vmem %s62_s28, 32 }
  0x10   :  { %p3881_p0 = scmp.ne.s32.totalorder %s62_s28, %s3880_s4  ;;  %p3885_p1 = scmp.lt.s32.totalorder %s62_s28, %s62_s28 }
  0x11   :  { %p3886_p2 = scmp.lt.s32.totalorder %s3884_s0, %s3880_s4 }
  0x13   :  { %p3887_p3 = por %p3886_p2, %p3885_p1 }
  0x15   :  { %p3888_p4 = pnand %p3887_p3, %p3881_p0 }
  0x17   :  { %3891 = shalt.err (!%p3888_p4)
}
  0x18   :  { %64 = dma.hbm_to_vmem [thread:$0]  %s4757_s7, 16, %s62_s28, [#allocation6]  }
  0x19   :  { %s3900_s5 = scalar_lea.vmem %s86_s30, 16  ;;  %s3904_s24 = scalar_lea.vmem %s86_s30, 32 }
  0x1a   :  { %p3901_p5 = scmp.ne.s32.totalorder %s86_s30, %s3900_s5  ;;  %p3905_p6 = scmp.lt.s32.totalorder %s86_s30, %s86_s30 }
  0x1b   :  { %p3906_p7 = scmp.lt.s32.totalorder %s3904_s24, %s3900_s5 }
  0x1d   :  { %p3907_p8 = por %p3906_p7, %p3905_p6 }
  0x1f   :  { %p3908_p9 = pnand %p3907_p8, %p3901_p5 }
  0x21   :  { %3911 = shalt.err (!%p3908_p9)
}
  0x22   :  { %88 = dma.hbm_to_vmem [thread:$0]  %s4761_s11, 16, %s86_s30, [#allocation9]  }
  0x23   :  { %s4106_s26 = smov [#allocation11]   ;;  %s4107_s27 = smov [#allocation14]  }
  0x24   :  { %s105_s2 = sshll.u32 %s4106_s26, 4  ;;  %s125_s3 = sshll.u32 %s4107_s27, 4  ;;  %s106_s2 = int_to_ptr.vmem [resolvable:$true] %s105_s2  ;;  %s126_s3 = int_to_ptr.vmem [resolvable:$true] %s125_s3 }
  0x25   :  { %s3920_s29 = scalar_lea.vmem %s106_s2, 16  ;;  %s3924_s7 = scalar_lea.vmem %s106_s2, 32 }
  0x26   :  { %p3921_p10 = scmp.ne.s32.totalorder %s106_s2, %s3920_s29  ;;  %p3925_p11 = scmp.lt.s32.totalorder %s106_s2, %s106_s2 }
  0x27   :  { %p3926_p12 = scmp.lt.s32.totalorder %s3924_s7, %s3920_s29 }
  0x29   :  { %p3927_p13 = por %p3926_p12, %p3925_p11 }
  0x2b   :  { %p3928_p0 = pnand %p3927_p13, %p3921_p10 }
  0x2d   :  { %3931 = shalt.err (!%p3928_p0)
}
  0x2e   :  { %108 = dma.hbm_to_vmem [thread:$0]  %s4763_s13, 16, %s106_s2, [#allocation12]  }
  0x2f   :  { %s3940_s0 = scalar_lea.vmem %s126_s3, 16  ;;  %s3944_s11 = scalar_lea.vmem %s126_s3, 32 }
  0x30   :  { %p3941_p1 = scmp.ne.s32.totalorder %s126_s3, %s3940_s0  ;;  %p3945_p2 = scmp.lt.s32.totalorder %s126_s3, %s126_s3 }
  0x31   :  { %p3946_p3 = scmp.lt.s32.totalorder %s3944_s11, %s3940_s0 }
  0x33   :  { %p3947_p4 = por %p3946_p3, %p3945_p2 }
  0x35   :  { %p3948_p5 = pnand %p3947_p4, %p3941_p1 }
  0x37   :  { %3951 = shalt.err (!%p3948_p5)
}
  0x38   :  { %128 = dma.hbm_to_vmem [thread:$0]  %s4765_s15, 16, %s126_s3, [#allocation15]  }
  0x39   :  { %s4108_s1 = smov [#allocation17]   ;;  %s4109_s24 = smov [#allocation3]  }
  0x3a   :  { %s149_s5 = sshll.u32 %s4108_s1, 4  ;;  %s49_s6 = sshll.u32 %s4109_s24, 4  ;;  %s150_s5 = int_to_ptr.vmem [resolvable:$true] %s149_s5  ;;  %s50_s6 = int_to_ptr.vmem [resolvable:$true] %s49_s6 }
  0x3b   :  { %s3960_s25 = scalar_lea.vmem %s150_s5, 16  ;;  %s3964_s13 = scalar_lea.vmem %s150_s5, 32 }
  0x3c   :  { %p3961_p6 = scmp.ne.s32.totalorder %s150_s5, %s3960_s25  ;;  %p3965_p7 = scmp.lt.s32.totalorder %s150_s5, %s150_s5 }
  0x3d   :  { %p3966_p8 = scmp.lt.s32.totalorder %s3964_s13, %s3960_s25 }
  0x3f   :  { %p3967_p9 = por %p3966_p8, %p3965_p7 }
  0x41   :  { %p3968_p10 = pnand %p3967_p9, %p3961_p6 }
  0x43   :  { %3971 = shalt.err (!%p3968_p10)
}
  0x44   :  { %152 = dma.hbm_to_vmem [thread:$0]  %s4769_s19, 16, %s150_s5, [#allocation18]  }
  0x45   :  { %s3980_s27 = scalar_lea.vmem %s50_s6, 16  ;;  %s3984_s15 = scalar_lea.vmem %s50_s6, 32 }
  0x46   :  { %p3981_p11 = scmp.ne.s32.totalorder %s50_s6, %s3980_s27  ;;  %p3985_p12 = scmp.lt.s32.totalorder %s50_s6, %s50_s6 }
  0x47   :  { %p3986_p13 = scmp.lt.s32.totalorder %s3984_s15, %s3980_s27 }
  0x49   :  { %p3987_p0 = por %p3986_p13, %p3985_p12 }
  0x4b   :  { %p3988_p1 = pnand %p3987_p0, %p3981_p11 }
  0x4d   :  { %3991 = shalt.err (!%p3988_p1)
}
  0x4e   :  { %s4784_s7 = sld [smem:[#allocation31_spill]]  ;;  %s4110_s28 = smov [#allocation7]  }
  0x4f   :  { %s73_s4 = sshll.u32 %s4110_s28, 4  ;;  %s4111_s0 = smov [#allocation10]   ;;  %s74_s4 = int_to_ptr.vmem [resolvable:$true] %s73_s4 }
  0x50   :  { %s95_s11 = sshll.u32 %s4111_s0, 4  ;;  %s4000_s30 = scalar_lea.vmem %s74_s4, 16  ;;  %s96_s11 = int_to_ptr.vmem [resolvable:$true] %s95_s11 }
  0x51   :  { %p4001_p2 = scmp.ne.s32.totalorder %s74_s4, %s4000_s30  ;;  %s4004_s19 = scalar_lea.vmem %s74_s4, 32 }
  0x52   :  { %p4005_p3 = scmp.lt.s32.totalorder %s74_s4, %s74_s4  ;;  %p4006_p4 = scmp.lt.s32.totalorder %s4004_s19, %s4000_s30 }
  0x54   :  { %52 = dma.hbm_to_vmem [thread:$0]  %s4784_s7, 16, %s50_s6, [#allocation4]  }
  0x55   :  { %p4007_p5 = por %p4006_p4, %p4005_p3 }
  0x57   :  { %p4008_p6 = pnand %p4007_p5, %p4001_p2 }
  0x59   :  { %4011 = shalt.err (!%p4008_p6)
}
  0x5a   :  { %76 = dma.hbm_to_vmem [thread:$0]  %s4759_s9, 16, %s74_s4, [#allocation6]  }
  0x5b   :  { %s4020_s5 = scalar_lea.vmem %s96_s11, 16  ;;  %s4024_s24 = scalar_lea.vmem %s96_s11, 32 }
  0x5c   :  { %p4021_p7 = scmp.ne.s32.totalorder %s96_s11, %s4020_s5  ;;  %p4025_p8 = scmp.lt.s32.totalorder %s96_s11, %s96_s11 }
  0x5d   :  { %p4026_p9 = scmp.lt.s32.totalorder %s4024_s24, %s4020_s5 }
  0x5f   :  { %p4027_p10 = por %p4026_p9, %p4025_p8 }
  0x61   :  { %p4028_p11 = pnand %p4027_p10, %p4021_p7 }
  0x63   :  { %4031 = shalt.err (!%p4028_p11)
}
  0x64   :  { %98 = dma.hbm_to_vmem [thread:$0]  %s4762_s12, 16, %s96_s11, [#allocation9]  }
  0x65   :  { %s4112_s13 = smov [#allocation13]   ;;  %s4113_s2 = smov [#allocation16]  }
  0x66   :  { %s115_s26 = sshll.u32 %s4112_s13, 4  ;;  %s137_s27 = sshll.u32 %s4113_s2, 4  ;;  %s116_s26 = int_to_ptr.vmem [resolvable:$true] %s115_s26  ;;  %s138_s27 = int_to_ptr.vmem [resolvable:$true] %s137_s27 }
  0x67   :  { %s4040_s15 = scalar_lea.vmem %s116_s26, 16  ;;  %s4044_s9 = scalar_lea.vmem %s116_s26, 32 }
  0x68   :  { %p4041_p12 = scmp.ne.s32.totalorder %s116_s26, %s4040_s15  ;;  %p4045_p13 = scmp.lt.s32.totalorder %s116_s26, %s116_s26 }
  0x69   :  { %p4046_p0 = scmp.lt.s32.totalorder %s4044_s9, %s4040_s15 }
  0x6b   :  { %p4047_p1 = por %p4046_p0, %p4045_p13 }
  0x6d   :  { %p4048_p2 = pnand %p4047_p1, %p4041_p12 }
  0x6f   :  { %4051 = shalt.err (!%p4048_p2)
}
  0x70   :  { %118 = dma.hbm_to_vmem [thread:$0]  %s4764_s14, 16, %s116_s26, [#allocation12]  }
  0x71   :  { %s4060_s7 = scalar_lea.vmem %s138_s27, 16  ;;  %s4064_s12 = scalar_lea.vmem %s138_s27, 32 }
  0x72   :  { %p4061_p3 = scmp.ne.s32.totalorder %s138_s27, %s4060_s7  ;;  %p4065_p4 = scmp.lt.s32.totalorder %s138_s27, %s138_s27 }
  0x73   :  { %p4066_p5 = scmp.lt.s32.totalorder %s4064_s12, %s4060_s7 }
  0x75   :  { %p4067_p6 = por %p4066_p5, %p4065_p4 }
  0x77   :  { %p4068_p7 = pnand %p4067_p6, %p4061_p3 }
  0x79   :  { %4071 = shalt.err (!%p4068_p7)
}
  0x7a   :  { %140 = dma.hbm_to_vmem [thread:$0]  %s4767_s17, 16, %s138_s27, [#allocation15]  }
  0x7b   :  { %s4114_s0 = smov [#allocation19]  }
  0x7c   :  { %s159_s11 = sshll.u32 %s4114_s0, 4  ;;  %s160_s11 = int_to_ptr.vmem [resolvable:$true] %s159_s11 }
  0x7d   :  { %s4080_s30 = scalar_lea.vmem %s160_s11, 16  ;;  %s4084_s19 = scalar_lea.vmem %s160_s11, 32 }
  0x7e   :  { %p4081_p8 = scmp.ne.s32.totalorder %s160_s11, %s4080_s30  ;;  %p4085_p9 = scmp.lt.s32.totalorder %s160_s11, %s160_s11 }
  0x7f   :  { %p4086_p10 = scmp.lt.s32.totalorder %s4084_s19, %s4080_s30 }
  0x81   :  { %p4087_p11 = por %p4086_p10, %p4085_p9 }
  0x83   :  { %p4088_p12 = pnand %p4087_p11, %p4081_p8 }
  0x85   :  { %4091 = shalt.err (!%p4088_p12)
}
  0x86   :  { %162 = dma.hbm_to_vmem [thread:$0]  %s4770_s20, 16, %s160_s11, [#allocation18]  }
  0x87   :  { %4092 = dma.done.wait [#allocation4], 16  }
  0x88   :  { %4093 = vsyncadd [#allocation4], 4294967280 }
  0x89   :  { %4094 = dma.done.wait [#allocation6], 32  }
  0x8a   :  { %4095 = vsyncadd [#allocation6], 4294967264 }
  0x8b   :  { %4096 = dma.done.wait [#allocation9], 32  }
  0x8c   :  { %4097 = vsyncadd [#allocation9], 4294967264 }
  0x8d   :  { %4098 = dma.done.wait [#allocation12], 32  }
  0x8e   :  { %4099 = vsyncadd [#allocation12], 4294967264 }
  0x8f   :  { %4100 = dma.done.wait [#allocation15], 32  }
  0x90   :  { %4101 = vsyncadd [#allocation15], 4294967264 }
  0x91   :  { %4102 = dma.done.wait [#allocation18], 32  }
  0x92   :  { %4103 = vsyncadd [#allocation18], 4294967264  ;;  %vm215_vm0 = vcmask 261120   ;;  %s4785_s5 = sld [smem:[#allocation30_spill]]  ;;  %v3296_v10 = vld [vmem:[#allocation3] ss:$0 sm:$0xff]  ;;  %v398_v27 = vlaneseq }
  0x93   :  { %s4786_s13 = sld [smem:[#allocation27_spill]]  ;;  %v4115_v17 = vmov 0.0   ;;  %vm4116_vm1 = vmmov 0   ;;  %v3299_v21 = vld [vmem:[#allocation5] ss:$0 sm:$0xff]  ;;  %vm579_vm2 = vcmask 64512  }
  0x94   :  { %s4787_s12 = sld [smem:[#allocation32_spill]]  ;;  %v4117_v25 = vmov 1966171168   ;;  %v4329_v29 = vshrl.u32 %v398_v27, 7  ;;  %vm619_vm3 = vcmask 1041409   ;;  %vm623_vm5 = vcmask 58368  }
  0x95   :  { %s4788_s17 = sld [smem:[#allocation26_spill]]  ;;  %v396_v26 = vunpack.c.l.s4 %v4117_v25  ;;  %vm1089_vm6 = vcmask 130048   ;;  %s4119_s28 = smov 64   ;;  %vm3121_vm7 = vcmask 523264  }
  0x96   :  { %s4789_s20 = sld [smem:[#allocation28_spill]]  ;;  %v4340_v34 = vsub.s32 0, %v4329_v29  ;;  %s4120_s4 = smov 88  }
  0x97   :  { %v397_v28 = vunpack.c.0.s8 %v396_v26  ;;  %s4121_s0 = smov 120   ;;  %s4122_s11 = smov 56  }
  0x98   :  { %v207_v0 = vld [vmem:[%s4785_s5 + $0x18] sm:$0xff]  ;;  %v206_v1 = vld [vmem:[%s4785_s5 + $0x10] sm:$0xff]  ;;  %v205_v3 = vld [vmem:[%s4785_s5 + $0x8] sm:$0xff]  ;;  %s4123_s30 = smov 80   ;;  %s4124_s19 = smov 112  }
  0x99   :  { %3521 = vmatprep.subr.mxu0 %v207_v0  ;;  %v4286_v2 = vld [vmem:[%s4786_s13] sm:$0xff]  ;;  %v4299_v5 = vld [vmem:[%s4786_s13 + $0x8] sm:$0xff]  ;;  %v4332_v30 = vsub.s32 %v397_v28, %v4329_v29  ;;  %s4126_s24 = smov 72   ;;  %s4127_s6 = smov 104  }
  0x9a   :  { %3522 = vmatpush3.msra.mxu0 %v207_v0  ;;  %3529 = vmatprep.mubr.msk.f32.mxu0 %vm215_vm0, %v4286_v2  ;;  %v204_v4 = vld [vmem:[%s4785_s5] sm:$0xff]  ;;  %v302_v6 = vld [vmem:[%s4787_s12 + $0x18] sm:$0xff]  ;;  %v301_v7 = vld [vmem:[%s4787_s12 + $0x10] sm:$0xff]  ;;  %s4125_s5 = smov 48   ;;  %s4128_s13 = smov 40  }
  0x9b   :  { %3523 = vmatprep.subr.mxu0 %v206_v1  ;;  %3532 = vmatprep.subr.mxu1 %v302_v6  ;;  %v300_v8 = vld [vmem:[%s4787_s12 + $0x8] sm:$0xff]  ;;  %v299_v9 = vld [vmem:[%s4787_s12] sm:$0xff]  ;;  %s4790_s12 = sld [smem:[#allocation29_spill]] }
  0x9c   :  { %3524 = vmatpush3.msra.mxu0 %v206_v1  ;;  %3533 = vmatpush3.msra.mxu1 %v302_v6  ;;  %v392_v18 = vld [vmem:[%s4788_s17] sm:$0xff]  ;;  %v393_v19 = vld [vmem:[%s4788_s17 + $0x8] sm:$0xff] }
  0x9d   :  { %3525 = vmatprep.subr.mxu0 %v205_v3  ;;  %3534 = vmatprep.subr.mxu1 %v301_v7  ;;  %637 = vst.msk [vmem:[#allocation2] sm:$0xff] %vm215_vm0, %v392_v18  ;;  %638 = vst.msk [vmem:[#allocation2 + $0x10] sm:$0xff] %vm215_vm0, %v393_v19  ;;  %v391_v31 = vld [vmem:[%s4789_s20] sm:$0x3] }
  0x9e   :  { %3526 = vmatpush3.msra.mxu0 %v205_v3  ;;  %3535 = vmatpush3.msra.mxu1 %v301_v7  ;;  %v401_v32 = vrot.slane %v391_v31, %v4332_v30  ;;  %vm616_vm4 = vcmp.lt.f32.partialorder %v391_v31, 0.0 }
  0x9f   :  { %3527 = vmatprep.subr.mxu0 %v204_v4  ;;  %3536 = vmatprep.subr.mxu1 %v300_v8 }
  0xa0   :  { %3528 = vmatpush3.msra.mxu0 %v204_v4  ;;  %3537 = vmatpush3.msra.mxu1 %v300_v8  ;;  %v409_v33 = vrot.slane %v401_v32, %v4332_v30  ;;  %v402_v35 = vcombine.high %v401_v32, %v401_v32 }
  0xa1   :  { %3530 = vmatmul.mubr.msk.f32.vlgmr.msra.gmra.mxu0 %vm215_vm0, %v4299_v5  ;;  %3538 = vmatprep.subr.mxu1 %v299_v9 }
  0xa2   :  { %3539 = vmatpush3.msra.mxu1 %v299_v9  ;;  %3543 = vmatprep.subr.mxu0 %v4115_v17  ;;  %v420_v36 = vrot.slane %v409_v33, %v4340_v34  ;;  %v416_v37 = vrot.slane %v402_v35, %v4332_v30 }
  0xa3   :  { %3545 = vmatprep.mubr.msk.f32.mxu0 %vm4116_vm1, %v4115_v17 }
  0xa4   :  { %v424_v40 = vrot.slane %v416_v37, %v4340_v34  ;;  %v659_v31 = vld [vmem:[#allocation2] sm:$0xff] }
  0xa5   :  { %v716_v32 = vsel %vm215_vm0, %v659_v31, 0.0 }
 0x161   :  { %v3531_v11 = vpop.f32.mrf.mxu0 }
 0x162   :  { %v294_v12 = vadd.f32 %v3531_v11, %v3296_v10 }
 0x163   :  { %v288_v13 = vpop.f32.mrf.mxu0 }
 0x164   :  { %v289_v14 = vadd.f32 %v3296_v10, %v288_v13  ;;  %v298_v16 = vmax.f32 %v294_v12, 0.0 }
 0x166   :  { %v297_v15 = vmax.f32 %v289_v14, 0.0 }
 0x168   :  { %3540 = vmatprep.mubr.msk.f32.mxu1 %vm215_vm0, %v297_v15 }
 0x169   :  { %3541 = vmatmul.mubr.msk.f32.vlgmr.msra.gmra.mxu1 %vm215_vm0, %v298_v16 }
 0x229   :  { %v3542_v20 = vpop.f32.mrf.mxu1 }
 0x22a   :  { %v388_v24 = vadd.f32 %v3542_v20, %v3299_v21 }
 0x22b   :  { %v382_v22 = vpop.f32.mrf.mxu1 }
 0x22c   :  { %v383_v23 = vadd.f32 %v3299_v21, %v382_v22 }
 0x22e   :  { %3544 = vmatpush3.xpose.msk.msra.mxu0 %vm215_vm0, %v383_v23 }
 0x22f   :  { %3548 = vmatprep.subr.mxu0 %v4115_v17 }
 0x231   :  { %3546 = vmatmul.mubr.msk.f32.vlgmr.msra.gmra.mxu0 %vm215_vm0, %v392_v18 }
 0x232   :  { %3549 = vmatpush3.xpose.msk.msra.mxu0 %vm215_vm0, %v388_v24  ;;  %3550 = vmatprep.mubr.msk.f32.mxu0 %vm4116_vm1, %v4115_v17  ;;  %v648_v24 = vsub.s32 1, %v4329_v29 }
 0x235   :  { %3551 = vmatmul.mubr.msk.f32.vlgmr.msra.gmra.mxu0 %vm215_vm0, %v393_v19 }
 0x2f1   :  { %v499_v38 = vpop.f32.mrf.mxu0 }
 0x2f2   :  { %v500_v39 = vadd.f32 %v499_v38, %v420_v36 }
 0x2f3   :  { %v3547_v41 = vpop.f32.mrf.mxu0 }
 0x2f4   :  { %v580_v42 = vsel %vm579_vm2, %v500_v39, -inf }
 0x2f5   :  { %581 = vmax.xlane.f32.xlu0 %v580_v42  ;;  %v575_v43 = vpop.f32.mrf.mxu0 }
 0x2f6   :  { %v576_v44 = vadd.f32 %v575_v43, %v424_v40 }
 0x2f7   :  { %v3552_v45 = vpop.f32.mrf.mxu0 }
 0x2f8   :  { %v583_v46 = vsel %vm579_vm2, %v576_v44, -inf }
 0x2f9   :  { %584 = vmax.xlane.f32.xlu0 %v583_v46 }
 0x37e   :  { %v582_v47 = vpop.xlane.xlu0 %581 }
 0x37f   :  { %v586_v48 = vsub.f32 %v500_v39, %v582_v47  ;;  %v661_v39 = vld [vmem:[#allocation2 + $0x10] sm:$0xff] }
 0x380   :  { %v722_v42 = vsel %vm215_vm0, %v661_v39, 0.0 }
 0x381   :  { %v588_v49 = vmul.f32 1.442695, %v586_v48 }
 0x382   :  { %v585_v50 = vpop.xlane.xlu0 %584 }
 0x383   :  { %3772 = vpow2.f32 %v588_v49  ;;  %v587_v51 = vsub.f32 %v576_v44, %v585_v50 }
 0x385   :  { %v590_v52 = vmul.f32 1.442695, %v587_v51 }
 0x387   :  { %3774 = vpow2.f32 %v590_v52 }
 0x390   :  { %v3773_v53 = vpop.eup %3772 }
 0x391   :  { %v592_v54 = vsel %vm579_vm2, %v3773_v53, 0.0 }
 0x392   :  { %593 = vadd.xlane.f32.xlu1 %v592_v54 }
 0x394   :  { %v3775_v55 = vpop.eup %3774 }
 0x395   :  { %v595_v56 = vsel %vm579_vm2, %v3775_v55, 0.0 }
 0x396   :  { %596 = vadd.xlane.f32.xlu1 %v595_v56 }
 0x41b   :  { %v594_v57 = vpop.xlane.xlu1 %593 }
 0x41c   :  { %3776 = vrcp.f32 %v594_v57 }
 0x41f   :  { %v597_v58 = vpop.xlane.xlu1 %596 }
 0x420   :  { %3778 = vrcp.f32 %v597_v58 }
 0x429   :  { %v3777_v59 = vpop.eup %3776 }
 0x42a   :  { %v599_v60 = vmul.f32 %v3777_v59, %v3773_v53 }
 0x42c   :  { %v602_v61 = vsel %vm579_vm2, %v599_v60, 0.0 }
 0x42d   :  { %v3779_v62 = vpop.eup %3778  ;;  %v603_v63 = vrot.slane %v602_v61, 4 }
 0x42e   :  { %v601_v0 = vmul.f32 %v3779_v62, %v3775_v55  ;;  %v689_v62 = vld [vmem:[%s4758_s8 + $0x10] sm:$0xff] }
 0x42f   :  { %v604_v1 = vadd.f32 %v603_v63, %v602_v61  ;;  %v690_v61 = vld [vmem:[%s4758_s8 + $0x18] sm:$0xff]  ;;  %v688_v63 = vld [vmem:[%s4758_s8 + $0x8] sm:$0xff] }
 0x430   :  { %v609_v3 = vsel %vm579_vm2, %v601_v0, 0.0  ;;  %3553 = vmatprep.subr.mxu0 %v690_v61  ;;  %v687_v0 = vld [vmem:[%s4758_s8] sm:$0xff]  ;;  %s4118_s8 = smov 96  }
 0x431   :  { %v605_v4 = vrot.slane %v604_v1, 2  ;;  %v610_v6 = vrot.slane %v609_v3, 4  ;;  %3554 = vmatpush3.msra.mxu0 %v690_v61 }
 0x432   :  { %3555 = vmatprep.subr.mxu0 %v689_v62 }
 0x433   :  { %v606_v7 = vadd.f32 %v605_v4, %v604_v1  ;;  %v611_v8 = vadd.f32 %v610_v6, %v609_v3  ;;  %3556 = vmatpush3.msra.mxu0 %v689_v62 }
 0x434   :  { %3557 = vmatprep.subr.mxu0 %v688_v63 }
 0x435   :  { %v612_v9 = vrot.slane %v611_v8, 2  ;;  %v607_v10 = vrot.slane %v606_v7, 1  ;;  %3558 = vmatpush3.msra.mxu0 %v688_v63 }
 0x436   :  { %3559 = vmatprep.subr.mxu0 %v687_v0 }
 0x437   :  { %v613_v11 = vadd.f32 %v612_v9, %v611_v8  ;;  %v608_v13 = vadd.f32 %v607_v10, %v606_v7  ;;  %3560 = vmatpush3.msra.mxu0 %v687_v0  ;;  %v3307_v7 = vld [vmem:[#allocation10] ss:$0 sm:$0xff]  ;;  %v3308_v9 = vld [vmem:[#allocation11] ss:$0 sm:$0xff] }
 0x439   :  { %v614_v12 = vrot.slane %v613_v11, 1 }
 0x43b   :  { %v615_v14 = vadd.f32 %v614_v12, %v613_v11 }
 0x43d   :  { %v620_v15 = vsel %vm619_vm3, %v615_v14, %v608_v13 }
 0x43e   :  { %v622_v16 = vsel %vm616_vm4, -1e+18, %v620_v15 }
 0x43f   :  { %v624_v17 = vsel %vm623_vm5, %v622_v16, -inf }
 0x440   :  { %625 = vmax.xlane.f32.xlu0 %v624_v17 }
 0x4c9   :  { %v626_v18 = vpop.xlane.xlu0 %625 }
 0x4ca   :  { %v627_v19 = vsub.f32 %v622_v16, %v626_v18 }
 0x4cc   :  { %v628_v20 = vmul.f32 1.442695, %v627_v19 }
 0x4ce   :  { %3780 = vpow2.f32 %v628_v20 }
 0x4db   :  { %v3781_v21 = vpop.eup %3780 }
 0x4dc   :  { %v630_v22 = vsel %vm623_vm5, %v3781_v21, 0.0 }
 0x4dd   :  { %631 = vadd.xlane.f32.xlu1 %v630_v22 }
 0x566   :  { %v632_v23 = vpop.xlane.xlu1 %631 }
 0x567   :  { %3782 = vrcp.f32 %v632_v23 }
 0x574   :  { %v3783_v25 = vpop.eup %3782 }
 0x575   :  { %v634_v26 = vmul.f32 %v3783_v25, %v3781_v21 }
 0x577   :  { %v649_v27 = vrot.slane %v634_v26, %v648_v24  ;;  %v642_v28 = vrot.slane %v634_v26, %v4340_v34 }
 0x579   :  { %651 = vbcast.lane.b32.xlu1 %v649_v27, 256  ;;  %644 = vbcast.lane.b32.xlu0 %v642_v28, 256 }
 0x59d   :  { %717 = vadd.xlane.f32.xlu1 %v716_v32 }
 0x5eb   :  { %v652_v33 = vpop.permute.xlu1 %651  ;;  %v645_v35 = vpop.permute.xlu0 %644 }
 0x5ec   :  { %v656_v36 = vmul.f32 %v652_v33, %v4299_v5  ;;  %v655_v37 = vmul.f32 %v645_v35, %v4286_v2 }
 0x5ee   :  { %658 = vst.msk [vmem:[#allocation2 + $0x18] sm:$0xff] %vm215_vm0, %v656_v36  ;;  %657 = vst.msk [vmem:[#allocation2 + $0x8] sm:$0xff] %vm215_vm0, %v655_v37  ;;  %v3309_v36 = vld [vmem:[#allocation7] ss:$0 sm:$0xff] }
 0x5f5   :  { %v662_v29 = vld [vmem:[#allocation2 + $0x18] sm:$0xff]  ;;  %v660_v38 = vld [vmem:[#allocation2 + $0x8] sm:$0xff] }
 0x5f6   :  { %v725_v40 = vsel %vm215_vm0, %v662_v29, 0.0  ;;  %v719_v41 = vsel %vm215_vm0, %v660_v38, 0.0 }
 0x5f7   :  { %726 = vadd.xlane.f32.xlu1 %v725_v40  ;;  %720 = vadd.xlane.f32.xlu0 %v719_v41 }
 0x5fb   :  { %723 = vadd.xlane.f32.xlu0 %v722_v42 }
 0x626   :  { %v718_v43 = vpop.xlane.xlu1 %717 }
 0x627   :  { %v729_v5 = vmul.f32 0.03125, %v718_v43 }
 0x629   :  { %v733_v44 = vsub.f32 %v659_v31, %v729_v5 }
 0x62b   :  { %v737_v2 = vmul.f32 %v733_v44, %v733_v44 }
 0x62d   :  { %v741_v45 = vsel %vm215_vm0, %v737_v2, 0.0 }
 0x62e   :  { %742 = vadd.xlane.f32.xlu0 %v741_v45 }
 0x680   :  { %v727_v46 = vpop.xlane.xlu1 %726  ;;  %v721_v47 = vpop.xlane.xlu0 %720 }
 0x681   :  { %v732_v48 = vmul.f32 0.03125, %v727_v46  ;;  %v730_v49 = vmul.f32 0.03125, %v721_v47  ;;  %v3306_v46 = vld.sshfl [vmem:[%s4790_s12] sm:$0x11 pattern:$0x75316420] }
 0x682   :  { %v679_v47 = vrot.slane %v3306_v46, %v4332_v30 }
 0x683   :  { %v736_v50 = vsub.f32 %v662_v29, %v732_v48  ;;  %v734_v51 = vsub.f32 %v660_v38, %v730_v49 }
 0x684   :  { %v724_v52 = vpop.xlane.xlu0 %723  ;;  %v4414_v48 = vrot.slane %v679_v47, %v4340_v34 }
 0x685   :  { %v731_v53 = vmul.f32 0.03125, %v724_v52  ;;  %v738_v54 = vmul.f32 %v734_v51, %v734_v51  ;;  %v740_v57 = vmul.f32 %v736_v50, %v736_v50 }
 0x687   :  { %v735_v55 = vsub.f32 %v661_v39, %v731_v53  ;;  %v744_v56 = vsel %vm215_vm0, %v738_v54, 0.0  ;;  %v750_v59 = vsel %vm215_vm0, %v740_v57, 0.0 }
 0x688   :  { %745 = vadd.xlane.f32.xlu1 %v744_v56 }
 0x689   :  { %v739_v58 = vmul.f32 %v735_v55, %v735_v55 }
 0x68b   :  { %v747_v60 = vsel %vm215_vm0, %v739_v58, 0.0 }
 0x68c   :  { %751 = vadd.xlane.f32.xlu1 %v750_v59  ;;  %748 = vadd.xlane.f32.xlu0 %v747_v60 }
 0x6b7   :  { %v743_v1 = vpop.xlane.xlu0 %742 }
 0x6b8   :  { %v753_v3 = vmul.f32 0.03125, %v743_v1 }
 0x6ba   :  { %v757_v4 = vadd.f32 1e-05, %v753_v3 }
 0x6bc   :  { %3784 = vrsqrt.f32 %v757_v4 }
 0x6c9   :  { %v3785_v6 = vpop.eup %3784 }
 0x6ca   :  { %v765_v8 = vmul.f32 %v3785_v6, %v733_v44 }
 0x6cc   :  { %v775_v10 = vmul.f32 %v3307_v7, %v765_v8 }
 0x6ce   :  { %v785_v11 = vadd.f32 %v3308_v9, %v775_v10 }
 0x6d0   :  { %3561 = vmatprep.mubr.msk.f32.mxu0 %vm215_vm0, %v785_v11 }
 0x711   :  { %v746_v12 = vpop.xlane.xlu1 %745 }
 0x712   :  { %v754_v13 = vmul.f32 0.03125, %v746_v12 }
 0x714   :  { %v758_v14 = vadd.f32 1e-05, %v754_v13 }
 0x715   :  { %v752_v15 = vpop.xlane.xlu1 %751  ;;  %v749_v16 = vpop.xlane.xlu0 %748 }
 0x716   :  { %3786 = vrsqrt.f32 %v758_v14  ;;  %v756_v17 = vmul.f32 0.03125, %v752_v15  ;;  %v755_v18 = vmul.f32 0.03125, %v749_v16 }
 0x718   :  { %v760_v19 = vadd.f32 1e-05, %v756_v17  ;;  %v759_v20 = vadd.f32 1e-05, %v755_v18 }
 0x71a   :  { %3788 = vrsqrt.f32 %v760_v19 }
 0x71b   :  { %3790 = vrsqrt.f32 %v759_v20 }
 0x723   :  { %v3787_v21 = vpop.eup %3786 }
 0x724   :  { %v766_v22 = vmul.f32 %v3787_v21, %v734_v51 }
 0x726   :  { %v776_v23 = vmul.f32 %v3307_v7, %v766_v22 }
 0x727   :  { %v3789_v24 = vpop.eup %3788 }
 0x728   :  { %v3791_v25 = vpop.eup %3790  ;;  %v786_v26 = vadd.f32 %v3308_v9, %v776_v23  ;;  %v768_v27 = vmul.f32 %v3789_v24, %v736_v50  ;;  %v672_v50 = vcombine.high %v3306_v46, %v3306_v46 }
 0x729   :  { %v767_v28 = vmul.f32 %v3791_v25, %v735_v55 }
 0x72a   :  { %3562 = vmatmul.mubr.msk.f32.vlgmr.msra.gmra.mxu0 %vm215_vm0, %v786_v26  ;;  %v778_v31 = vmul.f32 %v3307_v7, %v768_v27  ;;  %v686_v55 = vrot.slane %v672_v50, %v4332_v30 }
 0x72b   :  { %v777_v32 = vmul.f32 %v3307_v7, %v767_v28 }
 0x72c   :  { %v788_v33 = vadd.f32 %v3308_v9, %v778_v31  ;;  %v4422_v61 = vrot.slane %v686_v55, %v4340_v34 }
 0x72d   :  { %v787_v35 = vadd.f32 %v3308_v9, %v777_v32 }
 0x72f   :  { %3564 = vmatprep.mubr.msk.f32.mxu0 %vm215_vm0, %v787_v35 }
 0x730   :  { %3565 = vmatmul.mubr.msk.f32.gmra.mxu0 %vm215_vm0, %v788_v33 }
 0x7ea   :  { %v3563_v37 = vpop.f32.mrf.mxu0 }
 0x7eb   :  { %v4381_v29 = vadd.f32 %v3563_v37, %v3309_v36 }
 0x7ec   :  { %v873_v38 = vpop.f32.mrf.mxu0 }
 0x7ed   :  { %v4383_v39 = vadd.f32 %v3309_v36, %v873_v38  ;;  %896 = vrot.lane.b32.xlu0 %v4381_v29, %s4118_s8 }
 0x7ef   :  { %894 = vrot.lane.b32.xlu1 %v4383_v39, %s4118_s8  ;;  %3571 = vmatprep.mubr.msk.f32.mxu1 %vm579_vm2, %v4383_v39 }
 0x7f0   :  { %v3566_v40 = vpop.f32.mrf.mxu0 }
 0x7f1   :  { %v4389_v41 = vadd.f32 %v3566_v40, %v3309_v36 }
 0x7f2   :  { %v883_v42 = vpop.f32.mrf.mxu0 }
 0x7f3   :  { %v4391_v43 = vadd.f32 %v3309_v36, %v883_v42  ;;  %986 = vrot.lane.b32.xlu1 %v4389_v41, %s4118_s8 }
 0x7f5   :  { %3578 = vmatprep.mubr.msk.f32.mxu0 %vm579_vm2, %v4391_v43 }
 0x7f7   :  { %984 = vrot.lane.b32.xlu1 %v4391_v43, %s4118_s8 }
 0x85f   :  { %v897_v5 = vpop.permute.xlu0 %896 }
 0x860   :  { %3567 = vmatprep.subr.msk.mxu1 %vm579_vm2, %v897_v5 }
 0x861   :  { %3568 = vmatpush3.xpose.msk.msra.mxu1 %vm579_vm2, %v897_v5  ;;  %v895_v44 = vpop.permute.xlu1 %894 }
 0x862   :  { %3569 = vmatprep.subr.msk.mxu1 %vm579_vm2, %v895_v44 }
 0x865   :  { %3570 = vmatpush3.xpose.msk.msra.mxu1 %vm579_vm2, %v895_v44  ;;  %v987_v2 = vpop.permute.xlu1 %986 }
 0x866   :  { %3574 = vmatprep.subr.msk.mxu0 %vm579_vm2, %v987_v2 }
 0x867   :  { %3575 = vmatpush3.xpose.msk.msra.mxu0 %vm579_vm2, %v987_v2 }
 0x868   :  { %3572 = vmatmul.mubr.msk.f32.vlgmr.msra.gmra.mxu1 %vm579_vm2, %v4381_v29 }
 0x869   :  { %v985_v45 = vpop.permute.xlu1 %984 }
 0x86a   :  { %3576 = vmatprep.subr.msk.mxu0 %vm579_vm2, %v985_v45 }
 0x86b   :  { %3577 = vmatpush3.xpose.msk.msra.mxu0 %vm579_vm2, %v985_v45 }
 0x86e   :  { %3579 = vmatmul.mubr.msk.f32.vlgmr.msra.gmra.mxu0 %vm579_vm2, %v4389_v41 }
 0x928   :  { %v3573_v49 = vpop.f32.mrf.mxu1 }
 0x929   :  { %v1072_v51 = vmul.f32 0.35355338, %v3573_v49 }
 0x92a   :  { %v973_v52 = vpop.f32.mrf.mxu1 }
 0x92b   :  { %v1071_v53 = vmul.f32 0.35355338, %v973_v52  ;;  %v1086_v54 = vadd.f32 %v4414_v48, %v1072_v51 }
 0x92d   :  { %v1093_v56 = vsel %vm1089_vm6, %v1086_v54, -inf  ;;  %v1085_v57 = vadd.f32 %v4414_v48, %v1071_v53 }
 0x92e   :  { %v3580_v58 = vpop.f32.mrf.mxu0  ;;  %1094 = vmax.xlane.f32.xlu1 %v1093_v56 }
 0x92f   :  { %v1090_v59 = vsel %vm1089_vm6, %v1085_v57, -inf  ;;  %v1074_v62 = vmul.f32 0.35355338, %v3580_v58 }
 0x930   :  { %v1062_v60 = vpop.f32.mrf.mxu0  ;;  %1091 = vmax.xlane.f32.xlu0 %v1090_v59 }
 0x931   :  { %v1073_v63 = vmul.f32 0.35355338, %v1062_v60  ;;  %v1088_v30 = vadd.f32 %v4422_v61, %v1074_v62 }
 0x933   :  { %v1087_v0 = vadd.f32 %v4422_v61, %v1073_v63  ;;  %v1099_v3 = vsel %vm1089_vm6, %v1088_v30, -inf }
 0x935   :  { %v1096_v1 = vsel %vm1089_vm6, %v1087_v0, -inf }
 0x936   :  { %1097 = vmax.xlane.f32.xlu0 %v1096_v1 }
 0x93a   :  { %1100 = vmax.xlane.f32.xlu0 %v1099_v3 }
 0x93f   :  { %1134 = vrot.lane.b32.xlu1 %v4383_v39, %s4119_s28 }
 0x943   :  { %1223 = vrot.lane.b32.xlu1 %v4389_v41, %s4119_s28 }
 0x947   :  { %1314 = vrot.lane.b32.xlu1 %v4381_v29, %s4120_s4 }
 0x94b   :  { %1312 = vrot.lane.b32.xlu1 %v4383_v39, %s4120_s4 }
 0x94f   :  { %1308 = vrot.lane.b32.xlu1 %v4383_v39, %s4121_s0 }
 0x950   :  { %1136 = vrot.lane.b32.xlu0 %v4381_v29, %s4119_s28 }
 0x954   :  { %1221 = vrot.lane.b32.xlu0 %v4391_v43, %s4119_s28 }
 0x958   :  { %1405 = vrot.lane.b32.xlu0 %v4389_v41, %s4120_s4 }
 0x9b7   :  { %v1095_v34 = vpop.xlane.xlu1 %1094 }
 0x9b8   :  { %v1103_v4 = vsub.f32 %v1086_v54, %v1095_v34 }
 0x9b9   :  { %v1092_v6 = vpop.xlane.xlu0 %1091 }
 0x9ba   :  { %v1108_v7 = vmul.f32 1.442695, %v1103_v4  ;;  %v1102_v8 = vsub.f32 %v1085_v57, %v1092_v6 }
 0x9bb   :  { %v1135_v9 = vpop.permute.xlu1 %1134 }
 0x9bc   :  { %3792 = vpow2.f32 %v1108_v7  ;;  %v1106_v10 = vmul.f32 1.442695, %v1102_v8 }
 0x9be   :  { %3794 = vpow2.f32 %v1106_v10 }
 0x9bf   :  { %v1224_v11 = vpop.permute.xlu1 %1223  ;;  %v1098_v12 = vpop.xlane.xlu0 %1097 }
 0x9c0   :  { %v1104_v13 = vsub.f32 %v1087_v0, %v1098_v12 }
 0x9c2   :  { %v1110_v14 = vmul.f32 1.442695, %v1104_v13 }
 0x9c3   :  { %v1315_v15 = vpop.permute.xlu1 %1314  ;;  %v1101_v16 = vpop.xlane.xlu0 %1100 }
 0x9c4   :  { %3796 = vpow2.f32 %v1110_v14  ;;  %v1105_v17 = vsub.f32 %v1088_v30, %v1101_v16  ;;  %3595 = vmatprep.subr.msk.mxu0 %vm579_vm2, %v1315_v15 }
 0x9c5   :  { %3596 = vmatpush3.xpose.msk.msra.mxu0 %vm579_vm2, %v1315_v15 }
 0x9c6   :  { %v1112_v18 = vmul.f32 1.442695, %v1105_v17 }
 0x9c7   :  { %v1313_v19 = vpop.permute.xlu1 %1312  ;;  %v1137_v20 = vpop.permute.xlu0 %1136 }
 0x9c8   :  { %3798 = vpow2.f32 %v1112_v18  ;;  %3581 = vmatprep.subr.mxu1 %v1137_v20  ;;  %3597 = vmatprep.subr.msk.mxu0 %vm579_vm2, %v1313_v19 }
 0x9c9   :  { %v3793_v21 = vpop.eup %3792  ;;  %3582 = vmatpush3.msra.mxu1 %v1137_v20  ;;  %3598 = vmatpush3.xpose.msk.msra.mxu0 %vm579_vm2, %v1313_v19 }
 0x9ca   :  { %3583 = vmatprep.subr.mxu1 %v1135_v9  ;;  %v1117_v22 = vsel %vm1089_vm6, %v3793_v21, 0.0 }
 0x9cb   :  { %v3795_v23 = vpop.eup %3794  ;;  %1118 = vadd.xlane.f32.xlu1 %v1117_v22  ;;  %v1309_v24 = vpop.permute.xlu1 %1308  ;;  %3584 = vmatpush3.msra.mxu1 %v1135_v9 }
 0x9cc   :  { %3588 = vmatprep.subr.mxu1 %v1224_v11  ;;  %3599 = vmatprep.mubr.msk.f32.mxu0 %vm579_vm2, %v1309_v24  ;;  %v1114_v25 = vsel %vm1089_vm6, %v3795_v23, 0.0  ;;  %v1222_v32 = vpop.permute.xlu0 %1221 }
 0x9cd   :  { %1115 = vadd.xlane.f32.xlu0 %v1114_v25 }
 0x9d0   :  { %v1406_v33 = vpop.permute.xlu0 %1405 }
 0x9d1   :  { %v3797_v26 = vpop.eup %3796 }
 0x9d2   :  { %v1120_v27 = vsel %vm1089_vm6, %v3797_v26, 0.0 }
 0x9d3   :  { %1121 = vadd.xlane.f32.xlu0 %v1120_v27 }
 0x9d5   :  { %v3799_v28 = vpop.eup %3798 }
 0x9d6   :  { %v1123_v31 = vsel %vm1089_vm6, %v3799_v28, 0.0 }
 0x9d7   :  { %1124 = vadd.xlane.f32.xlu1 %v1123_v31 }
 0x9e8   :  { %1403 = vrot.lane.b32.xlu1 %v4391_v43, %s4120_s4 }
 0x9e9   :  { %1310 = vrot.lane.b32.xlu0 %v4381_v29, %s4121_s0 }
 0x9ec   :  { %1401 = vrot.lane.b32.xlu1 %v4389_v41, %s4121_s0 }
 0x9ed   :  { %1399 = vrot.lane.b32.xlu0 %v4391_v43, %s4121_s0 }
 0xa54   :  { %v1119_v35 = vpop.xlane.xlu1 %1118 }
 0xa55   :  { %3800 = vrcp.f32 %v1119_v35 }
 0xa56   :  { %v1116_v36 = vpop.xlane.xlu0 %1115 }
 0xa57   :  { %3802 = vrcp.f32 %v1116_v36 }
 0xa5c   :  { %v1122_v37 = vpop.xlane.xlu0 %1121 }
 0xa5d   :  { %3804 = vrcp.f32 %v1122_v37 }
 0xa60   :  { %v1125_v38 = vpop.xlane.xlu1 %1124  ;;  %v1311_v40 = vpop.permute.xlu0 %1310 }
 0xa61   :  { %3806 = vrcp.f32 %v1125_v38  ;;  %3600 = vmatmul.mubr.msk.f32.vlgmr.msra.gmra.mxu0 %vm579_vm2, %v1311_v40 }
 0xa62   :  { %v3801_v42 = vpop.eup %3800 }
 0xa63   :  { %v1129_v2 = vmul.f32 %v3801_v42, %v3793_v21 }
 0xa64   :  { %v3803_v5 = vpop.eup %3802  ;;  %v1400_v50 = vpop.permute.xlu0 %1399 }
 0xa65   :  { %v1127_v44 = vmul.f32 %v3803_v5, %v3795_v23  ;;  %v1404_v51 = vpop.permute.xlu1 %1403 }
 0xa67   :  { %3585 = vmatprep.mubr.msk.f32.mxu1 %vm1089_vm6, %v1127_v44  ;;  %v693_v44 = vld [vmem:[%s4760_s10 + $0x8] sm:$0xff] }
 0xa68   :  { %3586 = vmatmul.mubr.msk.f32.vlgmr.msra.gmra.mxu1 %vm1089_vm6, %v1129_v2 }
 0xa69   :  { %3589 = vmatpush3.msra.mxu1 %v1224_v11  ;;  %v1402_v52 = vpop.permute.xlu1 %1401 }
 0xa6a   :  { %v3805_v45 = vpop.eup %3804  ;;  %3590 = vmatprep.subr.mxu1 %v1222_v32 }
 0xa6b   :  { %3591 = vmatpush3.msra.mxu1 %v1222_v32  ;;  %v1131_v46 = vmul.f32 %v3805_v45, %v3797_v26 }
 0xa6c   :  { %3602 = vmatprep.subr.msk.mxu1 %vm579_vm2, %v1406_v33 }
 0xa6d   :  { %3592 = vmatprep.mubr.msk.f32.mxu1 %vm1089_vm6, %v1131_v46 }
 0xa6e   :  { %v3807_v47 = vpop.eup %3806 }
 0xa6f   :  { %v1133_v49 = vmul.f32 %v3807_v47, %v3799_v28 }
 0xa71   :  { %3593 = vmatmul.mubr.msk.f32.vlgmr.msra.gmra.mxu1 %vm1089_vm6, %v1133_v49 }
 0xa72   :  { %3603 = vmatpush3.xpose.msk.msra.mxu1 %vm579_vm2, %v1406_v33  ;;  %3606 = vmatprep.mubr.msk.f32.mxu1 %vm579_vm2, %v1400_v50 }
 0xa73   :  { %3604 = vmatprep.subr.msk.mxu1 %vm579_vm2, %v1404_v51 }
 0xa76   :  { %3605 = vmatpush3.xpose.msk.msra.mxu1 %vm579_vm2, %v1404_v51  ;;  %v692_v51 = vld [vmem:[%s4760_s10] sm:$0xff] }
 0xa79   :  { %3607 = vmatmul.mubr.msk.f32.vlgmr.msra.gmra.mxu1 %vm579_vm2, %v1402_v52 }
 0xb21   :  { %v3601_v53 = vpop.f32.mrf.mxu0 }
 0xb22   :  { %v1491_v54 = vmul.f32 0.35355338, %v3601_v53 }
 0xb23   :  { %v1390_v55 = vpop.f32.mrf.mxu0 }
 0xb24   :  { %v1490_v56 = vmul.f32 0.35355338, %v1390_v55  ;;  %v1495_v57 = vadd.f32 %v1491_v54, %v4414_v48 }
 0xb26   :  { %v1501_v58 = vsel %vm1089_vm6, %v1495_v57, -inf  ;;  %v1494_v59 = vadd.f32 %v1490_v56, %v4414_v48 }
 0xb27   :  { %1502 = vmax.xlane.f32.xlu1 %v1501_v58 }
 0xb28   :  { %v1498_v60 = vsel %vm1089_vm6, %v1494_v59, -inf  ;;  %v4472_v62 = vpop.f32.mrf.mxu1 }
 0xb29   :  { %1499 = vmax.xlane.f32.xlu0 %v1498_v60 }
 0xb2a   :  { %v4474_v63 = vpop.f32.mrf.mxu1 }
 0xb31   :  { %v4476_v0 = vpop.f32.mrf.mxu1 }
 0xb33   :  { %v4478_v1 = vpop.f32.mrf.mxu1 }
 0xb39   :  { %v3608_v30 = vpop.f32.mrf.mxu1 }
 0xb3a   :  { %v1493_v34 = vmul.f32 0.35355338, %v3608_v30 }
 0xb3b   :  { %v1481_v3 = vpop.f32.mrf.mxu1 }
 0xb3c   :  { %v1492_v4 = vmul.f32 0.35355338, %v1481_v3  ;;  %v1497_v8 = vadd.f32 %v1493_v34, %v4422_v61 }
 0xb3e   :  { %v1496_v6 = vadd.f32 %v1492_v4, %v4422_v61  ;;  %v1507_v9 = vsel %vm1089_vm6, %v1497_v8, -inf }
 0xb40   :  { %v1504_v7 = vsel %vm1089_vm6, %v1496_v6, -inf }
 0xb41   :  { %1505 = vmax.xlane.f32.xlu0 %v1504_v7 }
 0xb45   :  { %1508 = vmax.xlane.f32.xlu0 %v1507_v9 }
 0xbb0   :  { %v1503_v10 = vpop.xlane.xlu1 %1502 }
 0xbb1   :  { %v1511_v11 = vsub.f32 %v1495_v57, %v1503_v10 }
 0xbb2   :  { %v1500_v12 = vpop.xlane.xlu0 %1499 }
 0xbb3   :  { %v1516_v13 = vmul.f32 1.442695, %v1511_v11  ;;  %v1510_v14 = vsub.f32 %v1494_v59, %v1500_v12 }
 0xbb5   :  { %3808 = vpow2.f32 %v1516_v13  ;;  %v1514_v15 = vmul.f32 1.442695, %v1510_v14 }
 0xbb7   :  { %3810 = vpow2.f32 %v1514_v15 }
 0xbc2   :  { %v3809_v16 = vpop.eup %3808 }
 0xbc3   :  { %v1525_v17 = vsel %vm1089_vm6, %v3809_v16, 0.0 }
 0xbc4   :  { %v3811_v18 = vpop.eup %3810  ;;  %1526 = vadd.xlane.f32.xlu1 %v1525_v17 }
 0xbc5   :  { %v1522_v19 = vsel %vm1089_vm6, %v3811_v18, 0.0 }
 0xbc6   :  { %1523 = vadd.xlane.f32.xlu0 %v1522_v19 }
 0xbca   :  { %v1506_v20 = vpop.xlane.xlu0 %1505 }
 0xbcb   :  { %v1512_v21 = vsub.f32 %v1496_v6, %v1506_v20 }
 0xbcd   :  { %v1518_v22 = vmul.f32 1.442695, %v1512_v21 }
 0xbce   :  { %v1509_v23 = vpop.xlane.xlu0 %1508 }
 0xbcf   :  { %3812 = vpow2.f32 %v1518_v22  ;;  %v1513_v24 = vsub.f32 %v1497_v8, %v1509_v23 }
 0xbd1   :  { %v1520_v25 = vmul.f32 1.442695, %v1513_v24 }
 0xbd3   :  { %3814 = vpow2.f32 %v1520_v25 }
 0xbdc   :  { %v3813_v26 = vpop.eup %3812 }
 0xbdd   :  { %v1528_v27 = vsel %vm1089_vm6, %v3813_v26, 0.0 }
 0xbde   :  { %1529 = vadd.xlane.f32.xlu0 %v1528_v27 }
 0xbe0   :  { %v3815_v28 = vpop.eup %3814 }
 0xbe1   :  { %v1531_v31 = vsel %vm1089_vm6, %v3815_v28, 0.0 }
 0xbe2   :  { %1532 = vadd.xlane.f32.xlu1 %v1531_v31 }
 0xbf3   :  { %1542 = vrot.lane.b32.xlu1 %v4383_v39, %s4122_s11 }
 0xbf4   :  { %1544 = vrot.lane.b32.xlu0 %v4381_v29, %s4122_s11 }
 0xbf7   :  { %1631 = vrot.lane.b32.xlu1 %v4389_v41, %s4122_s11 }
 0xbf8   :  { %1916 = vrot.lane.b32.xlu0 %v4381_v29, %s4123_s30 }
 0xbfb   :  { %1629 = vrot.lane.b32.xlu1 %v4391_v43, %s4122_s11 }
 0xbfc   :  { %2007 = vrot.lane.b32.xlu0 %v4389_v41, %s4123_s30 }
 0xbff   :  { %1914 = vrot.lane.b32.xlu1 %v4383_v39, %s4123_s30 }
 0xc00   :  { %1912 = vrot.lane.b32.xlu0 %v4381_v29, %s4124_s19 }
 0xc03   :  { %1910 = vrot.lane.b32.xlu1 %v4383_v39, %s4124_s19 }
 0xc04   :  { %2001 = vrot.lane.b32.xlu0 %v4391_v43, %s4124_s19 }
 0xc07   :  { %2005 = vrot.lane.b32.xlu1 %v4391_v43, %s4123_s30 }
 0xc0b   :  { %2003 = vrot.lane.b32.xlu1 %v4389_v41, %s4124_s19 }
 0xc4d   :  { %v1527_v35 = vpop.xlane.xlu1 %1526 }
 0xc4f   :  { %v1524_v32 = vpop.xlane.xlu0 %1523 }
 0xc50   :  { %3816 = vrcp.f32 %v1524_v32 }
 0xc51   :  { %3818 = vrcp.f32 %v1527_v35 }
 0xc5d   :  { %v3817_v33 = vpop.eup %3816 }
 0xc5e   :  { %v1535_v36 = vmul.f32 %v3817_v33, %v3811_v18  ;;  %v3819_v42 = vpop.eup %3818 }
 0xc5f   :  { %v1537_v2 = vmul.f32 %v3819_v42, %v3809_v16 }
 0xc60   :  { %3613 = vmatprep.mubr.msk.f32.mxu0 %vm1089_vm6, %v1535_v36 }
 0xc67   :  { %v1530_v37 = vpop.xlane.xlu0 %1529 }
 0xc68   :  { %3820 = vrcp.f32 %v1530_v37 }
 0xc6b   :  { %v1533_v38 = vpop.xlane.xlu1 %1532  ;;  %v1545_v40 = vpop.permute.xlu0 %1544 }
 0xc6c   :  { %3822 = vrcp.f32 %v1533_v38  ;;  %3609 = vmatprep.subr.mxu0 %v1545_v40 }
 0xc6d   :  { %3610 = vmatpush3.msra.mxu0 %v1545_v40 }
 0xc6f   :  { %v1543_v5 = vpop.permute.xlu1 %1542  ;;  %v1917_v45 = vpop.permute.xlu0 %1916 }
 0xc70   :  { %3611 = vmatprep.subr.mxu0 %v1543_v5 }
 0xc71   :  { %3612 = vmatpush3.msra.mxu0 %v1543_v5 }
 0xc72   :  { %3614 = vmatmul.mubr.msk.f32.vlgmr.msra.gmra.mxu0 %vm1089_vm6, %v1537_v2  ;;  %3623 = vmatprep.subr.mxu0 %v693_v44 }
 0xc73   :  { %v1632_v46 = vpop.permute.xlu1 %1631  ;;  %3624 = vmatpush3.msra.mxu0 %v693_v44  ;;  %v2008_v52 = vpop.permute.xlu0 %2007 }
 0xc74   :  { %3616 = vmatprep.subr.mxu1 %v1632_v46  ;;  %3639 = vmatprep.subr.msk.mxu0 %vm579_vm2, %v1917_v45 }
 0xc75   :  { %v3821_v47 = vpop.eup %3820  ;;  %3617 = vmatpush3.msra.mxu1 %v1632_v46 }
 0xc76   :  { %v1539_v49 = vmul.f32 %v3821_v47, %v3813_v26 }
 0xc77   :  { %v1630_v50 = vpop.permute.xlu1 %1629  ;;  %v1913_v56 = vpop.permute.xlu0 %1912 }
 0xc78   :  { %3618 = vmatprep.subr.mxu1 %v1630_v50  ;;  %3620 = vmatprep.mubr.msk.f32.mxu1 %vm1089_vm6, %v1539_v49 }
 0xc79   :  { %v3823_v53 = vpop.eup %3822  ;;  %3619 = vmatpush3.msra.mxu1 %v1630_v50 }
 0xc7a   :  { %3631 = vmatprep.subr.mxu1 %v692_v51  ;;  %v1541_v54 = vmul.f32 %v3823_v53, %v3815_v28 }
 0xc7b   :  { %v1915_v55 = vpop.permute.xlu1 %1914  ;;  %v2002_v59 = vpop.permute.xlu0 %2001 }
 0xc7c   :  { %3621 = vmatmul.mubr.msk.f32.vlgmr.msra.gmra.mxu1 %vm1089_vm6, %v1541_v54 }
 0xc7d   :  { %3632 = vmatpush3.msra.mxu1 %v692_v51  ;;  %3633 = vmatprep.mubr.msk.f32.mxu1 %vm579_vm2, %v4474_v63 }
 0xc7e   :  { %3646 = vmatprep.subr.msk.mxu1 %vm579_vm2, %v2008_v52 }
 0xc7f   :  { %v1911_v57 = vpop.permute.xlu1 %1910 }
 0xc80   :  { %3634 = vmatmul.mubr.msk.f32.vlgmr.msra.gmra.mxu1 %vm579_vm2, %v4472_v62 }
 0xc81   :  { %3647 = vmatpush3.xpose.msk.msra.mxu1 %vm579_vm2, %v2008_v52  ;;  %3636 = vmatprep.mubr.msk.f32.mxu1 %vm579_vm2, %v4478_v1 }
 0xc83   :  { %v2006_v58 = vpop.permute.xlu1 %2005 }
 0xc84   :  { %3637 = vmatmul.mubr.msk.f32.gmra.mxu1 %vm579_vm2, %v4476_v0  ;;  %3648 = vmatprep.subr.msk.mxu1 %vm579_vm2, %v2006_v58 }
 0xc85   :  { %3649 = vmatpush3.xpose.msk.msra.mxu1 %vm579_vm2, %v2006_v58  ;;  %3650 = vmatprep.mubr.msk.f32.mxu1 %vm579_vm2, %v2002_v59 }
 0xc87   :  { %v2004_v60 = vpop.permute.xlu1 %2003 }
 0xc88   :  { %3651 = vmatmul.mubr.msk.f32.vlgmr.msra.gmra.mxu1 %vm579_vm2, %v2004_v60 }
 0xd32   :  { %v3615_v62 = vpop.f32.mrf.mxu0 }
 0xd34   :  { %v1620_v63 = vpop.f32.mrf.mxu0 }
 0xd35   :  { %3625 = vmatprep.mubr.msk.f32.mxu0 %vm579_vm2, %v1620_v63 }
 0xd36   :  { %3626 = vmatmul.mubr.msk.f32.vlgmr.msra.gmra.mxu0 %vm579_vm2, %v3615_v62 }
 0xd37   :  { %3640 = vmatpush3.xpose.msk.msra.mxu0 %vm579_vm2, %v1917_v45 }
 0xd38   :  { %3641 = vmatprep.subr.msk.mxu0 %vm579_vm2, %v1915_v55 }
 0xd3b   :  { %3642 = vmatpush3.xpose.msk.msra.mxu0 %vm579_vm2, %v1915_v55 }
 0xd3c   :  { %v3622_v0 = vpop.f32.mrf.mxu1 }
 0xd3e   :  { %v1707_v1 = vpop.f32.mrf.mxu1 }
 0xd3f   :  { %3628 = vmatprep.mubr.msk.f32.mxu0 %vm579_vm2, %v1707_v1 }
 0xd40   :  { %3629 = vmatmul.mubr.msk.f32.gmra.mxu0 %vm579_vm2, %v3622_v0  ;;  %v4534_v30 = vpop.f32.mrf.mxu1 }
 0xd41   :  { %3643 = vmatprep.mubr.msk.f32.mxu0 %vm579_vm2, %v1911_v57  ;;  %v694_v57 = vld [vmem:[%s4760_s10 + $0x10] sm:$0xff] }
 0xd42   :  { %v4536_v3 = vpop.f32.mrf.mxu1 }
 0xd44   :  { %3644 = vmatmul.mubr.msk.f32.vlgmr.msra.gmra.mxu0 %vm579_vm2, %v1913_v56  ;;  %v4538_v34 = vpop.f32.mrf.mxu1 }
 0xd46   :  { %v4542_v6 = vpop.f32.mrf.mxu1 }
 0xd48   :  { %v3652_v8 = vpop.f32.mrf.mxu1 }
 0xd49   :  { %v2095_v20 = vmul.f32 0.35355338, %v3652_v8 }
 0xd4a   :  { %v2083_v11 = vpop.f32.mrf.mxu1 }
 0xd4b   :  { %v2094_v15 = vmul.f32 0.35355338, %v2083_v11  ;;  %v2099_v24 = vadd.f32 %v2095_v20, %v4422_v61 }
 0xd4d   :  { %v2098_v22 = vadd.f32 %v2094_v15, %v4422_v61  ;;  %v2109_v25 = vsel %vm1089_vm6, %v2099_v24, -inf }
 0xd4f   :  { %v2106_v23 = vsel %vm1089_vm6, %v2098_v22, -inf }
 0xdf6   :  { %v4540_v4 = vpop.f32.mrf.mxu0 }
 0xdf8   :  { %v4544_v7 = vpop.f32.mrf.mxu0 }
 0xe00   :  { %v4546_v9 = vpop.f32.mrf.mxu0 }
 0xe02   :  { %v4548_v10 = vpop.f32.mrf.mxu0 }
 0xe04   :  { %v3645_v12 = vpop.f32.mrf.mxu0 }
 0xe05   :  { %v2093_v13 = vmul.f32 0.35355338, %v3645_v12 }
 0xe06   :  { %v1992_v14 = vpop.f32.mrf.mxu0 }
 0xe07   :  { %v2092_v16 = vmul.f32 0.35355338, %v1992_v14  ;;  %v2097_v17 = vadd.f32 %v2093_v13, %v4414_v48 }
 0xe09   :  { %v2103_v18 = vsel %vm1089_vm6, %v2097_v17, -inf  ;;  %v2096_v19 = vadd.f32 %v2092_v16, %v4414_v48 }
 0xe0a   :  { %2104 = vmax.xlane.f32.xlu1 %v2103_v18 }
 0xe0b   :  { %v2100_v21 = vsel %vm1089_vm6, %v2096_v19, -inf }
 0xe0c   :  { %2101 = vmax.xlane.f32.xlu0 %v2100_v21 }
 0xe10   :  { %2107 = vmax.xlane.f32.xlu0 %v2106_v23 }
 0xe14   :  { %2110 = vmax.xlane.f32.xlu0 %v2109_v25 }
 0xe93   :  { %v2105_v28 = vpop.xlane.xlu1 %2104 }
 0xe94   :  { %v2113_v33 = vsub.f32 %v2097_v17, %v2105_v28 }
 0xe95   :  { %v2102_v26 = vpop.xlane.xlu0 %2101 }
 0xe96   :  { %v2112_v27 = vsub.f32 %v2096_v19, %v2102_v26  ;;  %v2118_v40 = vmul.f32 1.442695, %v2113_v33 }
 0xe98   :  { %v2116_v35 = vmul.f32 1.442695, %v2112_v27 }
 0xe99   :  { %v2108_v31 = vpop.xlane.xlu0 %2107 }
 0xe9a   :  { %v2114_v32 = vsub.f32 %v2098_v22, %v2108_v31 }
 0xe9c   :  { %v2120_v36 = vmul.f32 1.442695, %v2114_v32 }
 0xe9d   :  { %v2111_v37 = vpop.xlane.xlu0 %2110 }
 0xe9e   :  { %3824 = vpow2.f32 %v2120_v36  ;;  %v2115_v38 = vsub.f32 %v2099_v24, %v2111_v37 }
 0xe9f   :  { %3826 = vpow2.f32 %v2116_v35 }
 0xea0   :  { %v2122_v42 = vmul.f32 1.442695, %v2115_v38 }
 0xea2   :  { %3828 = vpow2.f32 %v2122_v42 }
 0xea3   :  { %3830 = vpow2.f32 %v2118_v40 }
 0xeab   :  { %v3825_v5 = vpop.eup %3824 }
 0xeac   :  { %v2130_v44 = vsel %vm1089_vm6, %v3825_v5, 0.0  ;;  %v3827_v2 = vpop.eup %3826 }
 0xead   :  { %2131 = vadd.xlane.f32.xlu0 %v2130_v44  ;;  %v2124_v46 = vsel %vm1089_vm6, %v3827_v2, 0.0 }
 0xeaf   :  { %v3829_v45 = vpop.eup %3828 }
 0xeb0   :  { %v2133_v47 = vsel %vm1089_vm6, %v3829_v45, 0.0  ;;  %v3831_v49 = vpop.eup %3830 }
 0xeb1   :  { %2125 = vadd.xlane.f32.xlu0 %v2124_v46  ;;  %2134 = vadd.xlane.f32.xlu1 %v2133_v47  ;;  %v2127_v50 = vsel %vm1089_vm6, %v3831_v49, 0.0 }
 0xeb5   :  { %2128 = vadd.xlane.f32.xlu1 %v2127_v50 }
 0xec6   :  { %2144 = vrot.lane.b32.xlu1 %v4383_v39, %s4125_s5 }
 0xec7   :  { %2146 = vrot.lane.b32.xlu0 %v4381_v29, %s4125_s5 }
 0xeca   :  { %2233 = vrot.lane.b32.xlu1 %v4389_v41, %s4125_s5 }
 0xecb   :  { %2425 = vrot.lane.b32.xlu0 %v4381_v29, %s4126_s24 }
 0xece   :  { %2231 = vrot.lane.b32.xlu1 %v4391_v43, %s4125_s5 }
 0xecf   :  { %2516 = vrot.lane.b32.xlu0 %v4389_v41, %s4126_s24 }
 0xed2   :  { %2423 = vrot.lane.b32.xlu1 %v4383_v39, %s4126_s24 }
 0xed3   :  { %2421 = vrot.lane.b32.xlu0 %v4381_v29, %s4127_s6 }
 0xed6   :  { %2419 = vrot.lane.b32.xlu1 %v4383_v39, %s4127_s6 }
 0xed7   :  { %2510 = vrot.lane.b32.xlu0 %v4391_v43, %s4127_s6 }
 0xeda   :  { %2514 = vrot.lane.b32.xlu1 %v4391_v43, %s4126_s24 }
 0xede   :  { %2512 = vrot.lane.b32.xlu1 %v4389_v41, %s4127_s6 }
 0xf36   :  { %v2132_v51 = vpop.xlane.xlu0 %2131 }
 0xf37   :  { %3832 = vrcp.f32 %v2132_v51 }
 0xf3a   :  { %v2135_v52 = vpop.xlane.xlu1 %2134  ;;  %v2126_v53 = vpop.xlane.xlu0 %2125 }
 0xf3b   :  { %3834 = vrcp.f32 %v2135_v52 }
 0xf3c   :  { %3836 = vrcp.f32 %v2126_v53  ;;  %v1902_v53 = vadd.f32 %v4542_v6, %v4548_v10 }
 0xf3e   :  { %v2129_v54 = vpop.xlane.xlu1 %2128  ;;  %v2147_v55 = vpop.permute.xlu0 %2146 }
 0xf3f   :  { %3838 = vrcp.f32 %v2129_v54  ;;  %3653 = vmatprep.subr.mxu0 %v2147_v55 }
 0xf40   :  { %3654 = vmatpush3.msra.mxu0 %v2147_v55 }
 0xf42   :  { %v2145_v56 = vpop.permute.xlu1 %2144  ;;  %v2426_v63 = vpop.permute.xlu0 %2425 }
 0xf43   :  { %3655 = vmatprep.subr.mxu0 %v2145_v56 }
 0xf44   :  { %v3833_v58 = vpop.eup %3832  ;;  %3656 = vmatpush3.msra.mxu0 %v2145_v56 }
 0xf45   :  { %v2141_v59 = vmul.f32 %v3833_v58, %v3825_v5  ;;  %3667 = vmatprep.subr.mxu0 %v694_v57 }
 0xf46   :  { %v2234_v60 = vpop.permute.xlu1 %2233  ;;  %v2517_v14 = vpop.permute.xlu0 %2516 }
 0xf47   :  { %3660 = vmatprep.subr.mxu1 %v2234_v60  ;;  %3664 = vmatprep.mubr.msk.f32.mxu1 %vm1089_vm6, %v2141_v59 }
 0xf48   :  { %v3835_v62 = vpop.eup %3834  ;;  %3661 = vmatpush3.msra.mxu1 %v2234_v60 }
 0xf49   :  { %v3837_v0 = vpop.eup %3836  ;;  %v2143_v11 = vmul.f32 %v3835_v62, %v3829_v45  ;;  %v1892_v45 = vadd.f32 %v4536_v3, %v4544_v7 }
 0xf4a   :  { %v2232_v1 = vpop.permute.xlu1 %2231  ;;  %v2137_v8 = vmul.f32 %v3837_v0, %v3827_v2  ;;  %v2422_v17 = vpop.permute.xlu0 %2421 }
 0xf4b   :  { %3662 = vmatprep.subr.mxu1 %v2232_v1 }
 0xf4c   :  { %v3839_v12 = vpop.eup %3838  ;;  %3657 = vmatprep.mubr.msk.f32.mxu0 %vm1089_vm6, %v2137_v8  ;;  %3663 = vmatpush3.msra.mxu1 %v2232_v1 }
 0xf4d   :  { %3665 = vmatmul.mubr.msk.f32.vlgmr.msra.gmra.mxu1 %vm1089_vm6, %v2143_v11  ;;  %3675 = vmatprep.subr.msk.mxu1 %vm579_vm2, %v2426_v63  ;;  %v2139_v13 = vmul.f32 %v3839_v12, %v3831_v49  ;;  %v1907_v49 = vadd.f32 %v4538_v34, %v4546_v9 }
 0xf4e   :  { %v2424_v15 = vpop.permute.xlu1 %2423  ;;  %3676 = vmatpush3.xpose.msk.msra.mxu1 %vm579_vm2, %v2426_v63  ;;  %v2511_v25 = vpop.permute.xlu0 %2510 }
 0xf4f   :  { %3658 = vmatmul.mubr.msk.f32.vlgmr.msra.gmra.mxu0 %vm1089_vm6, %v2139_v13  ;;  %3677 = vmatprep.subr.msk.mxu1 %vm579_vm2, %v2424_v15 }
 0xf50   :  { %3668 = vmatpush3.msra.mxu0 %v694_v57 }
 0xf51   :  { %3682 = vmatprep.subr.msk.mxu0 %vm579_vm2, %v2517_v14 }
 0xf52   :  { %v2420_v16 = vpop.permute.xlu1 %2419  ;;  %3678 = vmatpush3.xpose.msk.msra.mxu1 %vm579_vm2, %v2424_v15 }
 0xf53   :  { %3679 = vmatprep.mubr.msk.f32.mxu1 %vm579_vm2, %v2420_v16 }
 0xf55   :  { %3680 = vmatmul.mubr.msk.f32.vlgmr.msra.gmra.mxu1 %vm579_vm2, %v2422_v17 }
 0xf56   :  { %v2515_v22 = vpop.permute.xlu1 %2514 }
 0xf5a   :  { %v2513_v31 = vpop.permute.xlu1 %2512 }
0x100d   :  { %v3666_v18 = vpop.f32.mrf.mxu1 }
0x100f   :  { %v3659_v19 = vpop.f32.mrf.mxu0  ;;  %v2309_v21 = vpop.f32.mrf.mxu1 }
0x1011   :  { %v2222_v20 = vpop.f32.mrf.mxu0 }
0x1012   :  { %3669 = vmatprep.mubr.msk.f32.mxu0 %vm579_vm2, %v2222_v20 }
0x1013   :  { %3670 = vmatmul.mubr.msk.f32.vlgmr.msra.gmra.mxu0 %vm579_vm2, %v3659_v19 }
0x1014   :  { %3683 = vmatpush3.xpose.msk.msra.mxu0 %vm579_vm2, %v2517_v14  ;;  %3672 = vmatprep.mubr.msk.f32.mxu0 %vm579_vm2, %v2309_v21 }
0x1015   :  { %3684 = vmatprep.subr.msk.mxu0 %vm579_vm2, %v2515_v22  ;;  %v3681_v23 = vpop.f32.mrf.mxu1 }
0x1016   :  { %v2602_v24 = vmul.f32 0.35355338, %v3681_v23 }
0x1017   :  { %3673 = vmatmul.mubr.msk.f32.gmra.mxu0 %vm579_vm2, %v3666_v18  ;;  %v2501_v26 = vpop.f32.mrf.mxu1 }
0x1018   :  { %v2601_v27 = vmul.f32 0.35355338, %v2501_v26  ;;  %3685 = vmatpush3.xpose.msk.msra.mxu0 %vm579_vm2, %v2515_v22  ;;  %3686 = vmatprep.mubr.msk.f32.mxu0 %vm579_vm2, %v2511_v25  ;;  %v2606_v28 = vadd.f32 %v2602_v24, %v4414_v48  ;;  %v695_v25 = vld [vmem:[%s4760_s10 + $0x18] sm:$0xff] }
0x101a   :  { %v2612_v32 = vsel %vm1089_vm6, %v2606_v28, -inf  ;;  %v2605_v33 = vadd.f32 %v2601_v27, %v4414_v48  ;;  %v1897_v48 = vadd.f32 %v4534_v30, %v4540_v4 }
0x101b   :  { %2613 = vmax.xlane.f32.xlu1 %v2612_v32  ;;  %3687 = vmatmul.mubr.msk.f32.vlgmr.msra.gmra.mxu0 %vm579_vm2, %v2513_v31  ;;  %v3378_v32 = vld [vmem:[#allocation8] ss:$0 sm:$0xff] }
0x101c   :  { %v2609_v35 = vsel %vm1089_vm6, %v2605_v33, -inf }
0x101d   :  { %2610 = vmax.xlane.f32.xlu0 %v2609_v35 }
0x10a4   :  { %v2614_v36 = vpop.xlane.xlu1 %2613 }
0x10a5   :  { %v2622_v37 = vsub.f32 %v2606_v28, %v2614_v36 }
0x10a6   :  { %v2611_v5 = vpop.xlane.xlu0 %2610 }
0x10a7   :  { %v2627_v38 = vmul.f32 1.442695, %v2622_v37  ;;  %v2621_v44 = vsub.f32 %v2605_v33, %v2611_v5 }
0x10a9   :  { %3840 = vpow2.f32 %v2627_v38  ;;  %v2625_v50 = vmul.f32 1.442695, %v2621_v44 }
0x10ab   :  { %3842 = vpow2.f32 %v2625_v50 }
0x10b6   :  { %v4601_v40 = vpop.eup %3840 }
0x10b7   :  { %v2636_v42 = vsel %vm1089_vm6, %v4601_v40, 0.0 }
0x10b8   :  { %2637 = vadd.xlane.f32.xlu1 %v2636_v42  ;;  %v3843_v6 = vpop.eup %3842 }
0x10b9   :  { %v2633_v10 = vsel %vm1089_vm6, %v3843_v6, 0.0 }
0x10d3   :  { %v3671_v2 = vpop.f32.mrf.mxu0 }
0x10d4   :  { %v4609_v46 = vadd.f32 %v3671_v2, %v1897_v48  ;;  %v3869_v48 = vld [vmem:[#allocation2] sm:$0xff] }
0x10d5   :  { %v2396_v47 = vpop.f32.mrf.mxu0 }
0x10d6   :  { %v4613_v51 = vadd.f32 %v2396_v47, %v1892_v45 }
0x10d7   :  { %v3674_v52 = vpop.f32.mrf.mxu0 }
0x10d8   :  { %v4617_v54 = vadd.f32 %v3674_v52, %v1907_v49 }
0x10d9   :  { %v2406_v30 = vpop.f32.mrf.mxu0 }
0x10da   :  { %v4619_v4 = vadd.f32 %v2406_v30, %v1902_v53  ;;  %v3870_v53 = vld [vmem:[#allocation2 + $0x10] sm:$0xff] }
0x10db   :  { %v3688_v3 = vpop.f32.mrf.mxu0 }
0x10dc   :  { %v2604_v55 = vmul.f32 0.35355338, %v3688_v3  ;;  %v3871_v3 = vld [vmem:[#allocation2 + $0x18] sm:$0xff] }
0x10dd   :  { %v2592_v7 = vpop.f32.mrf.mxu0 }
0x10de   :  { %v2603_v56 = vmul.f32 0.35355338, %v2592_v7  ;;  %v2608_v9 = vadd.f32 %v2604_v55, %v4422_v61 }
0x10e0   :  { %v2607_v57 = vadd.f32 %v2603_v56, %v4422_v61  ;;  %v2618_v58 = vsel %vm1089_vm6, %v2608_v9, -inf }
0x10e2   :  { %v2615_v34 = vsel %vm1089_vm6, %v2607_v57, -inf }
0x10e3   :  { %2616 = vmax.xlane.f32.xlu0 %v2615_v34 }
0x10e7   :  { %2619 = vmax.xlane.f32.xlu0 %v2618_v58 }
0x10eb   :  { %2634 = vadd.xlane.f32.xlu0 %v2633_v10 }
0x1141   :  { %v2638_v16 = vpop.xlane.xlu1 %2637 }
0x116c   :  { %v2617_v59 = vpop.xlane.xlu0 %2616 }
0x116d   :  { %v2623_v60 = vsub.f32 %v2607_v57, %v2617_v59 }
0x116f   :  { %v2629_v62 = vmul.f32 1.442695, %v2623_v60 }
0x1170   :  { %v2620_v63 = vpop.xlane.xlu0 %2619 }
0x1171   :  { %3844 = vpow2.f32 %v2629_v62  ;;  %v2624_v0 = vsub.f32 %v2608_v9, %v2620_v63 }
0x1173   :  { %v2631_v1 = vmul.f32 1.442695, %v2624_v0 }
0x1174   :  { %v2635_v8 = vpop.xlane.xlu0 %2634 }
0x1175   :  { %3846 = vpow2.f32 %v2631_v1 }
0x1176   :  { %3848 = vrcp.f32 %v2635_v8 }
0x1177   :  { %3850 = vrcp.f32 %v2638_v16  ;;  %v703_v16 = vld [vmem:[%s4766_s16 + $0x10] sm:$0xff] }
0x117e   :  { %v3845_v11 = vpop.eup %3844 }
0x117f   :  { %v2639_v61 = vsel %vm1089_vm6, %v3845_v11, 0.0 }
0x1180   :  { %2640 = vadd.xlane.f32.xlu0 %v2639_v61 }
0x1182   :  { %v3847_v12 = vpop.eup %3846 }
0x1183   :  { %v3849_v13 = vpop.eup %3848  ;;  %v2642_v14 = vsel %vm1089_vm6, %v3847_v12, 0.0 }
0x1184   :  { %2643 = vadd.xlane.f32.xlu1 %v2642_v14  ;;  %v2646_v15 = vmul.f32 %v3849_v13, %v3843_v6  ;;  %v3851_v20 = vpop.eup %3850 }
0x1186   :  { %3693 = vmatprep.mubr.msk.f32.mxu1 %vm1089_vm6, %v2646_v15  ;;  %v704_v15 = vld [vmem:[%s4766_s16 + $0x18] sm:$0xff] }
0x1195   :  { %2653 = vrot.lane.b32.xlu1 %v4383_v39, %s4128_s13  ;;  %v2648_v39 = vmul.f32 %v3851_v20, %v4601_v40  ;;  %v3868_v40 = vld [vmem:[#allocation2 + $0x8] sm:$0xff]  ;;  %v712_v20 = vld [vmem:[%s4768_s18 + $0x30] sm:$0xff] }
0x1196   :  { %2655 = vrot.lane.b32.xlu0 %v4381_v29, %s4128_s13 }
0x1199   :  { %2742 = vrot.lane.b32.xlu1 %v4389_v41, %s4128_s13 }
0x119d   :  { %2740 = vrot.lane.b32.xlu1 %v4391_v43, %s4128_s13 }
0x1209   :  { %v2641_v17 = vpop.xlane.xlu0 %2640 }
0x120a   :  { %3852 = vrcp.f32 %v2641_v17  ;;  %v702_v17 = vld [vmem:[%s4766_s16 + $0x8] sm:$0xff] }
0x120d   :  { %v2644_v18 = vpop.xlane.xlu1 %2643  ;;  %v2656_v19 = vpop.permute.xlu0 %2655 }
0x120e   :  { %3854 = vrcp.f32 %v2644_v18  ;;  %3689 = vmatprep.subr.mxu1 %v2656_v19  ;;  %v701_v18 = vld [vmem:[%s4766_s16] sm:$0xff] }
0x120f   :  { %3690 = vmatpush3.msra.mxu1 %v2656_v19  ;;  %v713_v19 = vld [vmem:[%s4768_s18 + $0x38] sm:$0xff] }
0x1211   :  { %v2654_v21 = vpop.permute.xlu1 %2653 }
0x1212   :  { %3691 = vmatprep.subr.mxu1 %v2654_v21 }
0x1213   :  { %3692 = vmatpush3.msra.mxu1 %v2654_v21  ;;  %v711_v21 = vld [vmem:[%s4768_s18 + $0x28] sm:$0xff] }
0x1214   :  { %3694 = vmatmul.mubr.msk.f32.vlgmr.msra.gmra.mxu1 %vm1089_vm6, %v2648_v39  ;;  %3703 = vmatprep.subr.mxu1 %v695_v25  ;;  %v710_v39 = vld [vmem:[%s4768_s18 + $0x20] sm:$0xff] }
0x1215   :  { %v2743_v29 = vpop.permute.xlu1 %2742  ;;  %3704 = vmatpush3.msra.mxu1 %v695_v25 }
0x1216   :  { %3696 = vmatprep.subr.mxu0 %v2743_v29  ;;  %3725 = vmatprep.subr.mxu1 %v713_v19 }
0x1217   :  { %v3853_v41 = vpop.eup %3852  ;;  %3697 = vmatpush3.msra.mxu0 %v2743_v29 }
0x1218   :  { %v2650_v43 = vmul.f32 %v3853_v41, %v3845_v11 }
0x1219   :  { %v2741_v22 = vpop.permute.xlu1 %2740 }
0x121a   :  { %3698 = vmatprep.subr.mxu0 %v2741_v22  ;;  %3700 = vmatprep.mubr.msk.f32.mxu0 %vm1089_vm6, %v2650_v43 }
0x121b   :  { %v3855_v23 = vpop.eup %3854  ;;  %3699 = vmatpush3.msra.mxu0 %v2741_v22 }
0x121c   :  { %v2652_v24 = vmul.f32 %v3855_v23, %v3847_v12  ;;  %3711 = vmatprep.subr.mxu0 %v704_v15 }
0x121e   :  { %3701 = vmatmul.mubr.msk.f32.vlgmr.msra.gmra.mxu0 %vm1089_vm6, %v2652_v24 }
0x121f   :  { %3712 = vmatpush3.msra.mxu0 %v704_v15 }
0x1220   :  { %3713 = vmatprep.subr.mxu0 %v703_v16 }
0x1221   :  { %3714 = vmatpush3.msra.mxu0 %v703_v16 }
0x1222   :  { %3715 = vmatprep.subr.mxu0 %v702_v17 }
0x1223   :  { %3716 = vmatpush3.msra.mxu0 %v702_v17 }
0x1224   :  { %3717 = vmatprep.subr.mxu0 %v701_v18 }
0x1225   :  { %3718 = vmatpush3.msra.mxu0 %v701_v18 }
0x12d4   :  { %v3695_v26 = vpop.f32.mrf.mxu1 }
0x12d6   :  { %v2731_v27 = vpop.f32.mrf.mxu1 }
0x12d7   :  { %3705 = vmatprep.mubr.msk.f32.mxu1 %vm579_vm2, %v2731_v27 }
0x12d8   :  { %3706 = vmatmul.mubr.msk.f32.vlgmr.msra.gmra.mxu1 %vm579_vm2, %v3695_v26 }
0x12d9   :  { %3726 = vmatpush3.msra.mxu1 %v713_v19 }
0x12da   :  { %3727 = vmatprep.subr.mxu1 %v712_v20 }
0x12db   :  { %3728 = vmatpush3.msra.mxu1 %v712_v20 }
0x12dc   :  { %3729 = vmatprep.subr.mxu1 %v711_v21 }
0x12dd   :  { %3730 = vmatpush3.msra.mxu1 %v711_v21 }
0x12de   :  { %v3702_v28 = vpop.f32.mrf.mxu0  ;;  %3731 = vmatprep.subr.mxu1 %v710_v39 }
0x12df   :  { %3732 = vmatpush3.msra.mxu1 %v710_v39 }
0x12e0   :  { %v2818_v31 = vpop.f32.mrf.mxu0 }
0x12e1   :  { %3708 = vmatprep.mubr.msk.f32.mxu1 %vm579_vm2, %v2818_v31 }
0x12e2   :  { %3709 = vmatmul.mubr.msk.f32.gmra.mxu1 %vm579_vm2, %v3702_v28 }
0x1398   :  { %v3707_v33 = vpop.f32.mrf.mxu1 }
0x1399   :  { %v2925_v35 = vadd.f32 %v3707_v33, %v4609_v46 }
0x139a   :  { %v2905_v36 = vpop.f32.mrf.mxu1 }
0x139b   :  { %v2935_v37 = vadd.f32 %v3378_v32, %v2925_v35  ;;  %v2924_v38 = vadd.f32 %v2905_v36, %v4613_v51  ;;  %v3379_v36 = vld [vmem:[#allocation13] ss:$0 sm:$0xff] }
0x139d   :  { %v4646_v42 = vadd.f32 %v3868_v40, %v2935_v37  ;;  %v2934_v5 = vadd.f32 %v3378_v32, %v2924_v38 }
0x139f   :  { %v4648_v44 = vadd.f32 %v3869_v48, %v2934_v5  ;;  %v2945_v2 = vsel %vm215_vm0, %v4646_v42, 0.0  ;;  %v3380_v5 = vld [vmem:[#allocation14] ss:$0 sm:$0xff] }
0x13a0   :  { %2946 = vadd.xlane.f32.xlu1 %v2945_v2 }
0x13a1   :  { %v2942_v45 = vsel %vm215_vm0, %v4648_v44, 0.0 }
0x13a2   :  { %2943 = vadd.xlane.f32.xlu0 %v2942_v45  ;;  %v3710_v46 = vpop.f32.mrf.mxu1 }
0x13a3   :  { %v2927_v47 = vadd.f32 %v3710_v46, %v4617_v54 }
0x13a4   :  { %v2915_v49 = vpop.f32.mrf.mxu1 }
0x13a5   :  { %v2926_v50 = vadd.f32 %v2915_v49, %v4619_v4  ;;  %v2937_v51 = vadd.f32 %v3378_v32, %v2927_v47 }
0x13a7   :  { %v2936_v52 = vadd.f32 %v3378_v32, %v2926_v50  ;;  %v4658_v7 = vadd.f32 %v3871_v3, %v2937_v51 }
0x13a9   :  { %v4656_v30 = vadd.f32 %v3870_v53, %v2936_v52  ;;  %v2951_v56 = vsel %vm215_vm0, %v4658_v7, 0.0 }
0x13ab   :  { %v2948_v55 = vsel %vm215_vm0, %v4656_v30, 0.0 }
0x13ac   :  { %2949 = vadd.xlane.f32.xlu0 %v2948_v55  ;;  %v709_v55 = vld [vmem:[%s4768_s18 + $0x18] sm:$0xff] }
0x13ad   :  { %3733 = vmatprep.subr.mxu1 %v709_v55 }
0x13ae   :  { %3734 = vmatpush3.msra.mxu1 %v709_v55 }
0x13b0   :  { %2952 = vadd.xlane.f32.xlu0 %v2951_v56  ;;  %v708_v56 = vld [vmem:[%s4768_s18 + $0x10] sm:$0xff] }
0x13b1   :  { %3735 = vmatprep.subr.mxu1 %v708_v56 }
0x13b2   :  { %3736 = vmatpush3.msra.mxu1 %v708_v56 }
0x1429   :  { %v2947_v54 = vpop.xlane.xlu1 %2946 }
0x142a   :  { %v2955_v57 = vmul.f32 0.03125, %v2947_v54  ;;  %v707_v54 = vld [vmem:[%s4768_s18 + $0x8] sm:$0xff] }
0x142b   :  { %v2944_v34 = vpop.xlane.xlu0 %2943  ;;  %3737 = vmatprep.subr.mxu1 %v707_v54 }
0x142c   :  { %v2959_v4 = vsub.f32 %v4646_v42, %v2955_v57  ;;  %v2954_v9 = vmul.f32 0.03125, %v2944_v34  ;;  %v706_v57 = vld [vmem:[%s4768_s18] sm:$0xff]  ;;  %3738 = vmatpush3.msra.mxu1 %v707_v54  ;;  %v3381_v34 = vld [vmem:[#allocation16] ss:$0 sm:$0xff] }
0x142d   :  { %3739 = vmatprep.subr.mxu1 %v706_v57 }
0x142e   :  { %v4666_v58 = vsub.f32 %v4648_v44, %v2954_v9  ;;  %v2963_v6 = vmul.f32 %v2959_v4, %v2959_v4  ;;  %3740 = vmatpush3.msra.mxu1 %v706_v57 }
0x1430   :  { %v2969_v10 = vsel %vm215_vm0, %v2963_v6, 0.0  ;;  %v2962_v59 = vmul.f32 %v4666_v58, %v4666_v58 }
0x1431   :  { %2970 = vadd.xlane.f32.xlu1 %v2969_v10 }
0x1432   :  { %v2966_v60 = vsel %vm215_vm0, %v2962_v59, 0.0 }
0x1433   :  { %2967 = vadd.xlane.f32.xlu0 %v2966_v60 }
0x1435   :  { %v2950_v62 = vpop.xlane.xlu0 %2949 }
0x1436   :  { %v2956_v63 = vmul.f32 0.03125, %v2950_v62 }
0x1438   :  { %v4673_v0 = vsub.f32 %v4656_v30, %v2956_v63 }
0x1439   :  { %v2953_v1 = vpop.xlane.xlu0 %2952 }
0x143a   :  { %v2957_v8 = vmul.f32 0.03125, %v2953_v1  ;;  %v2964_v11 = vmul.f32 %v4673_v0, %v4673_v0 }
0x143c   :  { %v4678_v61 = vsub.f32 %v4658_v7, %v2957_v8  ;;  %v2972_v12 = vsel %vm215_vm0, %v2964_v11, 0.0  ;;  %v3390_v11 = vld [vmem:[#allocation17] ss:$0 sm:$0xff] }
0x143d   :  { %2973 = vadd.xlane.f32.xlu0 %v2972_v12 }
0x143e   :  { %v2965_v13 = vmul.f32 %v4678_v61, %v4678_v61 }
0x1440   :  { %v2975_v14 = vsel %vm215_vm0, %v2965_v13, 0.0 }
0x1441   :  { %2976 = vadd.xlane.f32.xlu1 %v2975_v14 }
0x14ba   :  { %v2971_v29 = vpop.xlane.xlu1 %2970 }
0x14bb   :  { %v2979_v41 = vmul.f32 0.03125, %v2971_v29 }
0x14bc   :  { %v2968_v43 = vpop.xlane.xlu0 %2967 }
0x14bd   :  { %v2983_v22 = vadd.f32 1e-05, %v2979_v41  ;;  %v2978_v23 = vmul.f32 0.03125, %v2968_v43 }
0x14bf   :  { %3856 = vrsqrt.f32 %v2983_v22  ;;  %v2982_v24 = vadd.f32 1e-05, %v2978_v23 }
0x14c1   :  { %3858 = vrsqrt.f32 %v2982_v24 }
0x14c6   :  { %v2974_v25 = vpop.xlane.xlu0 %2973 }
0x14c7   :  { %v2980_v26 = vmul.f32 0.03125, %v2974_v25 }
0x14c9   :  { %v2984_v27 = vadd.f32 1e-05, %v2980_v26 }
0x14ca   :  { %v2977_v28 = vpop.xlane.xlu1 %2976 }
0x14cb   :  { %3860 = vrsqrt.f32 %v2984_v27  ;;  %v2981_v31 = vmul.f32 0.03125, %v2977_v28 }
0x14cc   :  { %v3857_v32 = vpop.eup %3856 }
0x14cd   :  { %v2991_v33 = vmul.f32 %v3857_v32, %v2959_v4  ;;  %v2985_v35 = vadd.f32 1e-05, %v2981_v31 }
0x14ce   :  { %v3859_v37 = vpop.eup %3858 }
0x14cf   :  { %3862 = vrsqrt.f32 %v2985_v35  ;;  %v2990_v38 = vmul.f32 %v3859_v37, %v4666_v58  ;;  %v3001_v40 = vmul.f32 %v3379_v36, %v2991_v33  ;;  %v3391_v37 = vld [vmem:[#allocation19] ss:$0 sm:$0xff] }
0x14d1   :  { %v3000_v48 = vmul.f32 %v3379_v36, %v2990_v38  ;;  %v3011_v45 = vadd.f32 %v3380_v5, %v3001_v40  ;;  %v3392_v40 = vld [vmem:[%s4771_s21] ss:$0 sm:$0xff] }
0x14d3   :  { %v3010_v2 = vadd.f32 %v3380_v5, %v3000_v48 }
0x14d5   :  { %3719 = vmatprep.mubr.msk.f32.mxu0 %vm215_vm0, %v3010_v2 }
0x14d6   :  { %3720 = vmatmul.mubr.msk.f32.vlgmr.msra.gmra.mxu0 %vm215_vm0, %v3011_v45 }
0x14d8   :  { %v3861_v46 = vpop.eup %3860 }
0x14d9   :  { %v2992_v47 = vmul.f32 %v3861_v46, %v4673_v0 }
0x14db   :  { %v3002_v49 = vmul.f32 %v3379_v36, %v2992_v47 }
0x14dc   :  { %v3863_v50 = vpop.eup %3862 }
0x14dd   :  { %v3012_v51 = vadd.f32 %v3380_v5, %v3002_v49  ;;  %v2993_v52 = vmul.f32 %v3863_v50, %v4678_v61 }
0x14df   :  { %3722 = vmatprep.mubr.msk.f32.mxu0 %vm215_vm0, %v3012_v51  ;;  %v3003_v53 = vmul.f32 %v3379_v36, %v2993_v52 }
0x14e1   :  { %v3013_v3 = vadd.f32 %v3380_v5, %v3003_v53 }
0x14e3   :  { %3723 = vmatmul.mubr.msk.f32.gmra.mxu0 %vm215_vm0, %v3013_v3 }
0x1596   :  { %v3721_v4 = vpop.f32.mrf.mxu0 }
0x1597   :  { %v3104_v9 = vadd.f32 %v3721_v4, %v3381_v34 }
0x1598   :  { %v3098_v58 = vpop.f32.mrf.mxu0 }
0x1599   :  { %v3099_v6 = vadd.f32 %v3381_v34, %v3098_v58  ;;  %v3118_v59 = vmax.f32 %v3104_v9, 0.0 }
0x159b   :  { %v3117_v10 = vmax.f32 %v3099_v6, 0.0 }
0x159d   :  { %3741 = vmatprep.mubr.msk.f32.mxu1 %vm3121_vm7, %v3117_v10 }
0x159e   :  { %3742 = vmatmul.mubr.msk.f32.vlgmr.msra.gmra.mxu1 %vm3121_vm7, %v3118_v59 }
0x15a3   :  { %v3724_v60 = vpop.f32.mrf.mxu0 }
0x15a4   :  { %v3114_v62 = vadd.f32 %v3724_v60, %v3381_v34 }
0x15a5   :  { %v3108_v63 = vpop.f32.mrf.mxu0 }
0x15a6   :  { %v3109_v0 = vadd.f32 %v3381_v34, %v3108_v63  ;;  %v3120_v8 = vmax.f32 %v3114_v62, 0.0 }
0x15a8   :  { %v3119_v1 = vmax.f32 %v3109_v0, 0.0 }
0x15aa   :  { %3744 = vmatprep.mubr.msk.f32.mxu1 %vm3121_vm7, %v3119_v1 }
0x15ab   :  { %3745 = vmatmul.mubr.msk.f32.gmra.mxu1 %vm3121_vm7, %v3120_v8 }
0x165e   :  { %v3743_v61 = vpop.f32.mrf.mxu1 }
0x165f   :  { %v3220_v12 = vadd.f32 %v3743_v61, %v4646_v42 }
0x1660   :  { %v3200_v13 = vpop.f32.mrf.mxu1 }
0x1661   :  { %v3230_v14 = vadd.f32 %v3390_v11, %v3220_v12  ;;  %v3219_v15 = vadd.f32 %v3200_v13, %v4648_v44 }
0x1663   :  { %3234 = vst.msk [vmem:[#allocation2 + $0x8] sm:$0xff] %vm215_vm0, %v3230_v14  ;;  %v3229_v16 = vadd.f32 %v3390_v11, %v3219_v15 }
0x1665   :  { %3233 = vst.msk [vmem:[#allocation2] sm:$0xff] %vm215_vm0, %v3229_v16  ;;  %v3242_v17 = vsel %vm215_vm0, %v3229_v16, 0.0 }
0x1666   :  { %3243 = vadd.xlane.f32.xlu0 %v3242_v17 }
0x166b   :  { %v3746_v18 = vpop.f32.mrf.mxu1 }
0x166c   :  { %v3222_v19 = vadd.f32 %v3746_v18, %v4658_v7 }
0x166d   :  { %v3210_v20 = vpop.f32.mrf.mxu1 }
0x166e   :  { %v3232_v21 = vadd.f32 %v3390_v11, %v3222_v19  ;;  %v3221_v39 = vadd.f32 %v3210_v20, %v4656_v30 }
0x1670   :  { %3236 = vst.msk [vmem:[#allocation2 + $0x18] sm:$0xff] %vm215_vm0, %v3232_v21  ;;  %v3231_v42 = vadd.f32 %v3390_v11, %v3221_v39 }
0x1672   :  { %3235 = vst.msk [vmem:[#allocation2 + $0x10] sm:$0xff] %vm215_vm0, %v3231_v42  ;;  %v3245_v44 = vsel %vm215_vm0, %v3231_v42, 0.0 }
0x1673   :  { %3246 = vadd.xlane.f32.xlu1 %v3245_v44 }
0x16ef   :  { %v3244_v29 = vpop.xlane.xlu0 %3243 }
0x16f0   :  { %v3248_v41 = vmul.f32 0.03125, %v3244_v29 }
0x16f2   :  { %v3250_v43 = vsub.f32 %v3229_v16, %v3248_v41 }
0x16f4   :  { %v3252_v22 = vmul.f32 %v3250_v43, %v3250_v43 }
0x16f6   :  { %v3254_v23 = vsel %vm215_vm0, %v3252_v22, 0.0 }
0x16f7   :  { %3255 = vadd.xlane.f32.xlu0 %v3254_v23 }
0x16fc   :  { %v3247_v7 = vpop.xlane.xlu1 %3246 }
0x16fd   :  { %v3249_v24 = vmul.f32 0.03125, %v3247_v7 }
0x16ff   :  { %v3251_v25 = vsub.f32 %v3231_v42, %v3249_v24 }
0x1701   :  { %v3253_v26 = vmul.f32 %v3251_v25, %v3251_v25 }
0x1703   :  { %v3257_v30 = vsel %vm215_vm0, %v3253_v26, 0.0 }
0x1704   :  { %3258 = vadd.xlane.f32.xlu1 %v3257_v30 }
0x1780   :  { %v3256_v27 = vpop.xlane.xlu0 %3255 }
0x1781   :  { %v3260_v28 = vmul.f32 0.03125, %v3256_v27 }
0x1783   :  { %v3262_v31 = vadd.f32 1e-05, %v3260_v28 }
0x1785   :  { %3864 = vrsqrt.f32 %v3262_v31 }
0x178d   :  { %v3259_v32 = vpop.xlane.xlu1 %3258 }
0x178e   :  { %v3261_v33 = vmul.f32 0.03125, %v3259_v32 }
0x1790   :  { %v3263_v35 = vadd.f32 1e-05, %v3261_v33 }
0x1792   :  { %v3865_v36 = vpop.eup %3864  ;;  %3866 = vrsqrt.f32 %v3263_v35 }
0x1793   :  { %v3266_v38 = vmul.f32 %v3865_v36, %v3250_v43 }
0x1795   :  { %v3274_v5 = vmul.f32 %v3391_v37, %v3266_v38 }
0x1797   :  { %v3282_v48 = vadd.f32 %v3392_v40, %v3274_v5 }
0x1799   :  { %3284 = vst.msk [vmem:[%s4772_s22] sm:$0xff] %vm215_vm0, %v3282_v48 }
0x179f   :  { %v3867_v2 = vpop.eup %3866 }
0x17a0   :  { %v3267_v45 = vmul.f32 %v3867_v2, %v3251_v25 }
0x17a2   :  { %v3275_v46 = vmul.f32 %v3391_v37, %v3267_v45 }
0x17a4   :  { %v3283_v47 = vadd.f32 %v3392_v40, %v3275_v46 }
0x17a6   :  { %3285 = vst.msk [vmem:[%s4772_s22 + $0x8] sm:$0xff] %vm215_vm0, %v3283_v47 }
0x17a7   :  { %3290 = vsyncpa [#allocation4], 1 }
0x17a8   :  { %3291 = vsyncpa [#allocation6], 1 }
0x17a9   :  { %3292 = vsyncpa [#allocation9], 1 }
0x17aa   :  { %3293 = vsyncpa [#allocation12], 1 }
0x17ab   :  { %3294 = vsyncpa [#allocation15], 1 }
0x17ac   :  { %3295 = vsyncpa [#allocation18], 1 }

// kernel: retro_forward.5
= control target key start
LH: loop header
LB: loop body
LE: loop exit
PB: predicated region body
PF: predicated region fallthrough
CT: control target
= control target key end

     0   :  { %s6451_s6 = smov 1   ;;  %s6452_s10 = smov 2   ;;  %s7258_s0 = inlined_call_operand.smem [shape: u32[30], index: -1, kind: input, shape index: {}] }
   0x1   :  { %s6506_s5 = sld [smem:[%s7258_s0]]   ;;  %s6453_s14 = smov 3  }
   0x2   :  { %s6511_s9 = sld [smem:[%s7258_s0 + %s6451_s6]]   ;;  %s6454_s18 = smov 4  }
   0x3   :  { %s6516_s13 = sld [smem:[%s7258_s0 + %s6452_s10]]   ;;  %s6455_s22 = smov 5  }
   0x4   :  { %s6521_s17 = sld [smem:[%s7258_s0 + %s6453_s14]]   ;;  %s6456_s26 = smov 6  }
   0x5   :  { %s6526_s21 = sld [smem:[%s7258_s0 + %s6454_s18]]   ;;  %s6457_s30 = smov 7  }
   0x6   :  { %s6531_s25 = sld [smem:[%s7258_s0 + %s6455_s22]]   ;;  %s6458_s4 = smov 8  }
   0x7   :  { %7268 = sst [smem:[#allocation9_spill]] %s6506_s5  ;;  %s6459_s10 = smov 9  }
   0x8   :  { %7269 = sst [smem:[#allocation10_spill]] %s6511_s9  ;;  %s6460_s15 = smov 10  }
   0x9   :  { %7270 = sst [smem:[#allocation11_spill]] %s6516_s13  ;;  %s6461_s20 = smov 11  }
   0xa   :  { %7271 = sst [smem:[#allocation12_spill]] %s6521_s17  ;;  %s6463_s1 = smov 13  }
   0xb   :  { %7272 = sst [smem:[#allocation13_spill]] %s6526_s21  ;;  %s6464_s7 = smov 14  }
   0xc   :  { %7273 = sst [smem:[#allocation14_spill]] %s6531_s25  ;;  %s6466_s22 = smov 16  }
   0xd   :  { %s6536_s29 = sld [smem:[%s7258_s0 + %s6456_s26]]   ;;  %s6462_s26 = smov 12  }
   0xe   :  { %s6541_s3 = sld [smem:[%s7258_s0 + %s6457_s30]]   ;;  %s6467_s28 = smov 17  }
   0xf   :  { %s6546_s8 = sld [smem:[%s7258_s0 + %s6458_s4]]  }
  0x10   :  { %s6551_s14 = sld [smem:[%s7258_s0 + %s6459_s10]]  }
  0x11   :  { %s6556_s19 = sld [smem:[%s7258_s0 + %s6460_s15]]   ;;  %s6465_s15 = smov 15  }
  0x12   :  { %s6561_s24 = sld [smem:[%s7258_s0 + %s6461_s20]]  }
  0x13   :  { %7274 = sst [smem:[#allocation15_spill]] %s6536_s29 }
  0x14   :  { %7275 = sst [smem:[#allocation16_spill]] %s6541_s3 }
  0x15   :  { %7276 = sst [smem:[#allocation17_spill]] %s6546_s8 }
  0x16   :  { %7277 = sst [smem:[#allocation18_spill]] %s6551_s14 }
  0x17   :  { %7278 = sst [smem:[#allocation19_spill]] %s6556_s19 }
  0x18   :  { %s6566_s30 = sld [smem:[%s7258_s0 + %s6462_s26]]  }
  0x19   :  { %s6571_s6 = sld [smem:[%s7258_s0 + %s6463_s1]]  }
  0x1a   :  { %s6576_s12 = sld [smem:[%s7258_s0 + %s6464_s7]]   ;;  %s6468_s7 = smov 18  }
  0x1b   :  { %s6581_s20 = sld [smem:[%s7258_s0 + %s6465_s15]]   ;;  %s6469_s15 = smov 19  }
  0x1c   :  { %s6586_s27 = sld [smem:[%s7258_s0 + %s6466_s22]]   ;;  %s6470_s22 = smov 20  }
  0x1d   :  { %s6591_s4 = sld [smem:[%s7258_s0 + %s6467_s28]]   ;;  %s6471_s28 = smov 21  }
  0x1e   :  { %s6596_s17 = sld [smem:[%s7258_s0 + %s6468_s7]]   ;;  %s6472_s7 = smov 22  }
  0x1f   :  { %s6601_s9 = sld [smem:[%s7258_s0 + %s6469_s15]]   ;;  %s6473_s15 = smov 23  }
  0x20   :  { %s6606_s13 = sld [smem:[%s7258_s0 + %s6470_s22]]   ;;  %s6474_s22 = smov 24  }
  0x21   :  { %s6611_s5 = sld [smem:[%s7258_s0 + %s6471_s28]]   ;;  %s6475_s28 = smov 25  }
  0x24   :  { %7279 = sst [smem:[#allocation20_spill]] %s6596_s17 }
  0x25   :  { %7280 = sst [smem:[#allocation21_spill]] %s6601_s9 }
  0x26   :  { %7281 = sst [smem:[#allocation22_spill]] %s6606_s13 }
  0x27   :  { %7282 = sst [smem:[#allocation23_spill]] %s6611_s5 }
  0x28   :  { %s6616_s17 = sld [smem:[%s7258_s0 + %s6472_s7]]   ;;  %s6476_s7 = smov 26  }
  0x29   :  { %s6621_s9 = sld [smem:[%s7258_s0 + %s6473_s15]]   ;;  %s6477_s15 = smov 27  }
  0x2a   :  { %s6626_s13 = sld [smem:[%s7258_s0 + %s6474_s22]]   ;;  %s6478_s22 = smov 28  }
  0x2b   :  { %s6631_s5 = sld [smem:[%s7258_s0 + %s6475_s28]]   ;;  %s6479_s28 = smov 29  }
  0x2e   :  { %7283 = sst [smem:[#allocation24_spill]] %s6616_s17 }
  0x2f   :  { %7284 = sst [smem:[#allocation25_spill]] %s6621_s9 }
  0x30   :  { %7285 = sst [smem:[#allocation26_spill]] %s6626_s13 }
  0x31   :  { %7286 = sst [smem:[#allocation27_spill]] %s6631_s5 }
  0x32   :  { %s6636_s17 = sld [smem:[%s7258_s0 + %s6476_s7]]  }
  0x33   :  { %s6641_s9 = sld [smem:[%s7258_s0 + %s6477_s15]]  }
  0x34   :  { %s6646_s13 = sld [smem:[%s7258_s0 + %s6478_s22]]  }
  0x35   :  { %s6651_s5 = sld [smem:[%s7258_s0 + %s6479_s28]]  }
  0x38   :  { %7287 = sst [smem:[#allocation28_spill]] %s6636_s17 }
  0x39   :  { %7288 = sst [smem:[#allocation29_spill]] %s6641_s9 }
  0x3a   :  { %7289 = sst [smem:[#allocation30_spill]] %s6646_s13 }
  0x3b   :  { %7290 = sst [smem:[#allocation31_spill]] %s6651_s5 }
  0x3c   :  { %65 = vsyncpa [#allocation4], 0 }
  0x3d   :  { %66 = vsyncpa [#allocation6], 0  ;;  %s6653_s7 = smov 0  }
  0x3e LB: > { %7291 = sst [smem:[#allocation32_spill]] %s6449_s7  ;;  %s6659_s10 = sadd.s32 4294967295, %s6449_s7   ;;  %s6449_s7 = sphi %s6653_s7, %s72_s7  }
  0x3f   : > { %7292 = sst [smem:[#allocation33_spill]] %s6659_s10  ;;  %p5706_p0 = scmp.ge.s32.totalorder %s6449_s7, 1 }
  0x40   : > { %p976_p1 = scmp.lt.s32.totalorder %s6449_s7, 3 }
  0x42   : > { %p977_p2 = pnand %p5706_p0, %p976_p1 }
  0x44   : > { %980 = sbr.rel (%p977_p2) target bundleno = 8483 (0x2123), region = 132 }
  0x49   : > { %s7294_s21 = sld [smem:[#allocation13_spill]]  ;;  %p1116_p3 = scmp.lt.s32.totalorder %s6659_s10, 1 }
  0x4a   : > { %s7295_s29 = sld [smem:[#allocation15_spill]] }
  0x4b   : > { %s7297_s8 = sld [smem:[#allocation17_spill]] }
  0x4c   : > { %s7299_s19 = sld [smem:[#allocation19_spill]] }
  0x4d   : > { %s6665_s0 = scalar_select %p1116_p3, %s6659_s10, 1 }
  0x4e   : > { %s7300_s11 = sld [smem:[#allocation20_spill]] }
  0x4f   : > { %s5823_s15 = sshll.u32 %s6665_s0, 5  ;;  %s7301_s16 = sld [smem:[#allocation21_spill]] }
  0x50   : > { %s7302_s22 = sld [smem:[#allocation22_spill]]  ;;  %s6671_s23 = scalar_lea.vmem %s7294_s21, %s5823_s15 }
  0x51   : > { %7303 = sst [smem:[#allocation34_spill]] %s6671_s23  ;;  %s6674_s28 = scalar_lea.vmem %s7295_s29, %s5823_s15 }
  0x52   : > { %s7304_s26 = sld [smem:[#allocation23_spill]]  ;;  %s6679_s7 = scalar_lea.vmem %s7297_s8, %s5823_s15 }
  0x53   : > { %7305 = sst [smem:[#allocation35_spill]] %s6674_s28  ;;  %s6684_s9 = scalar_lea.vmem %s7299_s19, %s5823_s15 }
  0x54   : > { %s7306_s2 = sld [smem:[#allocation24_spill]]  ;;  %s6689_s10 = scalar_lea.vmem %s6566_s30, %s5823_s15 }
  0x55   : > { %7307 = sst [smem:[#allocation36_spill]] %s6679_s7  ;;  %s1155_s18 = scalar_lea.vmem %s6571_s6, %s6665_s0 }
  0x56   : > { %s7308_s5 = sld [smem:[#allocation25_spill]]  ;;  %s1158_s21 = scalar_lea.vmem %s6576_s12, %s6665_s0 }
  0x57   : > { %s1161_s25 = scalar_lea.vmem %s6581_s20, %s6665_s0  ;;  %s1164_s23 = scalar_lea.vmem %s6586_s27, %s6665_s0 }
  0x58   : > { %s1167_s29 = scalar_lea.vmem %s6591_s4, %s6665_s0  ;;  %s1170_s28 = scalar_lea.vmem %s7300_s11, %s6665_s0 }
  0x59   : > { %s1173_s1 = scalar_lea.vmem %s7301_s16, %s6665_s0  ;;  %s6706_s3 = scalar_lea.vmem %s7302_s22, %s5823_s15 }
  0x5a   : > { %s1181_s8 = scalar_lea.vmem %s7304_s26, %s6665_s0  ;;  %s5829_s7 = sshll.u32 %s6665_s0, 6 }
  0x5b   : > { %s6712_s13 = scalar_lea.vmem %s7306_s2, %s5829_s7  ;;  %s7309_s19 = sld [smem:[#allocation33_spill]] }
  0x5c   : > { %s1189_s14 = scalar_lea.vmem %s7308_s5, %s6665_s0 }
  0x61   : > { %p5721_p4 = scmp.ne.s32.totalorder %s7309_s19, 0 }
  0x62   : > { %s7310_s17 = sld [smem:[#allocation9_spill]] (!%p5721_p4) }
  0x63   : > { %1193 = sbr.rel (%p5721_p4) target bundleno = 106 (0x6a), region = 136 }
  0x68   : > { %v1194_v0 = vld [vmem:[%s7310_s17] sm:$0xff]  ;;  %vm1196_vm0 = vcmask 261120   ;;  %v1195_v1 = vld [vmem:[%s7310_s17 + $0x8] sm:$0xff] }
  0x69   : > { %1197 = vst.msk [vmem:[#allocation2] sm:$0xff] %vm1196_vm0, %v1194_v0  ;;  %1198 = vst.msk [vmem:[#allocation2 + $0x8] sm:$0xff] %vm1196_vm0, %v1195_v1 }
  0x6a PF: > { %vm1271_vm1 = vcmask 261120   ;;  %s7311_s5 = sld [smem:[#allocation34_spill]]  ;;  %v5724_v27 = vld [vmem:[%s1158_s21] ss:$0 sm:$0xff]  ;;  %v6480_v36 = vmov 0.0   ;;  %vm6481_vm2 = vmmov 0   ;;  %v1203_v44 = vlaneseq }
  0x6b   : > { %s7312_s19 = sld [smem:[#allocation14_spill]]  ;;  %v5725_v29 = vld [vmem:[%s1161_s25] ss:$0 sm:$0xff]  ;;  %5974 = vmatprep.subr.mxu1 %v6480_v36  ;;  %5976 = vmatprep.mubr.msk.f32.mxu1 %vm6481_vm2, %v6480_v36  ;;  %s6482_s25 = smov 96   ;;  %vm1415_vm3 = vcmask 64512   ;;  %vm5150_vm5 = vcmask 523264  }
  0x6c   : > { %s7314_s7 = sld [smem:[#allocation11_spill]]  ;;  %v6483_v45 = vmov 1966171168   ;;  %v1204_v47 = vshrl.u32 %v1203_v44, 7  ;;  %v1206_v52 = vand.u32 127, %v1203_v44  ;;  %s6484_s11 = smov 64  }
  0x6d   : > { %v1220_v46 = vunpack.c.l.s4 %v6483_v45  ;;  %s6485_s15 = smov 88   ;;  %s6486_s16 = smov 120  }
  0x6e   : > { %v6776_v54 = vsub.s32 0, %v1204_v47  ;;  %vm1207_vm4 = vcmp.gt.s32.totalorder %v1206_v52, %v1204_v47  ;;  %s6487_s22 = smov 56   ;;  %s6488_s26 = smov 80  }
  0x6f   : > { %v1221_v48 = vunpack.c.0.s8 %v1220_v46  ;;  %v1208_v57 = vsel %vm1207_vm4, -1e+09, %v6480_v36  ;;  %s6489_s2 = smov 112  }
  0x70   : > { %v6719_v2 = vld [vmem:[#allocation2] sm:$0xff]  ;;  %v6721_v3 = vld [vmem:[#allocation2 + $0x8] sm:$0xff]  ;;  %v1318_v16 = vld [vmem:[%s7311_s5 + $0x18] sm:$0xff] }
  0x71   : > { %v1272_v4 = vsel %vm1271_vm1, %v6719_v2, 0.0  ;;  %v1275_v5 = vsel %vm1271_vm1, %v6721_v3, 0.0  ;;  %v1317_v17 = vld [vmem:[%s7311_s5 + $0x10] sm:$0xff]  ;;  %5958 = vmatprep.subr.mxu0 %v1318_v16  ;;  %v1316_v18 = vld [vmem:[%s7311_s5 + $0x8] sm:$0xff]  ;;  %v1315_v19 = vld [vmem:[%s7311_s5] sm:$0xff]  ;;  %s7313_s21 = scalar_lea.vmem %s7312_s19, %s6665_s0  ;;  %v6773_v51 = vsub.s32 %v1221_v48, %v1204_v47  ;;  %s7315_s5 = sld [smem:[#allocation35_spill]] }
  0x72   : > { %1273 = vadd.xlane.f32.xlu0 %v1272_v4  ;;  %5959 = vmatpush3.msra.mxu0 %v1318_v16  ;;  %v5726_v37 = vld [vmem:[%s7313_s21] ss:$0 sm:$0xff]  ;;  %s6490_s19 = smov 48   ;;  %s6491_s21 = smov 72  }
  0x73   : > { %5960 = vmatprep.subr.mxu0 %v1317_v17  ;;  %v5722_v49 = vld.sshfl [vmem:[%s7314_s7] sm:$0x11 pattern:$0x75316420]  ;;  %s6492_s7 = smov 104  }
  0x74   : > { %5961 = vmatpush3.msra.mxu0 %v1317_v17  ;;  %v1218_v50 = vcombine.high %v5722_v49, %v5722_v49  ;;  %v1225_v55 = vrot.slane %v5722_v49, %v6773_v51 }
  0x75   : > { %5962 = vmatprep.subr.mxu0 %v1316_v18 }
  0x76   : > { %1276 = vadd.xlane.f32.xlu0 %v1275_v5  ;;  %5963 = vmatpush3.msra.mxu0 %v1316_v18  ;;  %v1232_v53 = vrot.slane %v1218_v50, %v6773_v51  ;;  %v1236_v58 = vrot.slane %v1225_v55, %v6776_v54 }
  0x77   : > { %5964 = vmatprep.subr.mxu0 %v1315_v19 }
  0x78   : > { %5965 = vmatpush3.msra.mxu0 %v1315_v19  ;;  %v1240_v56 = vrot.slane %v1232_v53, %v6776_v54  ;;  %v6784_v62 = vadd.f32 %v1236_v58, %v1208_v57 }
  0x79   : > { %5969 = vmatprep.subr.mxu0 %v6480_v36 }
  0x7a   : > { %v6782_v59 = vadd.f32 %v1240_v56, %v1208_v57 }
  0xfb   : > { %v1274_v6 = vpop.xlane.xlu0 %1273 }
  0xfc   : > { %v1279_v7 = vmul.f32 0.03125, %v1274_v6 }
  0xfe   : > { %v1281_v8 = vsub.f32 %v6719_v2, %v1279_v7 }
  0xff   : > { %v1277_v9 = vpop.xlane.xlu0 %1276 }
 0x100   : > { %v1280_v10 = vmul.f32 0.03125, %v1277_v9  ;;  %v1283_v11 = vmul.f32 %v1281_v8, %v1281_v8 }
 0x102   : > { %v1282_v12 = vsub.f32 %v6721_v3, %v1280_v10  ;;  %v1285_v13 = vsel %vm1271_vm1, %v1283_v11, 0.0 }
 0x103   : > { %1286 = vadd.xlane.f32.xlu1 %v1285_v13 }
 0x104   : > { %v1284_v14 = vmul.f32 %v1282_v12, %v1282_v12 }
 0x106   : > { %v1288_v15 = vsel %vm1271_vm1, %v1284_v14, 0.0 }
 0x107   : > { %1289 = vadd.xlane.f32.xlu1 %v1288_v15 }
 0x18c   : > { %v1287_v20 = vpop.xlane.xlu1 %1286 }
 0x18d   : > { %v1291_v21 = vmul.f32 0.03125, %v1287_v20 }
 0x18f   : > { %v1293_v22 = vadd.f32 1e-05, %v1291_v21 }
 0x190   : > { %v1290_v23 = vpop.xlane.xlu1 %1289 }
 0x191   : > { %6299 = vrsqrt.f32 %v1293_v22  ;;  %v1292_v24 = vmul.f32 0.03125, %v1290_v23 }
 0x193   : > { %v1294_v25 = vadd.f32 1e-05, %v1292_v24 }
 0x195   : > { %6301 = vrsqrt.f32 %v1294_v25 }
 0x19e   : > { %v6300_v26 = vpop.eup %6299 }
 0x19f   : > { %v1297_v28 = vmul.f32 %v6300_v26, %v1281_v8 }
 0x1a1   : > { %v1305_v30 = vmul.f32 %v5724_v27, %v1297_v28 }
 0x1a2   : > { %v6302_v31 = vpop.eup %6301 }
 0x1a3   : > { %v1298_v32 = vmul.f32 %v6302_v31, %v1282_v12  ;;  %v1313_v33 = vadd.f32 %v5725_v29, %v1305_v30 }
 0x1a5   : > { %v1306_v34 = vmul.f32 %v5724_v27, %v1298_v32  ;;  %5966 = vmatprep.mubr.msk.f32.mxu0 %vm1271_vm1, %v1313_v33 }
 0x1a7   : > { %v1314_v35 = vadd.f32 %v5725_v29, %v1306_v34 }
 0x1a9   : > { %5967 = vmatmul.mubr.msk.f32.vlgmr.msra.gmra.mxu0 %vm1271_vm1, %v1314_v35 }
 0x1aa   : > { %5971 = vmatprep.mubr.msk.f32.mxu0 %vm6481_vm2, %v6480_v36 }
 0x269   : > { %v5968_v38 = vpop.f32.mrf.mxu0 }
 0x26a   : > { %v6752_v39 = vadd.f32 %v5968_v38, %v5726_v37 }
 0x26b   : > { %v1398_v40 = vpop.f32.mrf.mxu0 }
 0x26c   : > { %v6754_v41 = vadd.f32 %v5726_v37, %v1398_v40  ;;  %1491 = vrot.lane.b32.xlu1 %v6752_v39, %s6482_s25 }
 0x26e   : > { %1413 = vrot.lane.b32.xlu0 %v6754_v41, %s6482_s25 }
 0x2de   : > { %v1492_v42 = vpop.permute.xlu1 %1491 }
 0x2df   : > { %5975 = vmatpush3.xpose.msk.msra.mxu1 %vm1415_vm3, %v1492_v42 }
 0x2e0   : > { %v1414_v43 = vpop.permute.xlu0 %1413  ;;  %5984 = vmatprep.subr.mxu1 %v6480_v36 }
 0x2e1   : > { %5970 = vmatpush3.xpose.msk.msra.mxu0 %vm1415_vm3, %v1414_v43 }
 0x2e2   : > { %5977 = vmatmul.mubr.msk.f32.vlgmr.msra.gmra.mxu1 %vm1415_vm3, %v6752_v39  ;;  %5979 = vmatprep.subr.mxu0 %v6480_v36 }
 0x2e3   : > { %5986 = vmatprep.mubr.msk.f32.mxu1 %vm6481_vm2, %v6480_v36 }
 0x2e4   : > { %5972 = vmatmul.mubr.msk.f32.vlgmr.msra.gmra.mxu0 %vm1415_vm3, %v6754_v41 }
 0x2e5   : > { %5981 = vmatprep.mubr.msk.f32.mxu0 %vm6481_vm2, %v6480_v36 }
 0x3a2   : > { %v1563_v60 = vpop.f32.mrf.mxu1 }
 0x3a3   : > { %v1568_v61 = vmul.f32 0.35355338, %v1563_v60 }
 0x3a4   : > { %v1486_v63 = vpop.f32.mrf.mxu0  ;;  %v5978_v0 = vpop.f32.mrf.mxu1 }
 0x3a5   : > { %v1567_v1 = vmul.f32 0.35355338, %v1486_v63  ;;  %v1570_v4 = vadd.f32 %v1568_v61, %v6782_v59  ;;  %v1407_v63 = vld [vmem:[%s7315_s5] sm:$0xff] }
 0x3a6   : > { %v5973_v5 = vpop.f32.mrf.mxu0 }
 0x3a7   : > { %v1574_v6 = vsel %vm1415_vm3, %v1570_v4, -inf  ;;  %v1569_v7 = vadd.f32 %v1567_v1, %v6784_v62 }
 0x3a8   : > { %1575 = vmax.xlane.f32.xlu0 %v1574_v6 }
 0x3a9   : > { %v1571_v8 = vsel %vm1415_vm3, %v1569_v7, -inf }
 0x3aa   : > { %1572 = vmax.xlane.f32.xlu1 %v1571_v8 }
 0x431   : > { %v1576_v9 = vpop.xlane.xlu0 %1575 }
 0x432   : > { %v1578_v10 = vsub.f32 %v1570_v4, %v1576_v9 }
 0x433   : > { %v1573_v11 = vpop.xlane.xlu1 %1572 }
 0x434   : > { %v1581_v12 = vmul.f32 1.442695, %v1578_v10  ;;  %v1577_v13 = vsub.f32 %v1569_v7, %v1573_v11 }
 0x436   : > { %6303 = vpow2.f32 %v1581_v12  ;;  %v1579_v14 = vmul.f32 1.442695, %v1577_v13  ;;  %v1408_v12 = vld [vmem:[%s7315_s5 + $0x8] sm:$0xff] }
 0x438   : > { %6305 = vpow2.f32 %v1579_v14 }
 0x443   : > { %v6304_v15 = vpop.eup %6303 }
 0x444   : > { %v1586_v16 = vsel %vm1415_vm3, %v6304_v15, 0.0 }
 0x445   : > { %v6306_v17 = vpop.eup %6305  ;;  %1587 = vadd.xlane.f32.xlu1 %v1586_v16 }
 0x446   : > { %v1583_v18 = vsel %vm1415_vm3, %v6306_v17, 0.0 }
 0x447   : > { %1584 = vadd.xlane.f32.xlu0 %v1583_v18 }
 0x456   : > { %1669 = vrot.lane.b32.xlu1 %v6752_v39, %s6484_s11 }
 0x45a   : > { %1747 = vrot.lane.b32.xlu1 %v6754_v41, %s6485_s15 }
 0x45d   : > { %1593 = vrot.lane.b32.xlu0 %v6754_v41, %s6484_s11  ;;  %s6493_s11 = smov 40  }
 0x45e   : > { %1825 = vrot.lane.b32.xlu1 %v6752_v39, %s6485_s15 }
 0x461   : > { %1745 = vrot.lane.b32.xlu0 %v6754_v41, %s6486_s16 }
 0x462   : > { %1823 = vrot.lane.b32.xlu1 %v6752_v39, %s6486_s16 }
 0x4ce   : > { %v1588_v19 = vpop.xlane.xlu1 %1587 }
 0x4cf   : > { %6307 = vrcp.f32 %v1588_v19 }
 0x4d0   : > { %v1585_v20 = vpop.xlane.xlu0 %1584 }
 0x4d1   : > { %6309 = vrcp.f32 %v1585_v20 }
 0x4d2   : > { %v1670_v21 = vpop.permute.xlu1 %1669 }
 0x4d3   : > { %5985 = vmatpush3.msra.mxu1 %v1670_v21 }
 0x4d4   : > { %v1594_v22 = vpop.permute.xlu0 %1593  ;;  %5994 = vmatprep.subr.mxu1 %v6480_v36 }
 0x4d5   : > { %5980 = vmatpush3.msra.mxu0 %v1594_v22 }
 0x4d6   : > { %v1748_v23 = vpop.permute.xlu1 %1747  ;;  %5989 = vmatprep.subr.mxu0 %v6480_v36 }
 0x4d8   : > { %v1746_v30 = vpop.permute.xlu0 %1745 }
 0x4da   : > { %v1826_v25 = vpop.permute.xlu1 %1825 }
 0x4dc   : > { %v6308_v24 = vpop.eup %6307 }
 0x4dd   : > { %v1592_v26 = vmul.f32 %v6308_v24, %v6304_v15 }
 0x4de   : > { %v6310_v27 = vpop.eup %6309  ;;  %v1824_v29 = vpop.permute.xlu1 %1823 }
 0x4df   : > { %5987 = vmatmul.mubr.msk.f32.vlgmr.msra.gmra.mxu1 %vm1415_vm3, %v1592_v26  ;;  %v1590_v28 = vmul.f32 %v6310_v27, %v6306_v17 }
 0x4e0   : > { %5995 = vmatpush3.xpose.msk.msra.mxu1 %vm1415_vm3, %v1826_v25  ;;  %5996 = vmatprep.mubr.msk.f32.mxu1 %vm6481_vm2, %v6480_v36 }
 0x4e1   : > { %5982 = vmatmul.mubr.msk.f32.vlgmr.msra.gmra.mxu0 %vm1415_vm3, %v1590_v28  ;;  %6004 = vmatprep.subr.mxu1 %v6480_v36 }
 0x4e2   : > { %5990 = vmatpush3.xpose.msk.msra.mxu0 %vm1415_vm3, %v1748_v23  ;;  %5991 = vmatprep.mubr.msk.f32.mxu0 %vm6481_vm2, %v6480_v36 }
 0x4e3   : > { %5997 = vmatmul.mubr.msk.f32.vlgmr.msra.gmra.mxu1 %vm1415_vm3, %v1824_v29  ;;  %5999 = vmatprep.subr.mxu0 %v6480_v36 }
 0x4e4   : > { %6006 = vmatprep.mubr.msk.f32.mxu1 %vm6481_vm2, %v6480_v36 }
 0x4e5   : > { %5992 = vmatmul.mubr.msk.f32.vlgmr.msra.gmra.mxu0 %vm1415_vm3, %v1746_v30 }
 0x4e6   : > { %6001 = vmatprep.mubr.msk.f32.mxu0 %vm6481_vm2, %v6480_v36 }
 0x59f   : > { %v1741_v31 = vpop.f32.mrf.mxu1 }
 0x5a1   : > { %v1665_v32 = vpop.f32.mrf.mxu0  ;;  %v5988_v33 = vpop.f32.mrf.mxu1 }
 0x5a3   : > { %v5983_v34 = vpop.f32.mrf.mxu0  ;;  %v1897_v35 = vpop.f32.mrf.mxu1 }
 0x5a4   : > { %v1902_v37 = vmul.f32 0.35355338, %v1897_v35 }
 0x5a5   : > { %v1819_v38 = vpop.f32.mrf.mxu0  ;;  %v5998_v40 = vpop.f32.mrf.mxu1 }
 0x5a6   : > { %v1901_v42 = vmul.f32 0.35355338, %v1819_v38  ;;  %v1904_v43 = vadd.f32 %v1902_v37, %v6782_v59 }
 0x5a7   : > { %v5993_v44 = vpop.f32.mrf.mxu0 }
 0x5a8   : > { %v1908_v45 = vsel %vm1415_vm3, %v1904_v43, -inf  ;;  %v1903_v46 = vadd.f32 %v1901_v42, %v6784_v62 }
 0x5a9   : > { %1909 = vmax.xlane.f32.xlu1 %v1908_v45 }
 0x5aa   : > { %v1905_v47 = vsel %vm1415_vm3, %v1903_v46, -inf }
 0x5ab   : > { %1906 = vmax.xlane.f32.xlu0 %v1905_v47 }
 0x5ba   : > { %2003 = vrot.lane.b32.xlu1 %v6752_v39, %s6487_s22 }
 0x5be   : > { %2243 = vrot.lane.b32.xlu1 %v6754_v41, %s6488_s26 }
 0x5c2   : > { %2321 = vrot.lane.b32.xlu1 %v6752_v39, %s6488_s26 }
 0x5c6   : > { %2319 = vrot.lane.b32.xlu1 %v6752_v39, %s6489_s2 }
 0x632   : > { %v1910_v48 = vpop.xlane.xlu1 %1909 }
 0x633   : > { %v1912_v49 = vsub.f32 %v1904_v43, %v1910_v48 }
 0x634   : > { %v1907_v50 = vpop.xlane.xlu0 %1906 }
 0x635   : > { %v1915_v52 = vmul.f32 1.442695, %v1912_v49  ;;  %v1911_v53 = vsub.f32 %v1903_v46, %v1907_v50 }
 0x636   : > { %v2004_v55 = vpop.permute.xlu1 %2003 }
 0x637   : > { %6311 = vpow2.f32 %v1915_v52  ;;  %v1913_v56 = vmul.f32 1.442695, %v1911_v53  ;;  %6005 = vmatpush3.msra.mxu1 %v2004_v55 }
 0x638   : > { %6014 = vmatprep.subr.mxu1 %v1407_v63 }
 0x639   : > { %6313 = vpow2.f32 %v1913_v56 }
 0x63a   : > { %v2244_v5 = vpop.permute.xlu1 %2243 }
 0x63e   : > { %v2322_v9 = vpop.permute.xlu1 %2321 }
 0x642   : > { %v2320_v11 = vpop.permute.xlu1 %2319 }
 0x644   : > { %v6312_v57 = vpop.eup %6311 }
 0x645   : > { %v1920_v58 = vsel %vm1415_vm3, %v6312_v57, 0.0 }
 0x646   : > { %v6314_v60 = vpop.eup %6313  ;;  %1921 = vadd.xlane.f32.xlu0 %v1920_v58 }
 0x647   : > { %v1917_v61 = vsel %vm1415_vm3, %v6314_v60, 0.0 }
 0x64a   : > { %1918 = vadd.xlane.f32.xlu0 %v1917_v61 }
 0x660   : > { %1927 = vrot.lane.b32.xlu0 %v6754_v41, %s6487_s22  ;;  %s7316_s22 = sld [smem:[#allocation16_spill]] }
 0x664   : > { %2241 = vrot.lane.b32.xlu0 %v6754_v41, %s6489_s2 }
 0x6cf   : > { %v1922_v0 = vpop.xlane.xlu0 %1921 }
 0x6d0   : > { %6315 = vrcp.f32 %v1922_v0 }
 0x6d3   : > { %v1919_v1 = vpop.xlane.xlu0 %1918 }
 0x6d4   : > { %6317 = vrcp.f32 %v1919_v1 }
 0x6d7   : > { %v1928_v4 = vpop.permute.xlu0 %1927 }
 0x6d8   : > { %6000 = vmatpush3.msra.mxu0 %v1928_v4 }
 0x6d9   : > { %6009 = vmatprep.subr.mxu0 %v1408_v12 }
 0x6db   : > { %v2242_v20 = vpop.permute.xlu0 %2241 }
 0x6dd   : > { %v6316_v6 = vpop.eup %6315 }
 0x6de   : > { %v1926_v7 = vmul.f32 %v6316_v6, %v6312_v57 }
 0x6e0   : > { %6007 = vmatmul.mubr.msk.f32.vlgmr.msra.gmra.mxu1 %vm1415_vm3, %v1926_v7 }
 0x6e1   : > { %v6318_v8 = vpop.eup %6317  ;;  %6016 = vmatprep.mubr.msk.f32.mxu1 %vm1415_vm3, %v1665_v32  ;;  %6015 = vmatpush3.msra.mxu1 %v1407_v63 }
 0x6e2   : > { %6024 = vmatprep.subr.mxu1 %v6480_v36  ;;  %v1924_v10 = vmul.f32 %v6318_v8, %v6314_v60  ;;  %v1409_v60 = vld [vmem:[%s7315_s5 + $0x10] sm:$0xff] }
 0x6e4   : > { %6002 = vmatmul.mubr.msk.f32.vlgmr.msra.gmra.mxu0 %vm1415_vm3, %v1924_v10  ;;  %6017 = vmatmul.mubr.msk.f32.vlgmr.msra.gmra.mxu1 %vm1415_vm3, %v1741_v31 }
 0x6e5   : > { %6025 = vmatpush3.xpose.msk.msra.mxu1 %vm1415_vm3, %v2322_v9  ;;  %6026 = vmatprep.mubr.msk.f32.mxu1 %vm6481_vm2, %v6480_v36 }
 0x6e6   : > { %6034 = vmatprep.subr.mxu1 %v6480_v36  ;;  %6010 = vmatpush3.msra.mxu0 %v1408_v12 }
 0x6e7   : > { %6019 = vmatprep.subr.mxu0 %v6480_v36 }
 0x6e8   : > { %6027 = vmatmul.mubr.msk.f32.vlgmr.msra.gmra.mxu1 %vm1415_vm3, %v2320_v11 }
 0x6e9   : > { %6036 = vmatprep.mubr.msk.f32.mxu1 %vm6481_vm2, %v6480_v36 }
 0x7a0   : > { %v2075_v13 = vpop.f32.mrf.mxu1 }
 0x7a2   : > { %v6008_v14 = vpop.f32.mrf.mxu1 }
 0x7a4   : > { %v1999_v15 = vpop.f32.mrf.mxu0  ;;  %v6851_v16 = vpop.f32.mrf.mxu1 }
 0x7a5   : > { %6011 = vmatprep.mubr.msk.f32.mxu0 %vm1415_vm3, %v1999_v15 }
 0x7a6   : > { %v6003_v17 = vpop.f32.mrf.mxu0  ;;  %6012 = vmatmul.mubr.msk.f32.vlgmr.msra.gmra.mxu0 %vm1415_vm3, %v2075_v13  ;;  %v6855_v18 = vpop.f32.mrf.mxu1 }
 0x7a7   : > { %6020 = vmatpush3.xpose.msk.msra.mxu0 %vm1415_vm3, %v2244_v5  ;;  %6021 = vmatprep.mubr.msk.f32.mxu0 %vm6481_vm2, %v6480_v36 }
 0x7a8   : > { %v2393_v19 = vpop.f32.mrf.mxu1  ;;  %6029 = vmatprep.subr.mxu0 %v6480_v36 }
 0x7a9   : > { %v2398_v21 = vmul.f32 0.35355338, %v2393_v19 }
 0x7aa   : > { %6022 = vmatmul.mubr.msk.f32.vlgmr.msra.gmra.mxu0 %vm1415_vm3, %v2242_v20  ;;  %v6028_v22 = vpop.f32.mrf.mxu1 }
 0x7ab   : > { %v2400_v23 = vadd.f32 %v2398_v21, %v6782_v59  ;;  %6031 = vmatprep.mubr.msk.f32.mxu0 %vm6481_vm2, %v6480_v36 }
 0x7ad   : > { %v2404_v24 = vsel %vm1415_vm3, %v2400_v23, -inf }
 0x7ae   : > { %2405 = vmax.xlane.f32.xlu1 %v2404_v24 }
 0x7bf   : > { %2499 = vrot.lane.b32.xlu1 %v6752_v39, %s6490_s19 }
 0x7c3   : > { %2660 = vrot.lane.b32.xlu1 %v6754_v41, %s6491_s21 }
 0x7c7   : > { %2738 = vrot.lane.b32.xlu1 %v6752_v39, %s6491_s21 }
 0x7cb   : > { %2736 = vrot.lane.b32.xlu1 %v6752_v39, %s6492_s7 }
 0x837   : > { %v2406_v25 = vpop.xlane.xlu1 %2405 }
 0x838   : > { %v2408_v27 = vsub.f32 %v2400_v23, %v2406_v25 }
 0x83a   : > { %v2411_v28 = vmul.f32 1.442695, %v2408_v27 }
 0x83b   : > { %v2500_v26 = vpop.permute.xlu1 %2499 }
 0x83c   : > { %6035 = vmatpush3.msra.mxu1 %v2500_v26  ;;  %6319 = vpow2.f32 %v2411_v28 }
 0x83d   : > { %6044 = vmatprep.subr.mxu1 %v6480_v36 }
 0x83f   : > { %v2661_v49 = vpop.permute.xlu1 %2660 }
 0x843   : > { %v2739_v5 = vpop.permute.xlu1 %2738 }
 0x847   : > { %v2737_v8 = vpop.permute.xlu1 %2736 }
 0x849   : > { %v6320_v37 = vpop.eup %6319 }
 0x84a   : > { %v2416_v38 = vsel %vm1415_vm3, %v6320_v37, 0.0 }
 0x866   : > { %v6875_v29 = vpop.f32.mrf.mxu0 }
 0x867   : > { %v2238_v13 = vadd.f32 %v6851_v16, %v6875_v29 }
 0x868   : > { %v6877_v30 = vpop.f32.mrf.mxu0 }
 0x869   : > { %v2233_v15 = vadd.f32 %v6855_v18, %v6877_v30 }
 0x86a   : > { %v2315_v31 = vpop.f32.mrf.mxu0 }
 0x86b   : > { %v2397_v32 = vmul.f32 0.35355338, %v2315_v31 }
 0x86c   : > { %v6023_v33 = vpop.f32.mrf.mxu0 }
 0x86d   : > { %v2399_v34 = vadd.f32 %v2397_v32, %v6784_v62 }
 0x86f   : > { %v2401_v35 = vsel %vm1415_vm3, %v2399_v34, -inf }
 0x870   : > { %2402 = vmax.xlane.f32.xlu0 %v2401_v35  ;;  %v1410_v35 = vld [vmem:[%s7315_s5 + $0x18] sm:$0xff]  ;;  %s7318_s5 = sld [smem:[#allocation36_spill]] }
 0x874   : > { %2417 = vadd.xlane.f32.xlu0 %v2416_v38 }
 0x8f9   : > { %v2403_v40 = vpop.xlane.xlu0 %2402 }
 0x8fa   : > { %v2407_v42 = vsub.f32 %v2399_v34, %v2403_v40 }
 0x8fc   : > { %v2409_v43 = vmul.f32 1.442695, %v2407_v42 }
 0x8fd   : > { %v2418_v44 = vpop.xlane.xlu0 %2417 }
 0x8fe   : > { %6321 = vpow2.f32 %v2409_v43 }
 0x8ff   : > { %6323 = vrcp.f32 %v2418_v44 }
 0x90b   : > { %v6322_v45 = vpop.eup %6321 }
 0x90c   : > { %v6324_v46 = vpop.eup %6323  ;;  %v2413_v47 = vsel %vm1415_vm3, %v6322_v45, 0.0 }
 0x90d   : > { %2414 = vadd.xlane.f32.xlu0 %v2413_v47  ;;  %v2422_v48 = vmul.f32 %v6324_v46, %v6320_v37 }
 0x90f   : > { %6037 = vmatmul.mubr.msk.f32.vlgmr.msra.gmra.mxu1 %vm1415_vm3, %v2422_v48 }
 0x910   : > { %6045 = vmatpush3.xpose.msk.msra.mxu1 %vm1415_vm3, %v2661_v49  ;;  %6046 = vmatprep.mubr.msk.f32.mxu1 %vm6481_vm2, %v6480_v36 }
 0x911   : > { %6054 = vmatprep.subr.mxu1 %v6480_v36 }
 0x923   : > { %2423 = vrot.lane.b32.xlu0 %v6754_v41, %s6490_s19  ;;  %s7317_s19 = scalar_lea.vmem %s7316_s22, %s6665_s0  ;;  %s7321_s22 = scalar_lea.vmem %s6561_s24, %s6665_s0 }
 0x924   : > { %v5761_v42 = vld [vmem:[%s7317_s19] ss:$0 sm:$0xff] }
 0x927   : > { %2658 = vrot.lane.b32.xlu0 %v6754_v41, %s6492_s7 }
 0x996   : > { %v2415_v50 = vpop.xlane.xlu0 %2414 }
 0x997   : > { %6325 = vrcp.f32 %v2415_v50 }
 0x99a   : > { %v2424_v52 = vpop.permute.xlu0 %2423 }
 0x99b   : > { %6030 = vmatpush3.msra.mxu0 %v2424_v52 }
 0x99c   : > { %6039 = vmatprep.subr.mxu0 %v1409_v60 }
 0x99e   : > { %v2659_v53 = vpop.permute.xlu0 %2658 }
 0x99f   : > { %6047 = vmatmul.mubr.msk.f32.vlgmr.msra.gmra.mxu1 %vm1415_vm3, %v2659_v53 }
 0x9a0   : > { %6056 = vmatprep.mubr.msk.f32.mxu1 %vm6481_vm2, %v6480_v36 }
 0x9a4   : > { %v6326_v55 = vpop.eup %6325 }
 0x9a5   : > { %v2420_v56 = vmul.f32 %v6326_v55, %v6322_v45 }
 0x9a7   : > { %6032 = vmatmul.mubr.msk.f32.vlgmr.msra.gmra.mxu0 %vm1415_vm3, %v2420_v56 }
 0x9a8   : > { %6040 = vmatpush3.msra.mxu0 %v1409_v60 }
 0x9a9   : > { %6049 = vmatprep.subr.mxu0 %v6480_v36 }
 0x9cf   : > { %v2571_v57 = vpop.f32.mrf.mxu1 }
 0x9d1   : > { %v6038_v58 = vpop.f32.mrf.mxu1 }
 0xa5f   : > { %v2732_v61 = vpop.f32.mrf.mxu1 }
 0xa60   : > { %v2814_v63 = vmul.f32 0.35355338, %v2732_v61 }
 0xa61   : > { %v6048_v0 = vpop.f32.mrf.mxu1 }
 0xa62   : > { %v2816_v1 = vadd.f32 %v2814_v63, %v6784_v62 }
 0xa64   : > { %v2818_v4 = vsel %vm1415_vm3, %v2816_v1, -inf }
 0xa65   : > { %2819 = vmax.xlane.f32.xlu0 %v2818_v4  ;;  %v3223_v4 = vld [vmem:[%s6684_s9 + $0x10] sm:$0xff] }
 0xa67   : > { %v2495_v6 = vpop.f32.mrf.mxu0 }
 0xa68   : > { %6041 = vmatprep.mubr.msk.f32.mxu0 %vm1415_vm3, %v2495_v6 }
 0xa69   : > { %v6033_v7 = vpop.f32.mrf.mxu0  ;;  %6042 = vmatmul.mubr.msk.f32.vlgmr.msra.gmra.mxu0 %vm1415_vm3, %v2571_v57 }
 0xa6a   : > { %6050 = vmatpush3.xpose.msk.msra.mxu0 %vm1415_vm3, %v2739_v5  ;;  %6051 = vmatprep.mubr.msk.f32.mxu0 %vm6481_vm2, %v6480_v36  ;;  %v3132_v5 = vld [vmem:[%s7318_s5 + $0x18] sm:$0xff]  ;;  %v3222_v7 = vld [vmem:[%s6684_s9 + $0x8] sm:$0xff] }
 0xa6b   : > { %6059 = vmatprep.subr.mxu0 %v6480_v36 }
 0xa6d   : > { %6052 = vmatmul.mubr.msk.f32.vlgmr.msra.gmra.mxu0 %vm1415_vm3, %v2737_v8  ;;  %v3131_v8 = vld [vmem:[%s7318_s5 + $0x10] sm:$0xff] }
 0xa6e   : > { %6061 = vmatprep.mubr.msk.f32.mxu0 %vm6481_vm2, %v6480_v36 }
 0xaee   : > { %v2820_v62 = vpop.xlane.xlu0 %2819 }
 0xaef   : > { %v2824_v9 = vsub.f32 %v2816_v1, %v2820_v62  ;;  %v3224_v1 = vld [vmem:[%s6684_s9 + $0x18] sm:$0xff]  ;;  %v3221_v62 = vld [vmem:[%s6684_s9] sm:$0xff]  ;;  %s7320_s9 = sld [smem:[#allocation18_spill]] }
 0xaf1   : > { %v2826_v10 = vmul.f32 1.442695, %v2824_v9  ;;  %v3130_v9 = vld [vmem:[%s7318_s5 + $0x8] sm:$0xff] }
 0xaf3   : > { %6327 = vpow2.f32 %v2826_v10 }
 0xb00   : > { %v6328_v11 = vpop.eup %6327 }
 0xb01   : > { %v2830_v12 = vsel %vm1415_vm3, %v6328_v11, 0.0 }
 0xb02   : > { %2831 = vadd.xlane.f32.xlu0 %v2830_v12 }
 0xb29   : > { %v6043_v14 = vpop.f32.mrf.mxu0 }
 0xb2a   : > { %v2657_v17 = vadd.f32 %v6043_v14, %v2238_v13 }
 0xb2b   : > { %v2647_v19 = vpop.f32.mrf.mxu0 }
 0xb2c   : > { %v2656_v20 = vadd.f32 %v2647_v19, %v2233_v15 }
 0xb2d   : > { %v2810_v21 = vpop.f32.mrf.mxu0 }
 0xb2e   : > { %v2815_v22 = vmul.f32 0.35355338, %v2810_v21  ;;  %v5762_v21 = vld [vmem:[%s1164_s23] ss:$0 sm:$0xff]  ;;  %s7322_s23 = sld [smem:[#allocation12_spill]] }
 0xb2f   : > { %v6053_v23 = vpop.f32.mrf.mxu0 }
 0xb30   : > { %v2817_v24 = vadd.f32 %v2815_v22, %v6782_v59 }
 0xb32   : > { %v2821_v25 = vsel %vm1415_vm3, %v2817_v24, -inf }
 0xb33   : > { %2822 = vmax.xlane.f32.xlu1 %v2821_v25 }
 0xb44   : > { %2916 = vrot.lane.b32.xlu1 %v6752_v39, %s6493_s11 }
 0xb8b   : > { %v2832_v59 = vpop.xlane.xlu0 %2831 }
 0xbbc   : > { %v2823_v26 = vpop.xlane.xlu1 %2822 }
 0xbbd   : > { %v2825_v16 = vsub.f32 %v2817_v24, %v2823_v26  ;;  %v5763_v26 = vld [vmem:[%s1167_s29] ss:$0 sm:$0xff]  ;;  %s7323_s29 = scalar_lea.vmem %s7320_s9, %s6665_s0 }
 0xbbf   : > { %v2828_v27 = vmul.f32 1.442695, %v2825_v16 }
 0xbc0   : > { %v2917_v28 = vpop.permute.xlu1 %2916 }
 0xbc1   : > { %6329 = vpow2.f32 %v2828_v27  ;;  %6060 = vmatpush3.msra.mxu0 %v2917_v28 }
 0xbc2   : > { %6331 = vrcp.f32 %v2832_v59  ;;  %6069 = vmatprep.subr.mxu0 %v3132_v5 }
 0xbce   : > { %v6330_v18 = vpop.eup %6329 }
 0xbcf   : > { %v2833_v29 = vsel %vm1415_vm3, %v6330_v18, 0.0  ;;  %v6332_v31 = vpop.eup %6331 }
 0xbd0   : > { %2834 = vadd.xlane.f32.xlu0 %v2833_v29  ;;  %v2837_v39 = vmul.f32 %v6332_v31, %v6328_v11  ;;  %v3129_v11 = vld [vmem:[%s7318_s5] sm:$0xff] }
 0xbe6   : > { %2840 = vrot.lane.b32.xlu0 %v6754_v41, %s6493_s11  ;;  %s7319_s11 = sld [smem:[#allocation10_spill]] }
 0xbec   : > { %v1201_v6 = vld [vmem:[%s7319_s11] sm:$0xff]  ;;  %v1202_v10 = vld [vmem:[%s7319_s11 + $0x8] sm:$0xff] }
 0xc59   : > { %v2835_v30 = vpop.xlane.xlu0 %2834 }
 0xc5a   : > { %6333 = vrcp.f32 %v2835_v30 }
 0xc5d   : > { %v2841_v32 = vpop.permute.xlu0 %2840 }
 0xc5e   : > { %6055 = vmatpush3.msra.mxu1 %v2841_v32  ;;  %v5764_v32 = vld [vmem:[%s7323_s29] ss:$0 sm:$0xff] }
 0xc5f   : > { %6057 = vmatmul.mubr.msk.f32.vlgmr.msra.gmra.mxu1 %vm1415_vm3, %v2837_v39  ;;  %6064 = vmatprep.subr.mxu1 %v1410_v35 }
 0xc60   : > { %6065 = vmatpush3.msra.mxu1 %v1410_v35 }
 0xc61   : > { %6080 = vmatprep.subr.mxu1 %v3224_v1 }
 0xc67   : > { %v6334_v33 = vpop.eup %6333 }
 0xc68   : > { %v2839_v34 = vmul.f32 %v6334_v33, %v6330_v18  ;;  %v5767_v18 = vld [vmem:[%s7321_s22] ss:$0 sm:$0xff] }
 0xc6a   : > { %6062 = vmatmul.mubr.msk.f32.vlgmr.msra.gmra.mxu0 %vm1415_vm3, %v2839_v34 }
 0xc6b   : > { %6070 = vmatpush3.msra.mxu0 %v3132_v5 }
 0xc6c   : > { %6071 = vmatprep.subr.mxu0 %v3131_v8 }
 0xc6d   : > { %6072 = vmatpush3.msra.mxu0 %v3131_v8 }
 0xc6e   : > { %6073 = vmatprep.subr.mxu0 %v3130_v9 }
 0xc6f   : > { %6074 = vmatpush3.msra.mxu0 %v3130_v9 }
 0xc70   : > { %6075 = vmatprep.subr.mxu0 %v3129_v11 }
 0xc71   : > { %6076 = vmatpush3.msra.mxu0 %v3129_v11 }
 0xc72   : > { %6091 = vmatprep.subr.mxu0 %v6480_v36 }
 0xd1f   : > { %v2912_v41 = vpop.f32.mrf.mxu1 }
 0xd20   : > { %6066 = vmatprep.mubr.msk.f32.mxu1 %vm1415_vm3, %v2912_v41  ;;  %v5723_v41 = vld.sshfl [vmem:[%s7322_s23] sm:$0x11 pattern:$0x75316420] }
 0xd21   : > { %v6058_v37 = vpop.f32.mrf.mxu1 }
 0xd22   : > { %v1254_v37 = vcombine.high %v5723_v41, %v5723_v41 }
 0xd2a   : > { %v2988_v38 = vpop.f32.mrf.mxu0 }
 0xd2b   : > { %6067 = vmatmul.mubr.msk.f32.vlgmr.msra.gmra.mxu1 %vm1415_vm3, %v2988_v38  ;;  %v1268_v38 = vrot.slane %v1254_v37, %v6773_v51 }
 0xd2c   : > { %v6063_v40 = vpop.f32.mrf.mxu0  ;;  %6081 = vmatpush3.msra.mxu1 %v3224_v1  ;;  %6088 = vmatprep.mubr.msk.f32.mxu1 %vm1271_vm1, %v1201_v6 }
 0xd2d   : > { %6082 = vmatprep.subr.mxu1 %v3223_v4  ;;  %v1261_v40 = vrot.slane %v5723_v41, %v6773_v51 }
 0xd2e   : > { %6083 = vmatpush3.msra.mxu1 %v3223_v4 }
 0xd2f   : > { %6084 = vmatprep.subr.mxu1 %v3222_v7 }
 0xd30   : > { %6085 = vmatpush3.msra.mxu1 %v3222_v7 }
 0xd31   : > { %6086 = vmatprep.subr.mxu1 %v3221_v62 }
 0xd32   : > { %6087 = vmatpush3.msra.mxu1 %v3221_v62 }
 0xd33   : > { %6089 = vmatmul.mubr.msk.f32.vlgmr.msra.gmra.mxu1 %vm1271_vm1, %v1202_v10  ;;  %6096 = vmatprep.subr.mxu1 %v6480_v36 }
 0xd34   : > { %6098 = vmatprep.mubr.msk.f32.mxu1 %vm6481_vm2, %v6480_v36 }
 0xdeb   : > { %v6068_v43 = vpop.f32.mrf.mxu1 }
 0xdec   : > { %v3074_v44 = vadd.f32 %v6068_v43, %v2657_v17 }
 0xded   : > { %v3064_v45 = vpop.f32.mrf.mxu1 }
 0xdee   : > { %v3082_v46 = vadd.f32 %v5761_v42, %v3074_v44  ;;  %v3073_v47 = vadd.f32 %v3064_v45, %v2656_v20  ;;  %v7002_v45 = vrot.slane %v1261_v40, %v6776_v54 }
 0xdf0   : > { %v6928_v48 = vadd.f32 %v3082_v46, %v6721_v3  ;;  %v3081_v49 = vadd.f32 %v5761_v42, %v3073_v47  ;;  %v6999_v42 = vrot.slane %v1268_v38, %v6776_v54 }
 0xdf2   : > { %v6931_v50 = vadd.f32 %v3081_v49, %v6719_v2  ;;  %v3090_v52 = vsel %vm1271_vm1, %v6928_v48, 0.0 }
 0xdf3   : > { %3091 = vadd.xlane.f32.xlu0 %v3090_v52  ;;  %v6090_v29 = vpop.f32.mrf.mxu1 }
 0xdf4   : > { %v3087_v53 = vsel %vm1271_vm1, %v6931_v50, 0.0  ;;  %v6970_v59 = vadd.f32 %v6090_v29, %v5767_v18 }
 0xdf5   : > { %3088 = vadd.xlane.f32.xlu1 %v3087_v53  ;;  %v3304_v30 = vpop.f32.mrf.mxu1 }
 0xdf6   : > { %v6972_v31 = vadd.f32 %v5767_v18, %v3304_v30  ;;  %6097 = vmatpush3.xpose.msk.msra.mxu1 %vm1415_vm3, %v6970_v59 }
 0xdf7   : > { %6106 = vmatprep.subr.mxu1 %v6480_v36 }
 0xe7c   : > { %v3092_v55 = vpop.xlane.xlu0 %3091 }
 0xe7d   : > { %v3094_v56 = vmul.f32 0.03125, %v3092_v55 }
 0xe7e   : > { %v3089_v3 = vpop.xlane.xlu1 %3088 }
 0xe7f   : > { %v3096_v57 = vsub.f32 %v6928_v48, %v3094_v56  ;;  %v3093_v2 = vmul.f32 0.03125, %v3089_v3 }
 0xe81   : > { %v3095_v58 = vsub.f32 %v6931_v50, %v3093_v2  ;;  %v3098_v60 = vmul.f32 %v3096_v57, %v3096_v57 }
 0xe83   : > { %v3102_v61 = vsel %vm1271_vm1, %v3098_v60, 0.0  ;;  %v3097_v63 = vmul.f32 %v3095_v58, %v3095_v58 }
 0xe84   : > { %3103 = vadd.xlane.f32.xlu1 %v3102_v61 }
 0xe85   : > { %v3099_v0 = vsel %vm1271_vm1, %v3097_v63, 0.0 }
 0xe86   : > { %3100 = vadd.xlane.f32.xlu0 %v3099_v0 }
 0xf0d   : > { %v3104_v12 = vpop.xlane.xlu1 %3103 }
 0xf0e   : > { %v3106_v13 = vmul.f32 0.03125, %v3104_v12 }
 0xf0f   : > { %v3101_v14 = vpop.xlane.xlu0 %3100 }
 0xf10   : > { %v3108_v15 = vadd.f32 1e-05, %v3106_v13  ;;  %v3105_v17 = vmul.f32 0.03125, %v3101_v14 }
 0xf12   : > { %6335 = vrsqrt.f32 %v3108_v15  ;;  %v3107_v19 = vadd.f32 1e-05, %v3105_v17 }
 0xf14   : > { %6337 = vrsqrt.f32 %v3107_v19 }
 0xf1f   : > { %v6336_v20 = vpop.eup %6335 }
 0xf20   : > { %v3112_v22 = vmul.f32 %v6336_v20, %v3096_v57 }
 0xf21   : > { %v6338_v23 = vpop.eup %6337 }
 0xf22   : > { %v3111_v24 = vmul.f32 %v6338_v23, %v3095_v58  ;;  %v3120_v25 = vmul.f32 %v5762_v21, %v3112_v22 }
 0xf24   : > { %v3119_v16 = vmul.f32 %v5762_v21, %v3111_v24  ;;  %v3128_v28 = vadd.f32 %v5763_v26, %v3120_v25 }
 0xf26   : > { %v3127_v27 = vadd.f32 %v5763_v26, %v3119_v16 }
 0xf28   : > { %6077 = vmatprep.mubr.msk.f32.mxu0 %vm1271_vm1, %v3127_v27 }
 0xf29   : > { %6078 = vmatmul.mubr.msk.f32.vlgmr.msra.gmra.mxu0 %vm1271_vm1, %v3128_v28 }
 0xf2a   : > { %6093 = vmatprep.mubr.msk.f32.mxu0 %vm6481_vm2, %v6480_v36  ;;  %6092 = vmatpush3.xpose.msk.msra.mxu0 %vm1415_vm3, %v6972_v31 }
 0xf2b   : > { %6101 = vmatprep.subr.mxu0 %v6480_v36 }
 0xfe9   : > { %v6079_v39 = vpop.f32.mrf.mxu0 }
 0xfea   : > { %v6983_v33 = vadd.f32 %v6079_v39, %v5764_v32 }
 0xfeb   : > { %v3212_v34 = vpop.f32.mrf.mxu0 }
 0xfec   : > { %v6985_v35 = vadd.f32 %v5764_v32, %v3212_v34  ;;  %6099 = vmatmul.mubr.msk.f32.vlgmr.msra.gmra.mxu1 %vm1415_vm3, %v6983_v33 }
 0xfed   : > { %6108 = vmatprep.mubr.msk.f32.mxu1 %vm6481_vm2, %v6480_v36 }
 0xfee   : > { %6094 = vmatmul.mubr.msk.f32.vlgmr.msra.gmra.mxu0 %vm1415_vm3, %v6985_v35 }
 0xfef   : > { %6103 = vmatprep.mubr.msk.f32.mxu0 %vm6481_vm2, %v6480_v36 }
0x10ac   : > { %v3466_v43 = vpop.f32.mrf.mxu1 }
0x10ad   : > { %v3471_v44 = vmul.f32 0.35355338, %v3466_v43 }
0x10ae   : > { %v3390_v46 = vpop.f32.mrf.mxu0  ;;  %v6100_v47 = vpop.f32.mrf.mxu1 }
0x10af   : > { %v3470_v49 = vmul.f32 0.35355338, %v3390_v46  ;;  %v3483_v52 = vadd.f32 %v6999_v42, %v3471_v44  ;;  %v3313_v46 = vld [vmem:[%s6689_s10] sm:$0xff] }
0x10b0   : > { %v6095_v53 = vpop.f32.mrf.mxu0 }
0x10b1   : > { %v3487_v55 = vsel %vm1415_vm3, %v3483_v52, -inf  ;;  %v3482_v56 = vadd.f32 %v7002_v45, %v3470_v49 }
0x10b2   : > { %3488 = vmax.xlane.f32.xlu1 %v3487_v55 }
0x10b3   : > { %v3484_v51 = vsel %vm1415_vm3, %v3482_v56, -inf }
0x10b4   : > { %3485 = vmax.xlane.f32.xlu0 %v3484_v51 }
0x113b   : > { %v3489_v3 = vpop.xlane.xlu1 %3488 }
0x113c   : > { %v3491_v57 = vsub.f32 %v3483_v52, %v3489_v3 }
0x113d   : > { %v3486_v2 = vpop.xlane.xlu0 %3485 }
0x113e   : > { %v3494_v58 = vmul.f32 1.442695, %v3491_v57  ;;  %v3490_v54 = vsub.f32 %v3482_v56, %v3486_v2 }
0x1140   : > { %6339 = vpow2.f32 %v3494_v58  ;;  %v3492_v60 = vmul.f32 1.442695, %v3490_v54  ;;  %v3314_v58 = vld [vmem:[%s6689_s10 + $0x8] sm:$0xff] }
0x1142   : > { %6341 = vpow2.f32 %v3492_v60 }
0x114d   : > { %v6340_v61 = vpop.eup %6339 }
0x114e   : > { %v3499_v63 = vsel %vm1415_vm3, %v6340_v61, 0.0 }
0x114f   : > { %v6342_v0 = vpop.eup %6341  ;;  %3500 = vadd.xlane.f32.xlu1 %v3499_v63 }
0x1150   : > { %v3496_v1 = vsel %vm1415_vm3, %v6342_v0, 0.0 }
0x1151   : > { %3497 = vadd.xlane.f32.xlu0 %v3496_v1 }
0x1160   : > { %3582 = vrot.lane.b32.xlu1 %v6970_v59, %s6482_s25 }
0x1164   : > { %3660 = vrot.lane.b32.xlu1 %v6972_v31, %s6486_s16 }
0x1167   : > { %3506 = vrot.lane.b32.xlu0 %v6972_v31, %s6482_s25 }
0x1168   : > { %3738 = vrot.lane.b32.xlu1 %v6970_v59, %s6486_s16 }
0x116b   : > { %3658 = vrot.lane.b32.xlu0 %v6985_v35, %s6486_s16 }
0x116c   : > { %3736 = vrot.lane.b32.xlu1 %v6983_v33, %s6486_s16 }
0x11d8   : > { %v3501_v4 = vpop.xlane.xlu1 %3500 }
0x11d9   : > { %6343 = vrcp.f32 %v3501_v4 }
0x11da   : > { %v3498_v5 = vpop.xlane.xlu0 %3497 }
0x11db   : > { %6345 = vrcp.f32 %v3498_v5 }
0x11dc   : > { %v3583_v6 = vpop.permute.xlu1 %3582 }
0x11dd   : > { %6107 = vmatpush3.msra.mxu1 %v3583_v6 }
0x11de   : > { %v3507_v7 = vpop.permute.xlu0 %3506  ;;  %6116 = vmatprep.subr.mxu1 %v6480_v36 }
0x11df   : > { %6102 = vmatpush3.msra.mxu0 %v3507_v7 }
0x11e0   : > { %v3661_v8 = vpop.permute.xlu1 %3660  ;;  %6111 = vmatprep.subr.mxu0 %v6480_v36 }
0x11e2   : > { %v3659_v14 = vpop.permute.xlu0 %3658 }
0x11e4   : > { %v3739_v9 = vpop.permute.xlu1 %3738 }
0x11e6   : > { %v6344_v62 = vpop.eup %6343 }
0x11e7   : > { %v7024_v10 = vmul.f32 %v6344_v62, %v6340_v61 }
0x11e8   : > { %v6346_v11 = vpop.eup %6345  ;;  %v3737_v13 = vpop.permute.xlu1 %3736 }
0x11e9   : > { %6109 = vmatmul.mubr.msk.f32.vlgmr.msra.gmra.mxu1 %vm1415_vm3, %v7024_v10  ;;  %v7028_v12 = vmul.f32 %v6346_v11, %v6342_v0 }
0x11ea   : > { %6117 = vmatpush3.xpose.msk.msra.mxu1 %vm1415_vm3, %v3739_v9  ;;  %6118 = vmatprep.mubr.msk.f32.mxu1 %vm6481_vm2, %v6480_v36 }
0x11eb   : > { %6104 = vmatmul.mubr.msk.f32.vlgmr.msra.gmra.mxu0 %vm1415_vm3, %v7028_v12  ;;  %6126 = vmatprep.subr.mxu1 %v6480_v36 }
0x11ec   : > { %6112 = vmatpush3.xpose.msk.msra.mxu0 %vm1415_vm3, %v3661_v8  ;;  %6113 = vmatprep.mubr.msk.f32.mxu0 %vm6481_vm2, %v6480_v36 }
0x11ed   : > { %6119 = vmatmul.mubr.msk.f32.vlgmr.msra.gmra.mxu1 %vm1415_vm3, %v3737_v13  ;;  %6121 = vmatprep.subr.mxu0 %v6480_v36 }
0x11ee   : > { %6128 = vmatprep.mubr.msk.f32.mxu1 %vm6481_vm2, %v6480_v36 }
0x11ef   : > { %6114 = vmatmul.mubr.msk.f32.vlgmr.msra.gmra.mxu0 %vm1415_vm3, %v3659_v14 }
0x11f0   : > { %6123 = vmatprep.mubr.msk.f32.mxu0 %vm6481_vm2, %v6480_v36 }
0x12a9   : > { %v3654_v15 = vpop.f32.mrf.mxu1 }
0x12ab   : > { %v3578_v17 = vpop.f32.mrf.mxu0  ;;  %v6110_v19 = vpop.f32.mrf.mxu1 }
0x12ad   : > { %v6105_v20 = vpop.f32.mrf.mxu0  ;;  %v3810_v21 = vpop.f32.mrf.mxu1 }
0x12ae   : > { %v3815_v22 = vmul.f32 0.35355338, %v3810_v21 }
0x12af   : > { %v3732_v23 = vpop.f32.mrf.mxu0  ;;  %v6120_v24 = vpop.f32.mrf.mxu1 }
0x12b0   : > { %v3814_v25 = vmul.f32 0.35355338, %v3732_v23  ;;  %v3817_v26 = vadd.f32 %v3815_v22, %v6999_v42 }
0x12b1   : > { %v6115_v16 = vpop.f32.mrf.mxu0 }
0x12b2   : > { %v3821_v27 = vsel %vm1415_vm3, %v3817_v26, -inf  ;;  %v3816_v28 = vadd.f32 %v3814_v25, %v7002_v45 }
0x12b3   : > { %3822 = vmax.xlane.f32.xlu1 %v3821_v27 }
0x12b4   : > { %v3818_v18 = vsel %vm1415_vm3, %v3816_v28, -inf }
0x12b5   : > { %3819 = vmax.xlane.f32.xlu0 %v3818_v18 }
0x12c4   : > { %3916 = vrot.lane.b32.xlu1 %v6970_v59, %s6485_s15 }
0x12c8   : > { %4158 = vrot.lane.b32.xlu1 %v6972_v31, %s6489_s2 }
0x12cc   : > { %4236 = vrot.lane.b32.xlu1 %v6970_v59, %s6489_s2 }
0x12d0   : > { %4234 = vrot.lane.b32.xlu1 %v6983_v33, %s6489_s2 }
0x133c   : > { %v3823_v29 = vpop.xlane.xlu1 %3822 }
0x133d   : > { %v3825_v30 = vsub.f32 %v3817_v26, %v3823_v29 }
0x133e   : > { %v3820_v32 = vpop.xlane.xlu0 %3819 }
0x133f   : > { %v3828_v39 = vmul.f32 1.442695, %v3825_v30  ;;  %v3824_v34 = vsub.f32 %v3816_v28, %v3820_v32 }
0x1340   : > { %v3917_v41 = vpop.permute.xlu1 %3916 }
0x1341   : > { %6347 = vpow2.f32 %v3828_v39  ;;  %v3826_v37 = vmul.f32 1.442695, %v3824_v34  ;;  %6127 = vmatpush3.msra.mxu1 %v3917_v41 }
0x1342   : > { %6136 = vmatprep.subr.mxu1 %v3313_v46 }
0x1343   : > { %6349 = vpow2.f32 %v3826_v37 }
0x1344   : > { %v4159_v53 = vpop.permute.xlu1 %4158 }
0x1348   : > { %v4237_v3 = vpop.permute.xlu1 %4236 }
0x134c   : > { %v4235_v2 = vpop.permute.xlu1 %4234 }
0x134e   : > { %v6348_v38 = vpop.eup %6347 }
0x134f   : > { %v3833_v40 = vsel %vm1415_vm3, %v6348_v38, 0.0 }
0x1350   : > { %v6350_v43 = vpop.eup %6349  ;;  %3834 = vadd.xlane.f32.xlu0 %v3833_v40 }
0x1351   : > { %v3830_v44 = vsel %vm1415_vm3, %v6350_v43, 0.0 }
0x1354   : > { %3831 = vadd.xlane.f32.xlu0 %v3830_v44 }
0x136a   : > { %3840 = vrot.lane.b32.xlu0 %v6972_v31, %s6485_s15 }
0x136e   : > { %4156 = vrot.lane.b32.xlu0 %v6985_v35, %s6489_s2 }
0x13d9   : > { %v3835_v47 = vpop.xlane.xlu0 %3834 }
0x13da   : > { %6351 = vrcp.f32 %v3835_v47  ;;  %v3315_v47 = vld [vmem:[%s6689_s10 + $0x10] sm:$0xff] }
0x13dd   : > { %v3832_v49 = vpop.xlane.xlu0 %3831 }
0x13de   : > { %6353 = vrcp.f32 %v3832_v49 }
0x13e1   : > { %v3841_v52 = vpop.permute.xlu0 %3840 }
0x13e2   : > { %6122 = vmatpush3.msra.mxu0 %v3841_v52 }
0x13e3   : > { %6131 = vmatprep.subr.mxu0 %v3314_v58 }
0x13e5   : > { %v4157_v5 = vpop.permute.xlu0 %4156 }
0x13e7   : > { %v6352_v55 = vpop.eup %6351 }
0x13e8   : > { %v7065_v56 = vmul.f32 %v6352_v55, %v6348_v38 }
0x13ea   : > { %6129 = vmatmul.mubr.msk.f32.vlgmr.msra.gmra.mxu1 %vm1415_vm3, %v7065_v56  ;;  %v4155_v30 = vadd.f32 %v7065_v56, %v7024_v10 }
0x13eb   : > { %v6354_v51 = vpop.eup %6353  ;;  %6138 = vmatprep.mubr.msk.f32.mxu1 %vm1415_vm3, %v3578_v17  ;;  %6137 = vmatpush3.msra.mxu1 %v3313_v46 }
0x13ec   : > { %6146 = vmatprep.subr.mxu1 %v6480_v36  ;;  %v7071_v57 = vmul.f32 %v6354_v51, %v6350_v43 }
0x13ee   : > { %6124 = vmatmul.mubr.msk.f32.vlgmr.msra.gmra.mxu0 %vm1415_vm3, %v7071_v57  ;;  %6139 = vmatmul.mubr.msk.f32.vlgmr.msra.gmra.mxu1 %vm1415_vm3, %v3654_v15  ;;  %v4154_v40 = vadd.f32 %v7071_v57, %v7028_v12 }
0x13ef   : > { %6147 = vmatpush3.xpose.msk.msra.mxu1 %vm1415_vm3, %v4237_v3  ;;  %6148 = vmatprep.mubr.msk.f32.mxu1 %vm6481_vm2, %v6480_v36 }
0x13f0   : > { %6156 = vmatprep.subr.mxu1 %v6480_v36  ;;  %6132 = vmatpush3.msra.mxu0 %v3314_v58 }
0x13f1   : > { %6141 = vmatprep.subr.mxu0 %v6480_v36 }
0x13f2   : > { %6149 = vmatmul.mubr.msk.f32.vlgmr.msra.gmra.mxu1 %vm1415_vm3, %v4235_v2 }
0x13f3   : > { %6158 = vmatprep.mubr.msk.f32.mxu1 %vm6481_vm2, %v6480_v36 }
0x14aa   : > { %v3988_v54 = vpop.f32.mrf.mxu1 }
0x14ac   : > { %v6130_v60 = vpop.f32.mrf.mxu1 }
0x14ae   : > { %v3912_v61 = vpop.f32.mrf.mxu0  ;;  %v7085_v63 = vpop.f32.mrf.mxu1 }
0x14af   : > { %6133 = vmatprep.mubr.msk.f32.mxu0 %vm1415_vm3, %v3912_v61 }
0x14b0   : > { %v6125_v0 = vpop.f32.mrf.mxu0  ;;  %6134 = vmatmul.mubr.msk.f32.vlgmr.msra.gmra.mxu0 %vm1415_vm3, %v3988_v54  ;;  %v7089_v1 = vpop.f32.mrf.mxu1 }
0x14b1   : > { %6142 = vmatpush3.xpose.msk.msra.mxu0 %vm1415_vm3, %v4159_v53  ;;  %6143 = vmatprep.mubr.msk.f32.mxu0 %vm6481_vm2, %v6480_v36 }
0x14b2   : > { %v4308_v4 = vpop.f32.mrf.mxu1  ;;  %6151 = vmatprep.subr.mxu0 %v6480_v36 }
0x14b3   : > { %v4313_v6 = vmul.f32 0.35355338, %v4308_v4 }
0x14b4   : > { %6144 = vmatmul.mubr.msk.f32.vlgmr.msra.gmra.mxu0 %vm1415_vm3, %v4157_v5  ;;  %v6150_v7 = vpop.f32.mrf.mxu1 }
0x14b5   : > { %v4315_v8 = vadd.f32 %v4313_v6, %v6999_v42  ;;  %6153 = vmatprep.mubr.msk.f32.mxu0 %vm6481_vm2, %v6480_v36 }
0x14b7   : > { %v4319_v62 = vsel %vm1415_vm3, %v4315_v8, -inf }
0x14b8   : > { %4320 = vmax.xlane.f32.xlu1 %v4319_v62 }
0x14c9   : > { %4414 = vrot.lane.b32.xlu1 %v6970_v59, %s6488_s26 }
0x14cd   : > { %4577 = vrot.lane.b32.xlu1 %v6972_v31, %s6492_s7 }
0x14d1   : > { %4655 = vrot.lane.b32.xlu1 %v6970_v59, %s6492_s7 }
0x14d5   : > { %4653 = vrot.lane.b32.xlu1 %v6983_v33, %s6492_s7 }
0x1541   : > { %v4321_v9 = vpop.xlane.xlu1 %4320 }
0x1542   : > { %v4323_v13 = vsub.f32 %v4315_v8, %v4321_v9 }
0x1544   : > { %v4326_v14 = vmul.f32 1.442695, %v4323_v13 }
0x1545   : > { %v4415_v11 = vpop.permute.xlu1 %4414 }
0x1546   : > { %6157 = vmatpush3.msra.mxu1 %v4415_v11  ;;  %6355 = vpow2.f32 %v4326_v14 }
0x1547   : > { %6166 = vmatprep.subr.mxu1 %v6480_v36 }
0x1549   : > { %v4578_v39 = vpop.permute.xlu1 %4577 }
0x154d   : > { %v4656_v12 = vpop.permute.xlu1 %4655 }
0x1551   : > { %v4654_v57 = vpop.permute.xlu1 %4653 }
0x1553   : > { %v6356_v33 = vpop.eup %6355 }
0x1554   : > { %v4331_v24 = vsel %vm1415_vm3, %v6356_v33, 0.0 }
0x1570   : > { %v7109_v15 = vpop.f32.mrf.mxu0 }
0x1571   : > { %v4151_v61 = vadd.f32 %v7085_v63, %v7109_v15 }
0x1572   : > { %v7111_v17 = vpop.f32.mrf.mxu0 }
0x1573   : > { %v4146_v4 = vadd.f32 %v7089_v1, %v7111_v17 }
0x1574   : > { %v4230_v19 = vpop.f32.mrf.mxu0 }
0x1575   : > { %v4312_v20 = vmul.f32 0.35355338, %v4230_v19 }
0x1576   : > { %v6145_v21 = vpop.f32.mrf.mxu0 }
0x1577   : > { %v4314_v22 = vadd.f32 %v4312_v20, %v7002_v45 }
0x1579   : > { %v4316_v23 = vsel %vm1415_vm3, %v4314_v22, -inf }
0x157a   : > { %4317 = vmax.xlane.f32.xlu0 %v4316_v23 }
0x157e   : > { %4332 = vadd.xlane.f32.xlu0 %v4331_v24 }
0x1603   : > { %v4318_v25 = vpop.xlane.xlu0 %4317 }
0x1604   : > { %v4322_v26 = vsub.f32 %v4314_v22, %v4318_v25  ;;  %v3316_v25 = vld [vmem:[%s6689_s10 + $0x18] sm:$0xff] }
0x1606   : > { %v4324_v16 = vmul.f32 1.442695, %v4322_v26 }
0x1607   : > { %v4333_v27 = vpop.xlane.xlu0 %4332 }
0x1608   : > { %6357 = vpow2.f32 %v4324_v16 }
0x1609   : > { %6359 = vrcp.f32 %v4333_v27 }
0x1615   : > { %v6358_v28 = vpop.eup %6357 }
0x1616   : > { %v6360_v18 = vpop.eup %6359  ;;  %v4328_v29 = vsel %vm1415_vm3, %v6358_v28, 0.0 }
0x1617   : > { %4329 = vadd.xlane.f32.xlu0 %v4328_v29  ;;  %v4337_v32 = vmul.f32 %v6360_v18, %v6356_v33 }
0x1619   : > { %6159 = vmatmul.mubr.msk.f32.vlgmr.msra.gmra.mxu1 %vm1415_vm3, %v4337_v32  ;;  %v7120_v34 = vadd.f32 %v4337_v32, %v4155_v30 }
0x161a   : > { %6167 = vmatpush3.xpose.msk.msra.mxu1 %vm1415_vm3, %v4578_v39  ;;  %6168 = vmatprep.mubr.msk.f32.mxu1 %vm6481_vm2, %v6480_v36 }
0x161b   : > { %6176 = vmatprep.subr.mxu1 %v6480_v36 }
0x162d   : > { %4338 = vrot.lane.b32.xlu0 %v6972_v31, %s6488_s26 }
0x1631   : > { %4575 = vrot.lane.b32.xlu0 %v6985_v35, %s6492_s7 }
0x16a0   : > { %v4330_v10 = vpop.xlane.xlu0 %4329 }
0x16a1   : > { %6361 = vrcp.f32 %v4330_v10 }
0x16a4   : > { %v4339_v41 = vpop.permute.xlu0 %4338 }
0x16a5   : > { %6152 = vmatpush3.msra.mxu0 %v4339_v41 }
0x16a6   : > { %6161 = vmatprep.subr.mxu0 %v3315_v47 }
0x16a8   : > { %v4576_v37 = vpop.permute.xlu0 %4575 }
0x16a9   : > { %6169 = vmatmul.mubr.msk.f32.vlgmr.msra.gmra.mxu1 %vm1415_vm3, %v4576_v37 }
0x16aa   : > { %6178 = vmatprep.mubr.msk.f32.mxu1 %vm6481_vm2, %v6480_v36 }
0x16ae   : > { %v6362_v38 = vpop.eup %6361 }
0x16af   : > { %v4335_v43 = vmul.f32 %v6362_v38, %v6358_v28  ;;  %v5802_v28 = vld [vmem:[%s1155_s18] ss:$0 sm:$0xff] }
0x16b1   : > { %6154 = vmatmul.mubr.msk.f32.vlgmr.msra.gmra.mxu0 %vm1415_vm3, %v4335_v43  ;;  %v4573_v44 = vadd.f32 %v4335_v43, %v4154_v40 }
0x16b2   : > { %6162 = vmatpush3.msra.mxu0 %v3315_v47 }
0x16b3   : > { %6171 = vmatprep.subr.mxu0 %v6480_v36 }
0x16d9   : > { %v4486_v46 = vpop.f32.mrf.mxu1 }
0x16db   : > { %v6160_v35 = vpop.f32.mrf.mxu1 }
0x1769   : > { %v4649_v49 = vpop.f32.mrf.mxu1 }
0x176a   : > { %v4731_v52 = vmul.f32 0.35355338, %v4649_v49 }
0x176b   : > { %v6170_v53 = vpop.f32.mrf.mxu1 }
0x176c   : > { %v4733_v55 = vadd.f32 %v4731_v52, %v7002_v45  ;;  %v5051_v53 = vld [vmem:[%s6706_s3 + $0x18] sm:$0xff] }
0x176e   : > { %v4735_v56 = vsel %vm1415_vm3, %v4733_v55, -inf }
0x176f   : > { %4736 = vmax.xlane.f32.xlu0 %v4735_v56  ;;  %v5049_v56 = vld [vmem:[%s6706_s3 + $0x8] sm:$0xff] }
0x1771   : > { %v4410_v51 = vpop.f32.mrf.mxu0 }
0x1772   : > { %6163 = vmatprep.mubr.msk.f32.mxu0 %vm1415_vm3, %v4410_v51  ;;  %v5149_v51 = vld [vmem:[%s6712_s13 + $0x38] sm:$0xff] }
0x1773   : > { %v6155_v3 = vpop.f32.mrf.mxu0  ;;  %6164 = vmatmul.mubr.msk.f32.vlgmr.msra.gmra.mxu0 %vm1415_vm3, %v4486_v46 }
0x1774   : > { %6172 = vmatpush3.xpose.msk.msra.mxu0 %vm1415_vm3, %v4656_v12  ;;  %6173 = vmatprep.mubr.msk.f32.mxu0 %vm6481_vm2, %v6480_v36  ;;  %v5048_v12 = vld [vmem:[%s6706_s3] sm:$0xff]  ;;  %v5148_v3 = vld [vmem:[%s6712_s13 + $0x30] sm:$0xff] }
0x1775   : > { %6181 = vmatprep.subr.mxu0 %v6480_v36 }
0x1777   : > { %6174 = vmatmul.mubr.msk.f32.vlgmr.msra.gmra.mxu0 %vm1415_vm3, %v4654_v57  ;;  %v5147_v57 = vld [vmem:[%s6712_s13 + $0x28] sm:$0xff] }
0x1778   : > { %6183 = vmatprep.mubr.msk.f32.mxu0 %vm6481_vm2, %v6480_v36 }
0x17f8   : > { %v4737_v45 = vpop.xlane.xlu0 %4736 }
0x17f9   : > { %v4741_v2 = vsub.f32 %v4733_v55, %v4737_v45  ;;  %v5050_v55 = vld [vmem:[%s6706_s3 + $0x10] sm:$0xff]  ;;  %v5146_v45 = vld [vmem:[%s6712_s13 + $0x20] sm:$0xff] }
0x17fb   : > { %v4743_v58 = vmul.f32 1.442695, %v4741_v2 }
0x17fd   : > { %6363 = vpow2.f32 %v4743_v58 }
0x180a   : > { %v6364_v54 = vpop.eup %6363 }
0x180b   : > { %v4747_v60 = vsel %vm1415_vm3, %v6364_v54, 0.0 }
0x180c   : > { %4748 = vadd.xlane.f32.xlu0 %v4747_v60 }
0x1833   : > { %v6165_v0 = vpop.f32.mrf.mxu0 }
0x1834   : > { %v4572_v5 = vadd.f32 %v6165_v0, %v4151_v61 }
0x1835   : > { %v4562_v6 = vpop.f32.mrf.mxu0 }
0x1836   : > { %v4571_v7 = vadd.f32 %v4562_v6, %v4146_v4 }
0x1837   : > { %v4727_v8 = vpop.f32.mrf.mxu0 }
0x1838   : > { %v4732_v36 = vmul.f32 0.35355338, %v4727_v8 }
0x1839   : > { %v6175_v62 = vpop.f32.mrf.mxu0 }
0x183a   : > { %v4734_v9 = vadd.f32 %v4732_v36, %v6999_v42  ;;  %v5804_v62 = vld [vmem:[%s1173_s1] ss:$0 sm:$0xff] }
0x183c   : > { %v4738_v11 = vsel %vm1415_vm3, %v4734_v9, -inf }
0x183d   : > { %4739 = vmax.xlane.f32.xlu1 %v4738_v11 }
0x184e   : > { %4833 = vrot.lane.b32.xlu1 %v6970_v59, %s6491_s21 }
0x1895   : > { %v4749_v13 = vpop.xlane.xlu0 %4748 }
0x1896   : > { %6365 = vrcp.f32 %v4749_v13 }
0x18a3   : > { %v6366_v63 = vpop.eup %6365 }
0x18a4   : > { %v4754_v14 = vmul.f32 %v6366_v63, %v6364_v54  ;;  %v5145_v63 = vld [vmem:[%s6712_s13 + $0x18] sm:$0xff] }
0x18a6   : > { %v7158_v15 = vadd.f32 %v4754_v14, %v4573_v44 }
0x18c6   : > { %v4740_v1 = vpop.xlane.xlu1 %4739 }
0x18c7   : > { %v4742_v17 = vsub.f32 %v4734_v9, %v4740_v1  ;;  %v5143_v1 = vld [vmem:[%s6712_s13 + $0x8] sm:$0xff] }
0x18c9   : > { %v4745_v19 = vmul.f32 1.442695, %v4742_v17  ;;  %v5142_v17 = vld [vmem:[%s6712_s13] sm:$0xff] }
0x18ca   : > { %v4834_v20 = vpop.permute.xlu1 %4833 }
0x18cb   : > { %6367 = vpow2.f32 %v4745_v19  ;;  %6182 = vmatpush3.msra.mxu0 %v4834_v20  ;;  %v5805_v19 = vld [vmem:[%s1181_s8] ss:$0 sm:$0xff] }
0x18cc   : > { %6191 = vmatprep.subr.mxu0 %v5051_v53 }
0x18d8   : > { %v6368_v42 = vpop.eup %6367 }
0x18d9   : > { %v4750_v21 = vsel %vm1415_vm3, %v6368_v42, 0.0 }
0x18da   : > { %4751 = vadd.xlane.f32.xlu0 %v4750_v21 }
0x18f0   : > { %4757 = vrot.lane.b32.xlu0 %v6972_v31, %s6491_s21 }
0x1963   : > { %v4752_v59 = vpop.xlane.xlu0 %4751 }
0x1964   : > { %6369 = vrcp.f32 %v4752_v59 }
0x1967   : > { %v4758_v22 = vpop.permute.xlu0 %4757 }
0x1968   : > { %6177 = vmatpush3.msra.mxu1 %v4758_v22 }
0x1969   : > { %6179 = vmatmul.mubr.msk.f32.vlgmr.msra.gmra.mxu1 %vm1415_vm3, %v4754_v14  ;;  %6186 = vmatprep.subr.mxu1 %v3316_v25  ;;  %v5144_v14 = vld [vmem:[%s6712_s13 + $0x10] sm:$0xff]  ;;  %s7328_s13 = sld [smem:[#allocation33_spill]] }
0x196a   : > { %6187 = vmatpush3.msra.mxu1 %v3316_v25  ;;  %v5810_v25 = vld [vmem:[%s1189_s14] ss:$0 sm:$0xff] }
0x196b   : > { %6202 = vmatprep.subr.mxu1 %v5149_v51 }
0x196f   : > { %p5811_p5 = scmp.ne.s32.totalorder %s7328_s13, 1 }
0x1970   : > { %s7329_s8 = sld [smem:[#allocation28_spill]] (!%p5811_p5) }
0x1971   : > { %v6370_v23 = vpop.eup %6369  ;;  %s7330_s14 = sld [smem:[#allocation26_spill]] (!%p5811_p5) }
0x1972   : > { %v4756_v33 = vmul.f32 %v6370_v23, %v6368_v42  ;;  %s7331_s0 = sld [smem:[#allocation27_spill]] (!%p5811_p5) }
0x1973   : > { %s7332_s1 = sld [smem:[#allocation29_spill]] (!%p5811_p5) }
0x1974   : > { %6184 = vmatmul.mubr.msk.f32.vlgmr.msra.gmra.mxu0 %vm1415_vm3, %v4756_v33  ;;  %v7166_v24 = vadd.f32 %v4756_v33, %v7120_v34 }
0x1975   : > { %6192 = vmatpush3.msra.mxu0 %v5051_v53 }
0x1976   : > { %6193 = vmatprep.subr.mxu0 %v5050_v55 }
0x1977   : > { %6194 = vmatpush3.msra.mxu0 %v5050_v55 }
0x1978   : > { %6195 = vmatprep.subr.mxu0 %v5049_v56 }
0x1979   : > { %6196 = vmatpush3.msra.mxu0 %v5049_v56 }
0x197a   : > { %6197 = vmatprep.subr.mxu0 %v5048_v12 }
0x197b   : > { %6198 = vmatpush3.msra.mxu0 %v5048_v12 }
0x1a29   : > { %v4829_v26 = vpop.f32.mrf.mxu1 }
0x1a2a   : > { %6188 = vmatprep.mubr.msk.f32.mxu1 %vm1415_vm3, %v4829_v26 }
0x1a2b   : > { %v6180_v31 = vpop.f32.mrf.mxu1 }
0x1a34   : > { %v4905_v16 = vpop.f32.mrf.mxu0 }
0x1a35   : > { %6189 = vmatmul.mubr.msk.f32.vlgmr.msra.gmra.mxu1 %vm1415_vm3, %v4905_v16 }
0x1a36   : > { %v6185_v27 = vpop.f32.mrf.mxu0  ;;  %6203 = vmatpush3.msra.mxu1 %v5149_v51 }
0x1a37   : > { %6204 = vmatprep.subr.mxu1 %v5148_v3 }
0x1a38   : > { %6205 = vmatpush3.msra.mxu1 %v5148_v3 }
0x1a39   : > { %6206 = vmatprep.subr.mxu1 %v5147_v57 }
0x1a3a   : > { %6207 = vmatpush3.msra.mxu1 %v5147_v57 }
0x1a3b   : > { %6208 = vmatprep.subr.mxu1 %v5146_v45 }
0x1a3c   : > { %6209 = vmatpush3.msra.mxu1 %v5146_v45 }
0x1a3d   : > { %6210 = vmatprep.subr.mxu1 %v5145_v63 }
0x1a3e   : > { %6211 = vmatpush3.msra.mxu1 %v5145_v63 }
0x1a3f   : > { %6212 = vmatprep.subr.mxu1 %v5144_v14 }
0x1a40   : > { %6213 = vmatpush3.msra.mxu1 %v5144_v14 }
0x1a41   : > { %6214 = vmatprep.subr.mxu1 %v5143_v1 }
0x1a42   : > { %6215 = vmatpush3.msra.mxu1 %v5143_v1 }
0x1a43   : > { %6216 = vmatprep.subr.mxu1 %v5142_v17 }
0x1a44   : > { %6217 = vmatpush3.msra.mxu1 %v5142_v17 }
0x1af5   : > { %v6190_v18 = vpop.f32.mrf.mxu1 }
0x1af6   : > { %v4991_v29 = vadd.f32 %v6190_v18, %v4572_v5  ;;  %v5803_v5 = vld [vmem:[%s1170_s28] ss:$0 sm:$0xff] }
0x1af7   : > { %v4981_v30 = vpop.f32.mrf.mxu1 }
0x1af8   : > { %v5001_v32 = vadd.f32 %v5802_v28, %v4991_v29  ;;  %v4990_v39 = vadd.f32 %v4981_v30, %v4571_v7 }
0x1afa   : > { %v7175_v34 = vadd.f32 %v5001_v32, %v6928_v48  ;;  %v5000_v10 = vadd.f32 %v5802_v28, %v4990_v39 }
0x1afc   : > { %v7178_v41 = vadd.f32 %v5000_v10, %v6931_v50  ;;  %v5009_v37 = vsel %vm1271_vm1, %v7175_v34, 0.0 }
0x1afd   : > { %5010 = vadd.xlane.f32.xlu0 %v5009_v37 }
0x1afe   : > { %v5006_v38 = vsel %vm1271_vm1, %v7178_v41, 0.0 }
0x1aff   : > { %5007 = vadd.xlane.f32.xlu1 %v5006_v38 }
0x1b86   : > { %v5011_v40 = vpop.xlane.xlu0 %5010 }
0x1b87   : > { %v5013_v43 = vmul.f32 0.03125, %v5011_v40 }
0x1b88   : > { %v5008_v44 = vpop.xlane.xlu1 %5007 }
0x1b89   : > { %v5015_v48 = vsub.f32 %v7175_v34, %v5013_v43  ;;  %v5012_v46 = vmul.f32 0.03125, %v5008_v44 }
0x1b8b   : > { %v5014_v50 = vsub.f32 %v7178_v41, %v5012_v46  ;;  %v5017_v35 = vmul.f32 %v5015_v48, %v5015_v48 }
0x1b8d   : > { %v5021_v47 = vsel %vm1271_vm1, %v5017_v35, 0.0  ;;  %v5016_v49 = vmul.f32 %v5014_v50, %v5014_v50 }
0x1b8e   : > { %5022 = vadd.xlane.f32.xlu1 %v5021_v47 }
0x1b8f   : > { %v5018_v52 = vsel %vm1271_vm1, %v5016_v49, 0.0 }
0x1b90   : > { %5019 = vadd.xlane.f32.xlu0 %v5018_v52 }
0x1c17   : > { %v5023_v2 = vpop.xlane.xlu1 %5022 }
0x1c18   : > { %v5025_v58 = vmul.f32 0.03125, %v5023_v2 }
0x1c19   : > { %v5020_v54 = vpop.xlane.xlu0 %5019 }
0x1c1a   : > { %v5027_v60 = vadd.f32 1e-05, %v5025_v58  ;;  %v5024_v61 = vmul.f32 0.03125, %v5020_v54 }
0x1c1c   : > { %6371 = vrsqrt.f32 %v5027_v60  ;;  %v5026_v0 = vadd.f32 1e-05, %v5024_v61 }
0x1c1e   : > { %6373 = vrsqrt.f32 %v5026_v0 }
0x1c29   : > { %v6372_v4 = vpop.eup %6371 }
0x1c2a   : > { %v5031_v6 = vmul.f32 %v6372_v4, %v5015_v48 }
0x1c2b   : > { %v6374_v7 = vpop.eup %6373 }
0x1c2c   : > { %v5030_v8 = vmul.f32 %v6374_v7, %v5014_v50  ;;  %v5039_v36 = vmul.f32 %v5803_v5, %v5031_v6 }
0x1c2e   : > { %v5038_v9 = vmul.f32 %v5803_v5, %v5030_v8  ;;  %v5047_v13 = vadd.f32 %v5804_v62, %v5039_v36 }
0x1c30   : > { %v5046_v11 = vadd.f32 %v5804_v62, %v5038_v9 }
0x1c32   : > { %6199 = vmatprep.mubr.msk.f32.mxu0 %vm1271_vm1, %v5046_v11 }
0x1c33   : > { %6200 = vmatmul.mubr.msk.f32.vlgmr.msra.gmra.mxu0 %vm1271_vm1, %v5047_v13 }
0x1cf3   : > { %v6201_v20 = vpop.f32.mrf.mxu0 }
0x1cf4   : > { %v5137_v42 = vadd.f32 %v6201_v20, %v5805_v19 }
0x1cf5   : > { %v5131_v21 = vpop.f32.mrf.mxu0 }
0x1cf6   : > { %v5132_v59 = vadd.f32 %v5805_v19, %v5131_v21  ;;  %v5141_v23 = vmax.f32 %v5137_v42, 0.0 }
0x1cf8   : > { %v5140_v22 = vmax.f32 %v5132_v59, 0.0 }
0x1cfa   : > { %6218 = vmatprep.mubr.msk.f32.mxu1 %vm5150_vm5, %v5140_v22 }
0x1cfb   : > { %6219 = vmatmul.mubr.msk.f32.vlgmr.msra.gmra.mxu1 %vm5150_vm5, %v5141_v23 }
0x1dbb   : > { %v6220_v33 = vpop.f32.mrf.mxu1 }
0x1dbc   : > { %v5233_v26 = vadd.f32 %v6220_v33, %v7175_v34 }
0x1dbd   : > { %v5223_v31 = vpop.f32.mrf.mxu1 }
0x1dbe   : > { %v5242_v16 = vadd.f32 %v5810_v25, %v5233_v26  ;;  %v5232_v27 = vadd.f32 %v5223_v31, %v7178_v41  ;;  %5248 = sbr.rel (%p5811_p5) target bundleno = 8443 (0x20fb), region = 140 }
0x1dc0   : > { %5244 = vst.msk [vmem:[#allocation2 + $0x8] sm:$0xff] %vm1271_vm1, %v5242_v16  ;;  %v5241_v28 = vadd.f32 %v5810_v25, %v5232_v27 }
0x1dc2   : > { %5243 = vst.msk [vmem:[#allocation2] sm:$0xff] %vm1271_vm1, %v5241_v28 }
0x1dc3   : > { %v5251_v18 = vsel %vm1271_vm1, %v5241_v28, 0.0  ;;  %v5254_v29 = vsel %vm1271_vm1, %v5242_v16, 0.0  ;;  %v5296_v44 = vld [vmem:[%s7329_s8 + $0x18] sm:$0xff]  ;;  %v5295_v48 = vld [vmem:[%s7329_s8 + $0x10] sm:$0xff]  ;;  %v5294_v46 = vld [vmem:[%s7329_s8 + $0x8] sm:$0xff]  ;;  %v5409_v14 = vmul.f32 0.25, %v7158_v15 }
0x1dc4   : > { %5252 = vadd.xlane.f32.xlu0 %v5251_v18  ;;  %6221 = vmatprep.subr.mxu0 %v5296_v44  ;;  %v5293_v50 = vld [vmem:[%s7329_s8] sm:$0xff]  ;;  %v5410_v1 = vmul.f32 0.25, %v7166_v24 }
0x1dc5   : > { %6222 = vmatpush3.msra.mxu0 %v5296_v44  ;;  %v5812_v12 = vld [vmem:[%s7330_s14] ss:$0 sm:$0xff]  ;;  %5411 = vst.msk [vmem:[#allocation5] sm:$0xff] %vm1415_vm3, %v5409_v14 }
0x1dc6   : > { %6223 = vmatprep.subr.mxu0 %v5295_v48  ;;  %v5813_v3 = vld [vmem:[%s7331_s0] ss:$0 sm:$0xff]  ;;  %5412 = vst.msk [vmem:[#allocation5 + $0x8] sm:$0xff] %vm1415_vm3, %v5410_v1 }
0x1dc7   : > { %6224 = vmatpush3.msra.mxu0 %v5295_v48  ;;  %v5814_v61 = vld [vmem:[%s7332_s1] ss:$0 sm:$0xff] }
0x1dc8   : > { %5255 = vadd.xlane.f32.xlu0 %v5254_v29  ;;  %6225 = vmatprep.subr.mxu0 %v5294_v46 }
0x1dc9   : > { %6226 = vmatpush3.msra.mxu0 %v5294_v46 }
0x1dca   : > { %6227 = vmatprep.subr.mxu0 %v5293_v50 }
0x1dcb   : > { %6228 = vmatpush3.msra.mxu0 %v5293_v50 }
0x1e4d   : > { %v5253_v30 = vpop.xlane.xlu0 %5252 }
0x1e4e   : > { %v5257_v32 = vmul.f32 0.03125, %v5253_v30 }
0x1e50   : > { %v5259_v39 = vsub.f32 %v5241_v28, %v5257_v32 }
0x1e51   : > { %v5256_v34 = vpop.xlane.xlu0 %5255 }
0x1e52   : > { %v5258_v10 = vmul.f32 0.03125, %v5256_v34  ;;  %v5261_v41 = vmul.f32 %v5259_v39, %v5259_v39 }
0x1e54   : > { %v5260_v37 = vsub.f32 %v5242_v16, %v5258_v10  ;;  %v5263_v38 = vsel %vm1271_vm1, %v5261_v41, 0.0 }
0x1e55   : > { %5264 = vadd.xlane.f32.xlu1 %v5263_v38 }
0x1e56   : > { %v5262_v40 = vmul.f32 %v5260_v37, %v5260_v37 }
0x1e58   : > { %v5266_v43 = vsel %vm1271_vm1, %v5262_v40, 0.0 }
0x1e59   : > { %5267 = vadd.xlane.f32.xlu1 %v5266_v43 }
0x1ede   : > { %v5265_v35 = vpop.xlane.xlu1 %5264 }
0x1edf   : > { %v5269_v47 = vmul.f32 0.03125, %v5265_v35 }
0x1ee1   : > { %v5271_v49 = vadd.f32 1e-05, %v5269_v47 }
0x1ee2   : > { %v5268_v52 = vpop.xlane.xlu1 %5267 }
0x1ee3   : > { %6375 = vrsqrt.f32 %v5271_v49  ;;  %v5270_v53 = vmul.f32 0.03125, %v5268_v52 }
0x1ee5   : > { %v5272_v55 = vadd.f32 1e-05, %v5270_v53 }
0x1ee7   : > { %6377 = vrsqrt.f32 %v5272_v55 }
0x1ef0   : > { %v6376_v56 = vpop.eup %6375 }
0x1ef1   : > { %v5275_v51 = vmul.f32 %v6376_v56, %v5259_v39 }
0x1ef3   : > { %v5283_v57 = vmul.f32 %v5812_v12, %v5275_v51 }
0x1ef4   : > { %v6378_v45 = vpop.eup %6377 }
0x1ef5   : > { %v5276_v2 = vmul.f32 %v6378_v45, %v5260_v37  ;;  %v5291_v58 = vadd.f32 %v5813_v3, %v5283_v57 }
0x1ef7   : > { %v5284_v54 = vmul.f32 %v5812_v12, %v5276_v2  ;;  %6229 = vmatprep.mubr.msk.f32.mxu0 %vm1271_vm1, %v5291_v58 }
0x1ef9   : > { %v5292_v60 = vadd.f32 %v5813_v3, %v5284_v54 }
0x1efb   : > { %6230 = vmatmul.mubr.msk.f32.vlgmr.msra.gmra.mxu0 %vm1271_vm1, %v5292_v60 }
0x1fbb   : > { %v6231_v0 = vpop.f32.mrf.mxu0 }
0x1fbc   : > { %v5382_v4 = vadd.f32 %v6231_v0, %v5814_v61 }
0x1fbd   : > { %v5376_v5 = vpop.f32.mrf.mxu0 }
0x1fbe   : > { %v5377_v6 = vadd.f32 %v5814_v61, %v5376_v5  ;;  %5387 = vmax.xlane.f32.xlu1 %v5382_v4 }
0x1fc0   : > { %5385 = vmax.xlane.f32.xlu0 %v5377_v6 }
0x2047   : > { %v5388_v7 = vpop.xlane.xlu1 %5387 }
0x2048   : > { %v5390_v8 = vsub.f32 %v5382_v4, %v5388_v7 }
0x2049   : > { %v5386_v36 = vpop.xlane.xlu0 %5385 }
0x204a   : > { %v5393_v62 = vmul.f32 1.442695, %v5390_v8  ;;  %v5389_v9 = vsub.f32 %v5377_v6, %v5386_v36 }
0x204c   : > { %6379 = vpow2.f32 %v5393_v62  ;;  %v5391_v11 = vmul.f32 1.442695, %v5389_v9 }
0x204e   : > { %6381 = vpow2.f32 %v5391_v11 }
0x2059   : > { %v6380_v13 = vpop.eup %6379 }
0x205a   : > { %5397 = vadd.xlane.f32.xlu1 %v6380_v13 }
0x205b   : > { %v6382_v63 = vpop.eup %6381 }
0x205c   : > { %5395 = vadd.xlane.f32.xlu0 %v6382_v63 }
0x20e3   : > { %v5398_v17 = vpop.xlane.xlu1 %5397 }
0x20e4   : > { %6383 = vlog2.f32 %v5398_v17 }
0x20e5   : > { %v5396_v19 = vpop.xlane.xlu0 %5395 }
0x20e6   : > { %6385 = vlog2.f32 %v5396_v19 }
0x20f1   : > { %v6384_v20 = vpop.eup %6383 }
0x20f2   : > { %v5402_v42 = vmul.f32 0.6931472, %v6384_v20 }
0x20f3   : > { %v6386_v21 = vpop.eup %6385 }
0x20f4   : > { %v5404_v59 = vadd.f32 %v5402_v42, %v5388_v7  ;;  %v5400_v22 = vmul.f32 0.6931472, %v6386_v21 }
0x20f6   : > { %v5406_v23 = vsub.f32 %v5382_v4, %v5404_v59  ;;  %v5403_v33 = vadd.f32 %v5400_v22, %v5386_v36 }
0x20f8   : > { %5408 = vst [vmem:[#allocation3 + $0x8] sm:$0xff] %v5406_v23  ;;  %v5405_v25 = vsub.f32 %v5377_v6, %v5403_v33 }
0x20fa   : > { %5407 = vst [vmem:[#allocation3] sm:$0xff] %v5405_v25 }
0x20fb PF: > { %s7333_s25 = sld [smem:[#allocation33_spill]]  ;;  %s6494_s15 = smov [#allocation3]  }
0x20fc   : > { %s5419_s16 = sshll.u32 %s6494_s15, 4  ;;  %s5420_s16 = int_to_ptr.vmem [resolvable:$true] %s5419_s16 }
0x20fd   : > { %s6387_s26 = scalar_lea.vmem %s5420_s16, 256  ;;  %p6394_p10 = scmp.lt.s32.totalorder %s5420_s16, %s5420_s16 }
0x20fe   : > { %p6388_p7 = scmp.ne.s32.totalorder %s5420_s16, %s6387_s26  ;;  %p6395_p11 = scmp.lt.s32.totalorder %s6387_s26, %s6387_s26 }
0x2100   : > { %p6396_p12 = por %p6395_p11, %p6394_p10 }
0x2101   : > { %p6240_p6 = scmp.eq.s32.totalorder %s7333_s25, 1 }
0x2103   : > { %p6389_p8 = pnand %p6388_p7, %p6240_p6 }
0x2105   : > { %p6390_p9 = pneg %p6389_p8 }
0x2107   : > { %p6397_p13 = pnand %p6396_p12, %p6390_p9 }
0x2109   : > { %6400 = shalt.err (!%p6397_p13)
}
0x210a   : > { %s6495_s2 = smov 128   ;;  %s7334_s21 = sld [smem:[#allocation30_spill]] }
0x210b   : > { %s6496_s7 = smov 8   ;;  %s6497_s19 = smov [#allocation5]  }
0x210c   : > { %s5432_s5 = sshll.u32 %s6497_s19, 4  ;;  %s5433_s5 = int_to_ptr.vmem [resolvable:$true] %s5432_s5 }
0x210d   : > { %s6411_s9 = scalar_lea.vmem %s5433_s5, 256  ;;  %p6418_p3 = scmp.lt.s32.totalorder %s5433_s5, %s5433_s5 }
0x210e   : > { %p6412_p0 = scmp.ne.s32.totalorder %s5433_s5, %s6411_s9  ;;  %p6419_p4 = scmp.lt.s32.totalorder %s6411_s9, %s6411_s9 }
0x2110   : > { %6233 = dma.vmem_to_hbm [thread:$0]  (%p6240_p6), %s5420_s16, 256, %s7334_s21, [#allocation4], %s6495_s2, %s6495_s2, %s6496_s7  }
0x2111   : > { %p6413_p1 = pnand %p6412_p0, %p6240_p6  ;;  %p6420_p5 = por %p6419_p4, %p6418_p3 }
0x2113   : > { %p6414_p2 = pneg %p6413_p1 }
0x2115   : > { %p6421_p7 = pnand %p6420_p5, %p6414_p2 }
0x2117   : > { %6424 = shalt.err (!%p6421_p7)
}
0x2118   : > { %s7335_s22 = sld [smem:[#allocation31_spill]] }
0x211e   : > { %6235 = dma.vmem_to_hbm [thread:$0]  (%p6240_p6), %s5433_s5, 256, %s7335_s22, [#allocation6], %s6495_s2, %s6495_s2, %s6496_s7  }
0x211f   : > { %6440 = dma.done.wait (%p6240_p6), [#allocation4], 256  }
0x2120   : > { %6442 = vsyncadd (%p6240_p6), [#allocation4], 4294967040 }
0x2121   : > { %6444 = dma.done.wait (%p6240_p6), [#allocation6], 256  }
0x2122   : > { %6446 = vsyncadd (%p6240_p6), [#allocation6], 4294967040 }
0x2123 PF: > { %s7336_s23 = sld [smem:[#allocation32_spill]] }
0x2129   : > { %s72_s7 = sadd.s32 1, %s7336_s23  }
0x212a   : > { %p69_p8 = scmp.ge.s32.totalorder %s72_s7, 4  }
0x212c   :  { %71 = sbr.rel (!%p69_p8) target bundleno = 62 (0x3e), region = 261 }
0x2131   :  { %5452 = vsyncpa [#allocation4], 1 }
0x2132   :  { %5454 = vsyncpa [#allocation4 + $0x1], 1 }
0x2133   :  { %5455 = vsyncpa [#allocation6], 1 }

</bundles_post_ra>
